<compile_context>
chip_gen: v6e
topology: v6e:2x2x1
jax: 0.10.0
libtpu: 0.0.40
codegen_flags: <defaults>
</compile_context>

<pallas_src>
import functools

import numpy as np
import jax
import jax.numpy as jnp
from jax import lax
from jax.experimental import pallas as pl
from jax.experimental.pallas import tpu as pltpu

EPS = 1e-5


# ----------------------------------------------------------------------------
# Pallas kernel: K height-taps of (M x cin_blk) @ (cin_blk x cout_blk) matmuls
# with the kw taps pre-folded into cin, + affine (BN) + activation epilogue.
# ----------------------------------------------------------------------------
def _conv_bn_act_kernel(x_ref, w_ref, scale_ref, bias_ref, ps_ref, pb_ref,
                        o_ref, acc_ref, *, K, th, Wo, act, n_ci, n_h):
    # grid = (n_h, n_cout_blocks, n_cin_blocks); last axis is the reduction.
    # x_ref : (N, Hp, Wo, cin_blk) bf16   (width-im2col'ed input, full spatial)
    # w_ref : (K, cin_blk, cout_blk) bf16 (kh-indexed weight slabs)
    # o_ref : (N, th, Wo, cout_blk)       (one output row-block)
    ci = pl.program_id(2)
    N = x_ref.shape[0]
    cin_blk = x_ref.shape[3]
    cout_blk = o_ref.shape[3]
    M = N * th * Wo

    def taps(acc):
        if n_h > 1:
            base = pl.multiple_of(pl.program_id(0) * th, th)
        for kh in range(K):
            if n_h > 1:
                patch = x_ref[:, pl.ds(base + kh, th), :, :]
            else:
                patch = x_ref[:, kh:kh + th, :, :]
            acc = acc + jnp.dot(patch.reshape(M, cin_blk), w_ref[kh],
                                preferred_element_type=jnp.float32)
        return acc

    def epilogue(acc):
        y = acc * scale_ref[0] + bias_ref[0]      # folded conv-bias + BN
        if act == "relu":
            y = jnp.maximum(y, 0.0)
        elif act == "sigmoid":
            y = jax.nn.sigmoid(y)
        y = y * ps_ref[0] + pb_ref[0]             # optional post affine (BN5)
        o_ref[...] = y.reshape(N, th, Wo, cout_blk).astype(o_ref.dtype)

    if n_ci == 1:
        # Single reduction step: accumulate entirely in registers.
        epilogue(taps(jnp.zeros((M, cout_blk), jnp.float32)))
    else:
        @pl.when(ci == 0)
        def _():
            acc_ref[...] = jnp.zeros_like(acc_ref)

        acc = taps(acc_ref[...])                  # one scratch read / step

        @pl.when(ci < n_ci - 1)
        def _():
            acc_ref[...] = acc                    # one scratch write / step

        @pl.when(ci == n_ci - 1)
        def _():
            epilogue(acc)


# ----------------------------------------------------------------------------
# Wrapper: width im2col, bf16 cast, 128-lane Cout padding, block selection.
# ----------------------------------------------------------------------------
def _pick_block(dim, cap):
    """Largest divisor of `dim` that is <= cap and a multiple of 128
    (or `dim` itself if dim <= cap / no such divisor)."""
    if dim <= cap:
        return dim
    b = (cap // 128) * 128
    while b > 0:
        if dim % b == 0:
            return b
        b -= 128
    return dim


def _pad_last(a, target, value):
    pad = target - a.shape[-1]
    if pad == 0:
        return a
    return jnp.pad(a, [(0, 0)] * (a.ndim - 1) + [(0, pad)],
                   constant_values=value)


def pallas_conv_bn_act(x_pad, w_hwio, scale, bias, post_scale, post_bias, *,
                       K, Ho, Wo, act, out_dtype=jnp.bfloat16,
                       max_cin=2048, max_cout=512):
    """x_pad: (N, Hp, Wp, Cin) already dilated+padded (any float dtype);
    w_hwio: (K, K, Cin, Cout) spatially-flipped equivalent forward-conv weight."""
    N, Hp, Wp, Cin = x_pad.shape
    Cout = w_hwio.shape[-1]
    Cout_p = ((Cout + 127) // 128) * 128          # lane-dense output columns
    D = K * Cin                                   # kw folded into contraction

    # Width-direction im2col: x_wcat[n,h,w, kw*Cin+c] = x_pad[n,h,w+kw,c].
    x_wcat = jnp.concatenate(
        [lax.slice_in_dim(x_pad, kw, kw + Wo, axis=2) for kw in range(K)],
        axis=-1).astype(jnp.bfloat16)             # (N, Hp, Wo, K*Cin)

    w_mat = _pad_last(w_hwio.astype(jnp.bfloat16).reshape(K, D, Cout),
                      Cout_p, 0.0)                # (K, K*Cin, Cout_p)
    scale2 = _pad_last(scale.reshape(1, Cout).astype(jnp.float32), Cout_p, 1.0)
    bias2 = _pad_last(bias.reshape(1, Cout).astype(jnp.float32), Cout_p, 0.0)
    ps2 = _pad_last(post_scale.reshape(1, Cout).astype(jnp.float32), Cout_p, 1.0)
    pb2 = _pad_last(post_bias.reshape(1, Cout).astype(jnp.float32), Cout_p, 0.0)

    cin_blk = _pick_block(D, max_cin)
    cout_blk = _pick_block(Cout_p, max_cout)
    n_ci = D // cin_blk
    n_co = Cout_p // cout_blk

    # 2-way output-row split when the channel grid collapses (keeps a parallel
    # axis >= 2 for megacore); weights/input index maps are constant over it,
    # so nothing gets re-streamed from HBM.
    if n_ci == 1 and n_co == 1 and Ho % 2 == 0:
        th = Ho // 2
    else:
        th = Ho
    n_h = Ho // th

    M = N * th * Wo
    acc_shape = (M, cout_blk) if n_ci > 1 else (8, 128)   # dummy if unused

    kernel = functools.partial(_conv_bn_act_kernel, K=K, th=th, Wo=Wo,
                               act=act, n_ci=n_ci, n_h=n_h)

    out = pl.pallas_call(
        kernel,
        out_shape=jax.ShapeDtypeStruct((N, Ho, Wo, Cout_p), out_dtype),
        grid_spec=pltpu.PrefetchScalarGridSpec(
            num_scalar_prefetch=0,
            grid=(n_h, n_co, n_ci),
            in_specs=[
                pl.BlockSpec((N, Hp, Wo, cin_blk),
                             lambda h, co, ci: (0, 0, 0, ci)),
                pl.BlockSpec((K, cin_blk, cout_blk),
                             lambda h, co, ci: (0, ci, co)),
                pl.BlockSpec((1, cout_blk), lambda h, co, ci: (0, co)),
                pl.BlockSpec((1, cout_blk), lambda h, co, ci: (0, co)),
                pl.BlockSpec((1, cout_blk), lambda h, co, ci: (0, co)),
                pl.BlockSpec((1, cout_blk), lambda h, co, ci: (0, co)),
            ],
            out_specs=pl.BlockSpec((N, th, Wo, cout_blk),
                                   lambda h, co, ci: (0, h, 0, co)),
            scratch_shapes=[pltpu.VMEM(acc_shape, jnp.float32)],
        ),
        compiler_params=pltpu.CompilerParams(
            dimension_semantics=("parallel", "parallel", "arbitrary"),
            # Peak need is ~28 MiB (L5); leave headroom on v7x's 64 MiB VMEM.
            vmem_limit_bytes=40 << 20,
        ),
    )(x_wcat, w_mat, scale2, bias2, ps2, pb2)

    return out[..., :Cout]


# ----------------------------------------------------------------------------
# Pure-JAX reference for the same fused op (identical bf16 quantization)
# ----------------------------------------------------------------------------
def ref_conv_bn_act(x_pad, w_hwio, scale, bias, post_scale, post_bias, *,
                    K, Ho, Wo, act, out_dtype=jnp.bfloat16):
    y = lax.conv_general_dilated(
        x_pad.astype(jnp.bfloat16), w_hwio.astype(jnp.bfloat16),
        (1, 1), "VALID", dimension_numbers=("NHWC", "HWIO", "NHWC"),
        preferred_element_type=jnp.float32)
    y = y * scale + bias
    if act == "relu":
        y = jnp.maximum(y, 0.0)
    elif act == "sigmoid":
        y = jax.nn.sigmoid(y)
    y = y * post_scale + post_bias
    return y.astype(out_dtype)


# ----------------------------------------------------------------------------
# JAX glue: conv_transpose -> dilated/padded stride-1 conv transform
# ----------------------------------------------------------------------------
def dilate_and_pad(x, stride, k, pad, out_pad):
    """NHWC. Zero-dilate by `stride`, pad lo=(k-1-pad), hi=(k-1-pad+out_pad)."""
    N, H, W, C = x.shape
    if stride > 1:
        xd = jnp.zeros((N, (H - 1) * stride + 1, (W - 1) * stride + 1, C),
                       x.dtype)
        xd = xd.at[:, ::stride, ::stride, :].set(x)
    else:
        xd = x
    lo = k - 1 - pad
    hi = k - 1 - pad + out_pad
    return jnp.pad(xd, ((0, 0), (lo, hi), (lo, hi), (0, 0)))


def convT_weight_to_hwio(w):
    """PyTorch ConvTranspose2d weight (Cin, Cout, K, K) -> spatially flipped
    HWIO (K, K, Cin, Cout) = the equivalent stride-1 forward-conv weight."""
    w_flip = w[:, :, ::-1, ::-1]
    return jnp.transpose(w_flip, (2, 3, 0, 1)).astype(jnp.bfloat16)


def fold_bn(conv_bias, gamma, beta, mean, var):
    scale = gamma / jnp.sqrt(var + EPS)
    bias = (conv_bias - mean) * scale + beta
    return scale, bias


# ----------------------------------------------------------------------------
# Parameters (deterministic, synthetic)
# ----------------------------------------------------------------------------
def init_params(key):
    keys = jax.random.split(key, 10)

    def convT(k, cin, cout, ksz):
        k1, k2 = jax.random.split(k)
        fan = cin * ksz * ksz
        w = jax.random.normal(k1, (cin, cout, ksz, ksz), jnp.float32) / np.sqrt(fan)
        b = 0.01 * jax.random.normal(k2, (cout,), jnp.float32)
        return w, b

    def bn(k, c):
        k1, k2, k3, k4 = jax.random.split(k, 4)
        gamma = 1.0 + 0.1 * jax.random.normal(k1, (c,), jnp.float32)
        beta = 0.1 * jax.random.normal(k2, (c,), jnp.float32)
        mean = 0.1 * jax.random.normal(k3, (c,), jnp.float32)
        var = 1.0 + 0.1 * jnp.abs(jax.random.normal(k4, (c,), jnp.float32))
        return gamma, beta, mean, var

    p = {}
    p["w1"], p["b1"] = convT(keys[0], 2048, 1024, 3); p["bn1"] = bn(keys[1], 1024)
    p["w2"], p["b2"] = convT(keys[2], 1024, 512, 3);  p["bn2"] = bn(keys[3], 512)
    p["w3"], p["b3"] = convT(keys[4], 512, 256, 3);   p["bn3"] = bn(keys[5], 256)
    p["w4"], p["b4"] = convT(keys[6], 256, 64, 3);    p["bn4"] = bn(keys[7], 64)
    p["bn5"] = bn(keys[8], 64)
    p["w5"], p["b5"] = convT(keys[9], 64, 3, 7)
    return p


# ----------------------------------------------------------------------------
# Full decoder forward
# ----------------------------------------------------------------------------
def decoder_forward(x_nchw, p, conv_fn):
    x = jnp.transpose(x_nchw, (0, 2, 3, 1)).astype(jnp.bfloat16)  # -> NHWC
    ones = lambda c: jnp.ones((c,), jnp.float32)
    zeros = lambda c: jnp.zeros((c,), jnp.float32)

    # convTrans1..3: ConvTranspose2d(k=3, s=2, p=1, op=1) + BN + ReLU
    for (w, b, bnp) in [(p["w1"], p["b1"], p["bn1"]),
                        (p["w2"], p["b2"], p["bn2"]),
                        (p["w3"], p["b3"], p["bn3"])]:
        xp = dilate_and_pad(x, stride=2, k=3, pad=1, out_pad=1)
        Ho, Wo = xp.shape[1] - 2, xp.shape[2] - 2
        scale, bias = fold_bn(b, *bnp)
        cout = w.shape[1]
        x = conv_fn(xp, convT_weight_to_hwio(w), scale, bias,
                    ones(cout), zeros(cout), K=3, Ho=Ho, Wo=Wo, act="relu")

    # convTrans4: ConvTranspose2d(k=3, s=1, p=1) + BN4 + ReLU.
    # BN5 (convTrans5's pre-conv BN) commutes with nearest upsample, so it is
    # fused here as a post-activation affine.
    xp = dilate_and_pad(x, stride=1, k=3, pad=1, out_pad=0)
    Ho, Wo = xp.shape[1] - 2, xp.shape[2] - 2
    scale4, bias4 = fold_bn(p["b4"], *p["bn4"])
    g5, be5, m5, v5 = p["bn5"]
    ps5 = g5 / jnp.sqrt(v5 + EPS)
    pb5 = be5 - m5 * ps5
    x = conv_fn(xp, convT_weight_to_hwio(p["w4"]), scale4, bias4, ps5, pb5,
                K=3, Ho=Ho, Wo=Wo, act="relu")

    # convTrans5: Upsample(x2, nearest) + [BN5 already applied] +
    #             ConvTranspose2d(k=7, s=2, p=3, op=1) + Sigmoid
    x = jnp.repeat(jnp.repeat(x, 2, axis=1), 2, axis=2)
    xp = dilate_and_pad(x, stride=2, k=7, pad=3, out_pad=1)
    Ho, Wo = xp.shape[1] - 6, xp.shape[2] - 6
    x = conv_fn(xp, convT_weight_to_hwio(p["w5"]), ones(3), p["b5"],
                ones(3), zeros(3), K=7, Ho=Ho, Wo=Wo, act="sigmoid",
                out_dtype=jnp.float32)

    return jnp.transpose(x.astype(jnp.float32), (0, 3, 1, 2))  # -> NCHW


# ----------------------------------------------------------------------------
if __name__ == "__main__":
    key = jax.random.PRNGKey(0)
    pkey, xkey = jax.random.split(key)
    params = init_params(pkey)

    # Small spatial extent (2x2) but channel counts fixed by the module (2048).
    x = jax.random.normal(xkey, (2, 2048, 2, 2), jnp.float32)

    out = decoder_forward(x, params, pallas_conv_bn_act)
    out = jax.block_until_ready(out)
    assert out.shape == (2, 3, 64, 64), out.shape

    ref = decoder_forward(x, params, ref_conv_bn_act)
    ref = jax.block_until_ready(ref)
    np.testing.assert_allclose(np.asarray(out), np.asarray(ref),
                               rtol=2e-3, atol=2e-3)
    print("KERNEL_OK")
</pallas_src>

<mosaic_0001>
module attributes {stable_mosaic.version = 11 : i64} {
  func.func @_conv_bn_act_kernel(%arg0: i32, %arg1: i32, %arg2: i32, %arg3: memref<2x6x4x2048xbf16, #tpu.memory_space<vmem>>, %arg4: memref<3x2048x512xbf16, #tpu.memory_space<vmem>>, %arg5: memref<1x512xf32, #tpu.memory_space<vmem>>, %arg6: memref<1x512xf32, #tpu.memory_space<vmem>>, %arg7: memref<1x512xf32, #tpu.memory_space<vmem>>, %arg8: memref<1x512xf32, #tpu.memory_space<vmem>>, %arg9: memref<2x4x4x512xbf16, #tpu.memory_space<vmem>>, %arg10: memref<32x512xf32, #tpu.memory_space<vmem>>) attributes {dimension_semantics = [#tpu.dimension_semantics<parallel>, #tpu.dimension_semantics<parallel>, #tpu.dimension_semantics<arbitrary>], iteration_bounds = array<i64: 1, 2, 3>, scalar_prefetch = 0 : i64, scratch_operands = 1 : i64, tpu.core_type = #tpu.core_type<tc>, window_params = [{transform_indices = @transform_0, window_bounds = array<i64: 2, 6, 4, 2048>}, {transform_indices = @transform_1, window_bounds = array<i64: 3, 2048, 512>}, {transform_indices = @transform_2, window_bounds = array<i64: 1, 512>}, {transform_indices = @transform_3, window_bounds = array<i64: 1, 512>}, {transform_indices = @transform_4, window_bounds = array<i64: 1, 512>}, {transform_indices = @transform_5, window_bounds = array<i64: 1, 512>}, {transform_indices = @transform_6, window_bounds = array<i64: 2, 4, 4, 512>}]} {
    %c0_i32 = arith.constant 0 : i32
    %0 = arith.cmpi eq, %arg2, %c0_i32 : i32
    %1 = arith.extui %0 : i1 to i32
    %c0_i32_0 = arith.constant 0 : i32
    %2 = arith.cmpi ne, %1, %c0_i32_0 : i32
    scf.if %2 {
      %cst_26 = arith.constant 0.000000e+00 : f32
      %28 = vector.broadcast %cst_26 : f32 to vector<32x512xf32>
      %c0_27 = arith.constant 0 : index
      %c0_28 = arith.constant 0 : index
      %29 = vector.load %arg10[%c0_27, %c0_28] : memref<32x512xf32, #tpu.memory_space<vmem>>, vector<32x512xf32>
      tpu.vector_store %arg10[%c0_27, %c0_28], %28 {strides = array<i32>} : memref<32x512xf32, #tpu.memory_space<vmem>>, vector<32x512xf32>,
    } else {
    }
    %c0 = arith.constant 0 : index
    %c0_1 = arith.constant 0 : index
    %3 = vector.load %arg10[%c0, %c0_1] : memref<32x512xf32, #tpu.memory_space<vmem>>, vector<32x512xf32>
    %c0_2 = arith.constant 0 : index
    %c0_3 = arith.constant 0 : index
    %c0_4 = arith.constant 0 : index
    %c0_5 = arith.constant 0 : index
    %4 = vector.load %arg3[%c0_2, %c0_3, %c0_4, %c0_5] : memref<2x6x4x2048xbf16, #tpu.memory_space<vmem>>, vector<2x4x4x2048xbf16>
    %5 = vector.shape_cast %4 : vector<2x4x4x2048xbf16> to vector<32x2048xbf16>
    %c0_6 = arith.constant 0 : index
    %c0_7 = arith.constant 0 : index
    %c0_8 = arith.constant 0 : index
    %6 = vector.load %arg4[%c0_6, %c0_7, %c0_8] : memref<3x2048x512xbf16, #tpu.memory_space<vmem>>, vector<1x2048x512xbf16>
    %7 = vector.shape_cast %6 : vector<1x2048x512xbf16> to vector<2048x512xbf16>
    %cst = arith.constant dense<0.000000e+00> : vector<32x512xf32>
    %8 = tpu.matmul %5, %7, %cst {dimension_numbers = #tpu.dot_dimension_numbers<[1], [0], [0], [1], [0, 0, 1, 1], [], []>} : vector<32x2048xbf16>, vector<2048x512xbf16>, vector<32x512xf32> -> vector<32x512xf32>
    %9 = arith.addf %3, %8 : vector<32x512xf32>
    %c0_9 = arith.constant 0 : index
    %c1 = arith.constant 1 : index
    %c0_10 = arith.constant 0 : index
    %c0_11 = arith.constant 0 : index
    %10 = vector.load %arg3[%c0_9, %c1, %c0_10, %c0_11] : memref<2x6x4x2048xbf16, #tpu.memory_space<vmem>>, vector<2x4x4x2048xbf16>
    %11 = vector.shape_cast %10 : vector<2x4x4x2048xbf16> to vector<32x2048xbf16>
    %c1_12 = arith.constant 1 : index
    %c0_13 = arith.constant 0 : index
    %c0_14 = arith.constant 0 : index
    %12 = vector.load %arg4[%c1_12, %c0_13, %c0_14] : memref<3x2048x512xbf16, #tpu.memory_space<vmem>>, vector<1x2048x512xbf16>
    %13 = vector.shape_cast %12 : vector<1x2048x512xbf16> to vector<2048x512xbf16>
    %cst_15 = arith.constant dense<0.000000e+00> : vector<32x512xf32>
    %14 = tpu.matmul %11, %13, %cst_15 {dimension_numbers = #tpu.dot_dimension_numbers<[1], [0], [0], [1], [0, 0, 1, 1], [], []>} : vector<32x2048xbf16>, vector<2048x512xbf16>, vector<32x512xf32> -> vector<32x512xf32>
    %15 = arith.addf %9, %14 : vector<32x512xf32>
    %c0_16 = arith.constant 0 : index
    %c2 = arith.constant 2 : index
    %c0_17 = arith.constant 0 : index
    %c0_18 = arith.constant 0 : index
    %16 = vector.load %arg3[%c0_16, %c2, %c0_17, %c0_18] : memref<2x6x4x2048xbf16, #tpu.memory_space<vmem>>, vector<2x4x4x2048xbf16>
    %17 = vector.shape_cast %16 : vector<2x4x4x2048xbf16> to vector<32x2048xbf16>
    %c2_19 = arith.constant 2 : index
    %c0_20 = arith.constant 0 : index
    %c0_21 = arith.constant 0 : index
    %18 = vector.load %arg4[%c2_19, %c0_20, %c0_21] : memref<3x2048x512xbf16, #tpu.memory_space<vmem>>, vector<1x2048x512xbf16>
    %19 = vector.shape_cast %18 : vector<1x2048x512xbf16> to vector<2048x512xbf16>
    %cst_22 = arith.constant dense<0.000000e+00> : vector<32x512xf32>
    %20 = tpu.matmul %17, %19, %cst_22 {dimension_numbers = #tpu.dot_dimension_numbers<[1], [0], [0], [1], [0, 0, 1, 1], [], []>} : vector<32x2048xbf16>, vector<2048x512xbf16>, vector<32x512xf32> -> vector<32x512xf32>
    %21 = arith.addf %15, %20 : vector<32x512xf32>
    %c2_i32 = arith.constant 2 : i32
    %22 = arith.cmpi slt, %arg2, %c2_i32 : i32
    %23 = arith.extui %22 : i1 to i32
    %c0_i32_23 = arith.constant 0 : i32
    %24 = arith.cmpi ne, %23, %c0_i32_23 : i32
    scf.if %24 {
      %c0_26 = arith.constant 0 : index
      %c0_27 = arith.constant 0 : index
      %28 = vector.load %arg10[%c0_26, %c0_27] : memref<32x512xf32, #tpu.memory_space<vmem>>, vector<32x512xf32>
      tpu.vector_store %arg10[%c0_26, %c0_27], %21 {strides = array<i32>} : memref<32x512xf32, #tpu.memory_space<vmem>>, vector<32x512xf32>,
    } else {
    }
    %c2_i32_24 = arith.constant 2 : i32
    %25 = arith.cmpi eq, %arg2, %c2_i32_24 : i32
    %26 = arith.extui %25 : i1 to i32
    %c0_i32_25 = arith.constant 0 : i32
    %27 = arith.cmpi ne, %26, %c0_i32_25 : i32
    scf.if %27 {
      %c0_26 = arith.constant 0 : index
      %c0_27 = arith.constant 0 : index
      %28 = vector.load %arg5[%c0_26, %c0_27] : memref<1x512xf32, #tpu.memory_space<vmem>>, vector<1x512xf32>
      %29 = vector.shape_cast %28 : vector<1x512xf32> to vector<512xf32>
      %30 = vector.shape_cast %29 : vector<512xf32> to vector<1x512xf32>
      %31 = vector.broadcast %30 : vector<1x512xf32> to vector<32x512xf32>
      %32 = arith.mulf %21, %31 : vector<32x512xf32>
      %c0_28 = arith.constant 0 : index
      %c0_29 = arith.constant 0 : index
      %33 = vector.load %arg6[%c0_28, %c0_29] : memref<1x512xf32, #tpu.memory_space<vmem>>, vector<1x512xf32>
      %34 = vector.shape_cast %33 : vector<1x512xf32> to vector<512xf32>
      %35 = vector.shape_cast %34 : vector<512xf32> to vector<1x512xf32>
      %36 = vector.broadcast %35 : vector<1x512xf32> to vector<32x512xf32>
      %37 = arith.addf %32, %36 : vector<32x512xf32>
      %cst_30 = arith.constant 0.000000e+00 : f32
      %38 = vector.broadcast %cst_30 : f32 to vector<32x512xf32>
      %39 = arith.maximumf %37, %38 : vector<32x512xf32>
      %c0_31 = arith.constant 0 : index
      %c0_32 = arith.constant 0 : index
      %40 = vector.load %arg7[%c0_31, %c0_32] : memref<1x512xf32, #tpu.memory_space<vmem>>, vector<1x512xf32>
      %41 = vector.shape_cast %40 : vector<1x512xf32> to vector<512xf32>
      %42 = vector.shape_cast %41 : vector<512xf32> to vector<1x512xf32>
      %43 = vector.broadcast %42 : vector<1x512xf32> to vector<32x512xf32>
      %44 = arith.mulf %39, %43 : vector<32x512xf32>
      %c0_33 = arith.constant 0 : index
      %c0_34 = arith.constant 0 : index
      %45 = vector.load %arg8[%c0_33, %c0_34] : memref<1x512xf32, #tpu.memory_space<vmem>>, vector<1x512xf32>
      %46 = vector.shape_cast %45 : vector<1x512xf32> to vector<512xf32>
      %47 = vector.shape_cast %46 : vector<512xf32> to vector<1x512xf32>
      %48 = vector.broadcast %47 : vector<1x512xf32> to vector<32x512xf32>
      %49 = arith.addf %44, %48 : vector<32x512xf32>
      %50 = vector.shape_cast %49 : vector<32x512xf32> to vector<2x4x4x512xf32>
      %51 = arith.truncf %50 : vector<2x4x4x512xf32> to vector<2x4x4x512xbf16>
      %c0_35 = arith.constant 0 : index
      %c0_36 = arith.constant 0 : index
      %c0_37 = arith.constant 0 : index
      %c0_38 = arith.constant 0 : index
      %52 = vector.load %arg9[%c0_35, %c0_36, %c0_37, %c0_38] : memref<2x4x4x512xbf16, #tpu.memory_space<vmem>>, vector<2x4x4x512xbf16>
      tpu.vector_store %arg9[%c0_35, %c0_36, %c0_37, %c0_38], %51 {strides = array<i32>} : memref<2x4x4x512xbf16, #tpu.memory_space<vmem>>, vector<2x4x4x512xbf16>,
    } else {
    }
    return
  }
  func.func @transform_0(%arg0: i32, %arg1: i32, %arg2: i32) -> (i32, i32, i32, i32) {
    %c0_i32 = arith.constant 0 : i32
    %c0_i32_0 = arith.constant 0 : i32
    %c0_i32_1 = arith.constant 0 : i32
    %c0_i32_2 = arith.constant 0 : i32
    return %c0_i32, %c0_i32_0, %c0_i32_1, %arg2 : i32, i32, i32, i32
  }
  func.func @transform_1(%arg0: i32, %arg1: i32, %arg2: i32) -> (i32, i32, i32) {
    %c0_i32 = arith.constant 0 : i32
    %c0_i32_0 = arith.constant 0 : i32
    return %c0_i32, %arg2, %arg1 : i32, i32, i32
  }
  func.func @transform_2(%arg0: i32, %arg1: i32, %arg2: i32) -> (i32, i32) {
    %c0_i32 = arith.constant 0 : i32
    %c0_i32_0 = arith.constant 0 : i32
    return %c0_i32, %arg1 : i32, i32
  }
  func.func @transform_3(%arg0: i32, %arg1: i32, %arg2: i32) -> (i32, i32) {
    %c0_i32 = arith.constant 0 : i32
    %c0_i32_0 = arith.constant 0 : i32
    return %c0_i32, %arg1 : i32, i32
  }
  func.func @transform_4(%arg0: i32, %arg1: i32, %arg2: i32) -> (i32, i32) {
    %c0_i32 = arith.constant 0 : i32
    %c0_i32_0 = arith.constant 0 : i32
    return %c0_i32, %arg1 : i32, i32
  }
  func.func @transform_5(%arg0: i32, %arg1: i32, %arg2: i32) -> (i32, i32) {
    %c0_i32 = arith.constant 0 : i32
    %c0_i32_0 = arith.constant 0 : i32
    return %c0_i32, %arg1 : i32, i32
  }
  func.func @transform_6(%arg0: i32, %arg1: i32, %arg2: i32) -> (i32, i32, i32, i32) {
    %c0_i32 = arith.constant 0 : i32
    %c0_i32_0 = arith.constant 0 : i32
    %c0_i32_1 = arith.constant 0 : i32
    return %c0_i32, %arg0, %c0_i32_0, %arg1 : i32, i32, i32, i32
  }
}

</mosaic_0001>

<bundles_post_ra>
// kernel: tpu_custom_call.1
= control target key start
LH: loop header
LB: loop body
LE: loop exit
PB: predicated region body
PF: predicated region fallthrough
CT: control target
= control target key end

     0   :  { %s23140_s0 = inlined_call_operand.hbm [shape: bf16[2,6,4,6144], index: 0, kind: input, shape index: {}]   ;;  %s23141_s1 = inlined_call_operand.hbm [shape: bf16[3,6144,1024], index: 1, kind: input, shape index: {}]   ;;  %s23142_s2 = inlined_call_operand.hbm [shape: f32[1,1024], index: 2, kind: input, shape index: {}]   ;;  %s23143_s3 = inlined_call_operand.hbm [shape: f32[1,1024], index: 3, kind: input, shape index: {}]   ;;  %s23144_s4 = inlined_call_operand.hbm [shape: f32[1,1024], index: 4, kind: input, shape index: {}]   ;;  %s23145_s5 = inlined_call_operand.hbm [shape: f32[1,1024], index: 5, kind: input, shape index: {}]   ;;  %s23146_s6 = inlined_call_operand.hbm [shape: bf16[2,4,4,1024], index: 6, kind: output, shape index: {}]  }
   0x1   :  { %23166 = sst [smem:[#allocation83_spill]] %s23140_s0 }
   0x2   :  { %23167 = sst [smem:[#allocation84_spill]] %s23146_s6 }
   0x3   :  { %11 = vsyncpa [#allocation4], 0 }
   0x4   :  { %13 = vsyncpa [#allocation4 + $0x1], 0 }
   0x5   :  { %14 = vsyncpa [#allocation7], 0 }
   0x6   :  { %16 = vsyncpa [#allocation7 + $0x1], 0 }
   0x7   :  { %17 = vsyncpa [#allocation10], 0 }
   0x8   :  { %19 = vsyncpa [#allocation10 + $0x1], 0 }
   0x9   :  { %20 = vsyncpa [#allocation13], 0 }
   0xa   :  { %22 = vsyncpa [#allocation13 + $0x1], 0 }
   0xb   :  { %23 = vsyncpa [#allocation5], 0 }
   0xc   :  { %25 = vsyncpa [#allocation5 + $0x1], 0  ;;  %s19731_s21 = smov 0   ;;  %s19733_s22 = smov 0  }
   0xd   :  { %s19735_s23 = smov 0   ;;  %s19737_s24 = smov 0  }
   0xe   :  { %s19739_s25 = smov 0   ;;  %s19741_s26 = smov 0  }
   0xf   :  { %s19743_s27 = smov 0   ;;  %s19745_s28 = smov 0  }
  0x10   :  { %s19747_s29 = smov 0   ;;  %s19749_s30 = smov 0  }
  0x11   :  { %s19751_s7 = smov 0   ;;  %s19753_s8 = smov 0  }
  0x12   :  { %s19755_s9 = smov 0   ;;  %s19757_s10 = smov 0  }
  0x13 LB: > { %23168 = sst [smem:[#allocation24_spill]] %s19622_s21  ;;  %s19800_s11 = sadd.s32 4294967295, %s19674_s10   ;;  %s19674_s10 = sphi %s19757_s10, %s31_s10   ;;  %s19670_s9 = sphi %s19755_s9, %s23349_s9   ;;  %s19666_s8 = sphi %s19753_s8, %s23348_s8   ;;  %s19662_s7 = sphi %s19751_s7, %s23347_s7   ;;  %s19658_s30 = sphi %s19749_s30, %s23346_s30   ;;  %s19654_s29 = sphi %s19747_s29, %s23345_s29   ;;  %s19650_s28 = sphi %s19745_s28, %s23344_s28   ;;  %s19646_s27 = sphi %s19743_s27, %s23343_s27   ;;  %s19642_s26 = sphi %s19741_s26, %s23342_s26   ;;  %s19638_s25 = sphi %s19739_s25, %s23341_s25   ;;  %s19634_s24 = sphi %s19737_s24, %s23334_s24   ;;  %s19630_s23 = sphi %s19735_s23, %s23340_s23   ;;  %s19626_s22 = sphi %s19733_s22, %s23339_s22   ;;  %s19622_s21 = sphi %s19731_s21, %s23332_s21  }
  0x14   : > { %23169 = sst [smem:[#allocation25_spill]] %s19626_s22  ;;  %s43_s13 = sadd.s32 1, %s19666_s8 }
  0x15   : > { %23170 = sst [smem:[#allocation26_spill]] %s19638_s25  ;;  %s46_s14 = sadd.s32 1, %s19670_s9 }
  0x16   : > { %23171 = sst [smem:[#allocation27_spill]] %s19658_s30  ;;  %p44_p0 = scmp.ge.s32.totalorder %s43_s13, 3 }
  0x17   : > { %23172 = sst [smem:[#allocation28_spill]] %s19662_s7  ;;  %s57_s15 = sadd.s32 1, %s19654_s29 }
  0x18   : > { %p64_p1 = scmp.ne.s32.totalorder %s19654_s29, %s19650_s28  ;;  %p65_p2 = scmp.eq.s32.totalorder %s19674_s10, 0 }
  0x19   : > { %s23351_s13 = smov (%p44_p0, %s43_s13), 0  ;;  %s23353_s14 = smov (!%p44_p0, %s46_s14), %s19670_s9 }
  0x1a   : > { %23173 = sst [smem:[#allocation29_spill]] %s23351_s13  ;;  %s54_s16 = ssub.s32 %s19666_s8, %s23351_s13 }
  0x1b   : > { %p19816_p3 = por %p65_p2, %p64_p1  ;;  %p48_p4 = scmp.ge.s32.totalorder %s23353_s14, 2 }
  0x1c   : > { %p55_p5 = scmp.eq.s32.totalorder %s54_s16, 0  ;;  %p70_p6 = scmp.ne.s32.totalorder %s19650_s28, %s19646_s27 }
  0x1d   : > { %p71_p7 = scmp.eq.s32.totalorder %s19800_s11, 0  ;;  %s23355_s14 = smov (%p48_p4, %s23353_s14), 0 }
  0x1e   : > { %23175 = sst [smem:[#allocation30_spill]] %s23355_s14  ;;  %s81_s20 = ssub.s32 %s19670_s9, %s23355_s14 }
  0x1f   : > { %s19825_s18 = scalar_select %p55_p5, %s19654_s29, %s57_s15  }
  0x20   : > { %p19829_p8 = por %p71_p7, %p70_p6  ;;  %s82_s27 = sor.u32 %s81_s20, %s54_s16 }
  0x21   : > { %23176 = sst [smem:[#allocation31_spill]] %s19825_s18  ;;  %s85_s12 = sadd.s32 1, %s19642_s26 }
  0x22   : > { %p83_p9 = scmp.eq.s32.totalorder %s82_s27, 0  ;;  %p92_p10 = scmp.ne.s32.totalorder %s19642_s26, %s19638_s25 }
  0x23   : > { %p98_p11 = scmp.ne.s32.totalorder %s19638_s25, %s19634_s24  ;;  %p109_p12 = scmp.eq.s32.totalorder %s81_s20, 0 }
  0x24   : > { %s19841_s13 = scalar_select %p83_p9, %s19642_s26, %s85_s12  }
  0x25   : > { %p19845_p13 = por %p92_p10, %p65_p2  ;;  %p19851_p0 = por %p98_p11, %p71_p7 }
  0x26   : > { %23178 = sst [smem:[#allocation32_spill]] %s19841_s13  ;;  %s111_s14 = sadd.s32 1, %s19630_s23 }
  0x27   : > { %s23180_s18 = scalar_select %p19851_p0, 1, 0 }
  0x28   : > { %p118_p1 = scmp.ne.s32.totalorder %s19630_s23, %s19626_s22  ;;  %p124_p5 = scmp.ne.s32.totalorder %s19626_s22, %s19622_s21 }
  0x29   : > { %23181 = sst [smem:[#allocation33_spill]] %s23180_s18  ;;  %p228_p6 = scmp.eq.s32.totalorder %s19800_s11, 5 }
  0x2a   : > { %s19859_s16 = scalar_select %p109_p12, %s19630_s23, %s111_s14  }
  0x2b   : > { %p19863_p4 = por %p118_p1, %p65_p2  ;;  %s23184_s12 = sadd.s32 4294967294, %s19674_s10  }
  0x2c   : > { %23182 = sst [smem:[#allocation34_spill]] %s19859_s16  ;;  %p234_p9 = scmp.eq.s32.totalorder %s23184_s12, 5 }
  0x2d   : > { %p19874_p10 = por %p124_p5, %p71_p7  ;;  %p19878_p11 = por %p228_p6, %p118_p1 }
  0x2e   : > { %p19882_p12 = por %p234_p9, %p124_p5  ;;  %p14226_p2 = scmp.ge.s32.totalorder %s19674_s10, 6 }
  0x2f   : > { %s23185_s20 = scalar_select %p19874_p10, 1, 0 }
  0x30   : > { %s23187_s27 = scalar_select %p19878_p11, 1, 0 }
  0x31   : > { %23186 = sst [smem:[#allocation35_spill]] %s23185_s20  ;;  %250 = sbr.rel (%p14226_p2) target bundleno = 139 (0x8b), region = 16 }
  0x32   : > { %23188 = sst [smem:[#allocation36_spill]] %s23187_s27  ;;  %s254_s12 = sand.u32 (!%p14226_p2), 1, %s19654_s29  }
  0x33   : > { %s23189_s14 = scalar_select %p19882_p12, 1, 0 }
  0x34   : > { %s16917_s13 = sshll.u32 (!%p14226_p2), %s19666_s8, 9  ;;  %s16924_s16 = smul.u32 (!%p14226_p2), 384, %s254_s12 }
  0x35   : > { %23190 = sst [smem:[#allocation37_spill]] %s23189_s14  ;;  %s255_s27 = scalar_lea.sflag (!%p14226_p2), [#allocation4], %s254_s12 }
  0x36   : > { %s23191_s0 = sld [smem:[#allocation83_spill]]  ;;  %s258_s30 = scalar_lea.vmem [#allocation3], %s16924_s16 }
  0x37   : > { %s265_s20 = sshll.u32 %s258_s30, 4  ;;  %s19676_s14 = smov [#allocation3]   ;;  %s266_s20 = int_to_ptr.vmem [resolvable:$true] %s265_s20 }
  0x38   : > { %s19396_s22 = scalar_lea.vmem %s266_s20, 6144  ;;  %s19400_s18 = sshll.u32 %s19676_s14, 4  ;;  %s19401_s18 = int_to_ptr.vmem [resolvable:$false] %s19400_s18 }
  0x39   : > { %p19397_p7 = scmp.ne.s32.totalorder %s266_s20, %s19396_s22  ;;  %s19402_s25 = scalar_lea.vmem %s19401_s18, 12288 }
  0x3a   : > { %p19403_p6 = scmp.lt.s32.totalorder %s266_s20, %s19401_s18  ;;  %p19404_p9 = scmp.lt.s32.totalorder %s19402_s25, %s19396_s22 }
  0x3b   : > { %p19398_p1 = pnand %p19397_p7, %p19816_p3 }
  0x3c   : > { %s264_s7 = scalar_lea.hbm %s23191_s0, %s16917_s13  ;;  %p19405_p2 = por %p19404_p9, %p19403_p6 }
  0x3d   : > { %p19399_p5 = pneg %p19398_p1 }
  0x3f   : > { %p19406_p12 = pnand %p19405_p2, %p19399_p5 }
  0x41   : > { %19409 = shalt.err (!%p19406_p12)
}
  0x42   : > { %s19677_s6 = smov 1536   ;;  %s19678_s21 = smov 512  }
  0x43   : > { %s19679_s30 = smov 32  }
  0x44   : > { %16928 = dma.hbm_to_vmem [thread:$0]  (%p19816_p3), %s264_s7, 6144, %s266_s20, %s255_s27, %s19677_s6, %s19678_s21, %s19679_s30  }
  0x45   : > { %s277_s13 = sand.u32 1, %s19642_s26   ;;  %s275_s16 = sand.u32 1, %s19674_s10  }
  0x46   : > { %s16925_s22 = smul.u32 12288, %s277_s13  ;;  %s14230_s25 = sshll.u32 %s19670_s9, 2 }
  0x47   : > { %s16918_s18 = sshll.u32 %s19666_s8, 11  ;;  %s19680_s27 = smov 393216  }
  0x48   : > { %s286_s14 = sadd.s32 %s16918_s18, %s14230_s25  ;;  %s279_s0 = scalar_lea.vmem [#allocation6], %s16925_s22 }
  0x49   : > { %s14232_s12 = sshll.u32 %s286_s14, 6  ;;  %s301_s17 = sshll.u32 %s279_s0, 4  ;;  %s302_s17 = int_to_ptr.vmem [resolvable:$true] %s301_s17 }
  0x4a   : > { %s16929_s7 = scalar_select %p19845_p13, [#allocation0], [#allocation17] }
  0x4b   : > { %16930 = sst [smem:[#allocation16]] (%p19845_p13), %s19680_s27  ;;  %s288_s30 = scalar_lea.hbm %s23141_s1, %s14232_s12 }
  0x4c   : > { %s293_s20 = sld [smem:[%s16929_s7]]   ;;  %s19681_s13 = smov 65536  }
  0x4d   : > { %16931 = sst [smem:[#allocation16 + $0x1]] (%p19845_p13), %s19681_s13  ;;  %s19682_s25 = smov 256  }
  0x4e   : > { %16932 = sst [smem:[#allocation16 + $0x2]] (%p19845_p13), %s19682_s25  ;;  %s19683_s0 = smov 512  }
  0x4f   : > { %16933 = sst [smem:[#allocation16 + $0x3]] (%p19845_p13), %s19683_s0  ;;  %s19684_s18 = smov 16  }
  0x50   : > { %16934 = sst [smem:[#allocation16 + $0x4]] (%p19845_p13), %s19682_s25  ;;  %s19919_s7 = scalar_lea.sflag [#allocation7], %s275_s16 }
  0x51   : > { %16935 = sst [smem:[#allocation16 + $0x5]] (%p19845_p13), %s19684_s18  ;;  %s19685_s12 = smov 131072  }
  0x52   : > { %s14233_s22 = sshll.u32 %s293_s20, 26  ;;  %s23160_s27 = sand.u32 1, %s19630_s23  }
  0x53   : > { %s14234_s14 = sadd.s32 134217728, %s14233_s22  ;;  %s19926_s6 = sshll.u32 %s19670_s9, 6 }
  0x54   : > { %16936 = dma.general (%p19845_p13), %s288_s30, 196608, %s302_s17, %s19919_s7, %s19685_s12, [#allocation16], %s14234_s14, 0  }
  0x55   : > { %s19930_s20 = sshll.u32 %s23160_s27, 2  ;;  %s353_s25 = scalar_lea.hbm %s23143_s3, %s19926_s6 }
  0x56   : > { %s347_s15 = scalar_lea.vmem [#allocation9], %s19930_s20  ;;  %s334_s22 = scalar_lea.hbm %s23142_s2, %s19926_s6 }
  0x57   : > { %s355_s17 = sshll.u32 %s347_s15, 4  ;;  %s19943_s18 = scalar_lea.sflag [#allocation10], %s275_s16  ;;  %s356_s17 = int_to_ptr.vmem [resolvable:$true] %s355_s17 }
  0x58   : > { %s19422_s14 = scalar_lea.vmem %s356_s17, 64  ;;  %s19686_s12 = smov [#allocation9]  }
  0x59   : > { %p19423_p3 = scmp.ne.s32.totalorder %s356_s17, %s19422_s14  ;;  %s19426_s27 = sshll.u32 %s19686_s12, 4  ;;  %s19427_s27 = int_to_ptr.vmem [resolvable:$false] %s19426_s27 }
  0x5a   : > { %s19428_s21 = scalar_lea.vmem %s19427_s27, 128  ;;  %p19429_p7 = scmp.lt.s32.totalorder %s356_s17, %s19427_s27 }
  0x5b   : > { %p19424_p13 = pnand %p19423_p3, %p19863_p4  ;;  %p19430_p1 = scmp.lt.s32.totalorder %s19428_s21, %s19422_s14 }
  0x5d   : > { %p19425_p12 = pneg %p19424_p13  ;;  %p19431_p5 = por %p19430_p1, %p19429_p7 }
  0x5f   : > { %p19432_p6 = pnand %p19431_p5, %p19425_p12 }
  0x61   : > { %19435 = shalt.err (!%p19432_p6)
}
  0x62   : > { %16938 = dma.hbm_to_vmem [thread:$0]  (%p19863_p4), %s353_s25, 64, %s356_s17, %s19943_s18  }
  0x63   : > { %s328_s16 = scalar_lea.vmem [#allocation8], %s19930_s20  ;;  %s372_s0 = scalar_lea.hbm %s23144_s4, %s19926_s6 }
  0x64   : > { %s336_s13 = sshll.u32 %s328_s16, 4  ;;  %s19687_s27 = smov [#allocation8]   ;;  %s337_s13 = int_to_ptr.vmem [resolvable:$true] %s336_s13 }
  0x65   : > { %s19448_s12 = scalar_lea.vmem %s337_s13, 64  ;;  %s19452_s14 = sshll.u32 %s19687_s27, 4  ;;  %s19453_s14 = int_to_ptr.vmem [resolvable:$false] %s19452_s14 }
  0x66   : > { %p19449_p9 = scmp.ne.s32.totalorder %s337_s13, %s19448_s12  ;;  %s19454_s21 = scalar_lea.vmem %s19453_s14, 128 }
  0x67   : > { %p19455_p13 = scmp.lt.s32.totalorder %s337_s13, %s19453_s14  ;;  %p19456_p12 = scmp.lt.s32.totalorder %s19454_s21, %s19448_s12 }
  0x68   : > { %p19450_p2 = pnand %p19449_p9, %p19863_p4 }
  0x69   : > { %p19457_p7 = por %p19456_p12, %p19455_p13 }
  0x6a   : > { %p19451_p3 = pneg %p19450_p2 }
  0x6c   : > { %p19458_p1 = pnand %p19457_p7, %p19451_p3 }
  0x6e   : > { %19461 = shalt.err (!%p19458_p1)
}
  0x6f   : > { %16937 = dma.hbm_to_vmem [thread:$0]  (%p19863_p4), %s334_s22, 64, %s337_s13, %s19919_s7  }
  0x70   : > { %s366_s16 = scalar_lea.vmem [#allocation11], %s19930_s20  ;;  %s19688_s12 = smov [#allocation11]  }
  0x71   : > { %s374_s15 = sshll.u32 %s366_s16, 4  ;;  %s19478_s27 = sshll.u32 %s19688_s12, 4  ;;  %s375_s15 = int_to_ptr.vmem [resolvable:$true] %s374_s15  ;;  %s19479_s27 = int_to_ptr.vmem [resolvable:$false] %s19478_s27 }
  0x72   : > { %s19474_s30 = scalar_lea.vmem %s375_s15, 64  ;;  %s19480_s14 = scalar_lea.vmem %s19479_s27, 128 }
  0x73   : > { %p19475_p5 = scmp.ne.s32.totalorder %s375_s15, %s19474_s30  ;;  %p19481_p2 = scmp.lt.s32.totalorder %s375_s15, %s19479_s27 }
  0x74   : > { %p19482_p3 = scmp.lt.s32.totalorder %s19480_s14, %s19474_s30 }
  0x75   : > { %p19476_p6 = pnand %p19475_p5, %p19863_p4 }
  0x76   : > { %p19483_p13 = por %p19482_p3, %p19481_p2 }
  0x77   : > { %p19477_p9 = pneg %p19476_p6 }
  0x79   : > { %p19484_p12 = pnand %p19483_p13, %p19477_p9 }
  0x7b   : > { %19487 = shalt.err (!%p19484_p12)
}
  0x7c   : > { %16939 = dma.hbm_to_vmem [thread:$0]  (%p19863_p4), %s372_s0, 64, %s375_s15, %s19943_s18  }
  0x7d   : > { %s391_s25 = scalar_lea.hbm %s23145_s5, %s19926_s6  ;;  %s385_s17 = scalar_lea.vmem [#allocation12], %s19930_s20 }
  0x7e   : > { %s393_s16 = sshll.u32 %s385_s17, 4  ;;  %s23192_s30 = sand.u32 1, %s19630_s23   ;;  %s394_s16 = int_to_ptr.vmem [resolvable:$true] %s393_s16 }
  0x7f   : > { %s382_s12 = scalar_lea.sflag [#allocation13], %s23192_s30  ;;  %s19500_s27 = scalar_lea.vmem %s394_s16, 64 }
  0x80   : > { %p19501_p7 = scmp.ne.s32.totalorder %s394_s16, %s19500_s27  ;;  %s19689_s14 = smov [#allocation12]  }
  0x81   : > { %s19504_s7 = sshll.u32 %s19689_s14, 4  ;;  %s19505_s7 = int_to_ptr.vmem [resolvable:$false] %s19504_s7 }
  0x82   : > { %p19502_p1 = pnand %p19501_p7, %p19863_p4  ;;  %s19506_s22 = scalar_lea.vmem %s19505_s7, 128 }
  0x83   : > { %p19507_p6 = scmp.lt.s32.totalorder %s394_s16, %s19505_s7  ;;  %p19508_p9 = scmp.lt.s32.totalorder %s19506_s22, %s19500_s27 }
  0x84   : > { %p19503_p5 = pneg %p19502_p1 }
  0x85   : > { %p19509_p2 = por %p19508_p9, %p19507_p6 }
  0x87   : > { %p19510_p3 = pnand %p19509_p2, %p19503_p5 }
  0x89   : > { %19513 = shalt.err (!%p19510_p3)
}
  0x8a   : > { %16940 = dma.hbm_to_vmem [thread:$0]  (%p19863_p4), %s391_s25, 64, %s394_s16, %s382_s12  }
  0x8b PF: > { %p14247_p13 = scmp.ge.s32.totalorder %s19674_s10, 1  ;;  %p398_p12 = scmp.lt.s32.totalorder %s19674_s10, 7 }
  0x8d   : > { %p399_p11 = pnand %p14247_p13, %p398_p12 }
  0x8f   : > { %402 = sbr.rel (%p399_p11) target bundleno = 2054 (0x806), region = 44 }
  0x94   : > { %s404_s6 = sand.u32 1, %s19650_s28  }
  0x95   : > { %s16926_s20 = smul.u32 384, %s404_s6  ;;  %s405_s18 = scalar_lea.sflag [#allocation4], %s404_s6 }
  0x97   : > { %s19990_s0 = scalar_lea.vmem [#allocation3], %s16926_s20 }
  0x98   : > { %19597 = dma.done.wait (%p19829_p8), %s405_s18, 6144  }
  0x99   : > { %19599 = vsyncadd (%p19829_p8), %s405_s18, 4294961152  ;;  %s23193_s24 = sld [smem:[#allocation26_spill]]  ;;  %s413_s13 = sand.u32 1, %s19800_s11  }
  0x9a   : > { %s414_s17 = scalar_lea.sflag [#allocation7], %s413_s13 }
  0x9f   : > { %s415_s21 = sand.u32 1, %s23193_s24  }
  0xa0   : > { %s16927_s25 = smul.u32 12288, %s415_s21 }
  0xa2   : > { %s19998_s16 = scalar_lea.vmem [#allocation6], %s16927_s25 }
  0xa3   : > { %19601 = dma.done.wait (%p19851_p0), %s414_s17, 196608  }
  0xa4   : > { %19603 = vsyncadd (%p19851_p0), %s414_s17, 4294770688  ;;  %s23195_s30 = sld [smem:[#allocation25_spill]] }
  0xaa   : > { %s20005_s27 = sand.u32 1, %s23195_s30  }
  0xab   : > { %s20008_s19 = sshll.u32 %s20005_s27, 2 }
  0xac   : > { %s426_s14 = scalar_lea.vmem [#allocation8], %s20008_s19 }
  0xad   : > { %19605 = dma.done.wait (%p19874_p10), %s414_s17, 64  }
  0xae   : > { %19607 = vsyncadd (%p19874_p10), %s414_s17, 4294967232  ;;  %s432_s11 = scalar_lea.sflag [#allocation10], %s413_s13  ;;  %s435_s7 = scalar_lea.vmem [#allocation9], %s20008_s19 }
  0xaf   : > { %19609 = dma.done.wait (%p19874_p10), %s432_s11, 128  }
  0xb0   : > { %19611 = vsyncadd (%p19874_p10), %s432_s11, 4294967168  ;;  %s444_s22 = scalar_lea.vmem [#allocation11], %s20008_s19  ;;  %s450_s6 = scalar_lea.sflag [#allocation13], %s20005_s27 }
  0xb1   : > { %s453_s20 = scalar_lea.vmem [#allocation12], %s20008_s19 }
  0xb2   : > { %19613 = dma.done.wait (%p19874_p10), %s450_s6, 64  }
  0xb3   : > { %19615 = vsyncadd (%p19874_p10), %s450_s6, 4294967232  ;;  %s14252_s18 = sshll.u32 %s20005_s27, 6  ;;  %s23197_s15 = sld [smem:[#allocation27_spill]] }
  0xb4   : > { %s20028_s24 = scalar_lea.vmem [#allocation14], %s14252_s18 }
  0xb9   : > { %p14253_p8 = scmp.ne.s32.totalorder %s23197_s15, 0 }
  0xbb   : > { %519 = sbr.rel (%p14253_p8) target bundleno = 201 (0xc9), region = 72 }
  0xc0   : > { %v19690_v0 = vmov 0.0  }
  0xc1   : > { %520 = vst [vmem:[#allocation2 + $0x30] sm:$0xff] %v19690_v0  ;;  %521 = vst [vmem:[#allocation2] sm:$0xff] %v19690_v0 }
  0xc2   : > { %522 = vst [vmem:[#allocation2 + $0x58] sm:$0xff] %v19690_v0  ;;  %523 = vst [vmem:[#allocation2 + $0x18] sm:$0xff] %v19690_v0 }
  0xc3   : > { %524 = vst [vmem:[#allocation2 + $0x50] sm:$0xff] %v19690_v0  ;;  %525 = vst [vmem:[#allocation2 + $0x68] sm:$0xff] %v19690_v0 }
  0xc4   : > { %526 = vst [vmem:[#allocation2 + $0x8] sm:$0xff] %v19690_v0  ;;  %527 = vst [vmem:[#allocation2 + $0x48] sm:$0xff] %v19690_v0 }
  0xc5   : > { %528 = vst [vmem:[#allocation2 + $0x40] sm:$0xff] %v19690_v0  ;;  %529 = vst [vmem:[#allocation2 + $0x20] sm:$0xff] %v19690_v0 }
  0xc6   : > { %530 = vst [vmem:[#allocation2 + $0x10] sm:$0xff] %v19690_v0  ;;  %531 = vst [vmem:[#allocation2 + $0x38] sm:$0xff] %v19690_v0 }
  0xc7   : > { %532 = vst [vmem:[#allocation2 + $0x60] sm:$0xff] %v19690_v0  ;;  %533 = vst [vmem:[#allocation2 + $0x70] sm:$0xff] %v19690_v0 }
  0xc8   : > { %534 = vst [vmem:[#allocation2 + $0x78] sm:$0xff] %v19690_v0  ;;  %535 = vst [vmem:[#allocation2 + $0x28] sm:$0xff] %v19690_v0 }
  0xc9 PF: > { %v17080_v1 = vld [vmem:[%s19998_s16 + $0xe4] ss:$16 sps:$4 sm:$0xff]   ;;  %v17084_v3 = vld [vmem:[%s19998_s16 + $0xe0] ss:$16 sps:$4 sm:$0xff]   ;;  %v19691_v39 = vmov 1983009808   ;;  %v1135_v41 = vlaneseq }
  0xca   : > { %v17082_v2 = vld [vmem:[%s19998_s16 + $0x2e4] ss:$16 sps:$4 sm:$0xff]   ;;  %4008 = vmatprep.subr.bf16.mxu0 %v17080_v1  ;;  %v17085_v4 = vld [vmem:[%s19998_s16 + $0x2e0] ss:$16 sps:$4 sm:$0xff]   ;;  %v1133_v40 = vunpack.c.l.s4 %v19691_v39 }
  0xcb   : > { %4061 = vmatprep.subr.bf16.mxu1 %v17082_v2  ;;  %v17086_v5 = vld [vmem:[%s19998_s16 + $0xc4] ss:$16 sps:$4 sm:$0xff]   ;;  %4009 = vmatpush1.bf16.msra.mxu0 %v17084_v3  ;;  %v17090_v7 = vld [vmem:[%s19998_s16 + $0xc0] ss:$16 sps:$4 sm:$0xff]   ;;  %v20073_v47 = vshrl.u32 %v1135_v41, 7 }
  0xcc   : > { %4062 = vmatpush1.bf16.msra.mxu1 %v17085_v4  ;;  %v17088_v6 = vld [vmem:[%s19998_s16 + $0x2c4] ss:$16 sps:$4 sm:$0xff]   ;;  %4010 = vmatprep.subr.bf16.mxu0 %v17086_v5  ;;  %v17091_v8 = vld [vmem:[%s19998_s16 + $0x2c0] ss:$16 sps:$4 sm:$0xff]   ;;  %v1134_v46 = vunpack.c.0.s8 %v1133_v40 }
  0xcd   : > { %4063 = vmatprep.subr.bf16.mxu1 %v17088_v6  ;;  %v17092_v9 = vld [vmem:[%s19998_s16 + $0xa4] ss:$16 sps:$4 sm:$0xff]   ;;  %v17096_v11 = vld [vmem:[%s19998_s16 + $0xa0] ss:$16 sps:$4 sm:$0xff]   ;;  %23198 = vst [vmem:[#allocation38_spill] sm:$0xff] %v20073_v47 }
  0xce   : > { %v17094_v10 = vld [vmem:[%s19998_s16 + $0x2a4] ss:$16 sps:$4 sm:$0xff]   ;;  %v17097_v12 = vld [vmem:[%s19998_s16 + $0x2a0] ss:$16 sps:$4 sm:$0xff]   ;;  %v20083_v55 = vsub.s32 %v1134_v46, %v20073_v47 }
  0xcf   : > { %4011 = vmatpush1.bf16.msra.mxu0 %v17090_v7  ;;  %v17098_v13 = vld [vmem:[%s19998_s16 + $0x84] ss:$16 sps:$4 sm:$0xff]   ;;  %v17102_v15 = vld [vmem:[%s19998_s16 + $0x80] ss:$16 sps:$4 sm:$0xff]  }
  0xd0   : > { %4064 = vmatpush1.bf16.msra.mxu1 %v17091_v8  ;;  %4012 = vmatprep.subr.bf16.mxu0 %v17092_v9  ;;  %v17100_v14 = vld [vmem:[%s19998_s16 + $0x284] ss:$16 sps:$4 sm:$0xff]   ;;  %v17103_v16 = vld [vmem:[%s19998_s16 + $0x280] ss:$16 sps:$4 sm:$0xff]   ;;  %23199 = vst [vmem:[#allocation39_spill] sm:$0xff] %v20083_v55 }
  0xd1   : > { %4065 = vmatprep.subr.bf16.mxu1 %v17094_v10  ;;  %v17104_v17 = vld [vmem:[%s19998_s16 + $0x64] ss:$16 sps:$4 sm:$0xff]   ;;  %v17108_v19 = vld [vmem:[%s19998_s16 + $0x60] ss:$16 sps:$4 sm:$0xff]  }
  0xd2   : > { %v17106_v18 = vld [vmem:[%s19998_s16 + $0x264] ss:$16 sps:$4 sm:$0xff]   ;;  %v17109_v20 = vld [vmem:[%s19998_s16 + $0x260] ss:$16 sps:$4 sm:$0xff]  }
  0xd3   : > { %4013 = vmatpush1.bf16.msra.mxu0 %v17096_v11  ;;  %v17110_v21 = vld [vmem:[%s19998_s16 + $0x44] ss:$16 sps:$4 sm:$0xff]   ;;  %v17114_v23 = vld [vmem:[%s19998_s16 + $0x40] ss:$16 sps:$4 sm:$0xff]  }
  0xd4   : > { %4066 = vmatpush1.bf16.msra.mxu1 %v17097_v12  ;;  %4014 = vmatprep.subr.bf16.mxu0 %v17098_v13  ;;  %v17112_v22 = vld [vmem:[%s19998_s16 + $0x244] ss:$16 sps:$4 sm:$0xff]   ;;  %v17115_v24 = vld [vmem:[%s19998_s16 + $0x240] ss:$16 sps:$4 sm:$0xff]  }
  0xd5   : > { %4067 = vmatprep.subr.bf16.mxu1 %v17100_v14  ;;  %v17116_v25 = vld [vmem:[%s19998_s16 + $0x24] ss:$16 sps:$4 sm:$0xff]   ;;  %v17120_v27 = vld [vmem:[%s19998_s16 + $0x20] ss:$16 sps:$4 sm:$0xff]  }
  0xd6   : > { %v17118_v26 = vld [vmem:[%s19998_s16 + $0x224] ss:$16 sps:$4 sm:$0xff]   ;;  %v17121_v28 = vld [vmem:[%s19998_s16 + $0x220] ss:$16 sps:$4 sm:$0xff]  }
  0xd7   : > { %4015 = vmatpush1.bf16.msra.mxu0 %v17102_v15  ;;  %v17122_v29 = vld [vmem:[%s19998_s16 + $0x4] ss:$16 sps:$4 sm:$0xff]   ;;  %v17126_v31 = vld [vmem:[%s19998_s16] ss:$16 sps:$4 sm:$0xff]  }
  0xd8   : > { %4068 = vmatpush1.bf16.msra.mxu1 %v17103_v16  ;;  %4016 = vmatprep.subr.bf16.mxu0 %v17104_v17  ;;  %v17124_v30 = vld [vmem:[%s19998_s16 + $0x204] ss:$16 sps:$4 sm:$0xff]   ;;  %v17127_v32 = vld [vmem:[%s19998_s16 + $0x200] ss:$16 sps:$4 sm:$0xff]  }
  0xd9   : > { %4069 = vmatprep.subr.bf16.mxu1 %v17106_v18  ;;  %v17128_v33 = vld [vmem:[%s19998_s16 + $0x1e4] ss:$16 sps:$4 sm:$0xff]   ;;  %v17132_v35 = vld [vmem:[%s19998_s16 + $0x1e0] ss:$16 sps:$4 sm:$0xff]  }
  0xda   : > { %v17130_v34 = vld [vmem:[%s19998_s16 + $0x3e4] ss:$16 sps:$4 sm:$0xff]   ;;  %v17133_v36 = vld [vmem:[%s19998_s16 + $0x3e0] ss:$16 sps:$4 sm:$0xff]  }
  0xdb   : > { %4017 = vmatpush1.bf16.msra.mxu0 %v17108_v19  ;;  %v17134_v37 = vld [vmem:[%s19998_s16 + $0x1c4] ss:$16 sps:$4 sm:$0xff]   ;;  %v17138_v42 = vld [vmem:[%s19998_s16 + $0x1c0] ss:$16 sps:$4 sm:$0xff]  }
  0xdc   : > { %4070 = vmatpush1.bf16.msra.mxu1 %v17109_v20  ;;  %4018 = vmatprep.subr.bf16.mxu0 %v17110_v21  ;;  %v17136_v38 = vld [vmem:[%s19998_s16 + $0x3c4] ss:$16 sps:$4 sm:$0xff]   ;;  %v17139_v43 = vld [vmem:[%s19998_s16 + $0x3c0] ss:$16 sps:$4 sm:$0xff]  }
  0xdd   : > { %4071 = vmatprep.subr.bf16.mxu1 %v17112_v22  ;;  %v17140_v44 = vld [vmem:[%s19998_s16 + $0x1a4] ss:$16 sps:$4 sm:$0xff]   ;;  %v17144_v48 = vld [vmem:[%s19998_s16 + $0x1a0] ss:$16 sps:$4 sm:$0xff]  }
  0xde   : > { %v17142_v45 = vld [vmem:[%s19998_s16 + $0x3a4] ss:$16 sps:$4 sm:$0xff]   ;;  %v17145_v49 = vld [vmem:[%s19998_s16 + $0x3a0] ss:$16 sps:$4 sm:$0xff]  }
  0xdf   : > { %4019 = vmatpush1.bf16.msra.mxu0 %v17114_v23  ;;  %v17146_v50 = vld [vmem:[%s19998_s16 + $0x184] ss:$16 sps:$4 sm:$0xff]   ;;  %v17150_v52 = vld [vmem:[%s19998_s16 + $0x180] ss:$16 sps:$4 sm:$0xff]  }
  0xe0   : > { %4072 = vmatpush1.bf16.msra.mxu1 %v17115_v24  ;;  %4020 = vmatprep.subr.bf16.mxu0 %v17116_v25  ;;  %v17148_v51 = vld [vmem:[%s19998_s16 + $0x384] ss:$16 sps:$4 sm:$0xff]   ;;  %v17151_v53 = vld [vmem:[%s19998_s16 + $0x380] ss:$16 sps:$4 sm:$0xff]  }
  0xe1   : > { %4073 = vmatprep.subr.bf16.mxu1 %v17118_v26  ;;  %v552_v54 = vld [vmem:[%s19990_s0] sm:$0xff] }
  0xe2   : > { %v556_v56 = vld [vmem:[%s19990_s0 + $0x20] sm:$0xff] }
  0xe3   : > { %4021 = vmatpush1.bf16.msra.mxu0 %v17120_v27  ;;  %v560_v57 = vld [vmem:[%s19990_s0 + $0x40] sm:$0xff]  ;;  %v1128_v60 = vcombine.low %v552_v54, %v556_v56  ;;  %v1129_v62 = vcombine.high %v552_v54, %v556_v56 }
  0xe4   : > { %4074 = vmatpush1.bf16.msra.mxu1 %v17121_v28  ;;  %4022 = vmatprep.subr.bf16.mxu0 %v17122_v29  ;;  %v564_v58 = vld [vmem:[%s19990_s0 + $0x60] sm:$0xff] }
  0xe5   : > { %4075 = vmatprep.subr.bf16.mxu1 %v17124_v30  ;;  %v17152_v59 = vld [vmem:[%s19998_s16 + $0x164] ss:$16 sps:$4 sm:$0xff]   ;;  %v1130_v61 = vcombine.low %v560_v57, %v564_v58  ;;  %v1131_v0 = vcombine.high %v560_v57, %v564_v58  ;;  %v1138_v1 = vrot.slane %v1128_v60, %v20083_v55  ;;  %v1145_v3 = vrot.slane %v1129_v62, %v20083_v55  ;;  %v17156_v4 = vld [vmem:[%s19998_s16 + $0x160] ss:$16 sps:$4 sm:$0xff]  }
  0xe6   : > { %v17154_v63 = vld [vmem:[%s19998_s16 + $0x364] ss:$16 sps:$4 sm:$0xff]   ;;  %v17157_v5 = vld [vmem:[%s19998_s16 + $0x360] ss:$16 sps:$4 sm:$0xff]  }
  0xe7   : > { %4023 = vmatpush1.bf16.msra.mxu0 %v17126_v31  ;;  %v1152_v2 = vrot.slane %v1130_v61, %v20083_v55  ;;  %v1159_v6 = vrot.slane %v1131_v0, %v20083_v55  ;;  %v17158_v7 = vld [vmem:[%s19998_s16 + $0x144] ss:$16 sps:$4 sm:$0xff]   ;;  %v17162_v11 = vld [vmem:[%s19998_s16 + $0x140] ss:$16 sps:$4 sm:$0xff]  }
  0xe8   : > { %4076 = vmatpush1.bf16.msra.mxu1 %v17127_v32  ;;  %4024 = vmatprep.subr.bf16.mxu0 %v17128_v33  ;;  %v17160_v9 = vld [vmem:[%s19998_s16 + $0x344] ss:$16 sps:$4 sm:$0xff]   ;;  %v17163_v12 = vld [vmem:[%s19998_s16 + $0x340] ss:$16 sps:$4 sm:$0xff]  }
  0xe9   : > { %4077 = vmatprep.subr.bf16.mxu1 %v17130_v34  ;;  %v20097_v8 = vcombine.high %v1138_v1, %v1152_v2  ;;  %v20100_v10 = vcombine.high %v1145_v3, %v1159_v6  ;;  %v17164_v13 = vld [vmem:[%s19998_s16 + $0x124] ss:$16 sps:$4 sm:$0xff]   ;;  %v17168_v15 = vld [vmem:[%s19998_s16 + $0x120] ss:$16 sps:$4 sm:$0xff]   ;;  %v20116_v23 = vcombine.low %v1138_v1, %v1152_v2  ;;  %v20118_v24 = vcombine.low %v1145_v3, %v1159_v6 }
  0xea   : > { %v17166_v14 = vld [vmem:[%s19998_s16 + $0x324] ss:$16 sps:$4 sm:$0xff]   ;;  %v17169_v16 = vld [vmem:[%s19998_s16 + $0x320] ss:$16 sps:$4 sm:$0xff]  }
  0xeb   : > { %4025 = vmatpush2.bf16.msra.mxu0 %v17132_v35  ;;  %4040 = vmatprep.mubr.bf16.mxu0 %v20097_v8  ;;  %v17170_v17 = vld [vmem:[%s19998_s16 + $0x104] ss:$16 sps:$4 sm:$0xff]   ;;  %v17174_v19 = vld [vmem:[%s19998_s16 + $0x100] ss:$16 sps:$4 sm:$0xff]  }
  0xec   : > { %4078 = vmatpush2.bf16.msra.mxu1 %v17133_v36  ;;  %4026 = vmatprep.subr.bf16.mxu0 %v17134_v37  ;;  %v17172_v18 = vld [vmem:[%s19998_s16 + $0x304] ss:$16 sps:$4 sm:$0xff]   ;;  %v17175_v20 = vld [vmem:[%s19998_s16 + $0x300] ss:$16 sps:$4 sm:$0xff]  }
  0xed   : > { %4079 = vmatprep.subr.bf16.mxu1 %v17136_v38  ;;  %4093 = vmatprep.mubr.bf16.mxu1 %v20100_v10  ;;  %v17178_v21 = vld [vmem:[%s19998_s16 + $0x4e4] ss:$16 sps:$4 sm:$0xff]   ;;  %v17176_v25 = vld [vmem:[%s19998_s16 + $0x4e0] ss:$16 sps:$4 sm:$0xff]  }
  0xee   : > { %v17181_v22 = vld [vmem:[%s19998_s16 + $0x6e4] ss:$16 sps:$4 sm:$0xff]   ;;  %v17179_v26 = vld [vmem:[%s19998_s16 + $0x6e0] ss:$16 sps:$4 sm:$0xff]  }
  0xef   : > { %4027 = vmatpush2.bf16.msra.mxu0 %v17138_v42  ;;  %v17184_v27 = vld [vmem:[%s19998_s16 + $0x4c4] ss:$16 sps:$4 sm:$0xff]   ;;  %v17182_v29 = vld [vmem:[%s19998_s16 + $0x4c0] ss:$16 sps:$4 sm:$0xff]  }
  0xf0   : > { %4080 = vmatpush2.bf16.msra.mxu1 %v17139_v43  ;;  %4028 = vmatprep.subr.bf16.mxu0 %v17140_v44  ;;  %v17187_v28 = vld [vmem:[%s19998_s16 + $0x6c4] ss:$16 sps:$4 sm:$0xff]   ;;  %v17185_v30 = vld [vmem:[%s19998_s16 + $0x6c0] ss:$16 sps:$4 sm:$0xff]  }
  0xf1   : > { %4081 = vmatprep.subr.bf16.mxu1 %v17142_v45  ;;  %v17190_v31 = vld [vmem:[%s19998_s16 + $0x4a4] ss:$16 sps:$4 sm:$0xff]   ;;  %v17188_v33 = vld [vmem:[%s19998_s16 + $0x4a0] ss:$16 sps:$4 sm:$0xff]  }
  0xf2   : > { %v17193_v32 = vld [vmem:[%s19998_s16 + $0x6a4] ss:$16 sps:$4 sm:$0xff]   ;;  %v17191_v34 = vld [vmem:[%s19998_s16 + $0x6a0] ss:$16 sps:$4 sm:$0xff]  }
  0xf3   : > { %4029 = vmatpush2.bf16.msra.mxu0 %v17144_v48  ;;  %v17196_v35 = vld [vmem:[%s19998_s16 + $0x484] ss:$16 sps:$4 sm:$0xff]   ;;  %v17194_v37 = vld [vmem:[%s19998_s16 + $0x480] ss:$16 sps:$4 sm:$0xff]  }
  0xf4   : > { %4082 = vmatpush2.bf16.msra.mxu1 %v17145_v49  ;;  %4030 = vmatprep.subr.bf16.mxu0 %v17146_v50  ;;  %v17199_v36 = vld [vmem:[%s19998_s16 + $0x684] ss:$16 sps:$4 sm:$0xff]   ;;  %v17197_v38 = vld [vmem:[%s19998_s16 + $0x680] ss:$16 sps:$4 sm:$0xff]  }
  0xf5   : > { %4083 = vmatprep.subr.bf16.mxu1 %v17148_v51  ;;  %v17202_v39 = vld [vmem:[%s19998_s16 + $0x464] ss:$16 sps:$4 sm:$0xff]   ;;  %v17200_v41 = vld [vmem:[%s19998_s16 + $0x460] ss:$16 sps:$4 sm:$0xff]  }
  0xf6   : > { %v17205_v40 = vld [vmem:[%s19998_s16 + $0x664] ss:$16 sps:$4 sm:$0xff]   ;;  %v17203_v42 = vld [vmem:[%s19998_s16 + $0x660] ss:$16 sps:$4 sm:$0xff]  }
  0xf7   : > { %4031 = vmatpush2.bf16.msra.mxu0 %v17150_v52  ;;  %v568_v43 = vld [vmem:[%s19990_s0 + $0xc0] sm:$0xff] }
  0xf8   : > { %4084 = vmatpush2.bf16.msra.mxu1 %v17151_v53  ;;  %4032 = vmatprep.subr.bf16.mxu0 %v17152_v59  ;;  %v572_v44 = vld [vmem:[%s19990_s0 + $0xe0] sm:$0xff] }
  0xf9   : > { %4085 = vmatprep.subr.bf16.mxu1 %v17154_v63  ;;  %v576_v45 = vld [vmem:[%s19990_s0 + $0x100] sm:$0xff]  ;;  %v1272_v49 = vcombine.low %v568_v43, %v572_v44  ;;  %v1273_v51 = vcombine.high %v568_v43, %v572_v44 }
  0xfa   : > { %v580_v46 = vld [vmem:[%s19990_s0 + $0x120] sm:$0xff] }
  0xfb   : > { %4033 = vmatpush2.bf16.msra.mxu0 %v17156_v4  ;;  %v17208_v48 = vld [vmem:[%s19998_s16 + $0x444] ss:$16 sps:$4 sm:$0xff]   ;;  %v1274_v50 = vcombine.low %v576_v45, %v580_v46  ;;  %v1275_v53 = vcombine.high %v576_v45, %v580_v46  ;;  %v1282_v54 = vrot.slane %v1272_v49, %v20083_v55  ;;  %v1289_v57 = vrot.slane %v1273_v51, %v20083_v55  ;;  %v17206_v58 = vld [vmem:[%s19998_s16 + $0x440] ss:$16 sps:$4 sm:$0xff]  }
  0xfc   : > { %4086 = vmatpush2.bf16.msra.mxu1 %v17157_v5  ;;  %4034 = vmatprep.subr.bf16.mxu0 %v17158_v7  ;;  %v17211_v52 = vld [vmem:[%s19998_s16 + $0x644] ss:$16 sps:$4 sm:$0xff]   ;;  %v17209_v59 = vld [vmem:[%s19998_s16 + $0x640] ss:$16 sps:$4 sm:$0xff]   ;;  %v553_v7 = vld [vmem:[%s19990_s0 + $0x8] sm:$0xff] }
  0xfd   : > { %4087 = vmatprep.subr.bf16.mxu1 %v17160_v9  ;;  %v1296_v56 = vrot.slane %v1274_v50, %v20083_v55  ;;  %v1303_v60 = vrot.slane %v1275_v53, %v20083_v55  ;;  %v17214_v61 = vld [vmem:[%s19998_s16 + $0x424] ss:$16 sps:$4 sm:$0xff]   ;;  %v17212_v2 = vld [vmem:[%s19998_s16 + $0x420] ss:$16 sps:$4 sm:$0xff]   ;;  %v557_v9 = vld [vmem:[%s19990_s0 + $0x28] sm:$0xff] }
  0xfe   : > { %v17217_v0 = vld [vmem:[%s19998_s16 + $0x624] ss:$16 sps:$4 sm:$0xff]   ;;  %v17215_v3 = vld [vmem:[%s19998_s16 + $0x620] ss:$16 sps:$4 sm:$0xff]  }
  0xff   : > { %4035 = vmatpush2.bf16.msra.mxu0 %v17162_v11  ;;  %v20153_v62 = vcombine.high %v1282_v54, %v1296_v56  ;;  %v20155_v63 = vcombine.low %v1282_v54, %v1296_v56  ;;  %v20158_v1 = vcombine.high %v1289_v57, %v1303_v60  ;;  %v20163_v4 = vcombine.low %v1289_v57, %v1303_v60  ;;  %v17220_v5 = vld [vmem:[%s19998_s16 + $0x404] ss:$16 sps:$4 sm:$0xff]   ;;  %v561_v11 = vld [vmem:[%s19990_s0 + $0x48] sm:$0xff]  ;;  %v17248_v45 = vld [vmem:[%s19998_s16 + $0x560] ss:$16 sps:$4 sm:$0xff]  }
 0x100   : > { %4088 = vmatpush2.bf16.msra.mxu1 %v17163_v12  ;;  %4036 = vmatprep.subr.bf16.mxu0 %v17164_v13  ;;  %v17223_v6 = vld [vmem:[%s19998_s16 + $0x604] ss:$16 sps:$4 sm:$0xff]   ;;  %v565_v12 = vld [vmem:[%s19990_s0 + $0x68] sm:$0xff]  ;;  %v1164_v13 = vcombine.low %v553_v7, %v557_v9  ;;  %v17251_v46 = vld [vmem:[%s19998_s16 + $0x760] ss:$16 sps:$4 sm:$0xff]  }
 0x101   : > { %4089 = vmatprep.subr.bf16.mxu1 %v17166_v14  ;;  %v1165_v14 = vcombine.high %v553_v7, %v557_v9  ;;  %v17250_v43 = vld [vmem:[%s19998_s16 + $0x564] ss:$16 sps:$4 sm:$0xff]   ;;  %v17254_v50 = vld [vmem:[%s19998_s16 + $0x540] ss:$16 sps:$4 sm:$0xff]   ;;  %v569_v57 = vld [vmem:[%s19990_s0 + $0xc8] sm:$0xff] }
 0x102   : > { %v17253_v44 = vld [vmem:[%s19998_s16 + $0x764] ss:$16 sps:$4 sm:$0xff]   ;;  %v17257_v51 = vld [vmem:[%s19998_s16 + $0x740] ss:$16 sps:$4 sm:$0xff]   ;;  %v581_v60 = vld [vmem:[%s19990_s0 + $0x128] sm:$0xff] }
 0x103   : > { %4037 = vmatpush2.bf16.msra.mxu0 %v17168_v15  ;;  %v1166_v15 = vcombine.low %v561_v11, %v565_v12  ;;  %v17259_v49 = vld [vmem:[%s19998_s16 + $0x744] ss:$16 sps:$4 sm:$0xff]   ;;  %v17260_v54 = vld [vmem:[%s19998_s16 + $0x520] ss:$16 sps:$4 sm:$0xff]  }
 0x104   : > { %4090 = vmatpush2.bf16.msra.mxu1 %v17169_v16  ;;  %4038 = vmatprep.subr.bf16.mxu0 %v17170_v17  ;;  %v1167_v16 = vcombine.high %v561_v11, %v565_v12  ;;  %v17218_v17 = vld [vmem:[%s19998_s16 + $0x400] ss:$16 sps:$4 sm:$0xff]   ;;  %v17265_v53 = vld [vmem:[%s19998_s16 + $0x724] ss:$16 sps:$4 sm:$0xff]  }
 0x105   : > { %4091 = vmatprep.subr.bf16.mxu1 %v17172_v18  ;;  %v17221_v18 = vld [vmem:[%s19998_s16 + $0x600] ss:$16 sps:$4 sm:$0xff]   ;;  %v17274_v11 = vld [vmem:[%s19998_s16 + $0x8e4] ss:$16 sps:$4 sm:$0xff]  }
 0x106   : > { %v17263_v56 = vld [vmem:[%s19998_s16 + $0x720] ss:$16 sps:$4 sm:$0xff]   ;;  %v17277_v12 = vld [vmem:[%s19998_s16 + $0xae4] ss:$16 sps:$4 sm:$0xff]  }
 0x107   : > { %4039 = vmatpush2.bf16.msra.mxu0 %v17174_v19  ;;  %v20177_v19 = vrot.slane %v1164_v13, %v20083_v55  ;;  %v17266_v7 = vld [vmem:[%s19998_s16 + $0x500] ss:$16 sps:$4 sm:$0xff]   ;;  %v17967_v47 = vld [vmem:[%s19998_s16 + $0x1684] ss:$16 sps:$4 sm:$0xff]  }
 0x108   : > { %4092 = vmatpush2.bf16.msra.mxu1 %v17175_v20  ;;  %4114 = vmatprep.subr.bf16.mxu0 %v17178_v21  ;;  %v20180_v20 = vrot.slane %v1165_v14, %v20083_v55  ;;  %v17226_v21 = vld [vmem:[%s19998_s16 + $0x5e4] ss:$16 sps:$4 sm:$0xff]   ;;  %v17269_v9 = vld [vmem:[%s19998_s16 + $0x700] ss:$16 sps:$4 sm:$0xff]  }
 0x109   : > { %4167 = vmatprep.subr.bf16.mxu1 %v17181_v22  ;;  %v20184_v22 = vrot.slane %v1166_v15, %v20083_v55 }
 0x10a   : > { %4041 = vmatmul.mubr.bf16.vlgmr.msra.gmra.mxu0 %v20116_v23 }
 0x10b   : > { %4094 = vmatmul.mubr.bf16.vlgmr.msra.gmra.mxu1 %v20118_v24  ;;  %4115 = vmatpush1.bf16.msra.mxu0 %v17176_v25  ;;  %v20187_v25 = vrot.slane %v1167_v16, %v20083_v55 }
 0x10c   : > { %4168 = vmatpush1.bf16.msra.mxu1 %v17179_v26  ;;  %4116 = vmatprep.subr.bf16.mxu0 %v17184_v27  ;;  %v17229_v26 = vld [vmem:[%s19998_s16 + $0x7e4] ss:$16 sps:$4 sm:$0xff]   ;;  %v20192_v27 = vcombine.high %v20177_v19, %v20184_v22 }
 0x10d   : > { %4169 = vmatprep.subr.bf16.mxu1 %v17187_v28  ;;  %4050 = vmatprep.mubr.bf16.mxu0 %v20153_v62  ;;  %v20196_v28 = vcombine.high %v20180_v20, %v20187_v25 }
 0x10e   : > { %4103 = vmatprep.mubr.bf16.mxu1 %v20158_v1 }
 0x10f   : > { %4117 = vmatpush1.bf16.msra.mxu0 %v17182_v29  ;;  %v17224_v29 = vld [vmem:[%s19998_s16 + $0x5e0] ss:$16 sps:$4 sm:$0xff]  }
 0x110   : > { %4170 = vmatpush1.bf16.msra.mxu1 %v17185_v30  ;;  %4118 = vmatprep.subr.bf16.mxu0 %v17190_v31  ;;  %v17227_v30 = vld [vmem:[%s19998_s16 + $0x7e0] ss:$16 sps:$4 sm:$0xff]   ;;  %v17232_v31 = vld [vmem:[%s19998_s16 + $0x5c4] ss:$16 sps:$4 sm:$0xff]  }
 0x111   : > { %4171 = vmatprep.subr.bf16.mxu1 %v17193_v32  ;;  %v17235_v32 = vld [vmem:[%s19998_s16 + $0x7c4] ss:$16 sps:$4 sm:$0xff]  }
 0x112   : > { %4051 = vmatmul.mubr.bf16.gmra.mxu0 %v20155_v63 }
 0x113   : > { %4119 = vmatpush1.bf16.msra.mxu0 %v17188_v33  ;;  %4104 = vmatmul.mubr.bf16.gmra.mxu1 %v20163_v4  ;;  %v17230_v33 = vld [vmem:[%s19998_s16 + $0x5c0] ss:$16 sps:$4 sm:$0xff]  }
 0x114   : > { %4172 = vmatpush1.bf16.msra.mxu1 %v17191_v34  ;;  %4120 = vmatprep.subr.bf16.mxu0 %v17196_v35  ;;  %v17233_v34 = vld [vmem:[%s19998_s16 + $0x7c0] ss:$16 sps:$4 sm:$0xff]   ;;  %v17238_v35 = vld [vmem:[%s19998_s16 + $0x5a4] ss:$16 sps:$4 sm:$0xff]  }
 0x115   : > { %4173 = vmatprep.subr.bf16.mxu1 %v17199_v36  ;;  %4146 = vmatprep.mubr.bf16.mxu0 %v20192_v27  ;;  %v17241_v36 = vld [vmem:[%s19998_s16 + $0x7a4] ss:$16 sps:$4 sm:$0xff]  }
 0x116   : > { %4199 = vmatprep.mubr.bf16.mxu1 %v20196_v28 }
 0x117   : > { %4121 = vmatpush1.bf16.msra.mxu0 %v17194_v37  ;;  %v17236_v37 = vld [vmem:[%s19998_s16 + $0x5a0] ss:$16 sps:$4 sm:$0xff]  }
 0x118   : > { %4174 = vmatpush1.bf16.msra.mxu1 %v17197_v38  ;;  %4122 = vmatprep.subr.bf16.mxu0 %v17202_v39  ;;  %v17239_v38 = vld [vmem:[%s19998_s16 + $0x7a0] ss:$16 sps:$4 sm:$0xff]   ;;  %v17244_v39 = vld [vmem:[%s19998_s16 + $0x584] ss:$16 sps:$4 sm:$0xff]  }
 0x119   : > { %4175 = vmatprep.subr.bf16.mxu1 %v17205_v40  ;;  %v17247_v40 = vld [vmem:[%s19998_s16 + $0x784] ss:$16 sps:$4 sm:$0xff]  }
 0x11b   : > { %4123 = vmatpush1.bf16.msra.mxu0 %v17200_v41  ;;  %v17242_v41 = vld [vmem:[%s19998_s16 + $0x580] ss:$16 sps:$4 sm:$0xff]  }
 0x11c   : > { %4176 = vmatpush1.bf16.msra.mxu1 %v17203_v42  ;;  %4124 = vmatprep.subr.bf16.mxu0 %v17208_v48  ;;  %v17245_v42 = vld [vmem:[%s19998_s16 + $0x780] ss:$16 sps:$4 sm:$0xff]   ;;  %v17256_v48 = vld [vmem:[%s19998_s16 + $0x544] ss:$16 sps:$4 sm:$0xff]  }
 0x11d   : > { %4177 = vmatprep.subr.bf16.mxu1 %v17211_v52  ;;  %v17262_v52 = vld [vmem:[%s19998_s16 + $0x524] ss:$16 sps:$4 sm:$0xff]  }
 0x11f   : > { %4125 = vmatpush1.bf16.msra.mxu0 %v17206_v58  ;;  %v573_v58 = vld [vmem:[%s19990_s0 + $0xe8] sm:$0xff] }
 0x120   : > { %4178 = vmatpush1.bf16.msra.mxu1 %v17209_v59  ;;  %4126 = vmatprep.subr.bf16.mxu0 %v17214_v61  ;;  %v577_v59 = vld [vmem:[%s19990_s0 + $0x108] sm:$0xff]  ;;  %v17268_v61 = vld [vmem:[%s19998_s16 + $0x504] ss:$16 sps:$4 sm:$0xff]  }
 0x121   : > { %4179 = vmatprep.subr.bf16.mxu1 %v17217_v0  ;;  %v17271_v0 = vld [vmem:[%s19998_s16 + $0x704] ss:$16 sps:$4 sm:$0xff]  }
 0x123   : > { %4127 = vmatpush1.bf16.msra.mxu0 %v17212_v2  ;;  %v1308_v2 = vcombine.low %v569_v57, %v573_v58 }
 0x124   : > { %4180 = vmatpush1.bf16.msra.mxu1 %v17215_v3  ;;  %4128 = vmatprep.subr.bf16.mxu0 %v17220_v5  ;;  %v1310_v3 = vcombine.low %v577_v59, %v581_v60  ;;  %v1309_v5 = vcombine.high %v569_v57, %v573_v58  ;;  %v17301_v58 = vld [vmem:[%s19998_s16 + $0xa64] ss:$16 sps:$4 sm:$0xff]  }
 0x125   : > { %4181 = vmatprep.subr.bf16.mxu1 %v17223_v6  ;;  %v1311_v6 = vcombine.high %v577_v59, %v581_v60  ;;  %v1318_v13 = vrot.slane %v1308_v2, %v20083_v55  ;;  %v17296_v59 = vld [vmem:[%s19998_s16 + $0x860] ss:$16 sps:$4 sm:$0xff]  }
 0x126   : > { %v1332_v14 = vrot.slane %v1310_v3, %v20083_v55  ;;  %v1325_v15 = vrot.slane %v1309_v5, %v20083_v55  ;;  %v17299_v60 = vld [vmem:[%s19998_s16 + $0xa60] ss:$16 sps:$4 sm:$0xff]   ;;  %v17310_v5 = vld [vmem:[%s19998_s16 + $0x824] ss:$16 sps:$4 sm:$0xff]  }
 0x127   : > { %4129 = vmatpush1.bf16.msra.mxu0 %v17218_v17  ;;  %v1339_v16 = vrot.slane %v1311_v6, %v20083_v55  ;;  %v20242_v17 = vcombine.low %v20177_v19, %v20184_v22  ;;  %v17281_v22 = vld [vmem:[%s19998_s16 + $0xac0] ss:$16 sps:$4 sm:$0xff]   ;;  %v17313_v6 = vld [vmem:[%s19998_s16 + $0xa24] ss:$16 sps:$4 sm:$0xff]  }
 0x128   : > { %4182 = vmatpush1.bf16.msra.mxu1 %v17221_v18  ;;  %4130 = vmatprep.subr.bf16.mxu0 %v17226_v21  ;;  %v20246_v18 = vcombine.low %v20180_v20, %v20187_v25  ;;  %v17272_v21 = vld [vmem:[%s19998_s16 + $0x8e0] ss:$16 sps:$4 sm:$0xff]   ;;  %v17286_v25 = vld [vmem:[%s19998_s16 + $0x8a4] ss:$16 sps:$4 sm:$0xff]  }
 0x129   : > { %4183 = vmatprep.subr.bf16.mxu1 %v17229_v26  ;;  %v17275_v26 = vld [vmem:[%s19998_s16 + $0xae0] ss:$16 sps:$4 sm:$0xff]   ;;  %v20254_v19 = vcombine.high %v1325_v15, %v1339_v16 }
 0x12a   : > { %v17278_v20 = vld [vmem:[%s19998_s16 + $0x8c0] ss:$16 sps:$4 sm:$0xff]  }
 0x12b   : > { %4131 = vmatpush2.bf16.msra.mxu0 %v17224_v29  ;;  %v17280_v29 = vld [vmem:[%s19998_s16 + $0x8c4] ss:$16 sps:$4 sm:$0xff]   ;;  %v17302_v2 = vld [vmem:[%s19998_s16 + $0x840] ss:$16 sps:$4 sm:$0xff]  }
 0x12c   : > { %4184 = vmatpush2.bf16.msra.mxu1 %v17227_v30  ;;  %4132 = vmatprep.subr.bf16.mxu0 %v17232_v31  ;;  %v17283_v30 = vld [vmem:[%s19998_s16 + $0xac4] ss:$16 sps:$4 sm:$0xff]   ;;  %v20252_v31 = vcombine.high %v1318_v13, %v1332_v14  ;;  %v17305_v3 = vld [vmem:[%s19998_s16 + $0xa40] ss:$16 sps:$4 sm:$0xff]  }
 0x12d   : > { %4185 = vmatprep.subr.bf16.mxu1 %v17235_v32  ;;  %v17289_v32 = vld [vmem:[%s19998_s16 + $0xaa4] ss:$16 sps:$4 sm:$0xff]  }
 0x12f   : > { %4133 = vmatpush2.bf16.msra.mxu0 %v17230_v33  ;;  %v554_v33 = vld [vmem:[%s19990_s0 + $0x10] sm:$0xff] }
 0x130   : > { %4186 = vmatpush2.bf16.msra.mxu1 %v17233_v34  ;;  %4134 = vmatprep.subr.bf16.mxu0 %v17238_v35  ;;  %v558_v34 = vld [vmem:[%s19990_s0 + $0x30] sm:$0xff] }
 0x131   : > { %4187 = vmatprep.subr.bf16.mxu1 %v17241_v36  ;;  %v562_v35 = vld [vmem:[%s19990_s0 + $0x50] sm:$0xff] }
 0x132   : > { %v566_v36 = vld [vmem:[%s19990_s0 + $0x70] sm:$0xff] }
 0x133   : > { %4135 = vmatpush2.bf16.msra.mxu0 %v17236_v37  ;;  %v1200_v37 = vcombine.low %v554_v33, %v558_v34 }
 0x134   : > { %4188 = vmatpush2.bf16.msra.mxu1 %v17239_v38  ;;  %4136 = vmatprep.subr.bf16.mxu0 %v17244_v39  ;;  %v1201_v38 = vcombine.high %v554_v33, %v558_v34  ;;  %v20268_v39 = vcombine.low %v1318_v13, %v1332_v14  ;;  %v17314_v13 = vld [vmem:[%s19998_s16 + $0x800] ss:$16 sps:$4 sm:$0xff]  }
 0x135   : > { %4189 = vmatprep.subr.bf16.mxu1 %v17247_v40  ;;  %v17284_v40 = vld [vmem:[%s19998_s16 + $0x8a0] ss:$16 sps:$4 sm:$0xff]  }
 0x136   : > { %v17317_v14 = vld [vmem:[%s19998_s16 + $0xa00] ss:$16 sps:$4 sm:$0xff]  }
 0x137   : > { %4137 = vmatpush2.bf16.msra.mxu0 %v17242_v41  ;;  %v17287_v41 = vld [vmem:[%s19998_s16 + $0xaa0] ss:$16 sps:$4 sm:$0xff]  }
 0x138   : > { %4190 = vmatpush2.bf16.msra.mxu1 %v17245_v42  ;;  %4138 = vmatprep.subr.bf16.mxu0 %v17250_v43  ;;  %v20272_v42 = vcombine.low %v1325_v15, %v1339_v16  ;;  %v1202_v43 = vcombine.low %v562_v35, %v566_v36  ;;  %v17322_v15 = vld [vmem:[%s19998_s16 + $0x9e4] ss:$16 sps:$4 sm:$0xff]   ;;  %v17332_v33 = vld [vmem:[%s19998_s16 + $0x9a0] ss:$16 sps:$4 sm:$0xff]  }
 0x139   : > { %4191 = vmatprep.subr.bf16.mxu1 %v17253_v44  ;;  %v1203_v44 = vcombine.high %v562_v35, %v566_v36  ;;  %v17325_v16 = vld [vmem:[%s19998_s16 + $0xbe4] ss:$16 sps:$4 sm:$0xff]   ;;  %v17335_v34 = vld [vmem:[%s19998_s16 + $0xba0] ss:$16 sps:$4 sm:$0xff]  }
 0x13a   : > { %v17340_v35 = vld [vmem:[%s19998_s16 + $0x984] ss:$16 sps:$4 sm:$0xff]  }
 0x13b   : > { %4139 = vmatpush2.bf16.msra.mxu0 %v17248_v45  ;;  %v17292_v45 = vld [vmem:[%s19998_s16 + $0x884] ss:$16 sps:$4 sm:$0xff]  }
 0x13c   : > { %4192 = vmatpush2.bf16.msra.mxu1 %v17251_v46  ;;  %4140 = vmatprep.subr.bf16.mxu0 %v17256_v48  ;;  %v20276_v46 = vrot.slane %v1200_v37, %v20083_v55  ;;  %v20279_v48 = vrot.slane %v1201_v38, %v20083_v55  ;;  %v17343_v36 = vld [vmem:[%s19998_s16 + $0xb84] ss:$16 sps:$4 sm:$0xff]   ;;  %v17338_v37 = vld [vmem:[%s19998_s16 + $0x980] ss:$16 sps:$4 sm:$0xff]  }
 0x13d   : > { %4193 = vmatprep.subr.bf16.mxu1 %v17259_v49  ;;  %v17295_v49 = vld [vmem:[%s19998_s16 + $0xa84] ss:$16 sps:$4 sm:$0xff]   ;;  %v17341_v38 = vld [vmem:[%s19998_s16 + $0xb80] ss:$16 sps:$4 sm:$0xff]  }
 0x13f   : > { %4141 = vmatpush2.bf16.msra.mxu0 %v17254_v50  ;;  %v20283_v50 = vrot.slane %v1202_v43, %v20083_v55  ;;  %v17344_v43 = vld [vmem:[%s19998_s16 + $0x960] ss:$16 sps:$4 sm:$0xff]  }
 0x140   : > { %4194 = vmatpush2.bf16.msra.mxu1 %v17257_v51  ;;  %4142 = vmatprep.subr.bf16.mxu0 %v17262_v52  ;;  %v20286_v51 = vrot.slane %v1203_v44, %v20083_v55  ;;  %v17347_v44 = vld [vmem:[%s19998_s16 + $0xb60] ss:$16 sps:$4 sm:$0xff]  }
 0x141   : > { %4195 = vmatprep.subr.bf16.mxu1 %v17265_v53  ;;  %v20292_v52 = vcombine.high %v20276_v46, %v20283_v50  ;;  %v17290_v53 = vld [vmem:[%s19998_s16 + $0x880] ss:$16 sps:$4 sm:$0xff]  }
 0x142   : > { %v20299_v57 = vcombine.high %v20279_v48, %v20286_v51 }
 0x143   : > { %4143 = vmatpush2.bf16.msra.mxu0 %v17260_v54  ;;  %v17293_v54 = vld [vmem:[%s19998_s16 + $0xa80] ss:$16 sps:$4 sm:$0xff]  }
 0x144   : > { %4196 = vmatpush2.bf16.msra.mxu1 %v17263_v56  ;;  %4144 = vmatprep.subr.bf16.mxu0 %v17268_v61  ;;  %v17298_v56 = vld [vmem:[%s19998_s16 + $0x864] ss:$16 sps:$4 sm:$0xff]  }
 0x145   : > { %4197 = vmatprep.subr.bf16.mxu1 %v17271_v0  ;;  %v17304_v61 = vld [vmem:[%s19998_s16 + $0x844] ss:$16 sps:$4 sm:$0xff]  }
 0x146   : > { %v17307_v0 = vld [vmem:[%s19998_s16 + $0xa44] ss:$16 sps:$4 sm:$0xff]  }
 0x147   : > { %4145 = vmatpush2.bf16.msra.mxu0 %v17266_v7  ;;  %v17308_v7 = vld [vmem:[%s19998_s16 + $0x820] ss:$16 sps:$4 sm:$0xff]  }
 0x148   : > { %4198 = vmatpush2.bf16.msra.mxu1 %v17269_v9  ;;  %4220 = vmatprep.subr.bf16.mxu0 %v17274_v11  ;;  %v17311_v9 = vld [vmem:[%s19998_s16 + $0xa20] ss:$16 sps:$4 sm:$0xff]   ;;  %v17316_v11 = vld [vmem:[%s19998_s16 + $0x804] ss:$16 sps:$4 sm:$0xff]  }
 0x149   : > { %4273 = vmatprep.subr.bf16.mxu1 %v17277_v12  ;;  %v17319_v12 = vld [vmem:[%s19998_s16 + $0xa04] ss:$16 sps:$4 sm:$0xff]  }
 0x14a   : > { %4147 = vmatmul.mubr.bf16.vlgmr.msra.gmra.mxu0 %v20242_v17 }
 0x14b   : > { %4200 = vmatmul.mubr.bf16.vlgmr.msra.gmra.mxu1 %v20246_v18  ;;  %4221 = vmatpush1.bf16.msra.mxu0 %v17272_v21  ;;  %v17320_v21 = vld [vmem:[%s19998_s16 + $0x9e0] ss:$16 sps:$4 sm:$0xff]  }
 0x14c   : > { %4274 = vmatpush1.bf16.msra.mxu1 %v17275_v26  ;;  %4222 = vmatprep.subr.bf16.mxu0 %v17280_v29  ;;  %v17323_v26 = vld [vmem:[%s19998_s16 + $0xbe0] ss:$16 sps:$4 sm:$0xff]   ;;  %v17328_v29 = vld [vmem:[%s19998_s16 + $0x9c4] ss:$16 sps:$4 sm:$0xff]  }
 0x14d   : > { %4275 = vmatprep.subr.bf16.mxu1 %v17283_v30  ;;  %4156 = vmatprep.mubr.bf16.mxu0 %v20252_v31  ;;  %v17331_v30 = vld [vmem:[%s19998_s16 + $0xbc4] ss:$16 sps:$4 sm:$0xff]  }
 0x14e   : > { %4209 = vmatprep.mubr.bf16.mxu1 %v20254_v19 }
 0x14f   : > { %4223 = vmatpush1.bf16.msra.mxu0 %v17278_v20  ;;  %v17326_v20 = vld [vmem:[%s19998_s16 + $0x9c0] ss:$16 sps:$4 sm:$0xff]  }
 0x150   : > { %4276 = vmatpush1.bf16.msra.mxu1 %v17281_v22  ;;  %4224 = vmatprep.subr.bf16.mxu0 %v17286_v25  ;;  %v17329_v22 = vld [vmem:[%s19998_s16 + $0xbc0] ss:$16 sps:$4 sm:$0xff]   ;;  %v17334_v25 = vld [vmem:[%s19998_s16 + $0x9a4] ss:$16 sps:$4 sm:$0xff]  }
 0x151   : > { %4277 = vmatprep.subr.bf16.mxu1 %v17289_v32  ;;  %v17337_v32 = vld [vmem:[%s19998_s16 + $0xba4] ss:$16 sps:$4 sm:$0xff]  }
 0x152   : > { %4157 = vmatmul.mubr.bf16.gmra.mxu0 %v20268_v39 }
 0x153   : > { %4210 = vmatmul.mubr.bf16.gmra.mxu1 %v20272_v42  ;;  %4225 = vmatpush1.bf16.msra.mxu0 %v17284_v40  ;;  %v17346_v40 = vld [vmem:[%s19998_s16 + $0x964] ss:$16 sps:$4 sm:$0xff]  }
 0x154   : > { %4278 = vmatpush1.bf16.msra.mxu1 %v17287_v41  ;;  %4226 = vmatprep.subr.bf16.mxu0 %v17292_v45  ;;  %v17349_v41 = vld [vmem:[%s19998_s16 + $0xb64] ss:$16 sps:$4 sm:$0xff]  }
 0x155   : > { %4279 = vmatprep.subr.bf16.mxu1 %v17295_v49  ;;  %4252 = vmatprep.mubr.bf16.mxu0 %v20292_v52  ;;  %v17352_v45 = vld [vmem:[%s19998_s16 + $0x944] ss:$16 sps:$4 sm:$0xff]  }
 0x156   : > { %4305 = vmatprep.mubr.bf16.mxu1 %v20299_v57  ;;  %v17355_v49 = vld [vmem:[%s19998_s16 + $0xb44] ss:$16 sps:$4 sm:$0xff]  }
 0x157   : > { %4227 = vmatpush1.bf16.msra.mxu0 %v17290_v53  ;;  %v17350_v53 = vld [vmem:[%s19998_s16 + $0x940] ss:$16 sps:$4 sm:$0xff]  }
 0x158   : > { %4280 = vmatpush1.bf16.msra.mxu1 %v17293_v54  ;;  %4228 = vmatprep.subr.bf16.mxu0 %v17298_v56  ;;  %v17353_v54 = vld [vmem:[%s19998_s16 + $0xb40] ss:$16 sps:$4 sm:$0xff]   ;;  %v17358_v56 = vld [vmem:[%s19998_s16 + $0x924] ss:$16 sps:$4 sm:$0xff]  }
 0x159   : > { %4281 = vmatprep.subr.bf16.mxu1 %v17301_v58  ;;  %v17361_v58 = vld [vmem:[%s19998_s16 + $0xb24] ss:$16 sps:$4 sm:$0xff]  }
 0x15b   : > { %4229 = vmatpush1.bf16.msra.mxu0 %v17296_v59  ;;  %v570_v59 = vld [vmem:[%s19990_s0 + $0xd0] sm:$0xff] }
 0x15c   : > { %4282 = vmatpush1.bf16.msra.mxu1 %v17299_v60  ;;  %4230 = vmatprep.subr.bf16.mxu0 %v17304_v61  ;;  %v574_v60 = vld [vmem:[%s19990_s0 + $0xf0] sm:$0xff] }
 0x15d   : > { %4283 = vmatprep.subr.bf16.mxu1 %v17307_v0  ;;  %v578_v61 = vld [vmem:[%s19990_s0 + $0x110] sm:$0xff] }
 0x15e   : > { %v582_v0 = vld [vmem:[%s19990_s0 + $0x130] sm:$0xff] }
 0x15f   : > { %4231 = vmatpush1.bf16.msra.mxu0 %v17302_v2  ;;  %v17356_v2 = vld [vmem:[%s19998_s16 + $0x920] ss:$16 sps:$4 sm:$0xff]  }
 0x160   : > { %4284 = vmatpush1.bf16.msra.mxu1 %v17305_v3  ;;  %4232 = vmatprep.subr.bf16.mxu0 %v17310_v5  ;;  %v17359_v3 = vld [vmem:[%s19998_s16 + $0xb20] ss:$16 sps:$4 sm:$0xff]   ;;  %v17364_v5 = vld [vmem:[%s19998_s16 + $0x904] ss:$16 sps:$4 sm:$0xff]  }
 0x161   : > { %4285 = vmatprep.subr.bf16.mxu1 %v17313_v6  ;;  %v17367_v6 = vld [vmem:[%s19998_s16 + $0xb04] ss:$16 sps:$4 sm:$0xff]  }
 0x163   : > { %4233 = vmatpush1.bf16.msra.mxu0 %v17308_v7  ;;  %v1344_v7 = vcombine.low %v570_v59, %v574_v60 }
 0x164   : > { %4286 = vmatpush1.bf16.msra.mxu1 %v17311_v9  ;;  %4234 = vmatprep.subr.bf16.mxu0 %v17316_v11  ;;  %v1346_v9 = vcombine.low %v578_v61, %v582_v0  ;;  %v1345_v11 = vcombine.high %v570_v59, %v574_v60  ;;  %v17380_v60 = vld [vmem:[%s19998_s16 + $0xca0] ss:$16 sps:$4 sm:$0xff]  }
 0x165   : > { %4287 = vmatprep.subr.bf16.mxu1 %v17319_v12  ;;  %v1347_v12 = vcombine.high %v578_v61, %v582_v0  ;;  %v17383_v61 = vld [vmem:[%s19998_s16 + $0xea0] ss:$16 sps:$4 sm:$0xff]  }
 0x167   : > { %4235 = vmatpush1.bf16.msra.mxu0 %v17314_v13  ;;  %v17362_v13 = vld [vmem:[%s19998_s16 + $0x900] ss:$16 sps:$4 sm:$0xff]  }
 0x168   : > { %4288 = vmatpush1.bf16.msra.mxu1 %v17317_v14  ;;  %4236 = vmatprep.subr.bf16.mxu0 %v17322_v15  ;;  %v17365_v14 = vld [vmem:[%s19998_s16 + $0xb00] ss:$16 sps:$4 sm:$0xff]   ;;  %v17370_v15 = vld [vmem:[%s19998_s16 + $0xce4] ss:$16 sps:$4 sm:$0xff]  }
 0x169   : > { %4289 = vmatprep.subr.bf16.mxu1 %v17325_v16  ;;  %v17373_v16 = vld [vmem:[%s19998_s16 + $0xee4] ss:$16 sps:$4 sm:$0xff]  }
 0x16b   : > { %4237 = vmatpush2.bf16.msra.mxu0 %v17320_v21  ;;  %v1354_v21 = vrot.slane %v1344_v7, %v20083_v55  ;;  %v17386_v7 = vld [vmem:[%s19998_s16 + $0xc80] ss:$16 sps:$4 sm:$0xff]  }
 0x16c   : > { %4290 = vmatpush2.bf16.msra.mxu1 %v17323_v26  ;;  %4238 = vmatprep.subr.bf16.mxu0 %v17328_v29  ;;  %v1368_v26 = vrot.slane %v1346_v9, %v20083_v55  ;;  %v17368_v29 = vld [vmem:[%s19998_s16 + $0xce0] ss:$16 sps:$4 sm:$0xff]  }
 0x16d   : > { %4291 = vmatprep.subr.bf16.mxu1 %v17331_v30  ;;  %v17371_v30 = vld [vmem:[%s19998_s16 + $0xee0] ss:$16 sps:$4 sm:$0xff]  }
 0x16e   : > { %v20400_v59 = vcombine.low %v1354_v21, %v1368_v26  ;;  %v17389_v9 = vld [vmem:[%s19998_s16 + $0xe80] ss:$16 sps:$4 sm:$0xff]  }
 0x16f   : > { %4239 = vmatpush2.bf16.msra.mxu0 %v17326_v20  ;;  %v1361_v20 = vrot.slane %v1345_v11, %v20083_v55  ;;  %v17394_v11 = vld [vmem:[%s19998_s16 + $0xc64] ss:$16 sps:$4 sm:$0xff]  }
 0x170   : > { %4292 = vmatpush2.bf16.msra.mxu1 %v17329_v22  ;;  %4240 = vmatprep.subr.bf16.mxu0 %v17334_v25  ;;  %v1375_v22 = vrot.slane %v1347_v12, %v20083_v55  ;;  %v555_v25 = vld [vmem:[%s19990_s0 + $0x18] sm:$0xff]  ;;  %v17397_v12 = vld [vmem:[%s19998_s16 + $0xe64] ss:$16 sps:$4 sm:$0xff]  }
 0x171   : > { %4293 = vmatprep.subr.bf16.mxu1 %v17337_v32  ;;  %v559_v32 = vld [vmem:[%s19990_s0 + $0x38] sm:$0xff] }
 0x172   : > { %v20404_v0 = vcombine.low %v1361_v20, %v1375_v22 }
 0x173   : > { %4241 = vmatpush2.bf16.msra.mxu0 %v17332_v33  ;;  %v20366_v33 = vcombine.low %v20276_v46, %v20283_v50  ;;  %v1236_v46 = vcombine.low %v555_v25, %v559_v32  ;;  %v20378_v50 = vcombine.high %v1361_v20, %v1375_v22  ;;  %v17404_v20 = vld [vmem:[%s19998_s16 + $0xc20] ss:$16 sps:$4 sm:$0xff]  }
 0x174   : > { %4294 = vmatpush2.bf16.msra.mxu1 %v17335_v34  ;;  %4242 = vmatprep.subr.bf16.mxu0 %v17340_v35  ;;  %v20370_v34 = vcombine.low %v20279_v48, %v20286_v51  ;;  %v563_v35 = vld [vmem:[%s19990_s0 + $0x58] sm:$0xff]  ;;  %v1237_v48 = vcombine.high %v555_v25, %v559_v32  ;;  %v17407_v22 = vld [vmem:[%s19998_s16 + $0xe20] ss:$16 sps:$4 sm:$0xff]   ;;  %v17412_v25 = vld [vmem:[%s19998_s16 + $0xc04] ss:$16 sps:$4 sm:$0xff]  }
 0x175   : > { %4295 = vmatprep.subr.bf16.mxu1 %v17343_v36  ;;  %v567_v36 = vld [vmem:[%s19990_s0 + $0x78] sm:$0xff]  ;;  %v17415_v32 = vld [vmem:[%s19998_s16 + $0xe04] ss:$16 sps:$4 sm:$0xff]  }
 0x176   : > { %v1239_v51 = vcombine.high %v563_v35, %v567_v36 }
 0x177   : > { %4243 = vmatpush2.bf16.msra.mxu0 %v17338_v37  ;;  %v17376_v37 = vld [vmem:[%s19998_s16 + $0xcc4] ss:$16 sps:$4 sm:$0xff]  }
 0x178   : > { %4296 = vmatpush2.bf16.msra.mxu1 %v17341_v38  ;;  %4244 = vmatprep.subr.bf16.mxu0 %v17346_v40  ;;  %v17379_v38 = vld [vmem:[%s19998_s16 + $0xec4] ss:$16 sps:$4 sm:$0xff]   ;;  %v20376_v40 = vcombine.high %v1354_v21, %v1368_v26  ;;  %v17398_v21 = vld [vmem:[%s19998_s16 + $0xc40] ss:$16 sps:$4 sm:$0xff]  }
 0x179   : > { %4297 = vmatprep.subr.bf16.mxu1 %v17349_v41  ;;  %v1238_v41 = vcombine.low %v563_v35, %v567_v36  ;;  %v17401_v26 = vld [vmem:[%s19998_s16 + $0xe40] ss:$16 sps:$4 sm:$0xff]  }
 0x17a   : > { %v17410_v35 = vld [vmem:[%s19998_s16 + $0xc00] ss:$16 sps:$4 sm:$0xff]  }
 0x17b   : > { %4245 = vmatpush2.bf16.msra.mxu0 %v17344_v43  ;;  %v17374_v43 = vld [vmem:[%s19998_s16 + $0xcc0] ss:$16 sps:$4 sm:$0xff]  }
 0x17c   : > { %4298 = vmatpush2.bf16.msra.mxu1 %v17347_v44  ;;  %4246 = vmatprep.subr.bf16.mxu0 %v17352_v45  ;;  %v17377_v44 = vld [vmem:[%s19998_s16 + $0xec0] ss:$16 sps:$4 sm:$0xff]   ;;  %v17382_v45 = vld [vmem:[%s19998_s16 + $0xca4] ss:$16 sps:$4 sm:$0xff]  }
 0x17d   : > { %4299 = vmatprep.subr.bf16.mxu1 %v17355_v49  ;;  %v17385_v49 = vld [vmem:[%s19998_s16 + $0xea4] ss:$16 sps:$4 sm:$0xff]   ;;  %v17413_v36 = vld [vmem:[%s19998_s16 + $0xe00] ss:$16 sps:$4 sm:$0xff]  }
 0x17f   : > { %4247 = vmatpush2.bf16.msra.mxu0 %v17350_v53  ;;  %v20387_v53 = vrot.slane %v1236_v46, %v20083_v55  ;;  %v17416_v46 = vld [vmem:[%s19998_s16 + $0xde0] ss:$16 sps:$4 sm:$0xff]  }
 0x180   : > { %4300 = vmatpush2.bf16.msra.mxu1 %v17353_v54  ;;  %4248 = vmatprep.subr.bf16.mxu0 %v17358_v56  ;;  %v20392_v54 = vrot.slane %v1238_v41, %v20083_v55  ;;  %v20395_v56 = vrot.slane %v1237_v48, %v20083_v55  ;;  %v17419_v41 = vld [vmem:[%s19998_s16 + $0xfe0] ss:$16 sps:$4 sm:$0xff]   ;;  %v17424_v48 = vld [vmem:[%s19998_s16 + $0xdc4] ss:$16 sps:$4 sm:$0xff]  }
 0x181   : > { %4301 = vmatprep.subr.bf16.mxu1 %v17361_v58  ;;  %v20398_v58 = vrot.slane %v1239_v51, %v20083_v55  ;;  %v17427_v51 = vld [vmem:[%s19998_s16 + $0xfc4] ss:$16 sps:$4 sm:$0xff]  }
 0x183   : > { %4249 = vmatpush2.bf16.msra.mxu0 %v17356_v2  ;;  %v17388_v2 = vld [vmem:[%s19998_s16 + $0xc84] ss:$16 sps:$4 sm:$0xff]  }
 0x184   : > { %4302 = vmatpush2.bf16.msra.mxu1 %v17359_v3  ;;  %4250 = vmatprep.subr.bf16.mxu0 %v17364_v5  ;;  %v17391_v3 = vld [vmem:[%s19998_s16 + $0xe84] ss:$16 sps:$4 sm:$0xff]   ;;  %v20410_v5 = vcombine.high %v20387_v53, %v20392_v54 }
 0x185   : > { %4303 = vmatprep.subr.bf16.mxu1 %v17367_v6  ;;  %v20414_v6 = vcombine.high %v20395_v56, %v20398_v58 }
 0x187   : > { %4251 = vmatpush2.bf16.msra.mxu0 %v17362_v13  ;;  %v17392_v13 = vld [vmem:[%s19998_s16 + $0xc60] ss:$16 sps:$4 sm:$0xff]  }
 0x188   : > { %4304 = vmatpush2.bf16.msra.mxu1 %v17365_v14  ;;  %4326 = vmatprep.subr.bf16.mxu0 %v17370_v15  ;;  %v17395_v14 = vld [vmem:[%s19998_s16 + $0xe60] ss:$16 sps:$4 sm:$0xff]   ;;  %v17400_v15 = vld [vmem:[%s19998_s16 + $0xc44] ss:$16 sps:$4 sm:$0xff]  }
 0x189   : > { %4379 = vmatprep.subr.bf16.mxu1 %v17373_v16  ;;  %v17403_v16 = vld [vmem:[%s19998_s16 + $0xe44] ss:$16 sps:$4 sm:$0xff]  }
 0x18a   : > { %4253 = vmatmul.mubr.bf16.vlgmr.msra.gmra.mxu0 %v20366_v33 }
 0x18b   : > { %4306 = vmatmul.mubr.bf16.vlgmr.msra.gmra.mxu1 %v20370_v34  ;;  %4327 = vmatpush1.bf16.msra.mxu0 %v17368_v29  ;;  %v17406_v29 = vld [vmem:[%s19998_s16 + $0xc24] ss:$16 sps:$4 sm:$0xff]  }
 0x18c   : > { %4380 = vmatpush1.bf16.msra.mxu1 %v17371_v30  ;;  %4328 = vmatprep.subr.bf16.mxu0 %v17376_v37  ;;  %v17409_v30 = vld [vmem:[%s19998_s16 + $0xe24] ss:$16 sps:$4 sm:$0xff]  }
 0x18d   : > { %4381 = vmatprep.subr.bf16.mxu1 %v17379_v38  ;;  %4262 = vmatprep.mubr.bf16.mxu0 %v20376_v40  ;;  %v17418_v37 = vld [vmem:[%s19998_s16 + $0xde4] ss:$16 sps:$4 sm:$0xff]  }
 0x18e   : > { %4315 = vmatprep.mubr.bf16.mxu1 %v20378_v50  ;;  %v17421_v38 = vld [vmem:[%s19998_s16 + $0xfe4] ss:$16 sps:$4 sm:$0xff]  }
 0x18f   : > { %4329 = vmatpush1.bf16.msra.mxu0 %v17374_v43  ;;  %v17422_v43 = vld [vmem:[%s19998_s16 + $0xdc0] ss:$16 sps:$4 sm:$0xff]  }
 0x190   : > { %4382 = vmatpush1.bf16.msra.mxu1 %v17377_v44  ;;  %4330 = vmatprep.subr.bf16.mxu0 %v17382_v45  ;;  %v17425_v44 = vld [vmem:[%s19998_s16 + $0xfc0] ss:$16 sps:$4 sm:$0xff]   ;;  %v17430_v45 = vld [vmem:[%s19998_s16 + $0xda4] ss:$16 sps:$4 sm:$0xff]  }
 0x191   : > { %4383 = vmatprep.subr.bf16.mxu1 %v17385_v49  ;;  %v17433_v49 = vld [vmem:[%s19998_s16 + $0xfa4] ss:$16 sps:$4 sm:$0xff]  }
 0x192   : > { %4263 = vmatmul.mubr.bf16.gmra.mxu0 %v20400_v59 }
 0x193   : > { %4316 = vmatmul.mubr.bf16.gmra.mxu1 %v20404_v0  ;;  %4331 = vmatpush1.bf16.msra.mxu0 %v17380_v60  ;;  %v17428_v60 = vld [vmem:[%s19998_s16 + $0xda0] ss:$16 sps:$4 sm:$0xff]  }
 0x194   : > { %4384 = vmatpush1.bf16.msra.mxu1 %v17383_v61  ;;  %4332 = vmatprep.subr.bf16.mxu0 %v17388_v2  ;;  %v17431_v61 = vld [vmem:[%s19998_s16 + $0xfa0] ss:$16 sps:$4 sm:$0xff]   ;;  %v17436_v2 = vld [vmem:[%s19998_s16 + $0xd84] ss:$16 sps:$4 sm:$0xff]  }
 0x195   : > { %4385 = vmatprep.subr.bf16.mxu1 %v17391_v3  ;;  %4358 = vmatprep.mubr.bf16.mxu0 %v20410_v5  ;;  %v17439_v3 = vld [vmem:[%s19998_s16 + $0xf84] ss:$16 sps:$4 sm:$0xff]  }
 0x196   : > { %4411 = vmatprep.mubr.bf16.mxu1 %v20414_v6 }
 0x197   : > { %4333 = vmatpush1.bf16.msra.mxu0 %v17386_v7  ;;  %v17434_v7 = vld [vmem:[%s19998_s16 + $0xd80] ss:$16 sps:$4 sm:$0xff]  }
 0x198   : > { %4386 = vmatpush1.bf16.msra.mxu1 %v17389_v9  ;;  %4334 = vmatprep.subr.bf16.mxu0 %v17394_v11  ;;  %v17437_v9 = vld [vmem:[%s19998_s16 + $0xf80] ss:$16 sps:$4 sm:$0xff]   ;;  %v17442_v11 = vld [vmem:[%s19998_s16 + $0xd64] ss:$16 sps:$4 sm:$0xff]  }
 0x199   : > { %4387 = vmatprep.subr.bf16.mxu1 %v17397_v12  ;;  %v17445_v12 = vld [vmem:[%s19998_s16 + $0xf64] ss:$16 sps:$4 sm:$0xff]  }
 0x19b   : > { %4335 = vmatpush1.bf16.msra.mxu0 %v17392_v13  ;;  %v17440_v13 = vld [vmem:[%s19998_s16 + $0xd60] ss:$16 sps:$4 sm:$0xff]  }
 0x19c   : > { %4388 = vmatpush1.bf16.msra.mxu1 %v17395_v14  ;;  %4336 = vmatprep.subr.bf16.mxu0 %v17400_v15  ;;  %v17443_v14 = vld [vmem:[%s19998_s16 + $0xf60] ss:$16 sps:$4 sm:$0xff]   ;;  %v17448_v15 = vld [vmem:[%s19998_s16 + $0xd44] ss:$16 sps:$4 sm:$0xff]  }
 0x19d   : > { %4389 = vmatprep.subr.bf16.mxu1 %v17403_v16  ;;  %v17451_v16 = vld [vmem:[%s19998_s16 + $0xf44] ss:$16 sps:$4 sm:$0xff]  }
 0x19f   : > { %4337 = vmatpush1.bf16.msra.mxu0 %v17398_v21  ;;  %v17446_v21 = vld [vmem:[%s19998_s16 + $0xd40] ss:$16 sps:$4 sm:$0xff]  }
 0x1a0   : > { %4390 = vmatpush1.bf16.msra.mxu1 %v17401_v26  ;;  %4338 = vmatprep.subr.bf16.mxu0 %v17406_v29  ;;  %v17449_v26 = vld [vmem:[%s19998_s16 + $0xf40] ss:$16 sps:$4 sm:$0xff]   ;;  %v17454_v29 = vld [vmem:[%s19998_s16 + $0xd24] ss:$16 sps:$4 sm:$0xff]  }
 0x1a1   : > { %4391 = vmatprep.subr.bf16.mxu1 %v17409_v30  ;;  %v17457_v30 = vld [vmem:[%s19998_s16 + $0xf24] ss:$16 sps:$4 sm:$0xff]  }
 0x1a3   : > { %4339 = vmatpush1.bf16.msra.mxu0 %v17404_v20  ;;  %v17452_v20 = vld [vmem:[%s19998_s16 + $0xd20] ss:$16 sps:$4 sm:$0xff]  }
 0x1a4   : > { %4392 = vmatpush1.bf16.msra.mxu1 %v17407_v22  ;;  %4340 = vmatprep.subr.bf16.mxu0 %v17412_v25  ;;  %v17455_v22 = vld [vmem:[%s19998_s16 + $0xf20] ss:$16 sps:$4 sm:$0xff]   ;;  %v571_v25 = vld [vmem:[%s19990_s0 + $0xd8] sm:$0xff] }
 0x1a5   : > { %4393 = vmatprep.subr.bf16.mxu1 %v17415_v32  ;;  %v575_v32 = vld [vmem:[%s19990_s0 + $0xf8] sm:$0xff] }
 0x1a7   : > { %4341 = vmatpush1.bf16.msra.mxu0 %v17410_v35  ;;  %v579_v35 = vld [vmem:[%s19990_s0 + $0x118] sm:$0xff] }
 0x1a8   : > { %4394 = vmatpush1.bf16.msra.mxu1 %v17413_v36  ;;  %4342 = vmatprep.subr.bf16.mxu0 %v17418_v37  ;;  %v583_v36 = vld [vmem:[%s19990_s0 + $0x138] sm:$0xff]  ;;  %v17460_v37 = vld [vmem:[%s19998_s16 + $0xd04] ss:$16 sps:$4 sm:$0xff]  }
 0x1a9   : > { %4395 = vmatprep.subr.bf16.mxu1 %v17421_v38  ;;  %v17463_v38 = vld [vmem:[%s19998_s16 + $0xf04] ss:$16 sps:$4 sm:$0xff]  }
 0x1ab   : > { %4343 = vmatpush2.bf16.msra.mxu0 %v17416_v46  ;;  %v1380_v46 = vcombine.low %v571_v25, %v575_v32 }
 0x1ac   : > { %4396 = vmatpush2.bf16.msra.mxu1 %v17419_v41  ;;  %4344 = vmatprep.subr.bf16.mxu0 %v17424_v48  ;;  %v1382_v41 = vcombine.low %v579_v35, %v583_v36  ;;  %v1381_v48 = vcombine.high %v571_v25, %v575_v32 }
 0x1ad   : > { %4397 = vmatprep.subr.bf16.mxu1 %v17427_v51  ;;  %v1383_v51 = vcombine.high %v579_v35, %v583_v36  ;;  %v17476_v36 = vld [vmem:[%s19998_s16 + $0xa8] ss:$16 sps:$4 sm:$0xff]  }
 0x1af   : > { %4345 = vmatpush2.bf16.msra.mxu0 %v17422_v43  ;;  %v17458_v43 = vld [vmem:[%s19998_s16 + $0xd00] ss:$16 sps:$4 sm:$0xff]  }
 0x1b0   : > { %4398 = vmatpush2.bf16.msra.mxu1 %v17425_v44  ;;  %4346 = vmatprep.subr.bf16.mxu0 %v17430_v45  ;;  %v17461_v44 = vld [vmem:[%s19998_s16 + $0xf00] ss:$16 sps:$4 sm:$0xff]   ;;  %v17466_v45 = vld [vmem:[%s19998_s16 + $0xec] ss:$16 sps:$4 sm:$0xff]  }
 0x1b1   : > { %4399 = vmatprep.subr.bf16.mxu1 %v17433_v49  ;;  %v17469_v49 = vld [vmem:[%s19998_s16 + $0x2ec] ss:$16 sps:$4 sm:$0xff]  }
 0x1b3   : > { %4347 = vmatpush2.bf16.msra.mxu0 %v17428_v60  ;;  %v1390_v60 = vrot.slane %v1380_v46, %v20083_v55 }
 0x1b4   : > { %4400 = vmatpush2.bf16.msra.mxu1 %v17431_v61  ;;  %4348 = vmatprep.subr.bf16.mxu0 %v17436_v2  ;;  %v1404_v61 = vrot.slane %v1382_v41, %v20083_v55  ;;  %v1397_v2 = vrot.slane %v1381_v48, %v20083_v55  ;;  %v17484_v41 = vld [vmem:[%s19998_s16 + $0x8c] ss:$16 sps:$4 sm:$0xff]  }
 0x1b5   : > { %4401 = vmatprep.subr.bf16.mxu1 %v17439_v3  ;;  %v1411_v3 = vrot.slane %v1383_v51, %v20083_v55  ;;  %v17487_v48 = vld [vmem:[%s19998_s16 + $0x28c] ss:$16 sps:$4 sm:$0xff]   ;;  %v17482_v51 = vld [vmem:[%s19998_s16 + $0x88] ss:$16 sps:$4 sm:$0xff]  }
 0x1b6   : > { %v20508_v35 = vcombine.low %v1390_v60, %v1404_v61 }
 0x1b7   : > { %4349 = vmatpush2.bf16.msra.mxu0 %v17434_v7  ;;  %v20482_v7 = vcombine.low %v20387_v53, %v20392_v54  ;;  %v20494_v53 = vcombine.high %v1397_v2, %v1411_v3 }
 0x1b8   : > { %4402 = vmatpush2.bf16.msra.mxu1 %v17437_v9  ;;  %4350 = vmatprep.subr.bf16.mxu0 %v17442_v11  ;;  %v20486_v9 = vcombine.low %v20395_v56, %v20398_v58  ;;  %v17464_v11 = vld [vmem:[%s19998_s16 + $0xe8] ss:$16 sps:$4 sm:$0xff]  }
 0x1b9   : > { %4403 = vmatprep.subr.bf16.mxu1 %v17445_v12  ;;  %v17467_v12 = vld [vmem:[%s19998_s16 + $0x2e8] ss:$16 sps:$4 sm:$0xff]  }
 0x1ba   : > { %v17470_v56 = vld [vmem:[%s19998_s16 + $0xc8] ss:$16 sps:$4 sm:$0xff]  }
 0x1bb   : > { %4351 = vmatpush2.bf16.msra.mxu0 %v17440_v13  ;;  %v17472_v13 = vld [vmem:[%s19998_s16 + $0xcc] ss:$16 sps:$4 sm:$0xff]   ;;  %v17473_v58 = vld [vmem:[%s19998_s16 + $0x2c8] ss:$16 sps:$4 sm:$0xff]  }
 0x1bc   : > { %4404 = vmatpush2.bf16.msra.mxu1 %v17443_v14  ;;  %4352 = vmatprep.subr.bf16.mxu0 %v17448_v15  ;;  %v17475_v14 = vld [vmem:[%s19998_s16 + $0x2cc] ss:$16 sps:$4 sm:$0xff]   ;;  %v20492_v15 = vcombine.high %v1390_v60, %v1404_v61  ;;  %v17491_v60 = vld [vmem:[%s19998_s16 + $0x268] ss:$16 sps:$4 sm:$0xff]  }
 0x1bd   : > { %4405 = vmatprep.subr.bf16.mxu1 %v17451_v16  ;;  %v17496_v61 = vld [vmem:[%s19998_s16 + $0x4c] ss:$16 sps:$4 sm:$0xff]  }
 0x1bf   : > { %4353 = vmatpush2.bf16.msra.mxu0 %v17446_v21 }
 0x1c0   : > { %4406 = vmatpush2.bf16.msra.mxu1 %v17449_v26  ;;  %4354 = vmatprep.subr.bf16.mxu0 %v17454_v29  ;;  %v17478_v26 = vld [vmem:[%s19998_s16 + $0xac] ss:$16 sps:$4 sm:$0xff]  }
 0x1c1   : > { %4407 = vmatprep.subr.bf16.mxu1 %v17457_v30 }
 0x1c3   : > { %4355 = vmatpush2.bf16.msra.mxu0 %v17452_v20  ;;  %v17481_v20 = vld [vmem:[%s19998_s16 + $0x2ac] ss:$16 sps:$4 sm:$0xff]  }
 0x1c4   : > { %4408 = vmatpush2.bf16.msra.mxu1 %v17455_v22  ;;  %4356 = vmatprep.subr.bf16.mxu0 %v17460_v37  ;;  %v17479_v37 = vld [vmem:[%s19998_s16 + $0x2a8] ss:$16 sps:$4 sm:$0xff]  }
 0x1c5   : > { %4409 = vmatprep.subr.bf16.mxu1 %v17463_v38  ;;  %v20512_v38 = vcombine.low %v1397_v2, %v1411_v3  ;;  %v17499_v2 = vld [vmem:[%s19998_s16 + $0x24c] ss:$16 sps:$4 sm:$0xff]   ;;  %v17494_v3 = vld [vmem:[%s19998_s16 + $0x48] ss:$16 sps:$4 sm:$0xff]  }
 0x1c7   : > { %4357 = vmatpush2.bf16.msra.mxu0 %v17458_v43  ;;  %v17485_v43 = vld [vmem:[%s19998_s16 + $0x288] ss:$16 sps:$4 sm:$0xff]  }
 0x1c8   : > { %4410 = vmatpush2.bf16.msra.mxu1 %v17461_v44  ;;  %4432 = vmatprep.subr.bf16.mxu0 %v17466_v45  ;;  %v17490_v44 = vld [vmem:[%s19998_s16 + $0x6c] ss:$16 sps:$4 sm:$0xff]  }
 0x1c9   : > { %4485 = vmatprep.subr.bf16.mxu1 %v17469_v49  ;;  %v17493_v45 = vld [vmem:[%s19998_s16 + $0x26c] ss:$16 sps:$4 sm:$0xff]   ;;  %v17488_v49 = vld [vmem:[%s19998_s16 + $0x68] ss:$16 sps:$4 sm:$0xff]  }
 0x1ca   : > { %v4042_v54 = vpop.f32.mrf.mxu0  ;;  %4359 = vmatmul.mubr.bf16.vlgmr.msra.gmra.mxu0 %v20482_v7 }
 0x1cb   : > { %v4095_v16 = vpop.f32.mrf.mxu1  ;;  %4412 = vmatmul.mubr.bf16.vlgmr.msra.gmra.mxu1 %v20486_v9  ;;  %4433 = vmatpush1.bf16.msra.mxu0 %v17464_v11  ;;  %v17497_v11 = vld [vmem:[%s19998_s16 + $0x248] ss:$16 sps:$4 sm:$0xff]  }
 0x1cc   : > { %v20500_v21 = vadd.f32 %v4095_v16, %v4042_v54  ;;  %4486 = vmatpush1.bf16.msra.mxu1 %v17467_v12  ;;  %v4044_v29 = vpop.f32.mrf.mxu0  ;;  %4434 = vmatprep.subr.bf16.mxu0 %v17472_v13  ;;  %v17500_v13 = vld [vmem:[%s19998_s16 + $0x28] ss:$16 sps:$4 sm:$0xff]  }
 0x1cd   : > { %v4097_v30 = vpop.f32.mrf.mxu1  ;;  %4487 = vmatprep.subr.bf16.mxu1 %v17475_v14  ;;  %4368 = vmatprep.mubr.bf16.mxu0 %v20492_v15  ;;  %v17503_v14 = vld [vmem:[%s19998_s16 + $0x228] ss:$16 sps:$4 sm:$0xff]  }
 0x1ce   : > { %v20504_v22 = vadd.f32 %v4097_v30, %v4044_v29  ;;  %4421 = vmatprep.mubr.bf16.mxu1 %v20494_v53  ;;  %v4046_v25 = vpop.f32.mrf.mxu0  ;;  %v17506_v30 = vld [vmem:[%s19998_s16 + $0x8] ss:$16 sps:$4 sm:$0xff]  }
 0x1cf   : > { %v4099_v32 = vpop.f32.mrf.mxu1  ;;  %4435 = vmatpush1.bf16.msra.mxu0 %v17470_v56  ;;  %v17508_v56 = vld [vmem:[%s19998_s16 + $0xc] ss:$16 sps:$4 sm:$0xff]  }
 0x1d0   : > { %v20514_v46 = vadd.f32 %v4099_v32, %v4046_v25  ;;  %4488 = vmatpush1.bf16.msra.mxu1 %v17473_v58  ;;  %4436 = vmatprep.subr.bf16.mxu0 %v17478_v26  ;;  %v20533_v12 = vpop.f32.mrf.mxu0  ;;  %v17511_v58 = vld [vmem:[%s19998_s16 + $0x20c] ss:$16 sps:$4 sm:$0xff]  }
 0x1d1   : > { %4489 = vmatprep.subr.bf16.mxu1 %v17481_v20  ;;  %23200 = vst [vmem:[#allocation40_spill] sm:$0xff] %v20533_v12  ;;  %v20538_v16 = vpop.f32.mrf.mxu1  ;;  %v17509_v20 = vld [vmem:[%s19998_s16 + $0x208] ss:$16 sps:$4 sm:$0xff]   ;;  %v17514_v32 = vld [vmem:[%s19998_s16 + $0x1ec] ss:$16 sps:$4 sm:$0xff]  }
 0x1d2   : > { %4369 = vmatmul.mubr.bf16.gmra.mxu0 %v20508_v35  ;;  %v4052_v54 = vpop.f32.mrf.mxu0  ;;  %23201 = vst [vmem:[#allocation41_spill] sm:$0xff] %v20538_v16  ;;  %v18255_v12 = vld [vmem:[%s19998_s16 + $0x128c] ss:$16 sps:$4 sm:$0xff]  }
 0x1d3   : > { %4422 = vmatmul.mubr.bf16.gmra.mxu1 %v20512_v38  ;;  %4437 = vmatpush1.bf16.msra.mxu0 %v17476_v36  ;;  %v4105_v26 = vpop.f32.mrf.mxu1 }
 0x1d4   : > { %4490 = vmatpush1.bf16.msra.mxu1 %v17479_v37  ;;  %4438 = vmatprep.subr.bf16.mxu0 %v17484_v41  ;;  %v4054_v29 = vpop.f32.mrf.mxu0  ;;  %v20544_v25 = vadd.f32 %v4105_v26, %v4052_v54  ;;  %v17517_v37 = vld [vmem:[%s19998_s16 + $0x3ec] ss:$16 sps:$4 sm:$0xff]   ;;  %v17530_v54 = vld [vmem:[%s19998_s16 + $0x188] ss:$16 sps:$4 sm:$0xff]  }
 0x1d5   : > { %4491 = vmatprep.subr.bf16.mxu1 %v17487_v48  ;;  %4464 = vmatprep.mubr.bf16.mxu0 %v20097_v8  ;;  %v17502_v8 = vld [vmem:[%s19998_s16 + $0x2c] ss:$16 sps:$4 sm:$0xff]   ;;  %v4107_v36 = vpop.f32.mrf.mxu1 }
 0x1d6   : > { %4517 = vmatprep.mubr.bf16.mxu1 %v20100_v10  ;;  %v17505_v10 = vld [vmem:[%s19998_s16 + $0x22c] ss:$16 sps:$4 sm:$0xff]   ;;  %v20548_v41 = vadd.f32 %v4107_v36, %v4054_v29  ;;  %v4056_v48 = vpop.f32.mrf.mxu0  ;;  %v17536_v29 = vld [vmem:[%s19998_s16 + $0x168] ss:$16 sps:$4 sm:$0xff]  }
 0x1d7   : > { %4439 = vmatpush1.bf16.msra.mxu0 %v17482_v51  ;;  %v4109_v51 = vpop.f32.mrf.mxu1  ;;  %v17541_v26 = vld [vmem:[%s19998_s16 + $0x36c] ss:$16 sps:$4 sm:$0xff]   ;;  %v17542_v36 = vld [vmem:[%s19998_s16 + $0x148] ss:$16 sps:$4 sm:$0xff]  }
 0x1d8   : > { %4492 = vmatpush1.bf16.msra.mxu1 %v17485_v43  ;;  %4440 = vmatprep.subr.bf16.mxu0 %v17490_v44  ;;  %v17512_v43 = vld [vmem:[%s19998_s16 + $0x1e8] ss:$16 sps:$4 sm:$0xff]  }
 0x1d9   : > { %4493 = vmatprep.subr.bf16.mxu1 %v17493_v45  ;;  %v17515_v44 = vld [vmem:[%s19998_s16 + $0x3e8] ss:$16 sps:$4 sm:$0xff]   ;;  %v20552_v45 = vadd.f32 %v4109_v51, %v4056_v48  ;;  %v17550_v48 = vld [vmem:[%s19998_s16 + $0x12c] ss:$16 sps:$4 sm:$0xff]  }
 0x1da   : > { %v17553_v51 = vld [vmem:[%s19998_s16 + $0x32c] ss:$16 sps:$4 sm:$0xff]  }
 0x1db   : > { %4441 = vmatpush1.bf16.msra.mxu0 %v17488_v49  ;;  %v17520_v49 = vld [vmem:[%s19998_s16 + $0x1cc] ss:$16 sps:$4 sm:$0xff]  }
 0x1dc   : > { %4494 = vmatpush1.bf16.msra.mxu1 %v17491_v60  ;;  %4442 = vmatprep.subr.bf16.mxu0 %v17496_v61  ;;  %v17523_v60 = vld [vmem:[%s19998_s16 + $0x3cc] ss:$16 sps:$4 sm:$0xff]   ;;  %v17518_v61 = vld [vmem:[%s19998_s16 + $0x1c8] ss:$16 sps:$4 sm:$0xff]  }
 0x1dd   : > { %4495 = vmatprep.subr.bf16.mxu1 %v17499_v2  ;;  %v17521_v2 = vld [vmem:[%s19998_s16 + $0x3c8] ss:$16 sps:$4 sm:$0xff]  }
 0x1df   : > { %4443 = vmatpush1.bf16.msra.mxu0 %v17494_v3  ;;  %v17526_v3 = vld [vmem:[%s19998_s16 + $0x1ac] ss:$16 sps:$4 sm:$0xff]  }
 0x1e0   : > { %4496 = vmatpush1.bf16.msra.mxu1 %v17497_v11  ;;  %4444 = vmatprep.subr.bf16.mxu0 %v17502_v8  ;;  %v17529_v11 = vld [vmem:[%s19998_s16 + $0x3ac] ss:$16 sps:$4 sm:$0xff]   ;;  %v17524_v8 = vld [vmem:[%s19998_s16 + $0x1a8] ss:$16 sps:$4 sm:$0xff]  }
 0x1e1   : > { %4497 = vmatprep.subr.bf16.mxu1 %v17505_v10  ;;  %v17527_v10 = vld [vmem:[%s19998_s16 + $0x3a8] ss:$16 sps:$4 sm:$0xff]  }
 0x1e3   : > { %4445 = vmatpush1.bf16.msra.mxu0 %v17500_v13  ;;  %v17532_v13 = vld [vmem:[%s19998_s16 + $0x18c] ss:$16 sps:$4 sm:$0xff]  }
 0x1e4   : > { %4498 = vmatpush1.bf16.msra.mxu1 %v17503_v14  ;;  %4446 = vmatprep.subr.bf16.mxu0 %v17508_v56  ;;  %v17535_v14 = vld [vmem:[%s19998_s16 + $0x38c] ss:$16 sps:$4 sm:$0xff]   ;;  %v17533_v56 = vld [vmem:[%s19998_s16 + $0x388] ss:$16 sps:$4 sm:$0xff]  }
 0x1e5   : > { %4499 = vmatprep.subr.bf16.mxu1 %v17511_v58  ;;  %v17538_v58 = vld [vmem:[%s19998_s16 + $0x16c] ss:$16 sps:$4 sm:$0xff]  }
 0x1e7   : > { %4447 = vmatpush1.bf16.msra.mxu0 %v17506_v30  ;;  %v17539_v30 = vld [vmem:[%s19998_s16 + $0x368] ss:$16 sps:$4 sm:$0xff]  }
 0x1e8   : > { %4500 = vmatpush1.bf16.msra.mxu1 %v17509_v20  ;;  %4448 = vmatprep.subr.bf16.mxu0 %v17514_v32  ;;  %v17544_v20 = vld [vmem:[%s19998_s16 + $0x14c] ss:$16 sps:$4 sm:$0xff]  }
 0x1e9   : > { %4501 = vmatprep.subr.bf16.mxu1 %v17517_v37  ;;  %v17547_v32 = vld [vmem:[%s19998_s16 + $0x34c] ss:$16 sps:$4 sm:$0xff]   ;;  %v17545_v37 = vld [vmem:[%s19998_s16 + $0x348] ss:$16 sps:$4 sm:$0xff]  }
 0x1eb   : > { %4449 = vmatpush2.bf16.msra.mxu0 %v17512_v43  ;;  %v17548_v43 = vld [vmem:[%s19998_s16 + $0x128] ss:$16 sps:$4 sm:$0xff]  }
 0x1ec   : > { %4502 = vmatpush2.bf16.msra.mxu1 %v17515_v44  ;;  %4450 = vmatprep.subr.bf16.mxu0 %v17520_v49  ;;  %v17551_v44 = vld [vmem:[%s19998_s16 + $0x328] ss:$16 sps:$4 sm:$0xff]   ;;  %v17556_v49 = vld [vmem:[%s19998_s16 + $0x10c] ss:$16 sps:$4 sm:$0xff]  }
 0x1ed   : > { %4503 = vmatprep.subr.bf16.mxu1 %v17523_v60  ;;  %v17559_v60 = vld [vmem:[%s19998_s16 + $0x30c] ss:$16 sps:$4 sm:$0xff]  }
 0x1ef   : > { %4451 = vmatpush2.bf16.msra.mxu0 %v17518_v61  ;;  %v17554_v61 = vld [vmem:[%s19998_s16 + $0x108] ss:$16 sps:$4 sm:$0xff]  }
 0x1f0   : > { %4504 = vmatpush2.bf16.msra.mxu1 %v17521_v2  ;;  %4452 = vmatprep.subr.bf16.mxu0 %v17526_v3  ;;  %v17557_v2 = vld [vmem:[%s19998_s16 + $0x308] ss:$16 sps:$4 sm:$0xff]   ;;  %v17562_v3 = vld [vmem:[%s19998_s16 + $0x4ec] ss:$16 sps:$4 sm:$0xff]  }
 0x1f1   : > { %4505 = vmatprep.subr.bf16.mxu1 %v17529_v11  ;;  %v17565_v11 = vld [vmem:[%s19998_s16 + $0x6ec] ss:$16 sps:$4 sm:$0xff]  }
 0x1f3   : > { %4453 = vmatpush2.bf16.msra.mxu0 %v17524_v8  ;;  %v17560_v8 = vld [vmem:[%s19998_s16 + $0x4e8] ss:$16 sps:$4 sm:$0xff]  }
 0x1f4   : > { %4506 = vmatpush2.bf16.msra.mxu1 %v17527_v10  ;;  %4454 = vmatprep.subr.bf16.mxu0 %v17532_v13  ;;  %v17563_v10 = vld [vmem:[%s19998_s16 + $0x6e8] ss:$16 sps:$4 sm:$0xff]   ;;  %v20586_v13 = vpop.f32.mrf.mxu0 }
 0x1f5   : > { %4507 = vmatprep.subr.bf16.mxu1 %v17535_v14  ;;  %23202 = vst [vmem:[#allocation42_spill] sm:$0xff] %v20586_v13  ;;  %v20588_v14 = vpop.f32.mrf.mxu1 }
 0x1f6   : > { %23203 = vst [vmem:[#allocation43_spill] sm:$0xff] %v20588_v14 }
 0x1f7   : > { %4455 = vmatpush2.bf16.msra.mxu0 %v17530_v54  ;;  %v17568_v54 = vld [vmem:[%s19998_s16 + $0x4cc] ss:$16 sps:$4 sm:$0xff]  }
 0x1f8   : > { %4508 = vmatpush2.bf16.msra.mxu1 %v17533_v56  ;;  %4456 = vmatprep.subr.bf16.mxu0 %v17538_v58  ;;  %v17571_v56 = vld [vmem:[%s19998_s16 + $0x6cc] ss:$16 sps:$4 sm:$0xff]   ;;  %v17566_v58 = vld [vmem:[%s19998_s16 + $0x4c8] ss:$16 sps:$4 sm:$0xff]  }
 0x1f9   : > { %4509 = vmatprep.subr.bf16.mxu1 %v17541_v26 }
 0x1fb   : > { %4457 = vmatpush2.bf16.msra.mxu0 %v17536_v29 }
 0x1fc   : > { %4510 = vmatpush2.bf16.msra.mxu1 %v17539_v30  ;;  %4458 = vmatprep.subr.bf16.mxu0 %v17544_v20  ;;  %v17569_v20 = vld [vmem:[%s19998_s16 + $0x6c8] ss:$16 sps:$4 sm:$0xff]  }
 0x1fd   : > { %4511 = vmatprep.subr.bf16.mxu1 %v17547_v32 }
 0x1ff   : > { %4459 = vmatpush2.bf16.msra.mxu0 %v17542_v36 }
 0x200   : > { %4512 = vmatpush2.bf16.msra.mxu1 %v17545_v37  ;;  %4460 = vmatprep.subr.bf16.mxu0 %v17550_v48  ;;  %v17574_v37 = vld [vmem:[%s19998_s16 + $0x4ac] ss:$16 sps:$4 sm:$0xff]  }
 0x201   : > { %4513 = vmatprep.subr.bf16.mxu1 %v17553_v51  ;;  %v17577_v48 = vld [vmem:[%s19998_s16 + $0x6ac] ss:$16 sps:$4 sm:$0xff]  }
 0x203   : > { %4461 = vmatpush2.bf16.msra.mxu0 %v17548_v43 }
 0x204   : > { %4514 = vmatpush2.bf16.msra.mxu1 %v17551_v44  ;;  %4462 = vmatprep.subr.bf16.mxu0 %v17556_v49 }
 0x205   : > { %4515 = vmatprep.subr.bf16.mxu1 %v17559_v60  ;;  %v17575_v60 = vld [vmem:[%s19998_s16 + $0x6a8] ss:$16 sps:$4 sm:$0xff]  }
 0x207   : > { %4463 = vmatpush2.bf16.msra.mxu0 %v17554_v61 }
 0x208   : > { %4516 = vmatpush2.bf16.msra.mxu1 %v17557_v2  ;;  %4538 = vmatprep.subr.bf16.mxu0 %v17562_v3  ;;  %v17583_v2 = vld [vmem:[%s19998_s16 + $0x68c] ss:$16 sps:$4 sm:$0xff]   ;;  %v17578_v3 = vld [vmem:[%s19998_s16 + $0x488] ss:$16 sps:$4 sm:$0xff]  }
 0x209   : > { %4591 = vmatprep.subr.bf16.mxu1 %v17565_v11 }
 0x20a   : > { %v4148_v26 = vpop.f32.mrf.mxu0  ;;  %4465 = vmatmul.mubr.bf16.vlgmr.msra.gmra.mxu0 %v20116_v23  ;;  %v17572_v23 = vld [vmem:[%s19998_s16 + $0x4a8] ss:$16 sps:$4 sm:$0xff]  }
 0x20b   : > { %v4201_v29 = vpop.f32.mrf.mxu1  ;;  %4518 = vmatmul.mubr.bf16.vlgmr.msra.gmra.mxu1 %v20118_v24  ;;  %v4149_v30 = vadd.f32 %v4148_v26, %v20500_v21  ;;  %4539 = vmatpush1.bf16.msra.mxu0 %v17560_v8  ;;  %v17589_v26 = vld [vmem:[%s19998_s16 + $0x66c] ss:$16 sps:$4 sm:$0xff]  }
 0x20c   : > { %4592 = vmatpush1.bf16.msra.mxu1 %v17563_v10  ;;  %v4150_v32 = vpop.f32.mrf.mxu0  ;;  %4540 = vmatprep.subr.bf16.mxu0 %v17568_v54  ;;  %v17581_v10 = vld [vmem:[%s19998_s16 + $0x688] ss:$16 sps:$4 sm:$0xff]  }
 0x20d   : > { %v4203_v36 = vpop.f32.mrf.mxu1  ;;  %4593 = vmatprep.subr.bf16.mxu1 %v17571_v56  ;;  %v20599_v51 = vadd.f32 %v4201_v29, %v4149_v30  ;;  %v4151_v43 = vadd.f32 %v4150_v32, %v20504_v22  ;;  %4474 = vmatprep.mubr.bf16.mxu0 %v20153_v62  ;;  %v17580_v62 = vld [vmem:[%s19998_s16 + $0x48c] ss:$16 sps:$4 sm:$0xff]  }
 0x20e   : > { %4527 = vmatprep.mubr.bf16.mxu1 %v20158_v1  ;;  %v4152_v24 = vpop.f32.mrf.mxu0 }
 0x20f   : > { %v4205_v21 = vpop.f32.mrf.mxu1  ;;  %v20605_v44 = vadd.f32 %v4203_v36, %v4151_v43  ;;  %v4153_v49 = vadd.f32 %v4152_v24, %v20514_v46  ;;  %4541 = vmatpush1.bf16.msra.mxu0 %v17566_v58  ;;  %v17586_v58 = vld [vmem:[%s19998_s16 + $0x46c] ss:$16 sps:$4 sm:$0xff]   ;;  %v17599_v24 = vld [vmem:[%s19998_s16 + $0x628] ss:$16 sps:$4 sm:$0xff]  }
 0x210   : > { %4594 = vmatpush1.bf16.msra.mxu1 %v17569_v20  ;;  %v20609_v61 = vpop.f32.mrf.mxu0  ;;  %4542 = vmatprep.subr.bf16.mxu0 %v17574_v37  ;;  %v17592_v36 = vld [vmem:[%s19998_s16 + $0x44c] ss:$16 sps:$4 sm:$0xff]   ;;  %v17590_v37 = vld [vmem:[%s19998_s16 + $0x448] ss:$16 sps:$4 sm:$0xff]  }
 0x211   : > { %23204 = vst [vmem:[#allocation44_spill] sm:$0xff] %v20609_v61  ;;  %v20611_v22 = vpop.f32.mrf.mxu1  ;;  %4595 = vmatprep.subr.bf16.mxu1 %v17577_v48  ;;  %v20615_v1 = vadd.f32 %v4205_v21, %v4153_v49  ;;  %v17598_v48 = vld [vmem:[%s19998_s16 + $0x42c] ss:$16 sps:$4 sm:$0xff]  }
 0x212   : > { %23205 = vst [vmem:[#allocation45_spill] sm:$0xff] %v20611_v22  ;;  %v4158_v11 = vpop.f32.mrf.mxu0  ;;  %4475 = vmatmul.mubr.bf16.gmra.mxu0 %v20155_v63  ;;  %v17584_v63 = vld [vmem:[%s19998_s16 + $0x468] ss:$16 sps:$4 sm:$0xff]   ;;  %v17601_v43 = vld [vmem:[%s19998_s16 + $0x62c] ss:$16 sps:$4 sm:$0xff]  }
 0x213   : > { %v4211_v46 = vpop.f32.mrf.mxu1  ;;  %4528 = vmatmul.mubr.bf16.gmra.mxu1 %v20163_v4  ;;  %v4159_v8 = vadd.f32 %v4158_v11, %v20544_v25  ;;  %4543 = vmatpush1.bf16.msra.mxu0 %v17572_v23  ;;  %v17596_v23 = vld [vmem:[%s19998_s16 + $0x428] ss:$16 sps:$4 sm:$0xff]   ;;  %v17604_v21 = vld [vmem:[%s19998_s16 + $0x40c] ss:$16 sps:$4 sm:$0xff]  }
 0x214   : > { %4596 = vmatpush1.bf16.msra.mxu1 %v17575_v60  ;;  %v4160_v54 = vpop.f32.mrf.mxu0  ;;  %4544 = vmatprep.subr.bf16.mxu0 %v17580_v62  ;;  %v17607_v49 = vld [vmem:[%s19998_s16 + $0x60c] ss:$16 sps:$4 sm:$0xff]   ;;  %v17602_v60 = vld [vmem:[%s19998_s16 + $0x408] ss:$16 sps:$4 sm:$0xff]  }
 0x215   : > { %v4213_v56 = vpop.f32.mrf.mxu1  ;;  %4597 = vmatprep.subr.bf16.mxu1 %v17583_v2  ;;  %v4161_v29 = vadd.f32 %v4160_v54, %v20548_v41  ;;  %v20625_v30 = vadd.f32 %v4211_v46, %v4159_v8  ;;  %4570 = vmatprep.mubr.bf16.mxu0 %v20192_v27  ;;  %v17587_v41 = vld [vmem:[%s19998_s16 + $0x668] ss:$16 sps:$4 sm:$0xff]   ;;  %v17595_v27 = vld [vmem:[%s19998_s16 + $0x64c] ss:$16 sps:$4 sm:$0xff]  }
 0x216   : > { %4623 = vmatprep.mubr.bf16.mxu1 %v20196_v28  ;;  %v4162_v4 = vpop.f32.mrf.mxu0  ;;  %v17605_v62 = vld [vmem:[%s19998_s16 + $0x608] ss:$16 sps:$4 sm:$0xff]   ;;  %v17610_v2 = vld [vmem:[%s19998_s16 + $0x5ec] ss:$16 sps:$4 sm:$0xff]  }
 0x217   : > { %v4215_v25 = vpop.f32.mrf.mxu1  ;;  %v4163_v20 = vadd.f32 %v4162_v4, %v20552_v45  ;;  %v20631_v32 = vadd.f32 %v4213_v56, %v4161_v29  ;;  %4545 = vmatpush1.bf16.msra.mxu0 %v17578_v3  ;;  %v17593_v45 = vld [vmem:[%s19998_s16 + $0x648] ss:$16 sps:$4 sm:$0xff]   ;;  %v17613_v3 = vld [vmem:[%s19998_s16 + $0x7ec] ss:$16 sps:$4 sm:$0xff]  }
 0x218   : > { %4598 = vmatpush1.bf16.msra.mxu1 %v17581_v10  ;;  %4546 = vmatprep.subr.bf16.mxu0 %v17586_v58  ;;  %v17608_v11 = vld [vmem:[%s19998_s16 + $0x5e8] ss:$16 sps:$4 sm:$0xff]   ;;  %v17616_v8 = vld [vmem:[%s19998_s16 + $0x5cc] ss:$16 sps:$4 sm:$0xff]  }
 0x219   : > { %4599 = vmatprep.subr.bf16.mxu1 %v17589_v26  ;;  %v20636_v28 = vadd.f32 %v4215_v25, %v4163_v20  ;;  %v17611_v46 = vld [vmem:[%s19998_s16 + $0x7e8] ss:$16 sps:$4 sm:$0xff]   ;;  %v17619_v10 = vld [vmem:[%s19998_s16 + $0x7cc] ss:$16 sps:$4 sm:$0xff]  }
 0x21a   : > { %v17614_v54 = vld [vmem:[%s19998_s16 + $0x5c8] ss:$16 sps:$4 sm:$0xff]   ;;  %v17622_v58 = vld [vmem:[%s19998_s16 + $0x5ac] ss:$16 sps:$4 sm:$0xff]  }
 0x21b   : > { %4547 = vmatpush1.bf16.msra.mxu0 %v17584_v63  ;;  %v17617_v56 = vld [vmem:[%s19998_s16 + $0x7c8] ss:$16 sps:$4 sm:$0xff]   ;;  %v17625_v26 = vld [vmem:[%s19998_s16 + $0x7ac] ss:$16 sps:$4 sm:$0xff]  }
 0x21c   : > { %4600 = vmatpush1.bf16.msra.mxu1 %v17587_v41  ;;  %4548 = vmatprep.subr.bf16.mxu0 %v17592_v36  ;;  %v17620_v29 = vld [vmem:[%s19998_s16 + $0x5a8] ss:$16 sps:$4 sm:$0xff]   ;;  %v17628_v4 = vld [vmem:[%s19998_s16 + $0x58c] ss:$16 sps:$4 sm:$0xff]  }
 0x21d   : > { %4601 = vmatprep.subr.bf16.mxu1 %v17595_v27  ;;  %v17623_v63 = vld [vmem:[%s19998_s16 + $0x7a8] ss:$16 sps:$4 sm:$0xff]   ;;  %v17631_v25 = vld [vmem:[%s19998_s16 + $0x78c] ss:$16 sps:$4 sm:$0xff]  }
 0x21e   : > { %v17626_v20 = vld [vmem:[%s19998_s16 + $0x588] ss:$16 sps:$4 sm:$0xff]   ;;  %v17634_v36 = vld [vmem:[%s19998_s16 + $0x56c] ss:$16 sps:$4 sm:$0xff]  }
 0x21f   : > { %4549 = vmatpush1.bf16.msra.mxu0 %v17590_v37  ;;  %v17629_v41 = vld [vmem:[%s19998_s16 + $0x788] ss:$16 sps:$4 sm:$0xff]   ;;  %v17637_v27 = vld [vmem:[%s19998_s16 + $0x76c] ss:$16 sps:$4 sm:$0xff]  }
 0x220   : > { %4602 = vmatpush1.bf16.msra.mxu1 %v17593_v45  ;;  %4550 = vmatprep.subr.bf16.mxu0 %v17598_v48  ;;  %v17632_v37 = vld [vmem:[%s19998_s16 + $0x568] ss:$16 sps:$4 sm:$0xff]   ;;  %v17640_v48 = vld [vmem:[%s19998_s16 + $0x54c] ss:$16 sps:$4 sm:$0xff]  }
 0x221   : > { %4603 = vmatprep.subr.bf16.mxu1 %v17601_v43  ;;  %v17635_v45 = vld [vmem:[%s19998_s16 + $0x768] ss:$16 sps:$4 sm:$0xff]   ;;  %v17643_v43 = vld [vmem:[%s19998_s16 + $0x74c] ss:$16 sps:$4 sm:$0xff]  }
 0x223   : > { %4551 = vmatpush1.bf16.msra.mxu0 %v17596_v23  ;;  %v17638_v23 = vld [vmem:[%s19998_s16 + $0x548] ss:$16 sps:$4 sm:$0xff]  }
 0x224   : > { %4604 = vmatpush1.bf16.msra.mxu1 %v17599_v24  ;;  %4552 = vmatprep.subr.bf16.mxu0 %v17604_v21  ;;  %v17641_v24 = vld [vmem:[%s19998_s16 + $0x748] ss:$16 sps:$4 sm:$0xff]   ;;  %v17646_v21 = vld [vmem:[%s19998_s16 + $0x52c] ss:$16 sps:$4 sm:$0xff]  }
 0x225   : > { %4605 = vmatprep.subr.bf16.mxu1 %v17607_v49  ;;  %v17649_v49 = vld [vmem:[%s19998_s16 + $0x72c] ss:$16 sps:$4 sm:$0xff]  }
 0x227   : > { %4553 = vmatpush1.bf16.msra.mxu0 %v17602_v60  ;;  %v17644_v60 = vld [vmem:[%s19998_s16 + $0x528] ss:$16 sps:$4 sm:$0xff]  }
 0x228   : > { %4606 = vmatpush1.bf16.msra.mxu1 %v17605_v62  ;;  %4554 = vmatprep.subr.bf16.mxu0 %v17610_v2  ;;  %v17647_v62 = vld [vmem:[%s19998_s16 + $0x728] ss:$16 sps:$4 sm:$0xff]   ;;  %v17652_v2 = vld [vmem:[%s19998_s16 + $0x50c] ss:$16 sps:$4 sm:$0xff]  }
 0x229   : > { %4607 = vmatprep.subr.bf16.mxu1 %v17613_v3  ;;  %v17655_v3 = vld [vmem:[%s19998_s16 + $0x70c] ss:$16 sps:$4 sm:$0xff]  }
 0x22b   : > { %4555 = vmatpush2.bf16.msra.mxu0 %v17608_v11  ;;  %v17650_v11 = vld [vmem:[%s19998_s16 + $0x508] ss:$16 sps:$4 sm:$0xff]  }
 0x22c   : > { %4608 = vmatpush2.bf16.msra.mxu1 %v17611_v46  ;;  %4556 = vmatprep.subr.bf16.mxu0 %v17616_v8  ;;  %v17653_v46 = vld [vmem:[%s19998_s16 + $0x708] ss:$16 sps:$4 sm:$0xff]   ;;  %v17658_v8 = vld [vmem:[%s19998_s16 + $0x8ec] ss:$16 sps:$4 sm:$0xff]  }
 0x22d   : > { %4609 = vmatprep.subr.bf16.mxu1 %v17619_v10  ;;  %v17661_v10 = vld [vmem:[%s19998_s16 + $0xaec] ss:$16 sps:$4 sm:$0xff]  }
 0x22f   : > { %4557 = vmatpush2.bf16.msra.mxu0 %v17614_v54  ;;  %v17656_v54 = vld [vmem:[%s19998_s16 + $0x8e8] ss:$16 sps:$4 sm:$0xff]  }
 0x230   : > { %4610 = vmatpush2.bf16.msra.mxu1 %v17617_v56  ;;  %4558 = vmatprep.subr.bf16.mxu0 %v17622_v58  ;;  %v17659_v56 = vld [vmem:[%s19998_s16 + $0xae8] ss:$16 sps:$4 sm:$0xff]   ;;  %v20684_v58 = vpop.f32.mrf.mxu0 }
 0x231   : > { %4611 = vmatprep.subr.bf16.mxu1 %v17625_v26  ;;  %23206 = vst [vmem:[#allocation46_spill] sm:$0xff] %v20684_v58  ;;  %v20686_v26 = vpop.f32.mrf.mxu1  ;;  %v18139_v58 = vld [vmem:[%s19998_s16 + $0x1ee0] ss:$16 sps:$4 sm:$0xff]  }
 0x232   : > { %23207 = vst [vmem:[#allocation47_spill] sm:$0xff] %v20686_v26  ;;  %v14773_v26 = vld [vmem:[%s19990_s0 + $0x58] sm:$0xff] }
 0x233   : > { %4559 = vmatpush2.bf16.msra.mxu0 %v17620_v29  ;;  %v17664_v29 = vld [vmem:[%s19998_s16 + $0x8cc] ss:$16 sps:$4 sm:$0xff]  }
 0x234   : > { %4612 = vmatpush2.bf16.msra.mxu1 %v17623_v63  ;;  %4560 = vmatprep.subr.bf16.mxu0 %v17628_v4  ;;  %v17667_v63 = vld [vmem:[%s19998_s16 + $0xacc] ss:$16 sps:$4 sm:$0xff]   ;;  %v17662_v4 = vld [vmem:[%s19998_s16 + $0x8c8] ss:$16 sps:$4 sm:$0xff]  }
 0x235   : > { %4613 = vmatprep.subr.bf16.mxu1 %v17631_v25  ;;  %v17665_v25 = vld [vmem:[%s19998_s16 + $0xac8] ss:$16 sps:$4 sm:$0xff]  }
 0x237   : > { %4561 = vmatpush2.bf16.msra.mxu0 %v17626_v20 }
 0x238   : > { %4614 = vmatpush2.bf16.msra.mxu1 %v17629_v41  ;;  %4562 = vmatprep.subr.bf16.mxu0 %v17634_v36 }
 0x239   : > { %4615 = vmatprep.subr.bf16.mxu1 %v17637_v27 }
 0x23b   : > { %4563 = vmatpush2.bf16.msra.mxu0 %v17632_v37 }
 0x23c   : > { %4616 = vmatpush2.bf16.msra.mxu1 %v17635_v45  ;;  %4564 = vmatprep.subr.bf16.mxu0 %v17640_v48  ;;  %v17670_v45 = vld [vmem:[%s19998_s16 + $0x8ac] ss:$16 sps:$4 sm:$0xff]  }
 0x23d   : > { %4617 = vmatprep.subr.bf16.mxu1 %v17643_v43  ;;  %v17673_v48 = vld [vmem:[%s19998_s16 + $0xaac] ss:$16 sps:$4 sm:$0xff]  }
 0x23f   : > { %4565 = vmatpush2.bf16.msra.mxu0 %v17638_v23 }
 0x240   : > { %4618 = vmatpush2.bf16.msra.mxu1 %v17641_v24  ;;  %4566 = vmatprep.subr.bf16.mxu0 %v17646_v21 }
 0x241   : > { %4619 = vmatprep.subr.bf16.mxu1 %v17649_v49 }
 0x243   : > { %4567 = vmatpush2.bf16.msra.mxu0 %v17644_v60 }
 0x244   : > { %4620 = vmatpush2.bf16.msra.mxu1 %v17647_v62  ;;  %4568 = vmatprep.subr.bf16.mxu0 %v17652_v2  ;;  %v17679_v62 = vld [vmem:[%s19998_s16 + $0xa8c] ss:$16 sps:$4 sm:$0xff]  }
 0x245   : > { %4621 = vmatprep.subr.bf16.mxu1 %v17655_v3 }
 0x247   : > { %4569 = vmatpush2.bf16.msra.mxu0 %v17650_v11  ;;  %v17674_v11 = vld [vmem:[%s19998_s16 + $0x888] ss:$16 sps:$4 sm:$0xff]  }
 0x248   : > { %4622 = vmatpush2.bf16.msra.mxu1 %v17653_v46  ;;  %4644 = vmatprep.subr.bf16.mxu0 %v17658_v8  ;;  %v17677_v46 = vld [vmem:[%s19998_s16 + $0xa88] ss:$16 sps:$4 sm:$0xff]  }
 0x249   : > { %4697 = vmatprep.subr.bf16.mxu1 %v17661_v10 }
 0x24a   : > { %v4254_v20 = vpop.f32.mrf.mxu0  ;;  %4571 = vmatmul.mubr.bf16.vlgmr.msra.gmra.mxu0 %v20242_v17  ;;  %v17668_v17 = vld [vmem:[%s19998_s16 + $0x8a8] ss:$16 sps:$4 sm:$0xff]  }
 0x24b   : > { %v4307_v41 = vpop.f32.mrf.mxu1  ;;  %4624 = vmatmul.mubr.bf16.vlgmr.msra.gmra.mxu1 %v20246_v18  ;;  %v4255_v36 = vadd.f32 %v4254_v20, %v20599_v51  ;;  %4645 = vmatpush1.bf16.msra.mxu0 %v17656_v54  ;;  %v17671_v18 = vld [vmem:[%s19998_s16 + $0xaa8] ss:$16 sps:$4 sm:$0xff]   ;;  %v17682_v54 = vld [vmem:[%s19998_s16 + $0x86c] ss:$16 sps:$4 sm:$0xff]  }
 0x24c   : > { %4698 = vmatpush1.bf16.msra.mxu1 %v17659_v56  ;;  %v4256_v27 = vpop.f32.mrf.mxu0  ;;  %4646 = vmatprep.subr.bf16.mxu0 %v17664_v29  ;;  %v17685_v56 = vld [vmem:[%s19998_s16 + $0xa6c] ss:$16 sps:$4 sm:$0xff]  }
 0x24d   : > { %v4309_v37 = vpop.f32.mrf.mxu1  ;;  %4699 = vmatprep.subr.bf16.mxu1 %v17667_v63  ;;  %v20697_v43 = vadd.f32 %v4307_v41, %v4255_v36  ;;  %v4257_v23 = vadd.f32 %v4256_v27, %v20605_v44  ;;  %4580 = vmatprep.mubr.bf16.mxu0 %v20252_v31  ;;  %v17676_v31 = vld [vmem:[%s19998_s16 + $0x88c] ss:$16 sps:$4 sm:$0xff]   ;;  %v17689_v41 = vld [vmem:[%s19998_s16 + $0xa48] ss:$16 sps:$4 sm:$0xff]  }
 0x24e   : > { %4633 = vmatprep.mubr.bf16.mxu1 %v20254_v19  ;;  %v4258_v51 = vpop.f32.mrf.mxu0  ;;  %v17694_v36 = vld [vmem:[%s19998_s16 + $0x82c] ss:$16 sps:$4 sm:$0xff]  }
 0x24f   : > { %v4311_v24 = vpop.f32.mrf.mxu1  ;;  %v20704_v21 = vadd.f32 %v4309_v37, %v4257_v23  ;;  %v4259_v49 = vadd.f32 %v4258_v51, %v20615_v1  ;;  %4647 = vmatpush1.bf16.msra.mxu0 %v17662_v4  ;;  %v17697_v27 = vld [vmem:[%s19998_s16 + $0xa2c] ss:$16 sps:$4 sm:$0xff]   ;;  %v17692_v37 = vld [vmem:[%s19998_s16 + $0x828] ss:$16 sps:$4 sm:$0xff]  }
 0x250   : > { %4700 = vmatpush1.bf16.msra.mxu1 %v17665_v25  ;;  %v20707_v60 = vpop.f32.mrf.mxu0  ;;  %4648 = vmatprep.subr.bf16.mxu0 %v17670_v45  ;;  %v17680_v25 = vld [vmem:[%s19998_s16 + $0x868] ss:$16 sps:$4 sm:$0xff]   ;;  %v17703_v23 = vld [vmem:[%s19998_s16 + $0xa0c] ss:$16 sps:$4 sm:$0xff]  }
 0x251   : > { %23208 = vst [vmem:[#allocation48_spill] sm:$0xff] %v20707_v60  ;;  %v20709_v44 = vpop.f32.mrf.mxu1  ;;  %4701 = vmatprep.subr.bf16.mxu1 %v17673_v48  ;;  %v20713_v19 = vadd.f32 %v4311_v24, %v4259_v49  ;;  %v17695_v45 = vld [vmem:[%s19998_s16 + $0xa28] ss:$16 sps:$4 sm:$0xff]   ;;  %v17700_v48 = vld [vmem:[%s19998_s16 + $0x80c] ss:$16 sps:$4 sm:$0xff]  }
 0x252   : > { %23209 = vst [vmem:[#allocation49_spill] sm:$0xff] %v20709_v44  ;;  %v4264_v2 = vpop.f32.mrf.mxu0  ;;  %4581 = vmatmul.mubr.bf16.gmra.mxu0 %v20268_v39  ;;  %v17706_v51 = vld [vmem:[%s19998_s16 + $0x9ec] ss:$16 sps:$4 sm:$0xff]   ;;  %v17704_v49 = vld [vmem:[%s19998_s16 + $0x9e8] ss:$16 sps:$4 sm:$0xff]  }
 0x253   : > { %v4317_v1 = vpop.f32.mrf.mxu1  ;;  %4634 = vmatmul.mubr.bf16.gmra.mxu1 %v20272_v42  ;;  %v4265_v3 = vadd.f32 %v4264_v2, %v20625_v30  ;;  %4649 = vmatpush1.bf16.msra.mxu0 %v17668_v17  ;;  %v17698_v17 = vld [vmem:[%s19998_s16 + $0x808] ss:$16 sps:$4 sm:$0xff]   ;;  %v17709_v24 = vld [vmem:[%s19998_s16 + $0xbec] ss:$16 sps:$4 sm:$0xff]   ;;  %v18136_v44 = vld [vmem:[%s19998_s16 + $0x1ce0] ss:$16 sps:$4 sm:$0xff]  }
 0x254   : > { %4702 = vmatpush1.bf16.msra.mxu1 %v17671_v18  ;;  %v4266_v8 = vpop.f32.mrf.mxu0  ;;  %4650 = vmatprep.subr.bf16.mxu0 %v17676_v31  ;;  %v17701_v18 = vld [vmem:[%s19998_s16 + $0xa08] ss:$16 sps:$4 sm:$0xff]   ;;  %v17715_v2 = vld [vmem:[%s19998_s16 + $0xbcc] ss:$16 sps:$4 sm:$0xff]  }
 0x255   : > { %v4319_v10 = vpop.f32.mrf.mxu1  ;;  %4703 = vmatprep.subr.bf16.mxu1 %v17679_v62  ;;  %v4267_v39 = vadd.f32 %v4266_v8, %v20631_v32  ;;  %v20723_v29 = vadd.f32 %v4317_v1, %v4265_v3  ;;  %4676 = vmatprep.mubr.bf16.mxu0 %v20292_v52  ;;  %v17683_v32 = vld [vmem:[%s19998_s16 + $0xa68] ss:$16 sps:$4 sm:$0xff]   ;;  %v17688_v52 = vld [vmem:[%s19998_s16 + $0x84c] ss:$16 sps:$4 sm:$0xff]  }
 0x256   : > { %4729 = vmatprep.mubr.bf16.mxu1 %v20299_v57  ;;  %v4268_v42 = vpop.f32.mrf.mxu0  ;;  %v17691_v57 = vld [vmem:[%s19998_s16 + $0xa4c] ss:$16 sps:$4 sm:$0xff]   ;;  %v17707_v31 = vld [vmem:[%s19998_s16 + $0xbe8] ss:$16 sps:$4 sm:$0xff]  }
 0x257   : > { %v4321_v30 = vpop.f32.mrf.mxu1  ;;  %v4269_v63 = vadd.f32 %v4268_v42, %v20636_v28  ;;  %v20728_v4 = vadd.f32 %v4319_v10, %v4267_v39  ;;  %4651 = vmatpush1.bf16.msra.mxu0 %v17674_v11  ;;  %v17686_v28 = vld [vmem:[%s19998_s16 + $0x848] ss:$16 sps:$4 sm:$0xff]   ;;  %v17712_v62 = vld [vmem:[%s19998_s16 + $0x9cc] ss:$16 sps:$4 sm:$0xff]  }
 0x258   : > { %4704 = vmatpush1.bf16.msra.mxu1 %v17677_v46  ;;  %4652 = vmatprep.subr.bf16.mxu0 %v17682_v54  ;;  %v17710_v1 = vld [vmem:[%s19998_s16 + $0x9c8] ss:$16 sps:$4 sm:$0xff]   ;;  %v17718_v11 = vld [vmem:[%s19998_s16 + $0x9ac] ss:$16 sps:$4 sm:$0xff]  }
 0x259   : > { %4705 = vmatprep.subr.bf16.mxu1 %v17685_v56  ;;  %v20734_v20 = vadd.f32 %v4321_v30, %v4269_v63  ;;  %v17713_v3 = vld [vmem:[%s19998_s16 + $0xbc8] ss:$16 sps:$4 sm:$0xff]   ;;  %v17721_v46 = vld [vmem:[%s19998_s16 + $0xbac] ss:$16 sps:$4 sm:$0xff]  }
 0x25a   : > { %v17716_v8 = vld [vmem:[%s19998_s16 + $0x9a8] ss:$16 sps:$4 sm:$0xff]   ;;  %v17724_v54 = vld [vmem:[%s19998_s16 + $0x98c] ss:$16 sps:$4 sm:$0xff]  }
 0x25b   : > { %4653 = vmatpush1.bf16.msra.mxu0 %v17680_v25  ;;  %v17719_v10 = vld [vmem:[%s19998_s16 + $0xba8] ss:$16 sps:$4 sm:$0xff]   ;;  %v17727_v56 = vld [vmem:[%s19998_s16 + $0xb8c] ss:$16 sps:$4 sm:$0xff]  }
 0x25c   : > { %4706 = vmatpush1.bf16.msra.mxu1 %v17683_v32  ;;  %4654 = vmatprep.subr.bf16.mxu0 %v17688_v52  ;;  %v17722_v39 = vld [vmem:[%s19998_s16 + $0x988] ss:$16 sps:$4 sm:$0xff]   ;;  %v17730_v30 = vld [vmem:[%s19998_s16 + $0x96c] ss:$16 sps:$4 sm:$0xff]  }
 0x25d   : > { %4707 = vmatprep.subr.bf16.mxu1 %v17691_v57  ;;  %v17725_v42 = vld [vmem:[%s19998_s16 + $0xb88] ss:$16 sps:$4 sm:$0xff]   ;;  %v17733_v63 = vld [vmem:[%s19998_s16 + $0xb6c] ss:$16 sps:$4 sm:$0xff]  }
 0x25e   : > { %v17728_v25 = vld [vmem:[%s19998_s16 + $0x968] ss:$16 sps:$4 sm:$0xff]   ;;  %v17736_v52 = vld [vmem:[%s19998_s16 + $0x94c] ss:$16 sps:$4 sm:$0xff]  }
 0x25f   : > { %4655 = vmatpush1.bf16.msra.mxu0 %v17686_v28  ;;  %v17731_v32 = vld [vmem:[%s19998_s16 + $0xb68] ss:$16 sps:$4 sm:$0xff]   ;;  %v17739_v57 = vld [vmem:[%s19998_s16 + $0xb4c] ss:$16 sps:$4 sm:$0xff]  }
 0x260   : > { %4708 = vmatpush1.bf16.msra.mxu1 %v17689_v41  ;;  %4656 = vmatprep.subr.bf16.mxu0 %v17694_v36  ;;  %v17734_v28 = vld [vmem:[%s19998_s16 + $0x948] ss:$16 sps:$4 sm:$0xff]   ;;  %v17742_v36 = vld [vmem:[%s19998_s16 + $0x92c] ss:$16 sps:$4 sm:$0xff]  }
 0x261   : > { %4709 = vmatprep.subr.bf16.mxu1 %v17697_v27  ;;  %v17737_v41 = vld [vmem:[%s19998_s16 + $0xb48] ss:$16 sps:$4 sm:$0xff]   ;;  %v17745_v27 = vld [vmem:[%s19998_s16 + $0xb2c] ss:$16 sps:$4 sm:$0xff]  }
 0x263   : > { %4657 = vmatpush1.bf16.msra.mxu0 %v17692_v37  ;;  %v17740_v37 = vld [vmem:[%s19998_s16 + $0x928] ss:$16 sps:$4 sm:$0xff]  }
 0x264   : > { %4710 = vmatpush1.bf16.msra.mxu1 %v17695_v45  ;;  %4658 = vmatprep.subr.bf16.mxu0 %v17700_v48  ;;  %v17743_v45 = vld [vmem:[%s19998_s16 + $0xb28] ss:$16 sps:$4 sm:$0xff]   ;;  %v17748_v48 = vld [vmem:[%s19998_s16 + $0x90c] ss:$16 sps:$4 sm:$0xff]  }
 0x265   : > { %4711 = vmatprep.subr.bf16.mxu1 %v17703_v23  ;;  %v17751_v23 = vld [vmem:[%s19998_s16 + $0xb0c] ss:$16 sps:$4 sm:$0xff]  }
 0x267   : > { %4659 = vmatpush1.bf16.msra.mxu0 %v17698_v17  ;;  %v17746_v17 = vld [vmem:[%s19998_s16 + $0x908] ss:$16 sps:$4 sm:$0xff]  }
 0x268   : > { %4712 = vmatpush1.bf16.msra.mxu1 %v17701_v18  ;;  %4660 = vmatprep.subr.bf16.mxu0 %v17706_v51  ;;  %v17749_v18 = vld [vmem:[%s19998_s16 + $0xb08] ss:$16 sps:$4 sm:$0xff]   ;;  %v17754_v51 = vld [vmem:[%s19998_s16 + $0xcec] ss:$16 sps:$4 sm:$0xff]  }
 0x269   : > { %4713 = vmatprep.subr.bf16.mxu1 %v17709_v24  ;;  %v17757_v24 = vld [vmem:[%s19998_s16 + $0xeec] ss:$16 sps:$4 sm:$0xff]  }
 0x26b   : > { %4661 = vmatpush2.bf16.msra.mxu0 %v17704_v49  ;;  %v17752_v49 = vld [vmem:[%s19998_s16 + $0xce8] ss:$16 sps:$4 sm:$0xff]  }
 0x26c   : > { %4714 = vmatpush2.bf16.msra.mxu1 %v17707_v31  ;;  %4662 = vmatprep.subr.bf16.mxu0 %v17712_v62  ;;  %v17755_v31 = vld [vmem:[%s19998_s16 + $0xee8] ss:$16 sps:$4 sm:$0xff]   ;;  %v20782_v62 = vpop.f32.mrf.mxu0 }
 0x26d   : > { %4715 = vmatprep.subr.bf16.mxu1 %v17715_v2  ;;  %23210 = vst [vmem:[#allocation50_spill] sm:$0xff] %v20782_v62  ;;  %v20784_v2 = vpop.f32.mrf.mxu1 }
 0x26e   : > { %23211 = vst [vmem:[#allocation51_spill] sm:$0xff] %v20784_v2 }
 0x26f   : > { %4663 = vmatpush2.bf16.msra.mxu0 %v17710_v1  ;;  %v17760_v1 = vld [vmem:[%s19998_s16 + $0xccc] ss:$16 sps:$4 sm:$0xff]  }
 0x270   : > { %4716 = vmatpush2.bf16.msra.mxu1 %v17713_v3  ;;  %4664 = vmatprep.subr.bf16.mxu0 %v17718_v11  ;;  %v17763_v3 = vld [vmem:[%s19998_s16 + $0xecc] ss:$16 sps:$4 sm:$0xff]   ;;  %v17758_v11 = vld [vmem:[%s19998_s16 + $0xcc8] ss:$16 sps:$4 sm:$0xff]  }
 0x271   : > { %4717 = vmatprep.subr.bf16.mxu1 %v17721_v46  ;;  %v17761_v46 = vld [vmem:[%s19998_s16 + $0xec8] ss:$16 sps:$4 sm:$0xff]  }
 0x273   : > { %4665 = vmatpush2.bf16.msra.mxu0 %v17716_v8 }
 0x274   : > { %4718 = vmatpush2.bf16.msra.mxu1 %v17719_v10  ;;  %4666 = vmatprep.subr.bf16.mxu0 %v17724_v54 }
 0x275   : > { %4719 = vmatprep.subr.bf16.mxu1 %v17727_v56 }
 0x277   : > { %4667 = vmatpush2.bf16.msra.mxu0 %v17722_v39 }
 0x278   : > { %4720 = vmatpush2.bf16.msra.mxu1 %v17725_v42  ;;  %4668 = vmatprep.subr.bf16.mxu0 %v17730_v30  ;;  %v17766_v42 = vld [vmem:[%s19998_s16 + $0xcac] ss:$16 sps:$4 sm:$0xff]  }
 0x279   : > { %4721 = vmatprep.subr.bf16.mxu1 %v17733_v63  ;;  %v17769_v30 = vld [vmem:[%s19998_s16 + $0xeac] ss:$16 sps:$4 sm:$0xff]  }
 0x27b   : > { %4669 = vmatpush2.bf16.msra.mxu0 %v17728_v25 }
 0x27c   : > { %4722 = vmatpush2.bf16.msra.mxu1 %v17731_v32  ;;  %4670 = vmatprep.subr.bf16.mxu0 %v17736_v52 }
 0x27d   : > { %4723 = vmatprep.subr.bf16.mxu1 %v17739_v57 }
 0x27f   : > { %4671 = vmatpush2.bf16.msra.mxu0 %v17734_v28 }
 0x280   : > { %4724 = vmatpush2.bf16.msra.mxu1 %v17737_v41  ;;  %4672 = vmatprep.subr.bf16.mxu0 %v17742_v36  ;;  %v17775_v41 = vld [vmem:[%s19998_s16 + $0xe8c] ss:$16 sps:$4 sm:$0xff]  }
 0x281   : > { %4725 = vmatprep.subr.bf16.mxu1 %v17745_v27  ;;  %v17773_v27 = vld [vmem:[%s19998_s16 + $0xe88] ss:$16 sps:$4 sm:$0xff]  }
 0x283   : > { %4673 = vmatpush2.bf16.msra.mxu0 %v17740_v37 }
 0x284   : > { %4726 = vmatpush2.bf16.msra.mxu1 %v17743_v45  ;;  %4674 = vmatprep.subr.bf16.mxu0 %v17748_v48 }
 0x285   : > { %4727 = vmatprep.subr.bf16.mxu1 %v17751_v23 }
 0x287   : > { %4675 = vmatpush2.bf16.msra.mxu0 %v17746_v17  ;;  %v17778_v17 = vld [vmem:[%s19998_s16 + $0xc6c] ss:$16 sps:$4 sm:$0xff]  }
 0x288   : > { %4728 = vmatpush2.bf16.msra.mxu1 %v17749_v18  ;;  %4750 = vmatprep.subr.bf16.mxu0 %v17754_v51  ;;  %v17781_v18 = vld [vmem:[%s19998_s16 + $0xe6c] ss:$16 sps:$4 sm:$0xff]  }
 0x289   : > { %4803 = vmatprep.subr.bf16.mxu1 %v17757_v24 }
 0x28a   : > { %v4360_v8 = vpop.f32.mrf.mxu0  ;;  %4677 = vmatmul.mubr.bf16.vlgmr.msra.gmra.mxu0 %v20366_v33  ;;  %v17764_v33 = vld [vmem:[%s19998_s16 + $0xca8] ss:$16 sps:$4 sm:$0xff]  }
 0x28b   : > { %v4413_v10 = vpop.f32.mrf.mxu1  ;;  %4730 = vmatmul.mubr.bf16.vlgmr.msra.gmra.mxu1 %v20370_v34  ;;  %v4361_v54 = vadd.f32 %v4360_v8, %v20697_v43  ;;  %4751 = vmatpush1.bf16.msra.mxu0 %v17752_v49  ;;  %v17767_v34 = vld [vmem:[%s19998_s16 + $0xea8] ss:$16 sps:$4 sm:$0xff]  }
 0x28c   : > { %4804 = vmatpush1.bf16.msra.mxu1 %v17755_v31  ;;  %v4362_v56 = vpop.f32.mrf.mxu0  ;;  %4752 = vmatprep.subr.bf16.mxu0 %v17760_v1  ;;  %v17779_v49 = vld [vmem:[%s19998_s16 + $0xe68] ss:$16 sps:$4 sm:$0xff]  }
 0x28d   : > { %v4415_v39 = vpop.f32.mrf.mxu1  ;;  %4805 = vmatprep.subr.bf16.mxu1 %v17763_v3  ;;  %v20795_v63 = vadd.f32 %v4413_v10, %v4361_v54  ;;  %v4363_v25 = vadd.f32 %v4362_v56, %v20704_v21  ;;  %4686 = vmatprep.mubr.bf16.mxu0 %v20376_v40  ;;  %v17772_v40 = vld [vmem:[%s19998_s16 + $0xc8c] ss:$16 sps:$4 sm:$0xff]   ;;  %v17788_v8 = vld [vmem:[%s19998_s16 + $0xc28] ss:$16 sps:$4 sm:$0xff]  }
 0x28e   : > { %4739 = vmatprep.mubr.bf16.mxu1 %v20378_v50  ;;  %v4364_v43 = vpop.f32.mrf.mxu0  ;;  %v17770_v50 = vld [vmem:[%s19998_s16 + $0xc88] ss:$16 sps:$4 sm:$0xff]   ;;  %v17787_v3 = vld [vmem:[%s19998_s16 + $0xe4c] ss:$16 sps:$4 sm:$0xff]  }
 0x28f   : > { %v4417_v32 = vpop.f32.mrf.mxu1  ;;  %v20802_v52 = vadd.f32 %v4415_v39, %v4363_v25  ;;  %v4365_v57 = vadd.f32 %v4364_v43, %v20713_v19  ;;  %4753 = vmatpush1.bf16.msra.mxu0 %v17758_v11  ;;  %v17790_v11 = vld [vmem:[%s19998_s16 + $0xc2c] ss:$16 sps:$4 sm:$0xff]   ;;  %v17791_v10 = vld [vmem:[%s19998_s16 + $0xe28] ss:$16 sps:$4 sm:$0xff]  }
 0x290   : > { %4806 = vmatpush1.bf16.msra.mxu1 %v17761_v46  ;;  %v20805_v28 = vpop.f32.mrf.mxu0  ;;  %4754 = vmatprep.subr.bf16.mxu0 %v17766_v42  ;;  %v17793_v46 = vld [vmem:[%s19998_s16 + $0xe2c] ss:$16 sps:$4 sm:$0xff]   ;;  %v17794_v39 = vld [vmem:[%s19998_s16 + $0xc08] ss:$16 sps:$4 sm:$0xff]  }
 0x291   : > { %23212 = vst [vmem:[#allocation52_spill] sm:$0xff] %v20805_v28  ;;  %v20807_v21 = vpop.f32.mrf.mxu1  ;;  %4807 = vmatprep.subr.bf16.mxu1 %v17769_v30  ;;  %v20811_v36 = vadd.f32 %v4417_v32, %v4365_v57  ;;  %v17796_v54 = vld [vmem:[%s19998_s16 + $0xc0c] ss:$16 sps:$4 sm:$0xff]   ;;  %v17797_v42 = vld [vmem:[%s19998_s16 + $0xe08] ss:$16 sps:$4 sm:$0xff]  }
 0x292   : > { %23213 = vst [vmem:[#allocation53_spill] sm:$0xff] %v20807_v21  ;;  %v4370_v37 = vpop.f32.mrf.mxu0  ;;  %4687 = vmatmul.mubr.bf16.gmra.mxu0 %v20400_v59  ;;  %v17776_v59 = vld [vmem:[%s19998_s16 + $0xc68] ss:$16 sps:$4 sm:$0xff]   ;;  %v17799_v56 = vld [vmem:[%s19998_s16 + $0xe0c] ss:$16 sps:$4 sm:$0xff]  }
 0x293   : > { %v4423_v19 = vpop.f32.mrf.mxu1  ;;  %4740 = vmatmul.mubr.bf16.gmra.mxu1 %v20404_v0  ;;  %v4371_v45 = vadd.f32 %v4370_v37, %v20723_v29  ;;  %4755 = vmatpush1.bf16.msra.mxu0 %v17764_v33  ;;  %v17802_v30 = vld [vmem:[%s19998_s16 + $0xdec] ss:$16 sps:$4 sm:$0xff]   ;;  %v17800_v33 = vld [vmem:[%s19998_s16 + $0xde8] ss:$16 sps:$4 sm:$0xff]   ;;  %v18063_v21 = vld [vmem:[%s19998_s16 + $0x1a84] ss:$16 sps:$4 sm:$0xff]  }
 0x294   : > { %4808 = vmatpush1.bf16.msra.mxu1 %v17767_v34  ;;  %v4372_v48 = vpop.f32.mrf.mxu0  ;;  %4756 = vmatprep.subr.bf16.mxu0 %v17772_v40  ;;  %v17805_v25 = vld [vmem:[%s19998_s16 + $0xfec] ss:$16 sps:$4 sm:$0xff]   ;;  %v17803_v34 = vld [vmem:[%s19998_s16 + $0xfe8] ss:$16 sps:$4 sm:$0xff]  }
 0x295   : > { %v4425_v23 = vpop.f32.mrf.mxu1  ;;  %4809 = vmatprep.subr.bf16.mxu1 %v17775_v41  ;;  %v4373_v51 = vadd.f32 %v4372_v48, %v20728_v4  ;;  %v20821_v24 = vadd.f32 %v4423_v19, %v4371_v45  ;;  %4782 = vmatprep.mubr.bf16.mxu0 %v20410_v5  ;;  %v17784_v4 = vld [vmem:[%s19998_s16 + $0xc4c] ss:$16 sps:$4 sm:$0xff]   ;;  %v17806_v57 = vld [vmem:[%s19998_s16 + $0xdc8] ss:$16 sps:$4 sm:$0xff]  }
 0x296   : > { %4835 = vmatprep.mubr.bf16.mxu1 %v20414_v6  ;;  %v4374_v0 = vpop.f32.mrf.mxu0  ;;  %v17782_v6 = vld [vmem:[%s19998_s16 + $0xc48] ss:$16 sps:$4 sm:$0xff]   ;;  %v17808_v43 = vld [vmem:[%s19998_s16 + $0xdcc] ss:$16 sps:$4 sm:$0xff]  }
 0x297   : > { %v4427_v29 = vpop.f32.mrf.mxu1  ;;  %v4375_v31 = vadd.f32 %v4374_v0, %v20734_v20  ;;  %v20828_v1 = vadd.f32 %v4425_v23, %v4373_v51  ;;  %4757 = vmatpush1.bf16.msra.mxu0 %v17770_v50  ;;  %v17785_v20 = vld [vmem:[%s19998_s16 + $0xe48] ss:$16 sps:$4 sm:$0xff]   ;;  %v17811_v32 = vld [vmem:[%s19998_s16 + $0xfcc] ss:$16 sps:$4 sm:$0xff]  }
 0x298   : > { %4810 = vmatpush1.bf16.msra.mxu1 %v17773_v27  ;;  %4758 = vmatprep.subr.bf16.mxu0 %v17778_v17  ;;  %v17809_v40 = vld [vmem:[%s19998_s16 + $0xfc8] ss:$16 sps:$4 sm:$0xff]   ;;  %v17814_v41 = vld [vmem:[%s19998_s16 + $0xdac] ss:$16 sps:$4 sm:$0xff]  }
 0x299   : > { %4811 = vmatprep.subr.bf16.mxu1 %v17781_v18  ;;  %v20832_v5 = vadd.f32 %v4427_v29, %v4375_v31  ;;  %v17817_v50 = vld [vmem:[%s19998_s16 + $0xfac] ss:$16 sps:$4 sm:$0xff]   ;;  %v17812_v27 = vld [vmem:[%s19998_s16 + $0xda8] ss:$16 sps:$4 sm:$0xff]  }
 0x29a   : > { %v17815_v37 = vld [vmem:[%s19998_s16 + $0xfa8] ss:$16 sps:$4 sm:$0xff]   ;;  %v17820_v19 = vld [vmem:[%s19998_s16 + $0xd8c] ss:$16 sps:$4 sm:$0xff]  }
 0x29b   : > { %4759 = vmatpush1.bf16.msra.mxu0 %v17776_v59  ;;  %v17823_v45 = vld [vmem:[%s19998_s16 + $0xf8c] ss:$16 sps:$4 sm:$0xff]   ;;  %v17818_v48 = vld [vmem:[%s19998_s16 + $0xd88] ss:$16 sps:$4 sm:$0xff]  }
 0x29c   : > { %4812 = vmatpush1.bf16.msra.mxu1 %v17779_v49  ;;  %4760 = vmatprep.subr.bf16.mxu0 %v17784_v4  ;;  %v17821_v23 = vld [vmem:[%s19998_s16 + $0xf88] ss:$16 sps:$4 sm:$0xff]   ;;  %v17826_v17 = vld [vmem:[%s19998_s16 + $0xd6c] ss:$16 sps:$4 sm:$0xff]  }
 0x29d   : > { %4813 = vmatprep.subr.bf16.mxu1 %v17787_v3  ;;  %v17829_v18 = vld [vmem:[%s19998_s16 + $0xf6c] ss:$16 sps:$4 sm:$0xff]   ;;  %v17824_v51 = vld [vmem:[%s19998_s16 + $0xd68] ss:$16 sps:$4 sm:$0xff]  }
 0x29e   : > { %v17827_v59 = vld [vmem:[%s19998_s16 + $0xf68] ss:$16 sps:$4 sm:$0xff]   ;;  %v17832_v49 = vld [vmem:[%s19998_s16 + $0xd4c] ss:$16 sps:$4 sm:$0xff]  }
 0x29f   : > { %4761 = vmatpush1.bf16.msra.mxu0 %v17782_v6  ;;  %v17835_v0 = vld [vmem:[%s19998_s16 + $0xf4c] ss:$16 sps:$4 sm:$0xff]   ;;  %v17830_v29 = vld [vmem:[%s19998_s16 + $0xd48] ss:$16 sps:$4 sm:$0xff]  }
 0x2a0   : > { %4814 = vmatpush1.bf16.msra.mxu1 %v17785_v20  ;;  %4762 = vmatprep.subr.bf16.mxu0 %v17790_v11  ;;  %v17833_v31 = vld [vmem:[%s19998_s16 + $0xf48] ss:$16 sps:$4 sm:$0xff]   ;;  %v17838_v4 = vld [vmem:[%s19998_s16 + $0xd2c] ss:$16 sps:$4 sm:$0xff]  }
 0x2a1   : > { %4815 = vmatprep.subr.bf16.mxu1 %v17793_v46  ;;  %v17841_v3 = vld [vmem:[%s19998_s16 + $0xf2c] ss:$16 sps:$4 sm:$0xff]   ;;  %v17836_v6 = vld [vmem:[%s19998_s16 + $0xd28] ss:$16 sps:$4 sm:$0xff]  }
 0x2a2   : > { %v17839_v20 = vld [vmem:[%s19998_s16 + $0xf28] ss:$16 sps:$4 sm:$0xff]   ;;  %v17844_v11 = vld [vmem:[%s19998_s16 + $0xd0c] ss:$16 sps:$4 sm:$0xff]  }
 0x2a3   : > { %4763 = vmatpush1.bf16.msra.mxu0 %v17788_v8  ;;  %v17847_v46 = vld [vmem:[%s19998_s16 + $0xf0c] ss:$16 sps:$4 sm:$0xff]   ;;  %v17842_v8 = vld [vmem:[%s19998_s16 + $0xd08] ss:$16 sps:$4 sm:$0xff]  }
 0x2a4   : > { %4816 = vmatpush1.bf16.msra.mxu1 %v17791_v10  ;;  %4764 = vmatprep.subr.bf16.mxu0 %v17796_v54  ;;  %v17845_v10 = vld [vmem:[%s19998_s16 + $0xf08] ss:$16 sps:$4 sm:$0xff]   ;;  %v17850_v54 = vld [vmem:[%s19998_s16 + $0x10e4] ss:$16 sps:$4 sm:$0xff]  }
 0x2a5   : > { %4817 = vmatprep.subr.bf16.mxu1 %v17799_v56  ;;  %v17853_v56 = vld [vmem:[%s19998_s16 + $0x12e4] ss:$16 sps:$4 sm:$0xff]   ;;  %v14769_v28 = vld [vmem:[%s19990_s0 + $0x38] sm:$0xff] }
 0x2a7   : > { %4765 = vmatpush1.bf16.msra.mxu0 %v17794_v39  ;;  %v14766_v39 = vld [vmem:[%s19990_s0 + $0x20] sm:$0xff] }
 0x2a8   : > { %4818 = vmatpush1.bf16.msra.mxu1 %v17797_v42  ;;  %4766 = vmatprep.subr.bf16.mxu0 %v17802_v30  ;;  %v14770_v42 = vld [vmem:[%s19990_s0 + $0x40] sm:$0xff] }
 0x2a9   : > { %4819 = vmatprep.subr.bf16.mxu1 %v17805_v25  ;;  %v14774_v30 = vld [vmem:[%s19990_s0 + $0x60] sm:$0xff] }
 0x2aa   : > { %v14778_v25 = vld [vmem:[%s19990_s0 + $0x80] sm:$0xff] }
 0x2ab   : > { %4767 = vmatpush2.bf16.msra.mxu0 %v17800_v33  ;;  %v17848_v33 = vld [vmem:[%s19998_s16 + $0x10e0] ss:$16 sps:$4 sm:$0xff]  }
 0x2ac   : > { %4820 = vmatpush2.bf16.msra.mxu1 %v17803_v34  ;;  %4768 = vmatprep.subr.bf16.mxu0 %v17808_v43  ;;  %v17851_v34 = vld [vmem:[%s19998_s16 + $0x12e0] ss:$16 sps:$4 sm:$0xff]   ;;  %v20884_v43 = vpop.f32.mrf.mxu0 }
 0x2ad   : > { %4821 = vmatprep.subr.bf16.mxu1 %v17811_v32  ;;  %23214 = vst [vmem:[#allocation54_spill] sm:$0xff] %v20884_v43  ;;  %v20886_v32 = vpop.f32.mrf.mxu1 }
 0x2ae   : > { %23215 = vst [vmem:[#allocation55_spill] sm:$0xff] %v20886_v32  ;;  %v18043_v32 = vld [vmem:[%s19998_s16 + $0x1ae0] ss:$16 sps:$4 sm:$0xff]  }
 0x2af   : > { %4769 = vmatpush2.bf16.msra.mxu0 %v17806_v57  ;;  %v17856_v57 = vld [vmem:[%s19998_s16 + $0x10c4] ss:$16 sps:$4 sm:$0xff]  }
 0x2b0   : > { %4822 = vmatpush2.bf16.msra.mxu1 %v17809_v40  ;;  %4770 = vmatprep.subr.bf16.mxu0 %v17814_v41  ;;  %v17859_v40 = vld [vmem:[%s19998_s16 + $0x12c4] ss:$16 sps:$4 sm:$0xff]   ;;  %v5450_v41 = vcombine.low %v14766_v39, %v14770_v42 }
 0x2b1   : > { %4823 = vmatprep.subr.bf16.mxu1 %v17817_v50  ;;  %v5451_v50 = vcombine.high %v14766_v39, %v14770_v42 }
 0x2b3   : > { %4771 = vmatpush2.bf16.msra.mxu0 %v17812_v27  ;;  %v5452_v27 = vcombine.low %v14774_v30, %v14778_v25 }
 0x2b4   : > { %4824 = vmatpush2.bf16.msra.mxu1 %v17815_v37  ;;  %4772 = vmatprep.subr.bf16.mxu0 %v17820_v19  ;;  %v5453_v37 = vcombine.high %v14774_v30, %v14778_v25 }
 0x2b5   : > { %4825 = vmatprep.subr.bf16.mxu1 %v17823_v45 }
 0x2b7   : > { %4773 = vmatpush2.bf16.msra.mxu0 %v17818_v48  ;;  %v17854_v48 = vld [vmem:[%s19998_s16 + $0x10c0] ss:$16 sps:$4 sm:$0xff]  }
 0x2b8   : > { %4826 = vmatpush2.bf16.msra.mxu1 %v17821_v23  ;;  %4774 = vmatprep.subr.bf16.mxu0 %v17826_v17  ;;  %v17857_v17 = vld [vmem:[%s19998_s16 + $0x12c0] ss:$16 sps:$4 sm:$0xff]  }
 0x2b9   : > { %4827 = vmatprep.subr.bf16.mxu1 %v17829_v18 }
 0x2bb   : > { %4775 = vmatpush2.bf16.msra.mxu0 %v17824_v51 }
 0x2bc   : > { %4828 = vmatpush2.bf16.msra.mxu1 %v17827_v59  ;;  %4776 = vmatprep.subr.bf16.mxu0 %v17832_v49  ;;  %v17862_v59 = vld [vmem:[%s19998_s16 + $0x10a4] ss:$16 sps:$4 sm:$0xff]  }
 0x2bd   : > { %4829 = vmatprep.subr.bf16.mxu1 %v17835_v0  ;;  %v17865_v49 = vld [vmem:[%s19998_s16 + $0x12a4] ss:$16 sps:$4 sm:$0xff]   ;;  %v20899_v0 = vrot.slane %v5450_v41, %v20083_v55  ;;  %v17872_v41 = vld [vmem:[%s19998_s16 + $0x1060] ss:$16 sps:$4 sm:$0xff]  }
 0x2bf   : > { %4777 = vmatpush2.bf16.msra.mxu0 %v17830_v29  ;;  %v17860_v29 = vld [vmem:[%s19998_s16 + $0x10a0] ss:$16 sps:$4 sm:$0xff]  }
 0x2c0   : > { %4830 = vmatpush2.bf16.msra.mxu1 %v17833_v31  ;;  %4778 = vmatprep.subr.bf16.mxu0 %v17838_v4  ;;  %v17863_v31 = vld [vmem:[%s19998_s16 + $0x12a0] ss:$16 sps:$4 sm:$0xff]   ;;  %v20911_v4 = vrot.slane %v5452_v27, %v20083_v55 }
 0x2c1   : > { %4831 = vmatprep.subr.bf16.mxu1 %v17841_v3  ;;  %v20914_v3 = vrot.slane %v5453_v37, %v20083_v55 }
 0x2c3   : > { %4779 = vmatpush2.bf16.msra.mxu0 %v17836_v6 }
 0x2c4   : > { %4832 = vmatpush2.bf16.msra.mxu1 %v17839_v20  ;;  %4780 = vmatprep.subr.bf16.mxu0 %v17844_v11 }
 0x2c5   : > { %4833 = vmatprep.subr.bf16.mxu1 %v17847_v46 }
 0x2c7   : > { %4781 = vmatpush2.bf16.msra.mxu0 %v17842_v8  ;;  %v17871_v8 = vld [vmem:[%s19998_s16 + $0x1284] ss:$16 sps:$4 sm:$0xff]  }
 0x2c8   : > { %4834 = vmatpush2.bf16.msra.mxu1 %v17845_v10  ;;  %8330 = vmatprep.subr.bf16.mxu0 %v17850_v54  ;;  %v17866_v10 = vld [vmem:[%s19998_s16 + $0x1080] ss:$16 sps:$4 sm:$0xff]  }
 0x2c9   : > { %8383 = vmatprep.subr.bf16.mxu1 %v17853_v56  ;;  %v17869_v54 = vld [vmem:[%s19998_s16 + $0x1280] ss:$16 sps:$4 sm:$0xff]   ;;  %v20928_v56 = vcombine.high %v20899_v0, %v20911_v4 }
 0x2ca   : > { %v4466_v19 = vpop.f32.mrf.mxu0  ;;  %4783 = vmatmul.mubr.bf16.vlgmr.msra.gmra.mxu0 %v20482_v7  ;;  %v20902_v7 = vrot.slane %v5451_v50, %v20083_v55  ;;  %v17875_v50 = vld [vmem:[%s19998_s16 + $0x1260] ss:$16 sps:$4 sm:$0xff]  }
 0x2cb   : > { %v4519_v45 = vpop.f32.mrf.mxu1  ;;  %4836 = vmatmul.mubr.bf16.vlgmr.msra.gmra.mxu1 %v20486_v9  ;;  %8331 = vmatpush1.bf16.msra.mxu0 %v17848_v33  ;;  %v17874_v33 = vld [vmem:[%s19998_s16 + $0x1064] ss:$16 sps:$4 sm:$0xff]  }
 0x2cc   : > { %v20893_v23 = vadd.f32 %v4519_v45, %v4466_v19  ;;  %8384 = vmatpush1.bf16.msra.mxu1 %v17851_v34  ;;  %v4468_v18 = vpop.f32.mrf.mxu0  ;;  %8332 = vmatprep.subr.bf16.mxu0 %v17856_v57  ;;  %v20932_v39 = vcombine.high %v20902_v7, %v20914_v3  ;;  %v17877_v34 = vld [vmem:[%s19998_s16 + $0x1264] ss:$16 sps:$4 sm:$0xff]  }
 0x2cd   : > { %v4521_v51 = vpop.f32.mrf.mxu1  ;;  %8385 = vmatprep.subr.bf16.mxu1 %v17859_v40  ;;  %4792 = vmatprep.mubr.bf16.mxu0 %v20492_v15  ;;  %v17880_v19 = vld [vmem:[%s19998_s16 + $0x1044] ss:$16 sps:$4 sm:$0xff]  }
 0x2ce   : > { %v20904_v9 = vadd.f32 %v4521_v51, %v4468_v18  ;;  %4845 = vmatprep.mubr.bf16.mxu1 %v20494_v53  ;;  %v4470_v6 = vpop.f32.mrf.mxu0  ;;  %v17868_v53 = vld [vmem:[%s19998_s16 + $0x1084] ss:$16 sps:$4 sm:$0xff]  }
 0x2cf   : > { %v4523_v20 = vpop.f32.mrf.mxu1  ;;  %8333 = vmatpush1.bf16.msra.mxu0 %v17854_v48  ;;  %v17883_v45 = vld [vmem:[%s19998_s16 + $0x1244] ss:$16 sps:$4 sm:$0xff]   ;;  %v17878_v48 = vld [vmem:[%s19998_s16 + $0x1040] ss:$16 sps:$4 sm:$0xff]  }
 0x2d0   : > { %v20916_v11 = vadd.f32 %v4523_v20, %v4470_v6  ;;  %8386 = vmatpush1.bf16.msra.mxu1 %v17857_v17  ;;  %v20918_v15 = vpop.f32.mrf.mxu0  ;;  %8334 = vmatprep.subr.bf16.mxu0 %v17862_v59  ;;  %v17881_v17 = vld [vmem:[%s19998_s16 + $0x1240] ss:$16 sps:$4 sm:$0xff]   ;;  %v17886_v18 = vld [vmem:[%s19998_s16 + $0x1024] ss:$16 sps:$4 sm:$0xff]  }
 0x2d1   : > { %23216 = vst [vmem:[#allocation56_spill] sm:$0xff] %v20918_v15  ;;  %v20920_v46 = vpop.f32.mrf.mxu1  ;;  %8387 = vmatprep.subr.bf16.mxu1 %v17865_v49  ;;  %v17889_v51 = vld [vmem:[%s19998_s16 + $0x1224] ss:$16 sps:$4 sm:$0xff]   ;;  %v17884_v59 = vld [vmem:[%s19998_s16 + $0x1020] ss:$16 sps:$4 sm:$0xff]  }
 0x2d2   : > { %23217 = vst [vmem:[#allocation57_spill] sm:$0xff] %v20920_v46  ;;  %4793 = vmatmul.mubr.bf16.gmra.mxu0 %v20508_v35  ;;  %v4476_v42 = vpop.f32.mrf.mxu0  ;;  %v17887_v49 = vld [vmem:[%s19998_s16 + $0x1220] ss:$16 sps:$4 sm:$0xff]  }
 0x2d3   : > { %4846 = vmatmul.mubr.bf16.gmra.mxu1 %v20512_v38  ;;  %v4529_v30 = vpop.f32.mrf.mxu1  ;;  %8335 = vmatpush1.bf16.msra.mxu0 %v17860_v29  ;;  %v17892_v29 = vld [vmem:[%s19998_s16 + $0x1004] ss:$16 sps:$4 sm:$0xff]   ;;  %v17890_v6 = vld [vmem:[%s19998_s16 + $0x1000] ss:$16 sps:$4 sm:$0xff]  }
 0x2d4   : > { %8388 = vmatpush1.bf16.msra.mxu1 %v17863_v31  ;;  %v20936_v25 = vadd.f32 %v4529_v30, %v4476_v42  ;;  %8336 = vmatprep.subr.bf16.mxu0 %v17868_v53  ;;  %v4478_v57 = vpop.f32.mrf.mxu0  ;;  %v17895_v31 = vld [vmem:[%s19998_s16 + $0x1204] ss:$16 sps:$4 sm:$0xff]   ;;  %v17893_v20 = vld [vmem:[%s19998_s16 + $0x1200] ss:$16 sps:$4 sm:$0xff]  }
 0x2d5   : > { %8389 = vmatprep.subr.bf16.mxu1 %v17871_v8  ;;  %v4531_v40 = vpop.f32.mrf.mxu1  ;;  %8362 = vmatprep.mubr.bf16.mxu0 %v20928_v56  ;;  %v17898_v53 = vld [vmem:[%s19998_s16 + $0x11e4] ss:$16 sps:$4 sm:$0xff]   ;;  %v18040_v15 = vld [vmem:[%s19998_s16 + $0x18e0] ss:$16 sps:$4 sm:$0xff]  }
 0x2d6   : > { %v20942_v35 = vadd.f32 %v4531_v40, %v4478_v57  ;;  %8415 = vmatprep.mubr.bf16.mxu1 %v20932_v39  ;;  %v4480_v38 = vpop.f32.mrf.mxu0  ;;  %v17901_v8 = vld [vmem:[%s19998_s16 + $0x13e4] ss:$16 sps:$4 sm:$0xff]  }
 0x2d7   : > { %v4533_v27 = vpop.f32.mrf.mxu1  ;;  %8337 = vmatpush1.bf16.msra.mxu0 %v17866_v10  ;;  %v17896_v10 = vld [vmem:[%s19998_s16 + $0x11e0] ss:$16 sps:$4 sm:$0xff]   ;;  %v17904_v42 = vld [vmem:[%s19998_s16 + $0x11c4] ss:$16 sps:$4 sm:$0xff]  }
 0x2d8   : > { %8390 = vmatpush1.bf16.msra.mxu1 %v17869_v54  ;;  %v20946_v37 = vadd.f32 %v4533_v27, %v4480_v38  ;;  %8338 = vmatprep.subr.bf16.mxu0 %v17874_v33  ;;  %v17899_v54 = vld [vmem:[%s19998_s16 + $0x13e0] ss:$16 sps:$4 sm:$0xff]   ;;  %v17907_v30 = vld [vmem:[%s19998_s16 + $0x13c4] ss:$16 sps:$4 sm:$0xff]  }
 0x2d9   : > { %8391 = vmatprep.subr.bf16.mxu1 %v17877_v34  ;;  %v17902_v33 = vld [vmem:[%s19998_s16 + $0x11c0] ss:$16 sps:$4 sm:$0xff]   ;;  %v17910_v57 = vld [vmem:[%s19998_s16 + $0x11a4] ss:$16 sps:$4 sm:$0xff]  }
 0x2da   : > { %v17905_v34 = vld [vmem:[%s19998_s16 + $0x13c0] ss:$16 sps:$4 sm:$0xff]   ;;  %v17913_v40 = vld [vmem:[%s19998_s16 + $0x13a4] ss:$16 sps:$4 sm:$0xff]  }
 0x2db   : > { %8339 = vmatpush1.bf16.msra.mxu0 %v17872_v41  ;;  %v17908_v41 = vld [vmem:[%s19998_s16 + $0x11a0] ss:$16 sps:$4 sm:$0xff]   ;;  %v17916_v38 = vld [vmem:[%s19998_s16 + $0x1184] ss:$16 sps:$4 sm:$0xff]  }
 0x2dc   : > { %8392 = vmatpush1.bf16.msra.mxu1 %v17875_v50  ;;  %8340 = vmatprep.subr.bf16.mxu0 %v17880_v19  ;;  %v17911_v50 = vld [vmem:[%s19998_s16 + $0x13a0] ss:$16 sps:$4 sm:$0xff]   ;;  %v17919_v27 = vld [vmem:[%s19998_s16 + $0x1384] ss:$16 sps:$4 sm:$0xff]  }
 0x2dd   : > { %8393 = vmatprep.subr.bf16.mxu1 %v17883_v45  ;;  %v17914_v19 = vld [vmem:[%s19998_s16 + $0x1180] ss:$16 sps:$4 sm:$0xff]  }
 0x2de   : > { %v17917_v45 = vld [vmem:[%s19998_s16 + $0x1380] ss:$16 sps:$4 sm:$0xff]  }
 0x2df   : > { %8341 = vmatpush1.bf16.msra.mxu0 %v17878_v48  ;;  %v17922_v48 = vld [vmem:[%s19998_s16 + $0x1164] ss:$16 sps:$4 sm:$0xff]  }
 0x2e0   : > { %8394 = vmatpush1.bf16.msra.mxu1 %v17881_v17  ;;  %8342 = vmatprep.subr.bf16.mxu0 %v17886_v18  ;;  %v17925_v17 = vld [vmem:[%s19998_s16 + $0x1364] ss:$16 sps:$4 sm:$0xff]   ;;  %v17920_v18 = vld [vmem:[%s19998_s16 + $0x1160] ss:$16 sps:$4 sm:$0xff]  }
 0x2e1   : > { %8395 = vmatprep.subr.bf16.mxu1 %v17889_v51  ;;  %v17923_v51 = vld [vmem:[%s19998_s16 + $0x1360] ss:$16 sps:$4 sm:$0xff]  }
 0x2e2   : > { %v14772_v46 = vld [vmem:[%s19990_s0 + $0x50] sm:$0xff] }
 0x2e3   : > { %8343 = vmatpush1.bf16.msra.mxu0 %v17884_v59  ;;  %v17928_v59 = vld [vmem:[%s19998_s16 + $0x1144] ss:$16 sps:$4 sm:$0xff]  }
 0x2e4   : > { %8396 = vmatpush1.bf16.msra.mxu1 %v17887_v49  ;;  %8344 = vmatprep.subr.bf16.mxu0 %v17892_v29  ;;  %v17931_v49 = vld [vmem:[%s19998_s16 + $0x1344] ss:$16 sps:$4 sm:$0xff]   ;;  %v17926_v29 = vld [vmem:[%s19998_s16 + $0x1140] ss:$16 sps:$4 sm:$0xff]  }
 0x2e5   : > { %8397 = vmatprep.subr.bf16.mxu1 %v17895_v31  ;;  %v17929_v31 = vld [vmem:[%s19998_s16 + $0x1340] ss:$16 sps:$4 sm:$0xff]  }
 0x2e7   : > { %8345 = vmatpush1.bf16.msra.mxu0 %v17890_v6  ;;  %v17934_v6 = vld [vmem:[%s19998_s16 + $0x1124] ss:$16 sps:$4 sm:$0xff]  }
 0x2e8   : > { %8398 = vmatpush1.bf16.msra.mxu1 %v17893_v20  ;;  %8346 = vmatprep.subr.bf16.mxu0 %v17898_v53  ;;  %v17937_v20 = vld [vmem:[%s19998_s16 + $0x1324] ss:$16 sps:$4 sm:$0xff]  }
 0x2e9   : > { %8399 = vmatprep.subr.bf16.mxu1 %v17901_v8  ;;  %v14782_v53 = vld [vmem:[%s19990_s0 + $0xe0] sm:$0xff] }
 0x2ea   : > { %v14786_v8 = vld [vmem:[%s19990_s0 + $0x100] sm:$0xff] }
 0x2eb   : > { %8347 = vmatpush2.bf16.msra.mxu0 %v17896_v10  ;;  %v14790_v10 = vld [vmem:[%s19990_s0 + $0x120] sm:$0xff] }
 0x2ec   : > { %8400 = vmatpush2.bf16.msra.mxu1 %v17899_v54  ;;  %8348 = vmatprep.subr.bf16.mxu0 %v17904_v42  ;;  %v14794_v54 = vld [vmem:[%s19990_s0 + $0x140] sm:$0xff] }
 0x2ed   : > { %8401 = vmatprep.subr.bf16.mxu1 %v17907_v30  ;;  %v17932_v42 = vld [vmem:[%s19998_s16 + $0x1120] ss:$16 sps:$4 sm:$0xff]  }
 0x2ee   : > { %v17935_v30 = vld [vmem:[%s19998_s16 + $0x1320] ss:$16 sps:$4 sm:$0xff]  }
 0x2ef   : > { %8349 = vmatpush2.bf16.msra.mxu0 %v17902_v33  ;;  %v17940_v33 = vld [vmem:[%s19998_s16 + $0x1104] ss:$16 sps:$4 sm:$0xff]  }
 0x2f0   : > { %8402 = vmatpush2.bf16.msra.mxu1 %v17905_v34  ;;  %8350 = vmatprep.subr.bf16.mxu0 %v17910_v57  ;;  %v17943_v34 = vld [vmem:[%s19998_s16 + $0x1304] ss:$16 sps:$4 sm:$0xff]   ;;  %v5594_v57 = vcombine.low %v14782_v53, %v14786_v8 }
 0x2f1   : > { %8403 = vmatprep.subr.bf16.mxu1 %v17913_v40  ;;  %v5596_v40 = vcombine.low %v14790_v10, %v14794_v54 }
 0x2f3   : > { %8351 = vmatpush2.bf16.msra.mxu0 %v17908_v41  ;;  %v5595_v41 = vcombine.high %v14782_v53, %v14786_v8  ;;  %v21010_v53 = vcombine.low %v20899_v0, %v20911_v4  ;;  %v21014_v8 = vcombine.low %v20902_v7, %v20914_v3 }
 0x2f4   : > { %8404 = vmatpush2.bf16.msra.mxu1 %v17911_v50  ;;  %8352 = vmatprep.subr.bf16.mxu0 %v17916_v38  ;;  %v5597_v50 = vcombine.high %v14790_v10, %v14794_v54  ;;  %v17938_v38 = vld [vmem:[%s19998_s16 + $0x1100] ss:$16 sps:$4 sm:$0xff]   ;;  %v21016_v10 = vpop.f32.mrf.mxu0  ;;  %v21018_v54 = vpop.f32.mrf.mxu1 }
 0x2f5   : > { %8405 = vmatprep.subr.bf16.mxu1 %v17919_v27  ;;  %v17941_v27 = vld [vmem:[%s19998_s16 + $0x1300] ss:$16 sps:$4 sm:$0xff]   ;;  %23218 = vst [vmem:[#allocation58_spill] sm:$0xff] %v21016_v10  ;;  %23219 = vst [vmem:[#allocation59_spill] sm:$0xff] %v21018_v54 }
 0x2f6   : > { %v17968_v54 = vld [vmem:[%s19998_s16 + $0x1460] ss:$16 sps:$4 sm:$0xff]  }
 0x2f7   : > { %8353 = vmatpush2.bf16.msra.mxu0 %v17914_v19  ;;  %v17946_v19 = vld [vmem:[%s19998_s16 + $0x14e4] ss:$16 sps:$4 sm:$0xff]   ;;  %v18034_v10 = vld [vmem:[%s19998_s16 + $0x1500] ss:$16 sps:$4 sm:$0xff]  }
 0x2f8   : > { %8406 = vmatpush2.bf16.msra.mxu1 %v17917_v45  ;;  %8354 = vmatprep.subr.bf16.mxu0 %v17922_v48  ;;  %v17949_v45 = vld [vmem:[%s19998_s16 + $0x16e4] ss:$16 sps:$4 sm:$0xff]   ;;  %v14767_v48 = vld [vmem:[%s19990_s0 + $0x28] sm:$0xff] }
 0x2f9   : > { %8407 = vmatprep.subr.bf16.mxu1 %v17925_v17  ;;  %v14771_v17 = vld [vmem:[%s19990_s0 + $0x48] sm:$0xff] }
 0x2fa   : > { %v5487_v0 = vcombine.high %v14767_v48, %v14771_v17 }
 0x2fb   : > { %8355 = vmatpush2.bf16.msra.mxu0 %v17920_v18  ;;  %v14775_v18 = vld [vmem:[%s19990_s0 + $0x68] sm:$0xff] }
 0x2fc   : > { %8408 = vmatpush2.bf16.msra.mxu1 %v17923_v51  ;;  %8356 = vmatprep.subr.bf16.mxu0 %v17928_v59  ;;  %v14779_v51 = vld [vmem:[%s19990_s0 + $0x88] sm:$0xff]  ;;  %v17944_v59 = vld [vmem:[%s19998_s16 + $0x14e0] ss:$16 sps:$4 sm:$0xff]  }
 0x2fd   : > { %8409 = vmatprep.subr.bf16.mxu1 %v17931_v49  ;;  %v17947_v49 = vld [vmem:[%s19998_s16 + $0x16e0] ss:$16 sps:$4 sm:$0xff]   ;;  %v5489_v3 = vcombine.high %v14775_v18, %v14779_v51 }
 0x2ff   : > { %8357 = vmatpush2.bf16.msra.mxu0 %v17926_v29  ;;  %v5604_v29 = vrot.slane %v5594_v57, %v20083_v55 }
 0x300   : > { %8410 = vmatpush2.bf16.msra.mxu1 %v17929_v31  ;;  %8358 = vmatprep.subr.bf16.mxu0 %v17934_v6  ;;  %v5618_v31 = vrot.slane %v5596_v40, %v20083_v55  ;;  %v5611_v6 = vrot.slane %v5595_v41, %v20083_v55 }
 0x301   : > { %8411 = vmatprep.subr.bf16.mxu1 %v17937_v20  ;;  %v5625_v20 = vrot.slane %v5597_v50, %v20083_v55  ;;  %v17950_v50 = vld [vmem:[%s19998_s16 + $0x14c0] ss:$16 sps:$4 sm:$0xff]  }
 0x302   : > { %v21022_v4 = vcombine.high %v5604_v29, %v5618_v31 }
 0x303   : > { %8359 = vmatpush2.bf16.msra.mxu0 %v17932_v42  ;;  %v17952_v42 = vld [vmem:[%s19998_s16 + $0x14c4] ss:$16 sps:$4 sm:$0xff]   ;;  %v21024_v7 = vcombine.high %v5611_v6, %v5625_v20 }
 0x304   : > { %8412 = vmatpush2.bf16.msra.mxu1 %v17935_v30  ;;  %8360 = vmatprep.subr.bf16.mxu0 %v17940_v33  ;;  %v17955_v30 = vld [vmem:[%s19998_s16 + $0x16c4] ss:$16 sps:$4 sm:$0xff]   ;;  %v5486_v33 = vcombine.low %v14767_v48, %v14771_v17 }
 0x305   : > { %8413 = vmatprep.subr.bf16.mxu1 %v17943_v34  ;;  %v5488_v34 = vcombine.low %v14775_v18, %v14779_v51  ;;  %v17961_v48 = vld [vmem:[%s19998_s16 + $0x16a4] ss:$16 sps:$4 sm:$0xff]  }
 0x306   : > { %v21034_v17 = vrot.slane %v5486_v33, %v20083_v55 }
 0x307   : > { %8361 = vmatpush2.bf16.msra.mxu0 %v17938_v38  ;;  %v17953_v38 = vld [vmem:[%s19998_s16 + $0x16c0] ss:$16 sps:$4 sm:$0xff]   ;;  %v21037_v18 = vrot.slane %v5488_v34, %v20083_v55  ;;  %v21051_v34 = vcombine.low %v5604_v29, %v5618_v31 }
 0x308   : > { %8414 = vmatpush2.bf16.msra.mxu1 %v17941_v27  ;;  %8436 = vmatprep.subr.bf16.mxu0 %v17946_v19  ;;  %v17962_v31 = vld [vmem:[%s19998_s16 + $0x1480] ss:$16 sps:$4 sm:$0xff]  }
 0x309   : > { %8489 = vmatprep.subr.bf16.mxu1 %v17949_v45  ;;  %v17958_v45 = vld [vmem:[%s19998_s16 + $0x14a4] ss:$16 sps:$4 sm:$0xff]  }
 0x30a   : > { %v4572_v57 = vpop.f32.mrf.mxu0  ;;  %8363 = vmatmul.mubr.bf16.vlgmr.msra.gmra.mxu0 %v21010_v53 }
 0x30b   : > { %v4625_v40 = vpop.f32.mrf.mxu1  ;;  %8416 = vmatmul.mubr.bf16.vlgmr.msra.gmra.mxu1 %v21014_v8  ;;  %v4573_v41 = vadd.f32 %v4572_v57, %v20893_v23  ;;  %8437 = vmatpush1.bf16.msra.mxu0 %v17944_v59  ;;  %v21040_v23 = vrot.slane %v5487_v0, %v20083_v55  ;;  %v21053_v0 = vcombine.low %v5611_v6, %v5625_v20 }
 0x30c   : > { %8490 = vmatpush1.bf16.msra.mxu1 %v17947_v49  ;;  %v4574_v27 = vpop.f32.mrf.mxu0  ;;  %8438 = vmatprep.subr.bf16.mxu0 %v17952_v42  ;;  %v17956_v49 = vld [vmem:[%s19998_s16 + $0x14a0] ss:$16 sps:$4 sm:$0xff]   ;;  %v21049_v42 = vrot.slane %v5489_v3, %v20083_v55  ;;  %v17964_v3 = vld [vmem:[%s19998_s16 + $0x1484] ss:$16 sps:$4 sm:$0xff]  }
 0x30d   : > { %v4627_v19 = vpop.f32.mrf.mxu1  ;;  %8491 = vmatprep.subr.bf16.mxu1 %v17955_v30  ;;  %v21042_v51 = vadd.f32 %v4625_v40, %v4573_v41  ;;  %v4575_v59 = vadd.f32 %v4574_v27, %v20904_v9  ;;  %8372 = vmatprep.mubr.bf16.mxu0 %v21022_v4  ;;  %v17959_v40 = vld [vmem:[%s19998_s16 + $0x16a0] ss:$16 sps:$4 sm:$0xff]  }
 0x30e   : > { %8425 = vmatprep.mubr.bf16.mxu1 %v21024_v7  ;;  %v4576_v30 = vpop.f32.mrf.mxu0  ;;  %v21074_v6 = vcombine.high %v21040_v23, %v21049_v42 }
 0x30f   : > { %v4629_v33 = vpop.f32.mrf.mxu1  ;;  %v21055_v57 = vadd.f32 %v4627_v19, %v4575_v59  ;;  %v4577_v9 = vadd.f32 %v4576_v30, %v20916_v11  ;;  %8439 = vmatpush1.bf16.msra.mxu0 %v17950_v50  ;;  %v21070_v11 = vcombine.high %v21034_v17, %v21037_v18  ;;  %v17965_v19 = vld [vmem:[%s19998_s16 + $0x1680] ss:$16 sps:$4 sm:$0xff]   ;;  %v17970_v59 = vld [vmem:[%s19998_s16 + $0x1464] ss:$16 sps:$4 sm:$0xff]  }
 0x310   : > { %8492 = vmatpush1.bf16.msra.mxu1 %v17953_v38  ;;  %v21059_v41 = vpop.f32.mrf.mxu0  ;;  %8440 = vmatprep.subr.bf16.mxu0 %v17958_v45  ;;  %v17973_v30 = vld [vmem:[%s19998_s16 + $0x1664] ss:$16 sps:$4 sm:$0xff]  }
 0x311   : > { %23220 = vst [vmem:[#allocation60_spill] sm:$0xff] %v21059_v41  ;;  %v21061_v27 = vpop.f32.mrf.mxu1  ;;  %8493 = vmatprep.subr.bf16.mxu1 %v17961_v48  ;;  %v21065_v29 = vadd.f32 %v4629_v33, %v4577_v9  ;;  %v14768_v41 = vld [vmem:[%s19990_s0 + $0x30] sm:$0xff] }
 0x312   : > { %23221 = vst [vmem:[#allocation61_spill] sm:$0xff] %v21061_v27  ;;  %v4582_v20 = vpop.f32.mrf.mxu0  ;;  %8373 = vmatmul.mubr.bf16.gmra.mxu0 %v21051_v34  ;;  %v18045_v27 = vld [vmem:[%s19998_s16 + $0x1ae4] ss:$16 sps:$4 sm:$0xff]  }
 0x313   : > { %v4635_v50 = vpop.f32.mrf.mxu1  ;;  %8426 = vmatmul.mubr.bf16.gmra.mxu1 %v21053_v0  ;;  %v4583_v38 = vadd.f32 %v4582_v20, %v20936_v25  ;;  %8441 = vmatpush1.bf16.msra.mxu0 %v17956_v49  ;;  %v17979_v20 = vld [vmem:[%s19998_s16 + $0x1644] ss:$16 sps:$4 sm:$0xff]  }
 0x314   : > { %8494 = vmatpush1.bf16.msra.mxu1 %v17959_v40  ;;  %v4584_v45 = vpop.f32.mrf.mxu0  ;;  %8442 = vmatprep.subr.bf16.mxu0 %v17964_v3  ;;  %v17976_v3 = vld [vmem:[%s19998_s16 + $0x1444] ss:$16 sps:$4 sm:$0xff]  }
 0x315   : > { %v4637_v48 = vpop.f32.mrf.mxu1  ;;  %8495 = vmatprep.subr.bf16.mxu1 %v17967_v47  ;;  %v4585_v33 = vadd.f32 %v4584_v45, %v20942_v35  ;;  %v21083_v9 = vadd.f32 %v4635_v50, %v4583_v38  ;;  %8468 = vmatprep.mubr.bf16.mxu0 %v21070_v11  ;;  %v17971_v35 = vld [vmem:[%s19998_s16 + $0x1660] ss:$16 sps:$4 sm:$0xff]  }
 0x316   : > { %8521 = vmatprep.mubr.bf16.mxu1 %v21074_v6  ;;  %v4586_v25 = vpop.f32.mrf.mxu0  ;;  %v17974_v38 = vld [vmem:[%s19998_s16 + $0x1440] ss:$16 sps:$4 sm:$0xff]  }
 0x317   : > { %v4639_v49 = vpop.f32.mrf.mxu1  ;;  %v4587_v40 = vadd.f32 %v4586_v25, %v20946_v37  ;;  %v21089_v47 = vadd.f32 %v4637_v48, %v4585_v33  ;;  %8443 = vmatpush1.bf16.msra.mxu0 %v17962_v31  ;;  %v17977_v37 = vld [vmem:[%s19998_s16 + $0x1640] ss:$16 sps:$4 sm:$0xff]   ;;  %v17982_v31 = vld [vmem:[%s19998_s16 + $0x1424] ss:$16 sps:$4 sm:$0xff]  }
 0x318   : > { %8496 = vmatpush1.bf16.msra.mxu1 %v17965_v19  ;;  %8444 = vmatprep.subr.bf16.mxu0 %v17970_v59  ;;  %v17985_v19 = vld [vmem:[%s19998_s16 + $0x1624] ss:$16 sps:$4 sm:$0xff]   ;;  %v17980_v45 = vld [vmem:[%s19998_s16 + $0x1420] ss:$16 sps:$4 sm:$0xff]  }
 0x319   : > { %8497 = vmatprep.subr.bf16.mxu1 %v17973_v30  ;;  %v21094_v50 = vadd.f32 %v4639_v49, %v4587_v40  ;;  %v17983_v48 = vld [vmem:[%s19998_s16 + $0x1620] ss:$16 sps:$4 sm:$0xff]   ;;  %v17988_v59 = vld [vmem:[%s19998_s16 + $0x1404] ss:$16 sps:$4 sm:$0xff]  }
 0x31a   : > { %v17986_v30 = vld [vmem:[%s19998_s16 + $0x1400] ss:$16 sps:$4 sm:$0xff]   ;;  %v17994_v25 = vld [vmem:[%s19998_s16 + $0x15e4] ss:$16 sps:$4 sm:$0xff]  }
 0x31b   : > { %8445 = vmatpush1.bf16.msra.mxu0 %v17968_v54  ;;  %v17991_v54 = vld [vmem:[%s19998_s16 + $0x1604] ss:$16 sps:$4 sm:$0xff]   ;;  %v17989_v33 = vld [vmem:[%s19998_s16 + $0x1600] ss:$16 sps:$4 sm:$0xff]  }
 0x31c   : > { %8498 = vmatpush1.bf16.msra.mxu1 %v17971_v35  ;;  %8446 = vmatprep.subr.bf16.mxu0 %v17976_v3  ;;  %v17997_v49 = vld [vmem:[%s19998_s16 + $0x17e4] ss:$16 sps:$4 sm:$0xff]   ;;  %v17992_v40 = vld [vmem:[%s19998_s16 + $0x15e0] ss:$16 sps:$4 sm:$0xff]  }
 0x31d   : > { %8499 = vmatprep.subr.bf16.mxu1 %v17979_v20  ;;  %v17995_v35 = vld [vmem:[%s19998_s16 + $0x17e0] ss:$16 sps:$4 sm:$0xff]   ;;  %v18000_v3 = vld [vmem:[%s19998_s16 + $0x15c4] ss:$16 sps:$4 sm:$0xff]  }
 0x31e   : > { %v18003_v20 = vld [vmem:[%s19998_s16 + $0x17c4] ss:$16 sps:$4 sm:$0xff]  }
 0x31f   : > { %8447 = vmatpush1.bf16.msra.mxu0 %v17974_v38  ;;  %v17998_v38 = vld [vmem:[%s19998_s16 + $0x15c0] ss:$16 sps:$4 sm:$0xff]  }
 0x320   : > { %8500 = vmatpush1.bf16.msra.mxu1 %v17977_v37  ;;  %8448 = vmatprep.subr.bf16.mxu0 %v17982_v31  ;;  %v18001_v37 = vld [vmem:[%s19998_s16 + $0x17c0] ss:$16 sps:$4 sm:$0xff]   ;;  %v18006_v31 = vld [vmem:[%s19998_s16 + $0x15a4] ss:$16 sps:$4 sm:$0xff]  }
 0x321   : > { %8501 = vmatprep.subr.bf16.mxu1 %v17985_v19  ;;  %v18009_v19 = vld [vmem:[%s19998_s16 + $0x17a4] ss:$16 sps:$4 sm:$0xff]  }
 0x323   : > { %8449 = vmatpush1.bf16.msra.mxu0 %v17980_v45  ;;  %v18004_v45 = vld [vmem:[%s19998_s16 + $0x15a0] ss:$16 sps:$4 sm:$0xff]  }
 0x324   : > { %8502 = vmatpush1.bf16.msra.mxu1 %v17983_v48  ;;  %8450 = vmatprep.subr.bf16.mxu0 %v17988_v59  ;;  %v18007_v48 = vld [vmem:[%s19998_s16 + $0x17a0] ss:$16 sps:$4 sm:$0xff]   ;;  %v18012_v59 = vld [vmem:[%s19998_s16 + $0x1584] ss:$16 sps:$4 sm:$0xff]  }
 0x325   : > { %8503 = vmatprep.subr.bf16.mxu1 %v17991_v54  ;;  %v18015_v54 = vld [vmem:[%s19998_s16 + $0x1784] ss:$16 sps:$4 sm:$0xff]  }
 0x327   : > { %8451 = vmatpush1.bf16.msra.mxu0 %v17986_v30  ;;  %v18010_v30 = vld [vmem:[%s19998_s16 + $0x1580] ss:$16 sps:$4 sm:$0xff]  }
 0x328   : > { %8504 = vmatpush1.bf16.msra.mxu1 %v17989_v33  ;;  %8452 = vmatprep.subr.bf16.mxu0 %v17994_v25  ;;  %v18013_v33 = vld [vmem:[%s19998_s16 + $0x1780] ss:$16 sps:$4 sm:$0xff]   ;;  %v18018_v25 = vld [vmem:[%s19998_s16 + $0x1564] ss:$16 sps:$4 sm:$0xff]  }
 0x329   : > { %8505 = vmatprep.subr.bf16.mxu1 %v17997_v49  ;;  %v18021_v49 = vld [vmem:[%s19998_s16 + $0x1764] ss:$16 sps:$4 sm:$0xff]  }
 0x32b   : > { %8453 = vmatpush2.bf16.msra.mxu0 %v17992_v40  ;;  %v18016_v40 = vld [vmem:[%s19998_s16 + $0x1560] ss:$16 sps:$4 sm:$0xff]  }
 0x32c   : > { %8506 = vmatpush2.bf16.msra.mxu1 %v17995_v35  ;;  %8454 = vmatprep.subr.bf16.mxu0 %v18000_v3  ;;  %v18019_v35 = vld [vmem:[%s19998_s16 + $0x1760] ss:$16 sps:$4 sm:$0xff]   ;;  %v18024_v3 = vld [vmem:[%s19998_s16 + $0x1544] ss:$16 sps:$4 sm:$0xff]  }
 0x32d   : > { %8507 = vmatprep.subr.bf16.mxu1 %v18003_v20  ;;  %v18027_v20 = vld [vmem:[%s19998_s16 + $0x1744] ss:$16 sps:$4 sm:$0xff]  }
 0x32f   : > { %8455 = vmatpush2.bf16.msra.mxu0 %v17998_v38  ;;  %v18022_v38 = vld [vmem:[%s19998_s16 + $0x1540] ss:$16 sps:$4 sm:$0xff]  }
 0x330   : > { %8508 = vmatpush2.bf16.msra.mxu1 %v18001_v37  ;;  %8456 = vmatprep.subr.bf16.mxu0 %v18006_v31  ;;  %v18025_v37 = vld [vmem:[%s19998_s16 + $0x1740] ss:$16 sps:$4 sm:$0xff]   ;;  %v18030_v31 = vld [vmem:[%s19998_s16 + $0x1524] ss:$16 sps:$4 sm:$0xff]  }
 0x331   : > { %8509 = vmatprep.subr.bf16.mxu1 %v18009_v19  ;;  %v18033_v19 = vld [vmem:[%s19998_s16 + $0x1724] ss:$16 sps:$4 sm:$0xff]  }
 0x333   : > { %8457 = vmatpush2.bf16.msra.mxu0 %v18004_v45  ;;  %v14783_v45 = vld [vmem:[%s19990_s0 + $0xe8] sm:$0xff] }
 0x334   : > { %8510 = vmatpush2.bf16.msra.mxu1 %v18007_v48  ;;  %8458 = vmatprep.subr.bf16.mxu0 %v18012_v59  ;;  %v14787_v48 = vld [vmem:[%s19990_s0 + $0x108] sm:$0xff] }
 0x335   : > { %8511 = vmatprep.subr.bf16.mxu1 %v18015_v54  ;;  %v14791_v59 = vld [vmem:[%s19990_s0 + $0x128] sm:$0xff] }
 0x336   : > { %v14795_v54 = vld [vmem:[%s19990_s0 + $0x148] sm:$0xff] }
 0x337   : > { %8459 = vmatpush2.bf16.msra.mxu0 %v18010_v30  ;;  %v18028_v30 = vld [vmem:[%s19998_s16 + $0x1520] ss:$16 sps:$4 sm:$0xff]  }
 0x338   : > { %8512 = vmatpush2.bf16.msra.mxu1 %v18013_v33  ;;  %8460 = vmatprep.subr.bf16.mxu0 %v18018_v25  ;;  %v18031_v33 = vld [vmem:[%s19998_s16 + $0x1720] ss:$16 sps:$4 sm:$0xff]   ;;  %v18036_v25 = vld [vmem:[%s19998_s16 + $0x1504] ss:$16 sps:$4 sm:$0xff]  }
 0x339   : > { %8513 = vmatprep.subr.bf16.mxu1 %v18021_v49  ;;  %v18039_v49 = vld [vmem:[%s19998_s16 + $0x1704] ss:$16 sps:$4 sm:$0xff]  }
 0x33b   : > { %8461 = vmatpush2.bf16.msra.mxu0 %v18016_v40  ;;  %v5630_v40 = vcombine.low %v14783_v45, %v14787_v48 }
 0x33c   : > { %8514 = vmatpush2.bf16.msra.mxu1 %v18019_v35  ;;  %8462 = vmatprep.subr.bf16.mxu0 %v18024_v3  ;;  %v5632_v35 = vcombine.low %v14791_v59, %v14795_v54  ;;  %v5631_v3 = vcombine.high %v14783_v45, %v14787_v48 }
 0x33d   : > { %8515 = vmatprep.subr.bf16.mxu1 %v18027_v20  ;;  %v5633_v20 = vcombine.high %v14791_v59, %v14795_v54  ;;  %v5640_v43 = vrot.slane %v5630_v40, %v20083_v55  ;;  %v21156_v54 = vcombine.low %v21034_v17, %v21037_v18  ;;  %v18051_v40 = vld [vmem:[%s19998_s16 + $0x1ac4] ss:$16 sps:$4 sm:$0xff]   ;;  %v5523_v17 = vcombine.high %v14768_v41, %v14772_v46 }
 0x33e   : > { %v5654_v45 = vrot.slane %v5632_v35, %v20083_v55  ;;  %v5647_v48 = vrot.slane %v5631_v3, %v20083_v55  ;;  %v5522_v35 = vcombine.low %v14768_v41, %v14772_v46  ;;  %v18049_v46 = vld [vmem:[%s19998_s16 + $0x1ac0] ss:$16 sps:$4 sm:$0xff]  }
 0x33f   : > { %8463 = vmatpush2.bf16.msra.mxu0 %v18022_v38  ;;  %v18037_v38 = vld [vmem:[%s19998_s16 + $0x1700] ss:$16 sps:$4 sm:$0xff]   ;;  %v5661_v59 = vrot.slane %v5633_v20, %v20083_v55  ;;  %v21186_v2 = vrot.slane %v5523_v17, %v20083_v55 }
 0x340   : > { %8516 = vmatpush2.bf16.msra.mxu1 %v18025_v37  ;;  %8464 = vmatprep.subr.bf16.mxu0 %v18030_v31  ;;  %v18042_v37 = vld [vmem:[%s19998_s16 + $0x18e4] ss:$16 sps:$4 sm:$0xff]   ;;  %v21168_v18 = vcombine.high %v5640_v43, %v5654_v45 }
 0x341   : > { %8517 = vmatprep.subr.bf16.mxu1 %v18033_v19  ;;  %v14776_v31 = vld [vmem:[%s19990_s0 + $0x70] sm:$0xff]  ;;  %v21200_v17 = vcombine.low %v5647_v48, %v5661_v59 }
 0x342   : > { %v14780_v19 = vld [vmem:[%s19990_s0 + $0x90] sm:$0xff] }
 0x343   : > { %8465 = vmatpush2.bf16.msra.mxu0 %v18028_v30  ;;  %v21160_v30 = vcombine.low %v21040_v23, %v21049_v42  ;;  %v5524_v3 = vcombine.low %v14776_v31, %v14780_v19  ;;  %v21170_v23 = vcombine.high %v5647_v48, %v5661_v59 }
 0x344   : > { %8518 = vmatpush2.bf16.msra.mxu1 %v18031_v33  ;;  %8466 = vmatprep.subr.bf16.mxu0 %v18036_v25  ;;  %v21162_v33 = vpop.f32.mrf.mxu0  ;;  %v21164_v25 = vpop.f32.mrf.mxu1 }
 0x345   : > { %8519 = vmatprep.subr.bf16.mxu1 %v18039_v49  ;;  %23222 = vst [vmem:[#allocation62_spill] sm:$0xff] %v21162_v33  ;;  %23223 = vst [vmem:[#allocation63_spill] sm:$0xff] %v21164_v25  ;;  %v18048_v49 = vld [vmem:[%s19998_s16 + $0x18c4] ss:$16 sps:$4 sm:$0xff]   ;;  %v21183_v33 = vrot.slane %v5524_v3, %v20083_v55 }
 0x346   : > { %v18054_v25 = vld [vmem:[%s19998_s16 + $0x18a4] ss:$16 sps:$4 sm:$0xff]  }
 0x347   : > { %8467 = vmatpush2.bf16.msra.mxu0 %v18034_v10  ;;  %v5525_v10 = vcombine.high %v14776_v31, %v14780_v19  ;;  %v18057_v31 = vld [vmem:[%s19998_s16 + $0x1aa4] ss:$16 sps:$4 sm:$0xff]   ;;  %v21180_v19 = vrot.slane %v5522_v35, %v20083_v55 }
 0x348   : > { %8520 = vmatpush2.bf16.msra.mxu1 %v18037_v38  ;;  %8542 = vmatprep.subr.bf16.mxu0 %v18042_v37 }
 0x349   : > { %8595 = vmatprep.subr.bf16.mxu1 %v18045_v27  ;;  %v18046_v27 = vld [vmem:[%s19998_s16 + $0x18c0] ss:$16 sps:$4 sm:$0xff]  }
 0x34a   : > { %v4678_v42 = vpop.f32.mrf.mxu0  ;;  %8469 = vmatmul.mubr.bf16.vlgmr.msra.gmra.mxu0 %v21156_v54 }
 0x34b   : > { %v4731_v20 = vpop.f32.mrf.mxu1  ;;  %8522 = vmatmul.mubr.bf16.vlgmr.msra.gmra.mxu1 %v21160_v30  ;;  %v4679_v38 = vadd.f32 %v4678_v42, %v21042_v51  ;;  %8543 = vmatpush1.bf16.msra.mxu0 %v18040_v15  ;;  %v18052_v15 = vld [vmem:[%s19998_s16 + $0x18a0] ss:$16 sps:$4 sm:$0xff]   ;;  %v21198_v42 = vcombine.low %v5640_v43, %v5654_v45  ;;  %v21215_v45 = vcombine.high %v21180_v19, %v21183_v33 }
 0x34c   : > { %8596 = vmatpush1.bf16.msra.mxu1 %v18043_v32  ;;  %v4680_v41 = vpop.f32.mrf.mxu0  ;;  %8544 = vmatprep.subr.bf16.mxu0 %v18048_v49  ;;  %v18055_v49 = vld [vmem:[%s19998_s16 + $0x1aa0] ss:$16 sps:$4 sm:$0xff]  }
 0x34d   : > { %v4733_v37 = vpop.f32.mrf.mxu1  ;;  %8597 = vmatprep.subr.bf16.mxu1 %v18051_v40  ;;  %v21188_v51 = vadd.f32 %v4731_v20, %v4679_v38  ;;  %v4681_v32 = vadd.f32 %v4680_v41, %v21055_v57  ;;  %8478 = vmatprep.mubr.bf16.mxu0 %v21168_v18  ;;  %v21196_v40 = vrot.slane %v5525_v10, %v20083_v55  ;;  %v18060_v10 = vld [vmem:[%s19998_s16 + $0x1884] ss:$16 sps:$4 sm:$0xff]  }
 0x34e   : > { %8531 = vmatprep.mubr.bf16.mxu1 %v21170_v23  ;;  %v4682_v35 = vpop.f32.mrf.mxu0 }
 0x34f   : > { %v4735_v3 = vpop.f32.mrf.mxu1  ;;  %v21202_v20 = vadd.f32 %v4733_v37, %v4681_v32  ;;  %v4683_v57 = vadd.f32 %v4682_v35, %v21065_v29  ;;  %8545 = vmatpush1.bf16.msra.mxu0 %v18046_v27  ;;  %v21219_v29 = vcombine.high %v21186_v2, %v21196_v40  ;;  %v18058_v27 = vld [vmem:[%s19998_s16 + $0x1880] ss:$16 sps:$4 sm:$0xff]   ;;  %v18066_v32 = vld [vmem:[%s19998_s16 + $0x1864] ss:$16 sps:$4 sm:$0xff]  }
 0x350   : > { %8598 = vmatpush1.bf16.msra.mxu1 %v18049_v46  ;;  %v21205_v38 = vpop.f32.mrf.mxu0  ;;  %8546 = vmatprep.subr.bf16.mxu0 %v18054_v25  ;;  %v18061_v46 = vld [vmem:[%s19998_s16 + $0x1a80] ss:$16 sps:$4 sm:$0xff]   ;;  %v18069_v35 = vld [vmem:[%s19998_s16 + $0x1a64] ss:$16 sps:$4 sm:$0xff]  }
 0x351   : > { %23224 = vst [vmem:[#allocation64_spill] sm:$0xff] %v21205_v38  ;;  %v21207_v41 = vpop.f32.mrf.mxu1  ;;  %8599 = vmatprep.subr.bf16.mxu1 %v18057_v31  ;;  %v21211_v43 = vadd.f32 %v4735_v3, %v4683_v57 }
 0x352   : > { %23225 = vst [vmem:[#allocation65_spill] sm:$0xff] %v21207_v41  ;;  %v4688_v48 = vpop.f32.mrf.mxu0  ;;  %8479 = vmatmul.mubr.bf16.gmra.mxu0 %v21198_v42 }
 0x353   : > { %v4741_v59 = vpop.f32.mrf.mxu1  ;;  %8532 = vmatmul.mubr.bf16.gmra.mxu1 %v21200_v17  ;;  %v4689_v25 = vadd.f32 %v4688_v48, %v21083_v9  ;;  %8547 = vmatpush1.bf16.msra.mxu0 %v18052_v15  ;;  %v18072_v48 = vld [vmem:[%s19998_s16 + $0x1844] ss:$16 sps:$4 sm:$0xff]  }
 0x354   : > { %8600 = vmatpush1.bf16.msra.mxu1 %v18055_v49  ;;  %v4690_v37 = vpop.f32.mrf.mxu0  ;;  %8548 = vmatprep.subr.bf16.mxu0 %v18060_v10 }
 0x355   : > { %v4743_v31 = vpop.f32.mrf.mxu1  ;;  %8601 = vmatprep.subr.bf16.mxu1 %v18063_v21  ;;  %v4691_v3 = vadd.f32 %v4690_v37, %v21089_v47  ;;  %v21229_v57 = vadd.f32 %v4741_v59, %v4689_v25  ;;  %8574 = vmatprep.mubr.bf16.mxu0 %v21215_v45  ;;  %v18064_v21 = vld [vmem:[%s19998_s16 + $0x1860] ss:$16 sps:$4 sm:$0xff]   ;;  %v18075_v59 = vld [vmem:[%s19998_s16 + $0x1a44] ss:$16 sps:$4 sm:$0xff]  }
 0x356   : > { %8627 = vmatprep.mubr.bf16.mxu1 %v21219_v29  ;;  %v4692_v9 = vpop.f32.mrf.mxu0  ;;  %v18067_v47 = vld [vmem:[%s19998_s16 + $0x1a60] ss:$16 sps:$4 sm:$0xff]  }
 0x357   : > { %v4745_v15 = vpop.f32.mrf.mxu1  ;;  %v4693_v49 = vadd.f32 %v4692_v9, %v21094_v50  ;;  %v21234_v10 = vadd.f32 %v4743_v31, %v4691_v3  ;;  %8549 = vmatpush1.bf16.msra.mxu0 %v18058_v27  ;;  %v18070_v50 = vld [vmem:[%s19998_s16 + $0x1840] ss:$16 sps:$4 sm:$0xff]   ;;  %v18078_v27 = vld [vmem:[%s19998_s16 + $0x1824] ss:$16 sps:$4 sm:$0xff]  }
 0x358   : > { %8602 = vmatpush1.bf16.msra.mxu1 %v18061_v46  ;;  %8550 = vmatprep.subr.bf16.mxu0 %v18066_v32  ;;  %v18073_v37 = vld [vmem:[%s19998_s16 + $0x1a40] ss:$16 sps:$4 sm:$0xff]   ;;  %v18081_v46 = vld [vmem:[%s19998_s16 + $0x1a24] ss:$16 sps:$4 sm:$0xff]  }
 0x359   : > { %8603 = vmatprep.subr.bf16.mxu1 %v18069_v35  ;;  %v21240_v25 = vadd.f32 %v4745_v15, %v4693_v49  ;;  %v18076_v31 = vld [vmem:[%s19998_s16 + $0x1820] ss:$16 sps:$4 sm:$0xff]   ;;  %v18084_v35 = vld [vmem:[%s19998_s16 + $0x1804] ss:$16 sps:$4 sm:$0xff]  }
 0x35a   : > { %v18079_v32 = vld [vmem:[%s19998_s16 + $0x1a20] ss:$16 sps:$4 sm:$0xff]   ;;  %v18087_v3 = vld [vmem:[%s19998_s16 + $0x1a04] ss:$16 sps:$4 sm:$0xff]  }
 0x35b   : > { %8551 = vmatpush1.bf16.msra.mxu0 %v18064_v21  ;;  %v18082_v9 = vld [vmem:[%s19998_s16 + $0x1800] ss:$16 sps:$4 sm:$0xff]   ;;  %v18090_v49 = vld [vmem:[%s19998_s16 + $0x19e4] ss:$16 sps:$4 sm:$0xff]  }
 0x35c   : > { %8604 = vmatpush1.bf16.msra.mxu1 %v18067_v47  ;;  %8552 = vmatprep.subr.bf16.mxu0 %v18072_v48  ;;  %v18085_v15 = vld [vmem:[%s19998_s16 + $0x1a00] ss:$16 sps:$4 sm:$0xff]   ;;  %v18093_v21 = vld [vmem:[%s19998_s16 + $0x1be4] ss:$16 sps:$4 sm:$0xff]  }
 0x35d   : > { %8605 = vmatprep.subr.bf16.mxu1 %v18075_v59  ;;  %v18088_v47 = vld [vmem:[%s19998_s16 + $0x19e0] ss:$16 sps:$4 sm:$0xff]   ;;  %v18096_v59 = vld [vmem:[%s19998_s16 + $0x19c4] ss:$16 sps:$4 sm:$0xff]  }
 0x35e   : > { %v18091_v48 = vld [vmem:[%s19998_s16 + $0x1be0] ss:$16 sps:$4 sm:$0xff]  }
 0x35f   : > { %8553 = vmatpush1.bf16.msra.mxu0 %v18070_v50  ;;  %v18099_v50 = vld [vmem:[%s19998_s16 + $0x1bc4] ss:$16 sps:$4 sm:$0xff]  }
 0x360   : > { %8606 = vmatpush1.bf16.msra.mxu1 %v18073_v37  ;;  %8554 = vmatprep.subr.bf16.mxu0 %v18078_v27  ;;  %v18094_v37 = vld [vmem:[%s19998_s16 + $0x19c0] ss:$16 sps:$4 sm:$0xff]  }
 0x361   : > { %8607 = vmatprep.subr.bf16.mxu1 %v18081_v46  ;;  %v18097_v27 = vld [vmem:[%s19998_s16 + $0x1bc0] ss:$16 sps:$4 sm:$0xff]   ;;  %v18102_v46 = vld [vmem:[%s19998_s16 + $0x19a4] ss:$16 sps:$4 sm:$0xff]  }
 0x363   : > { %8555 = vmatpush1.bf16.msra.mxu0 %v18076_v31  ;;  %v18105_v31 = vld [vmem:[%s19998_s16 + $0x1ba4] ss:$16 sps:$4 sm:$0xff]  }
 0x364   : > { %8608 = vmatpush1.bf16.msra.mxu1 %v18079_v32  ;;  %8556 = vmatprep.subr.bf16.mxu0 %v18084_v35  ;;  %v18100_v32 = vld [vmem:[%s19998_s16 + $0x19a0] ss:$16 sps:$4 sm:$0xff]  }
 0x365   : > { %8609 = vmatprep.subr.bf16.mxu1 %v18087_v3  ;;  %v18103_v35 = vld [vmem:[%s19998_s16 + $0x1ba0] ss:$16 sps:$4 sm:$0xff]   ;;  %v18108_v3 = vld [vmem:[%s19998_s16 + $0x1984] ss:$16 sps:$4 sm:$0xff]  }
 0x367   : > { %8557 = vmatpush1.bf16.msra.mxu0 %v18082_v9  ;;  %v18111_v9 = vld [vmem:[%s19998_s16 + $0x1b84] ss:$16 sps:$4 sm:$0xff]  }
 0x368   : > { %8610 = vmatpush1.bf16.msra.mxu1 %v18085_v15  ;;  %8558 = vmatprep.subr.bf16.mxu0 %v18090_v49  ;;  %v18106_v15 = vld [vmem:[%s19998_s16 + $0x1980] ss:$16 sps:$4 sm:$0xff]  }
 0x369   : > { %8611 = vmatprep.subr.bf16.mxu1 %v18093_v21  ;;  %v18109_v49 = vld [vmem:[%s19998_s16 + $0x1b80] ss:$16 sps:$4 sm:$0xff]   ;;  %v18114_v21 = vld [vmem:[%s19998_s16 + $0x1964] ss:$16 sps:$4 sm:$0xff]  }
 0x36b   : > { %8559 = vmatpush2.bf16.msra.mxu0 %v18088_v47  ;;  %v18117_v47 = vld [vmem:[%s19998_s16 + $0x1b64] ss:$16 sps:$4 sm:$0xff]  }
 0x36c   : > { %8612 = vmatpush2.bf16.msra.mxu1 %v18091_v48  ;;  %8560 = vmatprep.subr.bf16.mxu0 %v18096_v59  ;;  %v18112_v48 = vld [vmem:[%s19998_s16 + $0x1960] ss:$16 sps:$4 sm:$0xff]  }
 0x36d   : > { %8613 = vmatprep.subr.bf16.mxu1 %v18099_v50  ;;  %v18115_v59 = vld [vmem:[%s19998_s16 + $0x1b60] ss:$16 sps:$4 sm:$0xff]   ;;  %v18120_v50 = vld [vmem:[%s19998_s16 + $0x1944] ss:$16 sps:$4 sm:$0xff]  }
 0x36f   : > { %8561 = vmatpush2.bf16.msra.mxu0 %v18094_v37  ;;  %v18123_v37 = vld [vmem:[%s19998_s16 + $0x1b44] ss:$16 sps:$4 sm:$0xff]  }
 0x370   : > { %8614 = vmatpush2.bf16.msra.mxu1 %v18097_v27  ;;  %8562 = vmatprep.subr.bf16.mxu0 %v18102_v46  ;;  %v18118_v27 = vld [vmem:[%s19998_s16 + $0x1940] ss:$16 sps:$4 sm:$0xff]  }
 0x371   : > { %8615 = vmatprep.subr.bf16.mxu1 %v18105_v31  ;;  %v18121_v46 = vld [vmem:[%s19998_s16 + $0x1b40] ss:$16 sps:$4 sm:$0xff]   ;;  %v18126_v31 = vld [vmem:[%s19998_s16 + $0x1924] ss:$16 sps:$4 sm:$0xff]  }
 0x373   : > { %8563 = vmatpush2.bf16.msra.mxu0 %v18100_v32  ;;  %v18129_v32 = vld [vmem:[%s19998_s16 + $0x1b24] ss:$16 sps:$4 sm:$0xff]  }
 0x374   : > { %8616 = vmatpush2.bf16.msra.mxu1 %v18103_v35  ;;  %8564 = vmatprep.subr.bf16.mxu0 %v18108_v3  ;;  %v14784_v35 = vld [vmem:[%s19990_s0 + $0xf0] sm:$0xff] }
 0x375   : > { %8617 = vmatprep.subr.bf16.mxu1 %v18111_v9  ;;  %v14788_v3 = vld [vmem:[%s19990_s0 + $0x110] sm:$0xff] }
 0x376   : > { %v14792_v9 = vld [vmem:[%s19990_s0 + $0x130] sm:$0xff]  ;;  %v5667_v38 = vcombine.high %v14784_v35, %v14788_v3 }
 0x377   : > { %8565 = vmatpush2.bf16.msra.mxu0 %v18106_v15  ;;  %v14796_v15 = vld [vmem:[%s19990_s0 + $0x150] sm:$0xff] }
 0x378   : > { %8618 = vmatpush2.bf16.msra.mxu1 %v18109_v49  ;;  %8566 = vmatprep.subr.bf16.mxu0 %v18114_v21  ;;  %v18124_v49 = vld [vmem:[%s19998_s16 + $0x1920] ss:$16 sps:$4 sm:$0xff]   ;;  %v5668_v41 = vcombine.low %v14792_v9, %v14796_v15  ;;  %v5669_v62 = vcombine.high %v14792_v9, %v14796_v15  ;;  %v21302_v9 = vcombine.low %v21180_v19, %v21183_v33 }
 0x379   : > { %8619 = vmatprep.subr.bf16.mxu1 %v18117_v47  ;;  %v18127_v21 = vld [vmem:[%s19998_s16 + $0x1b20] ss:$16 sps:$4 sm:$0xff]   ;;  %v18132_v47 = vld [vmem:[%s19998_s16 + $0x1904] ss:$16 sps:$4 sm:$0xff]   ;;  %v21306_v15 = vcombine.low %v21186_v2, %v21196_v40 }
 0x37a   : > { %v5690_v14 = vrot.slane %v5668_v41, %v20083_v55  ;;  %v18147_v41 = vld [vmem:[%s19998_s16 + $0x1ec4] ss:$16 sps:$4 sm:$0xff]   ;;  %v18145_v33 = vld [vmem:[%s19998_s16 + $0x1ec0] ss:$16 sps:$4 sm:$0xff]  }
 0x37b   : > { %8567 = vmatpush2.bf16.msra.mxu0 %v18112_v48  ;;  %v18135_v48 = vld [vmem:[%s19998_s16 + $0x1b04] ss:$16 sps:$4 sm:$0xff]  }
 0x37c   : > { %8620 = vmatpush2.bf16.msra.mxu1 %v18115_v59  ;;  %8568 = vmatprep.subr.bf16.mxu0 %v18120_v50  ;;  %v18130_v59 = vld [vmem:[%s19998_s16 + $0x1900] ss:$16 sps:$4 sm:$0xff]  }
 0x37d   : > { %8621 = vmatprep.subr.bf16.mxu1 %v18123_v37  ;;  %v18133_v50 = vld [vmem:[%s19998_s16 + $0x1b00] ss:$16 sps:$4 sm:$0xff]   ;;  %v5666_v37 = vcombine.low %v14784_v35, %v14788_v3  ;;  %v5683_v35 = vrot.slane %v5667_v38, %v20083_v55  ;;  %v5697_v3 = vrot.slane %v5669_v62, %v20083_v55  ;;  %v18144_v38 = vld [vmem:[%s19998_s16 + $0x1cc4] ss:$16 sps:$4 sm:$0xff]  }
 0x37f   : > { %8569 = vmatpush2.bf16.msra.mxu0 %v18118_v27  ;;  %v18138_v27 = vld [vmem:[%s19998_s16 + $0x1ce4] ss:$16 sps:$4 sm:$0xff]   ;;  %v5676_v60 = vrot.slane %v5666_v37, %v20083_v55  ;;  %v18142_v37 = vld [vmem:[%s19998_s16 + $0x1cc0] ss:$16 sps:$4 sm:$0xff]   ;;  %v21318_v2 = vcombine.high %v5683_v35, %v5697_v3 }
 0x380   : > { %8622 = vmatpush2.bf16.msra.mxu1 %v18121_v46  ;;  %8570 = vmatprep.subr.bf16.mxu0 %v18126_v31  ;;  %v18141_v46 = vld [vmem:[%s19998_s16 + $0x1ee4] ss:$16 sps:$4 sm:$0xff]   ;;  %v14777_v31 = vld [vmem:[%s19990_s0 + $0x78] sm:$0xff] }
 0x381   : > { %8623 = vmatprep.subr.bf16.mxu1 %v18129_v32  ;;  %v14781_v32 = vld [vmem:[%s19990_s0 + $0x98] sm:$0xff]  ;;  %v21316_v19 = vcombine.high %v5676_v60, %v5690_v14 }
 0x382   : > { %v5560_v62 = vcombine.low %v14777_v31, %v14781_v32  ;;  %v5561_v40 = vcombine.high %v14777_v31, %v14781_v32 }
 0x383   : > { %8571 = vmatpush2.bf16.msra.mxu0 %v18124_v49  ;;  %v21308_v49 = vpop.f32.mrf.mxu0 }
 0x384   : > { %8624 = vmatpush2.bf16.msra.mxu1 %v18127_v21  ;;  %8572 = vmatprep.subr.bf16.mxu0 %v18132_v47  ;;  %23226 = vst [vmem:[#allocation66_spill] sm:$0xff] %v21308_v49  ;;  %v21310_v21 = vpop.f32.mrf.mxu1  ;;  %v5558_v47 = vcombine.low %v14769_v28, %v14773_v26  ;;  %v21329_v32 = vrot.slane %v5560_v62, %v20083_v55 }
 0x385   : > { %8625 = vmatprep.subr.bf16.mxu1 %v18135_v48  ;;  %23227 = vst [vmem:[#allocation67_spill] sm:$0xff] %v21310_v21  ;;  %v5559_v48 = vcombine.high %v14769_v28, %v14773_v26  ;;  %v18153_v21 = vld [vmem:[%s19998_s16 + $0x1ea4] ss:$16 sps:$4 sm:$0xff]   ;;  %v21344_v62 = vcombine.low %v5676_v60, %v5690_v14  ;;  %v18154_v14 = vld [vmem:[%s19998_s16 + $0x1c80] ss:$16 sps:$4 sm:$0xff]  }
 0x386   : > { %v21326_v31 = vrot.slane %v5558_v47, %v20083_v55  ;;  %v18157_v60 = vld [vmem:[%s19998_s16 + $0x1e80] ss:$16 sps:$4 sm:$0xff]  }
 0x387   : > { %8573 = vmatpush2.bf16.msra.mxu0 %v18130_v59  ;;  %v21332_v49 = vrot.slane %v5559_v48, %v20083_v55  ;;  %v21346_v48 = vcombine.low %v5683_v35, %v5697_v3 }
 0x388   : > { %8626 = vmatpush2.bf16.msra.mxu1 %v18133_v50  ;;  %8648 = vmatprep.subr.bf16.mxu0 %v18138_v27  ;;  %v21363_v35 = vcombine.high %v21326_v31, %v21329_v32 }
 0x389   : > { %8701 = vmatprep.subr.bf16.mxu1 %v18141_v46  ;;  %v18150_v46 = vld [vmem:[%s19998_s16 + $0x1ca4] ss:$16 sps:$4 sm:$0xff]  }
 0x38a   : > { %v4784_v59 = vpop.f32.mrf.mxu0  ;;  %8575 = vmatmul.mubr.bf16.vlgmr.msra.gmra.mxu0 %v21302_v9 }
 0x38b   : > { %v4837_v50 = vpop.f32.mrf.mxu1  ;;  %8628 = vmatmul.mubr.bf16.vlgmr.msra.gmra.mxu1 %v21306_v15  ;;  %v4785_v27 = vadd.f32 %v4784_v59, %v21188_v51  ;;  %8649 = vmatpush1.bf16.msra.mxu0 %v18136_v44  ;;  %v18151_v51 = vld [vmem:[%s19998_s16 + $0x1ea0] ss:$16 sps:$4 sm:$0xff]  }
 0x38c   : > { %8702 = vmatpush1.bf16.msra.mxu1 %v18139_v58  ;;  %v4786_v26 = vpop.f32.mrf.mxu0  ;;  %8650 = vmatprep.subr.bf16.mxu0 %v18144_v38  ;;  %v18148_v58 = vld [vmem:[%s19998_s16 + $0x1ca0] ss:$16 sps:$4 sm:$0xff]   ;;  %v21342_v38 = vrot.slane %v5561_v40, %v20083_v55  ;;  %v18156_v40 = vld [vmem:[%s19998_s16 + $0x1c84] ss:$16 sps:$4 sm:$0xff]  }
 0x38d   : > { %v4839_v28 = vpop.f32.mrf.mxu1  ;;  %8703 = vmatprep.subr.bf16.mxu1 %v18147_v41  ;;  %v21334_v13 = vadd.f32 %v4837_v50, %v4785_v27  ;;  %v4787_v44 = vadd.f32 %v4786_v26, %v21202_v20  ;;  %8584 = vmatprep.mubr.bf16.mxu0 %v21316_v19  ;;  %v18159_v26 = vld [vmem:[%s19998_s16 + $0x1e84] ss:$16 sps:$4 sm:$0xff]  }
 0x38e   : > { %8637 = vmatprep.mubr.bf16.mxu1 %v21318_v2  ;;  %v4788_v41 = vpop.f32.mrf.mxu0 }
 0x38f   : > { %v4841_v47 = vpop.f32.mrf.mxu1  ;;  %v21348_v20 = vadd.f32 %v4839_v28, %v4787_v44  ;;  %v4789_v59 = vadd.f32 %v4788_v41, %v21211_v43  ;;  %8651 = vmatpush1.bf16.msra.mxu0 %v18142_v37  ;;  %v21367_v43 = vcombine.high %v21332_v49, %v21342_v38  ;;  %v18165_v44 = vld [vmem:[%s19998_s16 + $0x1e64] ss:$16 sps:$4 sm:$0xff]  }
 0x390   : > { %8704 = vmatpush1.bf16.msra.mxu1 %v18145_v33  ;;  %v21351_v50 = vpop.f32.mrf.mxu0  ;;  %8652 = vmatprep.subr.bf16.mxu0 %v18150_v46  ;;  %v18162_v46 = vld [vmem:[%s19998_s16 + $0x1c64] ss:$16 sps:$4 sm:$0xff]  }
 0x391   : > { %23228 = vst [vmem:[#allocation68_spill] sm:$0xff] %v21348_v20  ;;  %23229 = vst [vmem:[#allocation69_spill] sm:$0xff] %v21351_v50  ;;  %v21353_v27 = vpop.f32.mrf.mxu1  ;;  %8705 = vmatprep.subr.bf16.mxu1 %v18153_v21  ;;  %v21357_v22 = vadd.f32 %v4841_v47, %v4789_v59  ;;  %v18160_v59 = vld [vmem:[%s19998_s16 + $0x1c60] ss:$16 sps:$4 sm:$0xff]   ;;  %v18340_v20 = vld [vmem:[%s19998_s16 + $0x14a8] ss:$16 sps:$4 sm:$0xff]  }
 0x392   : > { %23230 = vst [vmem:[#allocation70_spill] sm:$0xff] %v21353_v27  ;;  %v4794_v3 = vpop.f32.mrf.mxu0  ;;  %8585 = vmatmul.mubr.bf16.gmra.mxu0 %v21344_v62  ;;  %v18163_v27 = vld [vmem:[%s19998_s16 + $0x1e60] ss:$16 sps:$4 sm:$0xff]  }
 0x393   : > { %23231 = vst [vmem:[#allocation71_spill] sm:$0xff] %v21357_v22  ;;  %v4847_v21 = vpop.f32.mrf.mxu1  ;;  %8638 = vmatmul.mubr.bf16.gmra.mxu1 %v21346_v48  ;;  %v4795_v37 = vadd.f32 %v4794_v3, %v21229_v57  ;;  %8653 = vmatpush1.bf16.msra.mxu0 %v18148_v58  ;;  %v18229_v50 = vld [vmem:[%s19998_s16 + $0x1f00] ss:$16 sps:$4 sm:$0xff]  }
 0x394   : > { %8706 = vmatpush1.bf16.msra.mxu1 %v18151_v51  ;;  %v4796_v33 = vpop.f32.mrf.mxu0  ;;  %8654 = vmatprep.subr.bf16.mxu0 %v18156_v40 }
 0x395   : > { %v4849_v28 = vpop.f32.mrf.mxu1  ;;  %8707 = vmatprep.subr.bf16.mxu1 %v18159_v26  ;;  %v4797_v41 = vadd.f32 %v4796_v33, %v21234_v10  ;;  %v21375_v47 = vadd.f32 %v4847_v21, %v4795_v37  ;;  %8680 = vmatprep.mubr.bf16.mxu0 %v21363_v35  ;;  %v18168_v10 = vld [vmem:[%s19998_s16 + $0x1c44] ss:$16 sps:$4 sm:$0xff]   ;;  %v18166_v21 = vld [vmem:[%s19998_s16 + $0x1c40] ss:$16 sps:$4 sm:$0xff]  }
 0x396   : > { %8733 = vmatprep.mubr.bf16.mxu1 %v21367_v43  ;;  %v4798_v57 = vpop.f32.mrf.mxu0  ;;  %v18171_v26 = vld [vmem:[%s19998_s16 + $0x1e44] ss:$16 sps:$4 sm:$0xff]   ;;  %v18172_v37 = vld [vmem:[%s19998_s16 + $0x1c20] ss:$16 sps:$4 sm:$0xff]  }
 0x397   : > { %23232 = vst [vmem:[#allocation72_spill] sm:$0xff] %v21375_v47  ;;  %v4851_v58 = vpop.f32.mrf.mxu1  ;;  %v4799_v51 = vadd.f32 %v4798_v57, %v21240_v25  ;;  %v21382_v40 = vadd.f32 %v4849_v28, %v4797_v41  ;;  %8655 = vmatpush1.bf16.msra.mxu0 %v18154_v14  ;;  %v18169_v25 = vld [vmem:[%s19998_s16 + $0x1e40] ss:$16 sps:$4 sm:$0xff]   ;;  %v18174_v14 = vld [vmem:[%s19998_s16 + $0x1c24] ss:$16 sps:$4 sm:$0xff]  }
 0x398   : > { %8708 = vmatpush1.bf16.msra.mxu1 %v18157_v60  ;;  %8656 = vmatprep.subr.bf16.mxu0 %v18162_v46  ;;  %v18177_v60 = vld [vmem:[%s19998_s16 + $0x1e24] ss:$16 sps:$4 sm:$0xff]   ;;  %v18175_v33 = vld [vmem:[%s19998_s16 + $0x1e20] ss:$16 sps:$4 sm:$0xff]  }
 0x399   : > { %23233 = vst [vmem:[#allocation73_spill] sm:$0xff] %v21382_v40  ;;  %8709 = vmatprep.subr.bf16.mxu1 %v18165_v44  ;;  %v21386_v3 = vadd.f32 %v4851_v58, %v4799_v51  ;;  %v18180_v28 = vld [vmem:[%s19998_s16 + $0x1c04] ss:$16 sps:$4 sm:$0xff]   ;;  %v18178_v46 = vld [vmem:[%s19998_s16 + $0x1c00] ss:$16 sps:$4 sm:$0xff]  }
 0x39a   : > { %v18181_v44 = vld [vmem:[%s19998_s16 + $0x1e00] ss:$16 sps:$4 sm:$0xff]   ;;  %v18186_v41 = vld [vmem:[%s19998_s16 + $0x1de4] ss:$16 sps:$4 sm:$0xff]  }
 0x39b   : > { %23234 = vst [vmem:[#allocation74_spill] sm:$0xff] %v21386_v3  ;;  %8657 = vmatpush1.bf16.msra.mxu0 %v18160_v59  ;;  %v18189_v59 = vld [vmem:[%s19998_s16 + $0x1fe4] ss:$16 sps:$4 sm:$0xff]   ;;  %v18184_v57 = vld [vmem:[%s19998_s16 + $0x1de0] ss:$16 sps:$4 sm:$0xff]  }
 0x39c   : > { %8710 = vmatpush1.bf16.msra.mxu1 %v18163_v27  ;;  %8658 = vmatprep.subr.bf16.mxu0 %v18168_v10  ;;  %v18183_v27 = vld [vmem:[%s19998_s16 + $0x1e04] ss:$16 sps:$4 sm:$0xff]   ;;  %v18187_v58 = vld [vmem:[%s19998_s16 + $0x1fe0] ss:$16 sps:$4 sm:$0xff]   ;;  %v18250_v3 = vld [vmem:[%s19998_s16 + $0x1088] ss:$16 sps:$4 sm:$0xff]  }
 0x39d   : > { %8711 = vmatprep.subr.bf16.mxu1 %v18171_v26  ;;  %v18192_v51 = vld [vmem:[%s19998_s16 + $0x1dc4] ss:$16 sps:$4 sm:$0xff]   ;;  %v18190_v26 = vld [vmem:[%s19998_s16 + $0x1dc0] ss:$16 sps:$4 sm:$0xff]  }
 0x39e   : > { %v18195_v10 = vld [vmem:[%s19998_s16 + $0x1fc4] ss:$16 sps:$4 sm:$0xff]  }
 0x39f   : > { %8659 = vmatpush1.bf16.msra.mxu0 %v18166_v21  ;;  %v18193_v21 = vld [vmem:[%s19998_s16 + $0x1fc0] ss:$16 sps:$4 sm:$0xff]  }
 0x3a0   : > { %8712 = vmatpush1.bf16.msra.mxu1 %v18169_v25  ;;  %8660 = vmatprep.subr.bf16.mxu0 %v18174_v14  ;;  %v18198_v25 = vld [vmem:[%s19998_s16 + $0x1da4] ss:$16 sps:$4 sm:$0xff]  }
 0x3a1   : > { %8713 = vmatprep.subr.bf16.mxu1 %v18177_v60  ;;  %v18201_v14 = vld [vmem:[%s19998_s16 + $0x1fa4] ss:$16 sps:$4 sm:$0xff]   ;;  %v18196_v60 = vld [vmem:[%s19998_s16 + $0x1da0] ss:$16 sps:$4 sm:$0xff]  }
 0x3a3   : > { %8661 = vmatpush1.bf16.msra.mxu0 %v18172_v37  ;;  %v18199_v37 = vld [vmem:[%s19998_s16 + $0x1fa0] ss:$16 sps:$4 sm:$0xff]  }
 0x3a4   : > { %8714 = vmatpush1.bf16.msra.mxu1 %v18175_v33  ;;  %8662 = vmatprep.subr.bf16.mxu0 %v18180_v28  ;;  %v18204_v33 = vld [vmem:[%s19998_s16 + $0x1d84] ss:$16 sps:$4 sm:$0xff]  }
 0x3a5   : > { %8715 = vmatprep.subr.bf16.mxu1 %v18183_v27  ;;  %v18207_v28 = vld [vmem:[%s19998_s16 + $0x1f84] ss:$16 sps:$4 sm:$0xff]   ;;  %v18202_v27 = vld [vmem:[%s19998_s16 + $0x1d80] ss:$16 sps:$4 sm:$0xff]  }
 0x3a7   : > { %8663 = vmatpush1.bf16.msra.mxu0 %v18178_v46  ;;  %v18205_v46 = vld [vmem:[%s19998_s16 + $0x1f80] ss:$16 sps:$4 sm:$0xff]  }
 0x3a8   : > { %8716 = vmatpush1.bf16.msra.mxu1 %v18181_v44  ;;  %8664 = vmatprep.subr.bf16.mxu0 %v18186_v41  ;;  %v18210_v44 = vld [vmem:[%s19998_s16 + $0x1d64] ss:$16 sps:$4 sm:$0xff]  }
 0x3a9   : > { %8717 = vmatprep.subr.bf16.mxu1 %v18189_v59  ;;  %v18213_v41 = vld [vmem:[%s19998_s16 + $0x1f64] ss:$16 sps:$4 sm:$0xff]   ;;  %v18208_v59 = vld [vmem:[%s19998_s16 + $0x1d60] ss:$16 sps:$4 sm:$0xff]  }
 0x3ab   : > { %8665 = vmatpush2.bf16.msra.mxu0 %v18184_v57  ;;  %v18211_v57 = vld [vmem:[%s19998_s16 + $0x1f60] ss:$16 sps:$4 sm:$0xff]  }
 0x3ac   : > { %8718 = vmatpush2.bf16.msra.mxu1 %v18187_v58  ;;  %8666 = vmatprep.subr.bf16.mxu0 %v18192_v51  ;;  %v18216_v58 = vld [vmem:[%s19998_s16 + $0x1d44] ss:$16 sps:$4 sm:$0xff]  }
 0x3ad   : > { %8719 = vmatprep.subr.bf16.mxu1 %v18195_v10  ;;  %v18219_v51 = vld [vmem:[%s19998_s16 + $0x1f44] ss:$16 sps:$4 sm:$0xff]   ;;  %v18214_v10 = vld [vmem:[%s19998_s16 + $0x1d40] ss:$16 sps:$4 sm:$0xff]  }
 0x3af   : > { %8667 = vmatpush2.bf16.msra.mxu0 %v18190_v26  ;;  %v18217_v26 = vld [vmem:[%s19998_s16 + $0x1f40] ss:$16 sps:$4 sm:$0xff]  }
 0x3b0   : > { %8720 = vmatpush2.bf16.msra.mxu1 %v18193_v21  ;;  %8668 = vmatprep.subr.bf16.mxu0 %v18198_v25  ;;  %v18222_v21 = vld [vmem:[%s19998_s16 + $0x1d24] ss:$16 sps:$4 sm:$0xff]  }
 0x3b1   : > { %8721 = vmatprep.subr.bf16.mxu1 %v18201_v14  ;;  %v18225_v25 = vld [vmem:[%s19998_s16 + $0x1f24] ss:$16 sps:$4 sm:$0xff]   ;;  %v14785_v14 = vld [vmem:[%s19990_s0 + $0xf8] sm:$0xff] }
 0x3b3   : > { %8669 = vmatpush2.bf16.msra.mxu0 %v18196_v60  ;;  %v14789_v60 = vld [vmem:[%s19990_s0 + $0x118] sm:$0xff] }
 0x3b4   : > { %8722 = vmatpush2.bf16.msra.mxu1 %v18199_v37  ;;  %8670 = vmatprep.subr.bf16.mxu0 %v18204_v33  ;;  %v14793_v37 = vld [vmem:[%s19990_s0 + $0x138] sm:$0xff] }
 0x3b5   : > { %8723 = vmatprep.subr.bf16.mxu1 %v18207_v28  ;;  %v14797_v33 = vld [vmem:[%s19990_s0 + $0x158] sm:$0xff]  ;;  %v18220_v28 = vld [vmem:[%s19998_s16 + $0x1d20] ss:$16 sps:$4 sm:$0xff]  }
 0x3b7   : > { %8671 = vmatpush2.bf16.msra.mxu0 %v18202_v27  ;;  %v18223_v27 = vld [vmem:[%s19998_s16 + $0x1f20] ss:$16 sps:$4 sm:$0xff]  }
 0x3b8   : > { %8724 = vmatpush2.bf16.msra.mxu1 %v18205_v46  ;;  %8672 = vmatprep.subr.bf16.mxu0 %v18210_v44  ;;  %v18228_v46 = vld [vmem:[%s19998_s16 + $0x1d04] ss:$16 sps:$4 sm:$0xff]  }
 0x3b9   : > { %8725 = vmatprep.subr.bf16.mxu1 %v18213_v41  ;;  %v18231_v44 = vld [vmem:[%s19998_s16 + $0x1f04] ss:$16 sps:$4 sm:$0xff]   ;;  %v5702_v41 = vcombine.low %v14785_v14, %v14789_v60 }
 0x3bb   : > { %8673 = vmatpush2.bf16.msra.mxu0 %v18208_v59  ;;  %v5704_v59 = vcombine.low %v14793_v37, %v14797_v33  ;;  %v5712_v61 = vrot.slane %v5702_v41, %v20083_v55  ;;  %v18238_v41 = vld [vmem:[%s19998_s16 + $0x10c8] ss:$16 sps:$4 sm:$0xff]  }
 0x3bc   : > { %8726 = vmatpush2.bf16.msra.mxu1 %v18211_v57  ;;  %8674 = vmatprep.subr.bf16.mxu0 %v18216_v58  ;;  %v5703_v57 = vcombine.high %v14785_v14, %v14789_v60  ;;  %v5705_v58 = vcombine.high %v14793_v37, %v14797_v33  ;;  %v21444_v37 = vcombine.low %v21326_v31, %v21329_v32 }
 0x3bd   : > { %8727 = vmatprep.subr.bf16.mxu1 %v18219_v51  ;;  %v18226_v51 = vld [vmem:[%s19998_s16 + $0x1d00] ss:$16 sps:$4 sm:$0xff]   ;;  %v5726_v16 = vrot.slane %v5704_v59, %v20083_v55  ;;  %v21448_v33 = vcombine.low %v21332_v49, %v21342_v38  ;;  %v18241_v59 = vld [vmem:[%s19998_s16 + $0x12c8] ss:$16 sps:$4 sm:$0xff]  }
 0x3be   : > { %v5719_v14 = vrot.slane %v5703_v57, %v20083_v55  ;;  %v5733_v60 = vrot.slane %v5705_v58, %v20083_v55 }
 0x3bf   : > { %8675 = vmatpush2.bf16.msra.mxu0 %v18214_v10  ;;  %v18234_v10 = vld [vmem:[%s19998_s16 + $0x10ec] ss:$16 sps:$4 sm:$0xff]   ;;  %v21458_v31 = vcombine.high %v5712_v61, %v5726_v16 }
 0x3c0   : > { %8728 = vmatpush2.bf16.msra.mxu1 %v18217_v26  ;;  %8676 = vmatprep.subr.bf16.mxu0 %v18222_v21  ;;  %v18237_v26 = vld [vmem:[%s19998_s16 + $0x12ec] ss:$16 sps:$4 sm:$0xff]   ;;  %v18232_v21 = vld [vmem:[%s19998_s16 + $0x10e8] ss:$16 sps:$4 sm:$0xff]   ;;  %v21460_v32 = vcombine.high %v5719_v14, %v5733_v60 }
 0x3c1   : > { %8729 = vmatprep.subr.bf16.mxu1 %v18225_v25  ;;  %v18235_v25 = vld [vmem:[%s19998_s16 + $0x12e8] ss:$16 sps:$4 sm:$0xff]  }
 0x3c3   : > { %8677 = vmatpush2.bf16.msra.mxu0 %v18220_v28  ;;  %v21450_v28 = vpop.f32.mrf.mxu0 }
 0x3c4   : > { %8730 = vmatpush2.bf16.msra.mxu1 %v18223_v27  ;;  %8678 = vmatprep.subr.bf16.mxu0 %v18228_v46  ;;  %23235 = vst [vmem:[#allocation75_spill] sm:$0xff] %v21450_v28  ;;  %v21452_v27 = vpop.f32.mrf.mxu1  ;;  %v18240_v46 = vld [vmem:[%s19998_s16 + $0x10cc] ss:$16 sps:$4 sm:$0xff]   ;;  %v18247_v28 = vld [vmem:[%s19998_s16 + $0x12a8] ss:$16 sps:$4 sm:$0xff]  }
 0x3c5   : > { %8731 = vmatprep.subr.bf16.mxu1 %v18231_v44  ;;  %23236 = vst [vmem:[#allocation76_spill] sm:$0xff] %v21452_v27  ;;  %v18243_v44 = vld [vmem:[%s19998_s16 + $0x12cc] ss:$16 sps:$4 sm:$0xff]   ;;  %v18244_v27 = vld [vmem:[%s19998_s16 + $0x10a8] ss:$16 sps:$4 sm:$0xff]  }
 0x3c7   : > { %8679 = vmatpush2.bf16.msra.mxu0 %v18226_v51  ;;  %v18246_v51 = vld [vmem:[%s19998_s16 + $0x10ac] ss:$16 sps:$4 sm:$0xff]  }
 0x3c8   : > { %8732 = vmatpush2.bf16.msra.mxu1 %v18229_v50  ;;  %8754 = vmatprep.subr.bf16.mxu0 %v18234_v10  ;;  %v18249_v10 = vld [vmem:[%s19998_s16 + $0x12ac] ss:$16 sps:$4 sm:$0xff]  }
 0x3c9   : > { %8807 = vmatprep.subr.bf16.mxu1 %v18237_v26 }
 0x3ca   : > { %v8364_v49 = vpop.f32.mrf.mxu0  ;;  %8681 = vmatmul.mubr.bf16.vlgmr.msra.gmra.mxu0 %v21444_v37 }
 0x3cb   : > { %v8417_v38 = vpop.f32.mrf.mxu1  ;;  %8734 = vmatmul.mubr.bf16.vlgmr.msra.gmra.mxu1 %v21448_v33  ;;  %8755 = vmatpush1.bf16.msra.mxu0 %v18232_v21 }
 0x3cc   : > { %v21464_v50 = vadd.f32 %v8417_v38, %v8364_v49  ;;  %8808 = vmatpush1.bf16.msra.mxu1 %v18235_v25  ;;  %v8366_v57 = vpop.f32.mrf.mxu0  ;;  %8756 = vmatprep.subr.bf16.mxu0 %v18240_v46  ;;  %v21474_v49 = vcombine.low %v5712_v61, %v5726_v16  ;;  %v21476_v46 = vcombine.low %v5719_v14, %v5733_v60  ;;  %v18253_v16 = vld [vmem:[%s19998_s16 + $0x1288] ss:$16 sps:$4 sm:$0xff]  }
 0x3cd   : > { %v8419_v58 = vpop.f32.mrf.mxu1  ;;  %8809 = vmatprep.subr.bf16.mxu1 %v18243_v44  ;;  %8690 = vmatprep.mubr.bf16.mxu0 %v21458_v31 }
 0x3ce   : > { %v21468_v26 = vadd.f32 %v8419_v58, %v8366_v57  ;;  %8743 = vmatprep.mubr.bf16.mxu1 %v21460_v32  ;;  %v8368_v21 = vpop.f32.mrf.mxu0  ;;  %v18252_v58 = vld [vmem:[%s19998_s16 + $0x108c] ss:$16 sps:$4 sm:$0xff]  }
 0x3cf   : > { %v8421_v25 = vpop.f32.mrf.mxu1  ;;  %8757 = vmatpush1.bf16.msra.mxu0 %v18238_v41  ;;  %v18258_v41 = vld [vmem:[%s19998_s16 + $0x106c] ss:$16 sps:$4 sm:$0xff]  }
 0x3d0   : > { %v21478_v44 = vadd.f32 %v8421_v25, %v8368_v21  ;;  %8810 = vmatpush1.bf16.msra.mxu1 %v18241_v59  ;;  %v21480_v38 = vpop.f32.mrf.mxu0  ;;  %8758 = vmatprep.subr.bf16.mxu0 %v18246_v51  ;;  %v18261_v59 = vld [vmem:[%s19998_s16 + $0x126c] ss:$16 sps:$4 sm:$0xff]   ;;  %v18256_v21 = vld [vmem:[%s19998_s16 + $0x1068] ss:$16 sps:$4 sm:$0xff]  }
 0x3d1   : > { %v21482_v57 = vpop.f32.mrf.mxu1  ;;  %8811 = vmatprep.subr.bf16.mxu1 %v18249_v10  ;;  %v18259_v25 = vld [vmem:[%s19998_s16 + $0x1268] ss:$16 sps:$4 sm:$0xff]  }
 0x3d2   : > { %8691 = vmatmul.mubr.bf16.gmra.mxu0 %v21474_v49  ;;  %v8374_v61 = vpop.f32.mrf.mxu0 }
 0x3d3   : > { %8744 = vmatmul.mubr.bf16.gmra.mxu1 %v21476_v46  ;;  %v8427_v14 = vpop.f32.mrf.mxu1  ;;  %8759 = vmatpush1.bf16.msra.mxu0 %v18244_v27 }
 0x3d4   : > { %8812 = vmatpush1.bf16.msra.mxu1 %v18247_v28  ;;  %v21490_v60 = vadd.f32 %v8427_v14, %v8374_v61  ;;  %8760 = vmatprep.subr.bf16.mxu0 %v18252_v58  ;;  %v8376_v51 = vpop.f32.mrf.mxu0  ;;  %v18264_v58 = vld [vmem:[%s19998_s16 + $0x104c] ss:$16 sps:$4 sm:$0xff]   ;;  %v18268_v14 = vld [vmem:[%s19998_s16 + $0x1028] ss:$16 sps:$4 sm:$0xff]  }
 0x3d5   : > { %8813 = vmatprep.subr.bf16.mxu1 %v18255_v12  ;;  %v8429_v10 = vpop.f32.mrf.mxu1  ;;  %8786 = vmatprep.mubr.bf16.mxu0 %v20928_v56  ;;  %v18267_v61 = vld [vmem:[%s19998_s16 + $0x124c] ss:$16 sps:$4 sm:$0xff]   ;;  %v18262_v56 = vld [vmem:[%s19998_s16 + $0x1048] ss:$16 sps:$4 sm:$0xff]  }
 0x3d6   : > { %v21496_v40 = vadd.f32 %v8429_v10, %v8376_v51  ;;  %8839 = vmatprep.mubr.bf16.mxu1 %v20932_v39  ;;  %v8378_v28 = vpop.f32.mrf.mxu0  ;;  %v18265_v39 = vld [vmem:[%s19998_s16 + $0x1248] ss:$16 sps:$4 sm:$0xff]   ;;  %v18279_v51 = vld [vmem:[%s19998_s16 + $0x120c] ss:$16 sps:$4 sm:$0xff]  }
 0x3d7   : > { %v8431_v12 = vpop.f32.mrf.mxu1  ;;  %8761 = vmatpush1.bf16.msra.mxu0 %v18250_v3  ;;  %v18270_v3 = vld [vmem:[%s19998_s16 + $0x102c] ss:$16 sps:$4 sm:$0xff]   ;;  %v18274_v10 = vld [vmem:[%s19998_s16 + $0x1008] ss:$16 sps:$4 sm:$0xff]  }
 0x3d8   : > { %8814 = vmatpush1.bf16.msra.mxu1 %v18253_v16  ;;  %v21500_v27 = vadd.f32 %v8431_v12, %v8378_v28  ;;  %8762 = vmatprep.subr.bf16.mxu0 %v18258_v41  ;;  %v18273_v16 = vld [vmem:[%s19998_s16 + $0x122c] ss:$16 sps:$4 sm:$0xff]   ;;  %v18271_v41 = vld [vmem:[%s19998_s16 + $0x1228] ss:$16 sps:$4 sm:$0xff]  }
 0x3d9   : > { %8815 = vmatprep.subr.bf16.mxu1 %v18261_v59  ;;  %v18276_v59 = vld [vmem:[%s19998_s16 + $0x100c] ss:$16 sps:$4 sm:$0xff]   ;;  %v18280_v12 = vld [vmem:[%s19998_s16 + $0x11e8] ss:$16 sps:$4 sm:$0xff]  }
 0x3da   : > { %v18285_v28 = vld [vmem:[%s19998_s16 + $0x13ec] ss:$16 sps:$4 sm:$0xff]  }
 0x3db   : > { %8763 = vmatpush1.bf16.msra.mxu0 %v18256_v21  ;;  %v18277_v21 = vld [vmem:[%s19998_s16 + $0x1208] ss:$16 sps:$4 sm:$0xff]  }
 0x3dc   : > { %8816 = vmatpush1.bf16.msra.mxu1 %v18259_v25  ;;  %8764 = vmatprep.subr.bf16.mxu0 %v18264_v58  ;;  %v18282_v25 = vld [vmem:[%s19998_s16 + $0x11ec] ss:$16 sps:$4 sm:$0xff]   ;;  %v18283_v58 = vld [vmem:[%s19998_s16 + $0x13e8] ss:$16 sps:$4 sm:$0xff]  }
 0x3dd   : > { %8817 = vmatprep.subr.bf16.mxu1 %v18267_v61  ;;  %v18288_v61 = vld [vmem:[%s19998_s16 + $0x11cc] ss:$16 sps:$4 sm:$0xff]  }
 0x3df   : > { %8765 = vmatpush1.bf16.msra.mxu0 %v18262_v56  ;;  %v18291_v56 = vld [vmem:[%s19998_s16 + $0x13cc] ss:$16 sps:$4 sm:$0xff]  }
 0x3e0   : > { %8818 = vmatpush1.bf16.msra.mxu1 %v18265_v39  ;;  %8766 = vmatprep.subr.bf16.mxu0 %v18270_v3  ;;  %v18286_v39 = vld [vmem:[%s19998_s16 + $0x11c8] ss:$16 sps:$4 sm:$0xff]  }
 0x3e1   : > { %8819 = vmatprep.subr.bf16.mxu1 %v18273_v16  ;;  %v18289_v3 = vld [vmem:[%s19998_s16 + $0x13c8] ss:$16 sps:$4 sm:$0xff]   ;;  %v18294_v16 = vld [vmem:[%s19998_s16 + $0x11ac] ss:$16 sps:$4 sm:$0xff]  }
 0x3e3   : > { %8767 = vmatpush1.bf16.msra.mxu0 %v18268_v14  ;;  %v18297_v14 = vld [vmem:[%s19998_s16 + $0x13ac] ss:$16 sps:$4 sm:$0xff]  }
 0x3e4   : > { %8820 = vmatpush1.bf16.msra.mxu1 %v18271_v41  ;;  %8768 = vmatprep.subr.bf16.mxu0 %v18276_v59  ;;  %v18292_v41 = vld [vmem:[%s19998_s16 + $0x11a8] ss:$16 sps:$4 sm:$0xff]  }
 0x3e5   : > { %8821 = vmatprep.subr.bf16.mxu1 %v18279_v51  ;;  %v18295_v59 = vld [vmem:[%s19998_s16 + $0x13a8] ss:$16 sps:$4 sm:$0xff]   ;;  %v18300_v51 = vld [vmem:[%s19998_s16 + $0x118c] ss:$16 sps:$4 sm:$0xff]  }
 0x3e7   : > { %8769 = vmatpush1.bf16.msra.mxu0 %v18274_v10  ;;  %v18303_v10 = vld [vmem:[%s19998_s16 + $0x138c] ss:$16 sps:$4 sm:$0xff]  }
 0x3e8   : > { %8822 = vmatpush1.bf16.msra.mxu1 %v18277_v21  ;;  %8770 = vmatprep.subr.bf16.mxu0 %v18282_v25  ;;  %v18298_v21 = vld [vmem:[%s19998_s16 + $0x1188] ss:$16 sps:$4 sm:$0xff]  }
 0x3e9   : > { %8823 = vmatprep.subr.bf16.mxu1 %v18285_v28  ;;  %v18301_v25 = vld [vmem:[%s19998_s16 + $0x1388] ss:$16 sps:$4 sm:$0xff]   ;;  %v18306_v28 = vld [vmem:[%s19998_s16 + $0x116c] ss:$16 sps:$4 sm:$0xff]  }
 0x3eb   : > { %8771 = vmatpush2.bf16.msra.mxu0 %v18280_v12  ;;  %v18309_v12 = vld [vmem:[%s19998_s16 + $0x136c] ss:$16 sps:$4 sm:$0xff]  }
 0x3ec   : > { %8824 = vmatpush2.bf16.msra.mxu1 %v18283_v58  ;;  %8772 = vmatprep.subr.bf16.mxu0 %v18288_v61  ;;  %v18304_v58 = vld [vmem:[%s19998_s16 + $0x1168] ss:$16 sps:$4 sm:$0xff]  }
 0x3ed   : > { %8825 = vmatprep.subr.bf16.mxu1 %v18291_v56  ;;  %v18307_v61 = vld [vmem:[%s19998_s16 + $0x1368] ss:$16 sps:$4 sm:$0xff]   ;;  %v18312_v56 = vld [vmem:[%s19998_s16 + $0x114c] ss:$16 sps:$4 sm:$0xff]  }
 0x3ef   : > { %8773 = vmatpush2.bf16.msra.mxu0 %v18286_v39  ;;  %v18315_v39 = vld [vmem:[%s19998_s16 + $0x134c] ss:$16 sps:$4 sm:$0xff]  }
 0x3f0   : > { %8826 = vmatpush2.bf16.msra.mxu1 %v18289_v3  ;;  %8774 = vmatprep.subr.bf16.mxu0 %v18294_v16  ;;  %v18310_v3 = vld [vmem:[%s19998_s16 + $0x1148] ss:$16 sps:$4 sm:$0xff]  }
 0x3f1   : > { %8827 = vmatprep.subr.bf16.mxu1 %v18297_v14  ;;  %v18313_v16 = vld [vmem:[%s19998_s16 + $0x1348] ss:$16 sps:$4 sm:$0xff]   ;;  %v18318_v14 = vld [vmem:[%s19998_s16 + $0x112c] ss:$16 sps:$4 sm:$0xff]  }
 0x3f3   : > { %8775 = vmatpush2.bf16.msra.mxu0 %v18292_v41  ;;  %v18321_v41 = vld [vmem:[%s19998_s16 + $0x132c] ss:$16 sps:$4 sm:$0xff]  }
 0x3f4   : > { %8828 = vmatpush2.bf16.msra.mxu1 %v18295_v59  ;;  %8776 = vmatprep.subr.bf16.mxu0 %v18300_v51  ;;  %v18316_v59 = vld [vmem:[%s19998_s16 + $0x1128] ss:$16 sps:$4 sm:$0xff]  }
 0x3f5   : > { %8829 = vmatprep.subr.bf16.mxu1 %v18303_v10  ;;  %v18319_v51 = vld [vmem:[%s19998_s16 + $0x1328] ss:$16 sps:$4 sm:$0xff]   ;;  %v18324_v10 = vld [vmem:[%s19998_s16 + $0x110c] ss:$16 sps:$4 sm:$0xff]  }
 0x3f7   : > { %8777 = vmatpush2.bf16.msra.mxu0 %v18298_v21  ;;  %v18327_v21 = vld [vmem:[%s19998_s16 + $0x130c] ss:$16 sps:$4 sm:$0xff]  }
 0x3f8   : > { %8830 = vmatpush2.bf16.msra.mxu1 %v18301_v25  ;;  %8778 = vmatprep.subr.bf16.mxu0 %v18306_v28  ;;  %v18322_v25 = vld [vmem:[%s19998_s16 + $0x1108] ss:$16 sps:$4 sm:$0xff]  }
 0x3f9   : > { %8831 = vmatprep.subr.bf16.mxu1 %v18309_v12  ;;  %v18325_v28 = vld [vmem:[%s19998_s16 + $0x1308] ss:$16 sps:$4 sm:$0xff]   ;;  %v18330_v12 = vld [vmem:[%s19998_s16 + $0x14ec] ss:$16 sps:$4 sm:$0xff]  }
 0x3fb   : > { %8779 = vmatpush2.bf16.msra.mxu0 %v18304_v58  ;;  %v18333_v58 = vld [vmem:[%s19998_s16 + $0x16ec] ss:$16 sps:$4 sm:$0xff]  }
 0x3fc   : > { %8832 = vmatpush2.bf16.msra.mxu1 %v18307_v61  ;;  %8780 = vmatprep.subr.bf16.mxu0 %v18312_v56  ;;  %v18328_v61 = vld [vmem:[%s19998_s16 + $0x14e8] ss:$16 sps:$4 sm:$0xff]  }
 0x3fd   : > { %8833 = vmatprep.subr.bf16.mxu1 %v18315_v39  ;;  %v18331_v56 = vld [vmem:[%s19998_s16 + $0x16e8] ss:$16 sps:$4 sm:$0xff]   ;;  %v21550_v39 = vpop.f32.mrf.mxu0 }
 0x3ff   : > { %8781 = vmatpush2.bf16.msra.mxu0 %v18310_v3  ;;  %v21552_v3 = vpop.f32.mrf.mxu1 }
 0x400   : > { %8834 = vmatpush2.bf16.msra.mxu1 %v18313_v16  ;;  %8782 = vmatprep.subr.bf16.mxu0 %v18318_v14  ;;  %v18336_v16 = vld [vmem:[%s19998_s16 + $0x14cc] ss:$16 sps:$4 sm:$0xff]  }
 0x401   : > { %8835 = vmatprep.subr.bf16.mxu1 %v18321_v41  ;;  %v18339_v14 = vld [vmem:[%s19998_s16 + $0x16cc] ss:$16 sps:$4 sm:$0xff]   ;;  %v18334_v41 = vld [vmem:[%s19998_s16 + $0x14c8] ss:$16 sps:$4 sm:$0xff]  }
 0x403   : > { %8783 = vmatpush2.bf16.msra.mxu0 %v18316_v59  ;;  %v18337_v59 = vld [vmem:[%s19998_s16 + $0x16c8] ss:$16 sps:$4 sm:$0xff]  }
 0x404   : > { %8836 = vmatpush2.bf16.msra.mxu1 %v18319_v51  ;;  %8784 = vmatprep.subr.bf16.mxu0 %v18324_v10 }
 0x405   : > { %8837 = vmatprep.subr.bf16.mxu1 %v18327_v21 }
 0x407   : > { %8785 = vmatpush2.bf16.msra.mxu0 %v18322_v25 }
 0x408   : > { %8838 = vmatpush2.bf16.msra.mxu1 %v18325_v28  ;;  %8860 = vmatprep.subr.bf16.mxu0 %v18330_v12  ;;  %v18342_v12 = vld [vmem:[%s19998_s16 + $0x14ac] ss:$16 sps:$4 sm:$0xff]  }
 0x409   : > { %8913 = vmatprep.subr.bf16.mxu1 %v18333_v58  ;;  %v18345_v58 = vld [vmem:[%s19998_s16 + $0x16ac] ss:$16 sps:$4 sm:$0xff]  }
 0x40a   : > { %v8470_v51 = vpop.f32.mrf.mxu0  ;;  %8787 = vmatmul.mubr.bf16.vlgmr.msra.gmra.mxu0 %v21010_v53  ;;  %v18343_v53 = vld [vmem:[%s19998_s16 + $0x16a8] ss:$16 sps:$4 sm:$0xff]  }
 0x40b   : > { %v8523_v10 = vpop.f32.mrf.mxu1  ;;  %8840 = vmatmul.mubr.bf16.vlgmr.msra.gmra.mxu1 %v21014_v8  ;;  %v8471_v21 = vadd.f32 %v8470_v51, %v21464_v50  ;;  %8861 = vmatpush1.bf16.msra.mxu0 %v18328_v61 }
 0x40c   : > { %8914 = vmatpush1.bf16.msra.mxu1 %v18331_v56  ;;  %v8472_v25 = vpop.f32.mrf.mxu0  ;;  %8862 = vmatprep.subr.bf16.mxu0 %v18336_v16 }
 0x40d   : > { %v8525_v28 = vpop.f32.mrf.mxu1  ;;  %8915 = vmatprep.subr.bf16.mxu1 %v18339_v14  ;;  %v21563_v47 = vadd.f32 %v8523_v10, %v8471_v21  ;;  %v8473_v22 = vadd.f32 %v8472_v25, %v21468_v26  ;;  %8796 = vmatprep.mubr.bf16.mxu0 %v21022_v4  ;;  %v18348_v14 = vld [vmem:[%s19998_s16 + $0x148c] ss:$16 sps:$4 sm:$0xff]   ;;  %v18349_v10 = vld [vmem:[%s19998_s16 + $0x1688] ss:$16 sps:$4 sm:$0xff]  }
 0x40e   : > { %8849 = vmatprep.mubr.bf16.mxu1 %v21024_v7  ;;  %v8474_v8 = vpop.f32.mrf.mxu0  ;;  %v18351_v4 = vld [vmem:[%s19998_s16 + $0x168c] ss:$16 sps:$4 sm:$0xff]   ;;  %v18346_v7 = vld [vmem:[%s19998_s16 + $0x1488] ss:$16 sps:$4 sm:$0xff]  }
 0x40f   : > { %v8527_v50 = vpop.f32.mrf.mxu1  ;;  %v21570_v61 = vadd.f32 %v8525_v28, %v8473_v22  ;;  %v8475_v56 = vadd.f32 %v8474_v8, %v21478_v44  ;;  %8863 = vmatpush1.bf16.msra.mxu0 %v18334_v41  ;;  %v18354_v25 = vld [vmem:[%s19998_s16 + $0x146c] ss:$16 sps:$4 sm:$0xff]  }
 0x410   : > { %8916 = vmatpush1.bf16.msra.mxu1 %v18337_v59  ;;  %v21573_v16 = vpop.f32.mrf.mxu0  ;;  %8864 = vmatprep.subr.bf16.mxu0 %v18342_v12  ;;  %v18357_v28 = vld [vmem:[%s19998_s16 + $0x166c] ss:$16 sps:$4 sm:$0xff]  }
 0x411   : > { %v21575_v26 = vpop.f32.mrf.mxu1  ;;  %8917 = vmatprep.subr.bf16.mxu1 %v18345_v58  ;;  %v21579_v51 = vadd.f32 %v8527_v50, %v8475_v56  ;;  %v18363_v50 = vld [vmem:[%s19998_s16 + $0x164c] ss:$16 sps:$4 sm:$0xff]   ;;  %v18361_v56 = vld [vmem:[%s19998_s16 + $0x1648] ss:$16 sps:$4 sm:$0xff]  }
 0x412   : > { %v8480_v22 = vpop.f32.mrf.mxu0  ;;  %8797 = vmatmul.mubr.bf16.gmra.mxu0 %v21051_v34  ;;  %v18352_v34 = vld [vmem:[%s19998_s16 + $0x1468] ss:$16 sps:$4 sm:$0xff]  }
 0x413   : > { %v8533_v44 = vpop.f32.mrf.mxu1  ;;  %8850 = vmatmul.mubr.bf16.gmra.mxu1 %v21053_v0  ;;  %v8481_v41 = vadd.f32 %v8480_v22, %v21490_v60  ;;  %8865 = vmatpush1.bf16.msra.mxu0 %v18340_v20  ;;  %v18355_v0 = vld [vmem:[%s19998_s16 + $0x1668] ss:$16 sps:$4 sm:$0xff]   ;;  %v18375_v22 = vld [vmem:[%s19998_s16 + $0x160c] ss:$16 sps:$4 sm:$0xff]  }
 0x414   : > { %8918 = vmatpush1.bf16.msra.mxu1 %v18343_v53  ;;  %v8482_v59 = vpop.f32.mrf.mxu0  ;;  %8866 = vmatprep.subr.bf16.mxu0 %v18348_v14  ;;  %v18369_v14 = vld [vmem:[%s19998_s16 + $0x162c] ss:$16 sps:$4 sm:$0xff]  }
 0x415   : > { %v8535_v21 = vpop.f32.mrf.mxu1  ;;  %8919 = vmatprep.subr.bf16.mxu1 %v18351_v4  ;;  %v8483_v12 = vadd.f32 %v8482_v59, %v21496_v40  ;;  %v21589_v58 = vadd.f32 %v8533_v44, %v8481_v41  ;;  %8892 = vmatprep.mubr.bf16.mxu0 %v21070_v11  ;;  %v18360_v40 = vld [vmem:[%s19998_s16 + $0x144c] ss:$16 sps:$4 sm:$0xff]   ;;  %v18364_v4 = vld [vmem:[%s19998_s16 + $0x1428] ss:$16 sps:$4 sm:$0xff]  }
 0x416   : > { %8945 = vmatprep.mubr.bf16.mxu1 %v21074_v6  ;;  %v8484_v20 = vpop.f32.mrf.mxu0  ;;  %v18358_v6 = vld [vmem:[%s19998_s16 + $0x1448] ss:$16 sps:$4 sm:$0xff]   ;;  %v18378_v59 = vld [vmem:[%s19998_s16 + $0x15ec] ss:$16 sps:$4 sm:$0xff]  }
 0x417   : > { %v8537_v60 = vpop.f32.mrf.mxu1  ;;  %v8485_v53 = vadd.f32 %v8484_v20, %v21500_v27  ;;  %v21596_v8 = vadd.f32 %v8535_v21, %v8483_v12  ;;  %8867 = vmatpush1.bf16.msra.mxu0 %v18346_v7  ;;  %v18366_v27 = vld [vmem:[%s19998_s16 + $0x142c] ss:$16 sps:$4 sm:$0xff]   ;;  %v18367_v7 = vld [vmem:[%s19998_s16 + $0x1628] ss:$16 sps:$4 sm:$0xff]  }
 0x418   : > { %8920 = vmatpush1.bf16.msra.mxu1 %v18349_v10  ;;  %8868 = vmatprep.subr.bf16.mxu0 %v18354_v25  ;;  %v18372_v10 = vld [vmem:[%s19998_s16 + $0x140c] ss:$16 sps:$4 sm:$0xff]   ;;  %v18370_v44 = vld [vmem:[%s19998_s16 + $0x1408] ss:$16 sps:$4 sm:$0xff]  }
 0x419   : > { %8921 = vmatprep.subr.bf16.mxu1 %v18357_v28  ;;  %v21600_v11 = vadd.f32 %v8537_v60, %v8485_v53  ;;  %v18373_v41 = vld [vmem:[%s19998_s16 + $0x1608] ss:$16 sps:$4 sm:$0xff]   ;;  %v18381_v21 = vld [vmem:[%s19998_s16 + $0x17ec] ss:$16 sps:$4 sm:$0xff]  }
 0x41a   : > { %v18376_v25 = vld [vmem:[%s19998_s16 + $0x15e8] ss:$16 sps:$4 sm:$0xff]   ;;  %v18384_v12 = vld [vmem:[%s19998_s16 + $0x15cc] ss:$16 sps:$4 sm:$0xff]  }
 0x41b   : > { %8869 = vmatpush1.bf16.msra.mxu0 %v18352_v34  ;;  %v18379_v28 = vld [vmem:[%s19998_s16 + $0x17e8] ss:$16 sps:$4 sm:$0xff]   ;;  %v18387_v34 = vld [vmem:[%s19998_s16 + $0x17cc] ss:$16 sps:$4 sm:$0xff]  }
 0x41c   : > { %8922 = vmatpush1.bf16.msra.mxu1 %v18355_v0  ;;  %8870 = vmatprep.subr.bf16.mxu0 %v18360_v40  ;;  %v18382_v0 = vld [vmem:[%s19998_s16 + $0x15c8] ss:$16 sps:$4 sm:$0xff]   ;;  %v18390_v60 = vld [vmem:[%s19998_s16 + $0x15ac] ss:$16 sps:$4 sm:$0xff]  }
 0x41d   : > { %8923 = vmatprep.subr.bf16.mxu1 %v18363_v50  ;;  %v18385_v20 = vld [vmem:[%s19998_s16 + $0x17c8] ss:$16 sps:$4 sm:$0xff]   ;;  %v18393_v53 = vld [vmem:[%s19998_s16 + $0x17ac] ss:$16 sps:$4 sm:$0xff]  }
 0x41e   : > { %v18388_v40 = vld [vmem:[%s19998_s16 + $0x15a8] ss:$16 sps:$4 sm:$0xff]  }
 0x41f   : > { %8871 = vmatpush1.bf16.msra.mxu0 %v18358_v6  ;;  %v18391_v50 = vld [vmem:[%s19998_s16 + $0x17a8] ss:$16 sps:$4 sm:$0xff]   ;;  %v18396_v6 = vld [vmem:[%s19998_s16 + $0x158c] ss:$16 sps:$4 sm:$0xff]  }
 0x420   : > { %8924 = vmatpush1.bf16.msra.mxu1 %v18361_v56  ;;  %8872 = vmatprep.subr.bf16.mxu0 %v18366_v27  ;;  %v18399_v56 = vld [vmem:[%s19998_s16 + $0x178c] ss:$16 sps:$4 sm:$0xff]   ;;  %v18394_v27 = vld [vmem:[%s19998_s16 + $0x1588] ss:$16 sps:$4 sm:$0xff]  }
 0x421   : > { %8925 = vmatprep.subr.bf16.mxu1 %v18369_v14  ;;  %v18397_v14 = vld [vmem:[%s19998_s16 + $0x1788] ss:$16 sps:$4 sm:$0xff]  }
 0x423   : > { %8873 = vmatpush1.bf16.msra.mxu0 %v18364_v4  ;;  %v18402_v4 = vld [vmem:[%s19998_s16 + $0x156c] ss:$16 sps:$4 sm:$0xff]  }
 0x424   : > { %8926 = vmatpush1.bf16.msra.mxu1 %v18367_v7  ;;  %8874 = vmatprep.subr.bf16.mxu0 %v18372_v10  ;;  %v18405_v7 = vld [vmem:[%s19998_s16 + $0x176c] ss:$16 sps:$4 sm:$0xff]   ;;  %v18400_v10 = vld [vmem:[%s19998_s16 + $0x1568] ss:$16 sps:$4 sm:$0xff]  }
 0x425   : > { %8927 = vmatprep.subr.bf16.mxu1 %v18375_v22  ;;  %v18403_v22 = vld [vmem:[%s19998_s16 + $0x1768] ss:$16 sps:$4 sm:$0xff]  }
 0x427   : > { %8875 = vmatpush1.bf16.msra.mxu0 %v18370_v44  ;;  %v18408_v44 = vld [vmem:[%s19998_s16 + $0x154c] ss:$16 sps:$4 sm:$0xff]  }
 0x428   : > { %8928 = vmatpush1.bf16.msra.mxu1 %v18373_v41  ;;  %8876 = vmatprep.subr.bf16.mxu0 %v18378_v59  ;;  %v18411_v41 = vld [vmem:[%s19998_s16 + $0x174c] ss:$16 sps:$4 sm:$0xff]   ;;  %v18406_v59 = vld [vmem:[%s19998_s16 + $0x1548] ss:$16 sps:$4 sm:$0xff]  }
 0x429   : > { %8929 = vmatprep.subr.bf16.mxu1 %v18381_v21  ;;  %v18409_v21 = vld [vmem:[%s19998_s16 + $0x1748] ss:$16 sps:$4 sm:$0xff]  }
 0x42b   : > { %8877 = vmatpush2.bf16.msra.mxu0 %v18376_v25  ;;  %v18414_v25 = vld [vmem:[%s19998_s16 + $0x152c] ss:$16 sps:$4 sm:$0xff]  }
 0x42c   : > { %8930 = vmatpush2.bf16.msra.mxu1 %v18379_v28  ;;  %8878 = vmatprep.subr.bf16.mxu0 %v18384_v12  ;;  %v18417_v28 = vld [vmem:[%s19998_s16 + $0x172c] ss:$16 sps:$4 sm:$0xff]   ;;  %v18412_v12 = vld [vmem:[%s19998_s16 + $0x1528] ss:$16 sps:$4 sm:$0xff]  }
 0x42d   : > { %8931 = vmatprep.subr.bf16.mxu1 %v18387_v34  ;;  %v18415_v34 = vld [vmem:[%s19998_s16 + $0x1728] ss:$16 sps:$4 sm:$0xff]  }
 0x42f   : > { %8879 = vmatpush2.bf16.msra.mxu0 %v18382_v0  ;;  %v18420_v0 = vld [vmem:[%s19998_s16 + $0x150c] ss:$16 sps:$4 sm:$0xff]  }
 0x430   : > { %8932 = vmatpush2.bf16.msra.mxu1 %v18385_v20  ;;  %8880 = vmatprep.subr.bf16.mxu0 %v18390_v60  ;;  %v18423_v20 = vld [vmem:[%s19998_s16 + $0x170c] ss:$16 sps:$4 sm:$0xff]   ;;  %v18418_v60 = vld [vmem:[%s19998_s16 + $0x1508] ss:$16 sps:$4 sm:$0xff]  }
 0x431   : > { %8933 = vmatprep.subr.bf16.mxu1 %v18393_v53  ;;  %v18421_v53 = vld [vmem:[%s19998_s16 + $0x1708] ss:$16 sps:$4 sm:$0xff]  }
 0x433   : > { %8881 = vmatpush2.bf16.msra.mxu0 %v18388_v40  ;;  %v18426_v40 = vld [vmem:[%s19998_s16 + $0x18ec] ss:$16 sps:$4 sm:$0xff]  }
 0x434   : > { %8934 = vmatpush2.bf16.msra.mxu1 %v18391_v50  ;;  %8882 = vmatprep.subr.bf16.mxu0 %v18396_v6  ;;  %v18429_v50 = vld [vmem:[%s19998_s16 + $0x1aec] ss:$16 sps:$4 sm:$0xff]   ;;  %v18424_v6 = vld [vmem:[%s19998_s16 + $0x18e8] ss:$16 sps:$4 sm:$0xff]  }
 0x435   : > { %8935 = vmatprep.subr.bf16.mxu1 %v18399_v56  ;;  %v18427_v56 = vld [vmem:[%s19998_s16 + $0x1ae8] ss:$16 sps:$4 sm:$0xff]  }
 0x437   : > { %8883 = vmatpush2.bf16.msra.mxu0 %v18394_v27  ;;  %v8486_v27 = vpop.f32.mrf.mxu0 }
 0x438   : > { %8936 = vmatpush2.bf16.msra.mxu1 %v18397_v14  ;;  %8884 = vmatprep.subr.bf16.mxu0 %v18402_v4  ;;  %v21648_v14 = vpop.f32.mrf.mxu1  ;;  %v18432_v4 = vld [vmem:[%s19998_s16 + $0x18cc] ss:$16 sps:$4 sm:$0xff]  }
 0x439   : > { %8937 = vmatprep.subr.bf16.mxu1 %v18405_v7  ;;  %v18435_v7 = vld [vmem:[%s19998_s16 + $0x1acc] ss:$16 sps:$4 sm:$0xff]  }
 0x43b   : > { %8885 = vmatpush2.bf16.msra.mxu0 %v18400_v10  ;;  %v8424_v10 = vadd.f32 %v21482_v57, %v21480_v38  ;;  %v18438_v38 = vld [vmem:[%s19998_s16 + $0x18ac] ss:$16 sps:$4 sm:$0xff]  }
 0x43c   : > { %8938 = vmatpush2.bf16.msra.mxu1 %v18403_v22  ;;  %8886 = vmatprep.subr.bf16.mxu0 %v18408_v44  ;;  %v18441_v57 = vld [vmem:[%s19998_s16 + $0x1aac] ss:$16 sps:$4 sm:$0xff]  }
 0x43d   : > { %8939 = vmatprep.subr.bf16.mxu1 %v18411_v41  ;;  %v8477_v41 = vadd.f32 %v21573_v16, %v8424_v10 }
 0x43f   : > { %8887 = vmatpush2.bf16.msra.mxu0 %v18406_v59  ;;  %v8530_v16 = vadd.f32 %v21575_v26, %v8477_v41  ;;  %v18450_v41 = vld [vmem:[%s19998_s16 + $0x186c] ss:$16 sps:$4 sm:$0xff]  }
 0x440   : > { %8940 = vmatpush2.bf16.msra.mxu1 %v18409_v21  ;;  %8888 = vmatprep.subr.bf16.mxu0 %v18414_v25  ;;  %v18430_v21 = vld [vmem:[%s19998_s16 + $0x18c8] ss:$16 sps:$4 sm:$0xff]  }
 0x441   : > { %8941 = vmatprep.subr.bf16.mxu1 %v18417_v28  ;;  %v18433_v25 = vld [vmem:[%s19998_s16 + $0x1ac8] ss:$16 sps:$4 sm:$0xff]  }
 0x443   : > { %8889 = vmatpush2.bf16.msra.mxu0 %v18412_v12 }
 0x444   : > { %8942 = vmatpush2.bf16.msra.mxu1 %v18415_v34  ;;  %8890 = vmatprep.subr.bf16.mxu0 %v18420_v0 }
 0x445   : > { %8943 = vmatprep.subr.bf16.mxu1 %v18423_v20 }
 0x447   : > { %8891 = vmatpush2.bf16.msra.mxu0 %v18418_v60  ;;  %v18436_v60 = vld [vmem:[%s19998_s16 + $0x18a8] ss:$16 sps:$4 sm:$0xff]  }
 0x448   : > { %8944 = vmatpush2.bf16.msra.mxu1 %v18421_v53  ;;  %8966 = vmatprep.subr.bf16.mxu0 %v18426_v40  ;;  %v18439_v53 = vld [vmem:[%s19998_s16 + $0x1aa8] ss:$16 sps:$4 sm:$0xff]  }
 0x449   : > { %9019 = vmatprep.subr.bf16.mxu1 %v18429_v50  ;;  %v8434_v50 = vadd.f32 %v21552_v3, %v21550_v39  ;;  %v18445_v39 = vld [vmem:[%s19998_s16 + $0x1a88] ss:$16 sps:$4 sm:$0xff]  }
 0x44a   : > { %v8576_v22 = vpop.f32.mrf.mxu0  ;;  %8893 = vmatmul.mubr.bf16.vlgmr.msra.gmra.mxu0 %v21156_v54 }
 0x44b   : > { %v8629_v44 = vpop.f32.mrf.mxu1  ;;  %8946 = vmatmul.mubr.bf16.vlgmr.msra.gmra.mxu1 %v21160_v30  ;;  %v8577_v59 = vadd.f32 %v8576_v22, %v21563_v47  ;;  %8967 = vmatpush1.bf16.msra.mxu0 %v18424_v6  ;;  %v18442_v22 = vld [vmem:[%s19998_s16 + $0x1888] ss:$16 sps:$4 sm:$0xff]  }
 0x44c   : > { %9020 = vmatpush1.bf16.msra.mxu1 %v18427_v56  ;;  %v8578_v28 = vpop.f32.mrf.mxu0  ;;  %8968 = vmatprep.subr.bf16.mxu0 %v18432_v4  ;;  %v8487_v4 = vadd.f32 %v8486_v27, %v8434_v50  ;;  %v18474_v50 = vld [vmem:[%s19998_s16 + $0x19ec] ss:$16 sps:$4 sm:$0xff]  }
 0x44d   : > { %v8631_v12 = vpop.f32.mrf.mxu1  ;;  %9021 = vmatprep.subr.bf16.mxu1 %v18435_v7  ;;  %v21662_v34 = vadd.f32 %v8629_v44, %v8577_v59  ;;  %v8579_v54 = vadd.f32 %v8578_v28, %v21570_v61  ;;  %8902 = vmatprep.mubr.bf16.mxu0 %v21168_v18  ;;  %v18444_v18 = vld [vmem:[%s19998_s16 + $0x188c] ss:$16 sps:$4 sm:$0xff]  }
 0x44e   : > { %8955 = vmatprep.mubr.bf16.mxu1 %v21170_v23  ;;  %v8580_v30 = vpop.f32.mrf.mxu0  ;;  %v18447_v23 = vld [vmem:[%s19998_s16 + $0x1a8c] ss:$16 sps:$4 sm:$0xff]  }
 0x44f   : > { %v8633_v47 = vpop.f32.mrf.mxu1  ;;  %v21668_v0 = vadd.f32 %v8631_v12, %v8579_v54  ;;  %v8581_v20 = vadd.f32 %v8580_v30, %v21579_v51  ;;  %8969 = vmatpush1.bf16.msra.mxu0 %v18430_v21  ;;  %v8540_v21 = vadd.f32 %v21648_v14, %v8487_v4  ;;  %v18451_v12 = vld [vmem:[%s19998_s16 + $0x1a68] ss:$16 sps:$4 sm:$0xff]   ;;  %v18459_v14 = vld [vmem:[%s19998_s16 + $0x1a4c] ss:$16 sps:$4 sm:$0xff]  }
 0x450   : > { %9022 = vmatpush1.bf16.msra.mxu1 %v18433_v25  ;;  %v8582_v40 = vpop.f32.mrf.mxu0  ;;  %8970 = vmatprep.subr.bf16.mxu0 %v18438_v38  ;;  %v18454_v30 = vld [vmem:[%s19998_s16 + $0x1848] ss:$16 sps:$4 sm:$0xff]   ;;  %v18480_v4 = vld [vmem:[%s19998_s16 + $0x19cc] ss:$16 sps:$4 sm:$0xff]  }
 0x451   : > { %v8635_v61 = vpop.f32.mrf.mxu1  ;;  %9023 = vmatprep.subr.bf16.mxu1 %v18441_v57  ;;  %v21677_v26 = vadd.f32 %v8633_v47, %v8581_v20  ;;  %v8583_v6 = vadd.f32 %v8582_v40, %v8530_v16  ;;  %v18457_v47 = vld [vmem:[%s19998_s16 + $0x1a48] ss:$16 sps:$4 sm:$0xff]   ;;  %v18462_v16 = vld [vmem:[%s19998_s16 + $0x182c] ss:$16 sps:$4 sm:$0xff]  }
 0x452   : > { %v8586_v51 = vpop.f32.mrf.mxu0  ;;  %8903 = vmatmul.mubr.bf16.gmra.mxu0 %v21198_v42  ;;  %v18453_v42 = vld [vmem:[%s19998_s16 + $0x1a6c] ss:$16 sps:$4 sm:$0xff]  }
 0x453   : > { %v8639_v56 = vpop.f32.mrf.mxu1  ;;  %8956 = vmatmul.mubr.bf16.gmra.mxu1 %v21200_v17  ;;  %v21681_v7 = vadd.f32 %v8635_v61, %v8583_v6  ;;  %v8587_v10 = vadd.f32 %v8586_v51, %v21589_v58  ;;  %8971 = vmatpush1.bf16.msra.mxu0 %v18436_v60  ;;  %v18465_v20 = vld [vmem:[%s19998_s16 + $0x1a2c] ss:$16 sps:$4 sm:$0xff]   ;;  %v18460_v60 = vld [vmem:[%s19998_s16 + $0x1828] ss:$16 sps:$4 sm:$0xff]  }
 0x454   : > { %9024 = vmatpush1.bf16.msra.mxu1 %v18439_v53  ;;  %v8588_v3 = vpop.f32.mrf.mxu0  ;;  %8972 = vmatprep.subr.bf16.mxu0 %v18444_v18  ;;  %v18463_v53 = vld [vmem:[%s19998_s16 + $0x1a28] ss:$16 sps:$4 sm:$0xff]   ;;  %v18468_v40 = vld [vmem:[%s19998_s16 + $0x180c] ss:$16 sps:$4 sm:$0xff]  }
 0x455   : > { %v8641_v44 = vpop.f32.mrf.mxu1  ;;  %9025 = vmatprep.subr.bf16.mxu1 %v18447_v23  ;;  %v8589_v59 = vadd.f32 %v8588_v3, %v21596_v8  ;;  %v21689_v17 = vadd.f32 %v8639_v56, %v8587_v10  ;;  %8998 = vmatprep.mubr.bf16.mxu0 %v21215_v45  ;;  %v18448_v8 = vld [vmem:[%s19998_s16 + $0x1868] ss:$16 sps:$4 sm:$0xff]   ;;  %v18471_v61 = vld [vmem:[%s19998_s16 + $0x1a0c] ss:$16 sps:$4 sm:$0xff]  }
 0x456   : > { %9051 = vmatprep.mubr.bf16.mxu1 %v21219_v29  ;;  %v8590_v58 = vpop.f32.mrf.mxu0  ;;  %v18456_v29 = vld [vmem:[%s19998_s16 + $0x184c] ss:$16 sps:$4 sm:$0xff]   ;;  %v18466_v18 = vld [vmem:[%s19998_s16 + $0x1808] ss:$16 sps:$4 sm:$0xff]  }
 0x457   : > { %v8643_v27 = vpop.f32.mrf.mxu1  ;;  %v8591_v25 = vadd.f32 %v8590_v58, %v21600_v11  ;;  %v21695_v28 = vadd.f32 %v8641_v44, %v8589_v59  ;;  %8973 = vmatpush1.bf16.msra.mxu0 %v18442_v22  ;;  %v18469_v23 = vld [vmem:[%s19998_s16 + $0x1a08] ss:$16 sps:$4 sm:$0xff]   ;;  %v18477_v6 = vld [vmem:[%s19998_s16 + $0x1bec] ss:$16 sps:$4 sm:$0xff]  }
 0x458   : > { %9026 = vmatpush1.bf16.msra.mxu1 %v18445_v39  ;;  %v8592_v38 = vpop.f32.mrf.mxu0  ;;  %8974 = vmatprep.subr.bf16.mxu0 %v18450_v41  ;;  %v18472_v51 = vld [vmem:[%s19998_s16 + $0x19e8] ss:$16 sps:$4 sm:$0xff]   ;;  %v18483_v10 = vld [vmem:[%s19998_s16 + $0x1bcc] ss:$16 sps:$4 sm:$0xff]  }
 0x459   : > { %v8645_v45 = vpop.f32.mrf.mxu1  ;;  %9027 = vmatprep.subr.bf16.mxu1 %v18453_v42  ;;  %v8593_v57 = vadd.f32 %v8592_v38, %v8540_v21  ;;  %v21701_v11 = vadd.f32 %v8643_v27, %v8591_v25  ;;  %v18475_v56 = vld [vmem:[%s19998_s16 + $0x1be8] ss:$16 sps:$4 sm:$0xff]   ;;  %v18486_v3 = vld [vmem:[%s19998_s16 + $0x19ac] ss:$16 sps:$4 sm:$0xff]  }
 0x45a   : > { %v18478_v22 = vld [vmem:[%s19998_s16 + $0x19c8] ss:$16 sps:$4 sm:$0xff]   ;;  %v18489_v44 = vld [vmem:[%s19998_s16 + $0x1bac] ss:$16 sps:$4 sm:$0xff]  }
 0x45b   : > { %v21703_v54 = vadd.f32 %v8645_v45, %v8593_v57  ;;  %8975 = vmatpush1.bf16.msra.mxu0 %v18448_v8  ;;  %v18481_v39 = vld [vmem:[%s19998_s16 + $0x1bc8] ss:$16 sps:$4 sm:$0xff]   ;;  %v18492_v59 = vld [vmem:[%s19998_s16 + $0x198c] ss:$16 sps:$4 sm:$0xff]  }
 0x45c   : > { %9028 = vmatpush1.bf16.msra.mxu1 %v18451_v12  ;;  %8976 = vmatprep.subr.bf16.mxu0 %v18456_v29  ;;  %v18484_v41 = vld [vmem:[%s19998_s16 + $0x19a8] ss:$16 sps:$4 sm:$0xff]   ;;  %v18495_v58 = vld [vmem:[%s19998_s16 + $0x1b8c] ss:$16 sps:$4 sm:$0xff]  }
 0x45d   : > { %9029 = vmatprep.subr.bf16.mxu1 %v18459_v14  ;;  %v18487_v42 = vld [vmem:[%s19998_s16 + $0x1ba8] ss:$16 sps:$4 sm:$0xff]   ;;  %v18498_v25 = vld [vmem:[%s19998_s16 + $0x196c] ss:$16 sps:$4 sm:$0xff]  }
 0x45e   : > { %v18490_v27 = vld [vmem:[%s19998_s16 + $0x1988] ss:$16 sps:$4 sm:$0xff]   ;;  %v18501_v8 = vld [vmem:[%s19998_s16 + $0x1b6c] ss:$16 sps:$4 sm:$0xff]  }
 0x45f   : > { %8977 = vmatpush1.bf16.msra.mxu0 %v18454_v30  ;;  %v18493_v21 = vld [vmem:[%s19998_s16 + $0x1b88] ss:$16 sps:$4 sm:$0xff]   ;;  %v18504_v45 = vld [vmem:[%s19998_s16 + $0x194c] ss:$16 sps:$4 sm:$0xff]  }
 0x460   : > { %9030 = vmatpush1.bf16.msra.mxu1 %v18457_v47  ;;  %8978 = vmatprep.subr.bf16.mxu0 %v18462_v16  ;;  %v18496_v12 = vld [vmem:[%s19998_s16 + $0x1968] ss:$16 sps:$4 sm:$0xff]   ;;  %v18507_v29 = vld [vmem:[%s19998_s16 + $0x1b4c] ss:$16 sps:$4 sm:$0xff]  }
 0x461   : > { %9031 = vmatprep.subr.bf16.mxu1 %v18465_v20  ;;  %v18499_v38 = vld [vmem:[%s19998_s16 + $0x1b68] ss:$16 sps:$4 sm:$0xff]   ;;  %v18510_v30 = vld [vmem:[%s19998_s16 + $0x192c] ss:$16 sps:$4 sm:$0xff]  }
 0x462   : > { %v18502_v14 = vld [vmem:[%s19998_s16 + $0x1948] ss:$16 sps:$4 sm:$0xff]   ;;  %v18513_v47 = vld [vmem:[%s19998_s16 + $0x1b2c] ss:$16 sps:$4 sm:$0xff]  }
 0x463   : > { %8979 = vmatpush1.bf16.msra.mxu0 %v18460_v60  ;;  %v18505_v57 = vld [vmem:[%s19998_s16 + $0x1b48] ss:$16 sps:$4 sm:$0xff]   ;;  %v18516_v60 = vld [vmem:[%s19998_s16 + $0x190c] ss:$16 sps:$4 sm:$0xff]  }
 0x464   : > { %9032 = vmatpush1.bf16.msra.mxu1 %v18463_v53  ;;  %8980 = vmatprep.subr.bf16.mxu0 %v18468_v40  ;;  %v18508_v16 = vld [vmem:[%s19998_s16 + $0x1928] ss:$16 sps:$4 sm:$0xff]   ;;  %v18519_v53 = vld [vmem:[%s19998_s16 + $0x1b0c] ss:$16 sps:$4 sm:$0xff]  }
 0x465   : > { %9033 = vmatprep.subr.bf16.mxu1 %v18471_v61  ;;  %v18511_v20 = vld [vmem:[%s19998_s16 + $0x1b28] ss:$16 sps:$4 sm:$0xff]  }
 0x466   : > { %v18514_v40 = vld [vmem:[%s19998_s16 + $0x1908] ss:$16 sps:$4 sm:$0xff]  }
 0x467   : > { %8981 = vmatpush1.bf16.msra.mxu0 %v18466_v18  ;;  %v18517_v61 = vld [vmem:[%s19998_s16 + $0x1b08] ss:$16 sps:$4 sm:$0xff]   ;;  %v18522_v18 = vld [vmem:[%s19998_s16 + $0x1cec] ss:$16 sps:$4 sm:$0xff]  }
 0x468   : > { %9034 = vmatpush1.bf16.msra.mxu1 %v18469_v23  ;;  %8982 = vmatprep.subr.bf16.mxu0 %v18474_v50  ;;  %v18525_v23 = vld [vmem:[%s19998_s16 + $0x1eec] ss:$16 sps:$4 sm:$0xff]   ;;  %v18520_v50 = vld [vmem:[%s19998_s16 + $0x1ce8] ss:$16 sps:$4 sm:$0xff]  }
 0x469   : > { %9035 = vmatprep.subr.bf16.mxu1 %v18477_v6  ;;  %v18523_v6 = vld [vmem:[%s19998_s16 + $0x1ee8] ss:$16 sps:$4 sm:$0xff]  }
 0x46b   : > { %8983 = vmatpush2.bf16.msra.mxu0 %v18472_v51  ;;  %v18528_v51 = vld [vmem:[%s19998_s16 + $0x1ccc] ss:$16 sps:$4 sm:$0xff]  }
 0x46c   : > { %9036 = vmatpush2.bf16.msra.mxu1 %v18475_v56  ;;  %8984 = vmatprep.subr.bf16.mxu0 %v18480_v4  ;;  %v18531_v56 = vld [vmem:[%s19998_s16 + $0x1ecc] ss:$16 sps:$4 sm:$0xff]   ;;  %v536_v4 = vld [vmem:[#allocation2 + $0x30] sm:$0xff] }
 0x46d   : > { %9037 = vmatprep.subr.bf16.mxu1 %v18483_v10 }
 0x46f   : > { %8985 = vmatpush2.bf16.msra.mxu0 %v18478_v22 }
 0x470   : > { %9038 = vmatpush2.bf16.msra.mxu1 %v18481_v39  ;;  %8986 = vmatprep.subr.bf16.mxu0 %v18486_v3  ;;  %v537_v39 = vld [vmem:[#allocation2] sm:$0xff] }
 0x471   : > { %9039 = vmatprep.subr.bf16.mxu1 %v18489_v44  ;;  %v18526_v44 = vld [vmem:[%s19998_s16 + $0x1cc8] ss:$16 sps:$4 sm:$0xff]  }
 0x473   : > { %8987 = vmatpush2.bf16.msra.mxu0 %v18484_v41  ;;  %v18529_v41 = vld [vmem:[%s19998_s16 + $0x1ec8] ss:$16 sps:$4 sm:$0xff]  }
 0x474   : > { %9040 = vmatpush2.bf16.msra.mxu1 %v18487_v42  ;;  %8988 = vmatprep.subr.bf16.mxu0 %v18492_v59 }
 0x475   : > { %9041 = vmatprep.subr.bf16.mxu1 %v18495_v58  ;;  %v18534_v58 = vld [vmem:[%s19998_s16 + $0x1cac] ss:$16 sps:$4 sm:$0xff]  }
 0x477   : > { %8989 = vmatpush2.bf16.msra.mxu0 %v18490_v27  ;;  %v18537_v27 = vld [vmem:[%s19998_s16 + $0x1eac] ss:$16 sps:$4 sm:$0xff]  }
 0x478   : > { %9042 = vmatpush2.bf16.msra.mxu1 %v18493_v21  ;;  %8990 = vmatprep.subr.bf16.mxu0 %v18498_v25  ;;  %v4856_v21 = vadd.f32 %v20795_v63, %v536_v4  ;;  %v540_v25 = vld [vmem:[#allocation2 + $0x50] sm:$0xff]  ;;  %v18532_v63 = vld [vmem:[%s19998_s16 + $0x1ca8] ss:$16 sps:$4 sm:$0xff]   ;;  %v548_v4 = vld [vmem:[#allocation2 + $0x60] sm:$0xff] }
 0x479   : > { %9043 = vmatprep.subr.bf16.mxu1 %v18501_v8 }
 0x47b   : > { %8991 = vmatpush2.bf16.msra.mxu0 %v18496_v12 }
 0x47c   : > { %9044 = vmatpush2.bf16.msra.mxu1 %v18499_v38  ;;  %8992 = vmatprep.subr.bf16.mxu0 %v18504_v45 }
 0x47d   : > { %9045 = vmatprep.subr.bf16.mxu1 %v18507_v29 }
 0x47f   : > { %8993 = vmatpush2.bf16.msra.mxu0 %v18502_v14 }
 0x480   : > { %9046 = vmatpush2.bf16.msra.mxu1 %v18505_v57  ;;  %8994 = vmatprep.subr.bf16.mxu0 %v18510_v30  ;;  %v18543_v57 = vld [vmem:[%s19998_s16 + $0x1e8c] ss:$16 sps:$4 sm:$0xff]  }
 0x481   : > { %9047 = vmatprep.subr.bf16.mxu1 %v18513_v47 }
 0x483   : > { %8995 = vmatpush2.bf16.msra.mxu0 %v18508_v16 }
 0x484   : > { %9048 = vmatpush2.bf16.msra.mxu1 %v18511_v20  ;;  %8996 = vmatprep.subr.bf16.mxu0 %v18516_v60 }
 0x485   : > { %9049 = vmatprep.subr.bf16.mxu1 %v18519_v53  ;;  %v545_v53 = vld [vmem:[#allocation2 + $0x20] sm:$0xff] }
 0x487   : > { %8997 = vmatpush2.bf16.msra.mxu0 %v18514_v40 }
 0x488   : > { %9050 = vmatpush2.bf16.msra.mxu1 %v18517_v61  ;;  %9072 = vmatprep.subr.bf16.mxu0 %v18522_v18  ;;  %v18538_v18 = vld [vmem:[%s19998_s16 + $0x1c88] ss:$16 sps:$4 sm:$0xff]  }
 0x489   : > { %9125 = vmatprep.subr.bf16.mxu1 %v18525_v23 }
 0x48a   : > { %v8682_v10 = vpop.f32.mrf.mxu0  ;;  %8999 = vmatmul.mubr.bf16.vlgmr.msra.gmra.mxu0 %v21302_v9 }
 0x48b   : > { %v8735_v22 = vpop.f32.mrf.mxu1  ;;  %9052 = vmatmul.mubr.bf16.vlgmr.msra.gmra.mxu1 %v21306_v15  ;;  %v8683_v3 = vadd.f32 %v8682_v10, %v21662_v34  ;;  %9073 = vmatpush1.bf16.msra.mxu0 %v18520_v50  ;;  %v4857_v34 = vadd.f32 %v20802_v52, %v537_v39  ;;  %v4860_v52 = vadd.f32 %v20811_v36, %v540_v25  ;;  %v18559_v25 = vld [vmem:[%s19998_s16 + $0x1e28] ss:$16 sps:$4 sm:$0xff]  }
 0x48c   : > { %9126 = vmatpush1.bf16.msra.mxu1 %v18523_v6  ;;  %v8684_v42 = vpop.f32.mrf.mxu0  ;;  %9074 = vmatprep.subr.bf16.mxu0 %v18528_v51  ;;  %v18549_v6 = vld [vmem:[%s19998_s16 + $0x1e6c] ss:$16 sps:$4 sm:$0xff]  }
 0x48d   : > { %v8737_v59 = vpop.f32.mrf.mxu1  ;;  %9127 = vmatprep.subr.bf16.mxu1 %v18531_v56  ;;  %v8736_v9 = vadd.f32 %v8735_v22, %v8683_v3  ;;  %v8685_v15 = vadd.f32 %v8684_v42, %v21668_v0  ;;  %9008 = vmatprep.mubr.bf16.mxu0 %v21316_v19  ;;  %v18535_v0 = vld [vmem:[%s19998_s16 + $0x1ea8] ss:$16 sps:$4 sm:$0xff]   ;;  %v4868_v42 = vadd.f32 %v20832_v5, %v548_v4  ;;  %v18558_v5 = vld [vmem:[%s19998_s16 + $0x1c2c] ss:$16 sps:$4 sm:$0xff]  }
 0x48e   : > { %9061 = vmatprep.mubr.bf16.mxu1 %v21318_v2  ;;  %v8686_v8 = vpop.f32.mrf.mxu0  ;;  %v18540_v2 = vld [vmem:[%s19998_s16 + $0x1c8c] ss:$16 sps:$4 sm:$0xff]  }
 0x48f   : > { %v8739_v12 = vpop.f32.mrf.mxu1  ;;  %v21765_v38 = vadd.f32 %v8736_v9, %v4856_v21  ;;  %v8738_v45 = vadd.f32 %v8737_v59, %v8685_v15  ;;  %v8687_v29 = vadd.f32 %v8686_v8, %v21677_v26  ;;  %9075 = vmatpush1.bf16.msra.mxu0 %v18526_v44  ;;  %v544_v26 = vld [vmem:[#allocation2 + $0x40] sm:$0xff]  ;;  %v18550_v9 = vld [vmem:[%s19998_s16 + $0x1c48] ss:$16 sps:$4 sm:$0xff]   ;;  %v18564_v8 = vld [vmem:[%s19998_s16 + $0x1c0c] ss:$16 sps:$4 sm:$0xff]  }
 0x490   : > { %9128 = vmatpush1.bf16.msra.mxu1 %v18529_v41  ;;  %v8688_v14 = vpop.f32.mrf.mxu0  ;;  %9076 = vmatprep.subr.bf16.mxu0 %v18534_v58  ;;  %v18555_v41 = vld [vmem:[%s19998_s16 + $0x1e4c] ss:$16 sps:$4 sm:$0xff]   ;;  %v18553_v15 = vld [vmem:[%s19998_s16 + $0x1e48] ss:$16 sps:$4 sm:$0xff]  }
 0x491   : > { %v8741_v19 = vpop.f32.mrf.mxu1  ;;  %9129 = vmatprep.subr.bf16.mxu1 %v18537_v27  ;;  %v21773_v30 = vadd.f32 %v8738_v45, %v4857_v34  ;;  %v8740_v47 = vadd.f32 %v8739_v12, %v8687_v29  ;;  %v8689_v16 = vadd.f32 %v8688_v14, %v21681_v7  ;;  %v18541_v7 = vld [vmem:[%s19998_s16 + $0x1e88] ss:$16 sps:$4 sm:$0xff]   ;;  %v18561_v34 = vld [vmem:[%s19998_s16 + $0x1e2c] ss:$16 sps:$4 sm:$0xff]  }
 0x492   : > { %v8692_v20 = vpop.f32.mrf.mxu0  ;;  %9009 = vmatmul.mubr.bf16.gmra.mxu0 %v21344_v62  ;;  %v18546_v62 = vld [vmem:[%s19998_s16 + $0x1c6c] ss:$16 sps:$4 sm:$0xff]   ;;  %v18562_v45 = vld [vmem:[%s19998_s16 + $0x1c08] ss:$16 sps:$4 sm:$0xff]  }
 0x493   : > { %v8745_v60 = vpop.f32.mrf.mxu1  ;;  %9062 = vmatmul.mubr.bf16.gmra.mxu1 %v21346_v48  ;;  %v21778_v40 = vadd.f32 %v8740_v47, %v4860_v52  ;;  %v21780_v61 = vadd.f32 %v8741_v19, %v8689_v16  ;;  %v8693_v36 = vadd.f32 %v8692_v20, %v21689_v17  ;;  %9077 = vmatpush1.bf16.msra.mxu0 %v18532_v63  ;;  %v18567_v12 = vld [vmem:[%s19998_s16 + $0x1e0c] ss:$16 sps:$4 sm:$0xff]   ;;  %v18565_v29 = vld [vmem:[%s19998_s16 + $0x1e08] ss:$16 sps:$4 sm:$0xff]  }
 0x494   : > { %9130 = vmatpush1.bf16.msra.mxu1 %v18535_v0  ;;  %v8694_v23 = vpop.f32.mrf.mxu0  ;;  %9078 = vmatprep.subr.bf16.mxu0 %v18540_v2  ;;  %v4864_v48 = vadd.f32 %v20821_v24, %v544_v26  ;;  %v4865_v17 = vadd.f32 %v20828_v1, %v545_v53  ;;  %v18544_v24 = vld [vmem:[%s19998_s16 + $0x1c68] ss:$16 sps:$4 sm:$0xff]   ;;  %v18552_v1 = vld [vmem:[%s19998_s16 + $0x1c4c] ss:$16 sps:$4 sm:$0xff]  }
 0x495   : > { %23237 = vst [vmem:[#allocation77_spill] sm:$0xff] %v21778_v40  ;;  %v8747_v50 = vpop.f32.mrf.mxu1  ;;  %9131 = vmatprep.subr.bf16.mxu1 %v18543_v57  ;;  %v8695_v51 = vadd.f32 %v8694_v23, %v21695_v28  ;;  %v8746_v56 = vadd.f32 %v8745_v60, %v8693_v36  ;;  %9104 = vmatprep.mubr.bf16.mxu0 %v21363_v35  ;;  %v18547_v28 = vld [vmem:[%s19998_s16 + $0x1e68] ss:$16 sps:$4 sm:$0xff]   ;;  %v18570_v63 = vld [vmem:[%s19998_s16 + $0x1dec] ss:$16 sps:$4 sm:$0xff]  }
 0x496   : > { %9157 = vmatprep.mubr.bf16.mxu1 %v21367_v43  ;;  %v8696_v10 = vpop.f32.mrf.mxu0  ;;  %v18573_v0 = vld [vmem:[%s19998_s16 + $0x1fec] ss:$16 sps:$4 sm:$0xff]   ;;  %v18568_v14 = vld [vmem:[%s19998_s16 + $0x1de8] ss:$16 sps:$4 sm:$0xff]   ;;  %v18924_v40 = vld [vmem:[%s19998_s16 + $0x2c84] ss:$16 sps:$4 sm:$0xff]  }
 0x497   : > { %v8749_v22 = vpop.f32.mrf.mxu1  ;;  %v21792_v39 = vadd.f32 %v8746_v56, %v4864_v48  ;;  %v8697_v3 = vadd.f32 %v8696_v10, %v21701_v11  ;;  %v8748_v44 = vadd.f32 %v8747_v50, %v8695_v51  ;;  %9079 = vmatpush1.bf16.msra.mxu0 %v18538_v18  ;;  %v18571_v19 = vld [vmem:[%s19998_s16 + $0x1fe8] ss:$16 sps:$4 sm:$0xff]   ;;  %v18576_v2 = vld [vmem:[%s19998_s16 + $0x1dcc] ss:$16 sps:$4 sm:$0xff]  }
 0x498   : > { %9132 = vmatpush1.bf16.msra.mxu1 %v18541_v7  ;;  %v8698_v35 = vpop.f32.mrf.mxu0  ;;  %9080 = vmatprep.subr.bf16.mxu0 %v18546_v62  ;;  %v18579_v57 = vld [vmem:[%s19998_s16 + $0x1fcc] ss:$16 sps:$4 sm:$0xff]   ;;  %v18574_v52 = vld [vmem:[%s19998_s16 + $0x1dc8] ss:$16 sps:$4 sm:$0xff]  }
 0x499   : > { %23238 = vst [vmem:[#allocation78_spill] sm:$0xff] %v21792_v39  ;;  %v8751_v43 = vpop.f32.mrf.mxu1  ;;  %9133 = vmatprep.subr.bf16.mxu1 %v18549_v6  ;;  %v21800_v59 = vadd.f32 %v8748_v44, %v4865_v17  ;;  %v8699_v11 = vadd.f32 %v8698_v35, %v21703_v54  ;;  %v8750_v58 = vadd.f32 %v8749_v22, %v8697_v3  ;;  %v18556_v54 = vld [vmem:[%s19998_s16 + $0x1c28] ss:$16 sps:$4 sm:$0xff]   ;;  %v18582_v16 = vld [vmem:[%s19998_s16 + $0x1dac] ss:$16 sps:$4 sm:$0xff]  }
 0x49a   : > { %v18577_v47 = vld [vmem:[%s19998_s16 + $0x1fc8] ss:$16 sps:$4 sm:$0xff]   ;;  %v18585_v26 = vld [vmem:[%s19998_s16 + $0x1fac] ss:$16 sps:$4 sm:$0xff]  }
 0x49b   : > { %23239 = vst [vmem:[#allocation79_spill] sm:$0xff] %v21800_v59  ;;  %v21803_v27 = vadd.f32 %v8750_v58, %v4868_v42  ;;  %v21805_v21 = vadd.f32 %v8751_v43, %v8699_v11  ;;  %9081 = vmatpush1.bf16.msra.mxu0 %v18544_v24  ;;  %v18580_v20 = vld [vmem:[%s19998_s16 + $0x1da8] ss:$16 sps:$4 sm:$0xff]   ;;  %v18588_v53 = vld [vmem:[%s19998_s16 + $0x1d8c] ss:$16 sps:$4 sm:$0xff]   ;;  %v15826_v42 = vld [vmem:[%s19990_s0 + $0x60] sm:$0xff] }
 0x49c   : > { %9134 = vmatpush1.bf16.msra.mxu1 %v18547_v28  ;;  %9082 = vmatprep.subr.bf16.mxu0 %v18552_v1  ;;  %v18583_v60 = vld [vmem:[%s19998_s16 + $0x1fa8] ss:$16 sps:$4 sm:$0xff]   ;;  %v18591_v36 = vld [vmem:[%s19998_s16 + $0x1f8c] ss:$16 sps:$4 sm:$0xff]   ;;  %v18618_v43 = vld [vmem:[%s19998_s16 + $0x20e4] ss:$16 sps:$4 sm:$0xff]  }
 0x49d   : > { %23240 = vst [vmem:[#allocation80_spill] sm:$0xff] %v21803_v27  ;;  %23241 = vst [vmem:[#allocation81_spill] sm:$0xff] %v21805_v21  ;;  %9135 = vmatprep.subr.bf16.mxu1 %v18555_v41  ;;  %v18586_v18 = vld [vmem:[%s19998_s16 + $0x1d88] ss:$16 sps:$4 sm:$0xff]   ;;  %v18594_v23 = vld [vmem:[%s19998_s16 + $0x1d6c] ss:$16 sps:$4 sm:$0xff]  }
 0x49e   : > { %v18589_v7 = vld [vmem:[%s19998_s16 + $0x1f88] ss:$16 sps:$4 sm:$0xff]   ;;  %v18597_v50 = vld [vmem:[%s19998_s16 + $0x1f6c] ss:$16 sps:$4 sm:$0xff]   ;;  %v18621_v1 = vld [vmem:[%s19998_s16 + $0x22e4] ss:$16 sps:$4 sm:$0xff]  }
 0x49f   : > { %9083 = vmatpush1.bf16.msra.mxu0 %v18550_v9  ;;  %v18592_v62 = vld [vmem:[%s19998_s16 + $0x1d68] ss:$16 sps:$4 sm:$0xff]   ;;  %v18600_v48 = vld [vmem:[%s19998_s16 + $0x1d4c] ss:$16 sps:$4 sm:$0xff]   ;;  %v15822_v41 = vld [vmem:[%s19990_s0 + $0x40] sm:$0xff] }
 0x4a0   : > { %9136 = vmatpush1.bf16.msra.mxu1 %v18553_v15  ;;  %9084 = vmatprep.subr.bf16.mxu0 %v18558_v5  ;;  %v18595_v6 = vld [vmem:[%s19998_s16 + $0x1f68] ss:$16 sps:$4 sm:$0xff]   ;;  %v18603_v51 = vld [vmem:[%s19998_s16 + $0x1f4c] ss:$16 sps:$4 sm:$0xff]   ;;  %v15830_v11 = vld [vmem:[%s19990_s0 + $0x80] sm:$0xff] }
 0x4a1   : > { %9137 = vmatprep.subr.bf16.mxu1 %v18561_v34  ;;  %v18598_v56 = vld [vmem:[%s19998_s16 + $0x1d48] ss:$16 sps:$4 sm:$0xff]   ;;  %v18606_v4 = vld [vmem:[%s19998_s16 + $0x1d2c] ss:$16 sps:$4 sm:$0xff]   ;;  %v15834_v58 = vld [vmem:[%s19990_s0 + $0xa0] sm:$0xff] }
 0x4a2   : > { %v18601_v17 = vld [vmem:[%s19998_s16 + $0x1f48] ss:$16 sps:$4 sm:$0xff]   ;;  %v18609_v10 = vld [vmem:[%s19998_s16 + $0x1f2c] ss:$16 sps:$4 sm:$0xff]   ;;  %v18616_v9 = vld [vmem:[%s19998_s16 + $0x20e0] ss:$16 sps:$4 sm:$0xff]  }
 0x4a3   : > { %9085 = vmatpush1.bf16.msra.mxu0 %v18556_v54  ;;  %v18604_v22 = vld [vmem:[%s19998_s16 + $0x1d28] ss:$16 sps:$4 sm:$0xff]   ;;  %v18612_v44 = vld [vmem:[%s19998_s16 + $0x1d0c] ss:$16 sps:$4 sm:$0xff]   ;;  %v18619_v15 = vld [vmem:[%s19998_s16 + $0x22e0] ss:$16 sps:$4 sm:$0xff]   ;;  %v9772_v54 = vcombine.low %v15822_v41, %v15826_v42 }
 0x4a4   : > { %9138 = vmatpush1.bf16.msra.mxu1 %v18559_v25  ;;  %9086 = vmatprep.subr.bf16.mxu0 %v18564_v8  ;;  %v18607_v3 = vld [vmem:[%s19998_s16 + $0x1f28] ss:$16 sps:$4 sm:$0xff]   ;;  %v18615_v24 = vld [vmem:[%s19998_s16 + $0x1f0c] ss:$16 sps:$4 sm:$0xff]   ;;  %v18624_v5 = vld [vmem:[%s19998_s16 + $0x20c4] ss:$16 sps:$4 sm:$0xff]   ;;  %v9773_v25 = vcombine.high %v15822_v41, %v15826_v42  ;;  %v9774_v8 = vcombine.low %v15830_v11, %v15834_v58 }
 0x4a5   : > { %9139 = vmatprep.subr.bf16.mxu1 %v18567_v12  ;;  %v18610_v28 = vld [vmem:[%s19998_s16 + $0x1d08] ss:$16 sps:$4 sm:$0xff]   ;;  %v18627_v34 = vld [vmem:[%s19998_s16 + $0x22c4] ss:$16 sps:$4 sm:$0xff]   ;;  %v9775_v12 = vcombine.high %v15830_v11, %v15834_v58 }
 0x4a6   : > { %v18613_v35 = vld [vmem:[%s19998_s16 + $0x1f08] ss:$16 sps:$4 sm:$0xff]   ;;  %v18651_v41 = vld [vmem:[%s19998_s16 + $0x2244] ss:$16 sps:$4 sm:$0xff]  }
 0x4a7   : > { %9087 = vmatpush1.bf16.msra.mxu0 %v18562_v45  ;;  %v23243_v59 = vld [vmem:[#allocation71_spill] sm:$0xff] }
 0x4a8   : > { %9140 = vmatpush1.bf16.msra.mxu1 %v18565_v29  ;;  %9088 = vmatprep.subr.bf16.mxu0 %v18570_v63 }
 0x4a9   : > { %9141 = vmatprep.subr.bf16.mxu1 %v18573_v0  ;;  %v18622_v0 = vld [vmem:[%s19998_s16 + $0x20c0] ss:$16 sps:$4 sm:$0xff]  }
 0x4ab   : > { %9089 = vmatpush2.bf16.msra.mxu0 %v18568_v14  ;;  %v18625_v14 = vld [vmem:[%s19998_s16 + $0x22c0] ss:$16 sps:$4 sm:$0xff]  }
 0x4ac   : > { %9142 = vmatpush2.bf16.msra.mxu1 %v18571_v19  ;;  %9090 = vmatprep.subr.bf16.mxu0 %v18576_v2 }
 0x4ad   : > { %9143 = vmatprep.subr.bf16.mxu1 %v18579_v57  ;;  %v18630_v57 = vld [vmem:[%s19998_s16 + $0x20a4] ss:$16 sps:$4 sm:$0xff]  }
 0x4af   : > { %9091 = vmatpush2.bf16.msra.mxu0 %v18574_v52  ;;  %v18633_v52 = vld [vmem:[%s19998_s16 + $0x22a4] ss:$16 sps:$4 sm:$0xff]  }
 0x4b0   : > { %9144 = vmatpush2.bf16.msra.mxu1 %v18577_v47  ;;  %9092 = vmatprep.subr.bf16.mxu0 %v18582_v16  ;;  %v21868_v47 = vrot.slane %v9772_v54, %v20083_v55  ;;  %v21878_v16 = vrot.slane %v9774_v8, %v20083_v55  ;;  %v18652_v54 = vld [vmem:[%s19998_s16 + $0x2020] ss:$16 sps:$4 sm:$0xff]   ;;  %v18660_v8 = vld [vmem:[%s19998_s16 + $0x2004] ss:$16 sps:$4 sm:$0xff]  }
 0x4b1   : > { %9145 = vmatprep.subr.bf16.mxu1 %v18585_v26  ;;  %v21881_v26 = vrot.slane %v9775_v12, %v20083_v55  ;;  %v18663_v12 = vld [vmem:[%s19998_s16 + $0x2204] ss:$16 sps:$4 sm:$0xff]  }
 0x4b3   : > { %9093 = vmatpush2.bf16.msra.mxu0 %v18580_v20 }
 0x4b4   : > { %9146 = vmatpush2.bf16.msra.mxu1 %v18583_v60  ;;  %9094 = vmatprep.subr.bf16.mxu0 %v18588_v53 }
 0x4b5   : > { %9147 = vmatprep.subr.bf16.mxu1 %v18591_v36  ;;  %v18628_v36 = vld [vmem:[%s19998_s16 + $0x20a0] ss:$16 sps:$4 sm:$0xff]  }
 0x4b7   : > { %9095 = vmatpush2.bf16.msra.mxu0 %v18586_v18  ;;  %v18631_v18 = vld [vmem:[%s19998_s16 + $0x22a0] ss:$16 sps:$4 sm:$0xff]  }
 0x4b8   : > { %9148 = vmatpush2.bf16.msra.mxu1 %v18589_v7  ;;  %9096 = vmatprep.subr.bf16.mxu0 %v18594_v23  ;;  %v18639_v23 = vld [vmem:[%s19998_s16 + $0x2284] ss:$16 sps:$4 sm:$0xff]  }
 0x4b9   : > { %9149 = vmatprep.subr.bf16.mxu1 %v18597_v50 }
 0x4bb   : > { %9097 = vmatpush2.bf16.msra.mxu0 %v18592_v62  ;;  %v21893_v62 = vcombine.high %v21868_v47, %v21878_v16 }
 0x4bc   : > { %9150 = vmatpush2.bf16.msra.mxu1 %v18595_v6  ;;  %9098 = vmatprep.subr.bf16.mxu0 %v18600_v48 }
 0x4bd   : > { %9151 = vmatprep.subr.bf16.mxu1 %v18603_v51 }
 0x4bf   : > { %9099 = vmatpush2.bf16.msra.mxu0 %v18598_v56  ;;  %v18634_v56 = vld [vmem:[%s19998_s16 + $0x2080] ss:$16 sps:$4 sm:$0xff]  }
 0x4c0   : > { %9152 = vmatpush2.bf16.msra.mxu1 %v18601_v17  ;;  %9100 = vmatprep.subr.bf16.mxu0 %v18606_v4  ;;  %v18637_v17 = vld [vmem:[%s19998_s16 + $0x2280] ss:$16 sps:$4 sm:$0xff]  }
 0x4c1   : > { %9153 = vmatprep.subr.bf16.mxu1 %v18609_v10  ;;  %v18642_v10 = vld [vmem:[%s19998_s16 + $0x2064] ss:$16 sps:$4 sm:$0xff]  }
 0x4c3   : > { %9101 = vmatpush2.bf16.msra.mxu0 %v18604_v22  ;;  %v18645_v22 = vld [vmem:[%s19998_s16 + $0x2264] ss:$16 sps:$4 sm:$0xff]  }
 0x4c4   : > { %9154 = vmatpush2.bf16.msra.mxu1 %v18607_v3  ;;  %9102 = vmatprep.subr.bf16.mxu0 %v18612_v44 }
 0x4c5   : > { %9155 = vmatprep.subr.bf16.mxu1 %v18615_v24 }
 0x4c7   : > { %9103 = vmatpush2.bf16.msra.mxu0 %v18610_v28  ;;  %v18640_v28 = vld [vmem:[%s19998_s16 + $0x2060] ss:$16 sps:$4 sm:$0xff]  }
 0x4c8   : > { %9156 = vmatpush2.bf16.msra.mxu1 %v18613_v35  ;;  %12652 = vmatprep.subr.bf16.mxu0 %v18618_v43  ;;  %v18643_v35 = vld [vmem:[%s19998_s16 + $0x2260] ss:$16 sps:$4 sm:$0xff]  }
 0x4c9   : > { %12705 = vmatprep.subr.bf16.mxu1 %v18621_v1  ;;  %v18648_v1 = vld [vmem:[%s19998_s16 + $0x2044] ss:$16 sps:$4 sm:$0xff]  }
 0x4ca   : > { %v8788_v45 = vpop.f32.mrf.mxu0  ;;  %9105 = vmatmul.mubr.bf16.vlgmr.msra.gmra.mxu0 %v21444_v37  ;;  %v21871_v37 = vrot.slane %v9773_v25, %v20083_v55  ;;  %v18655_v25 = vld [vmem:[%s19998_s16 + $0x2220] ss:$16 sps:$4 sm:$0xff]  }
 0x4cb   : > { %v8841_v29 = vpop.f32.mrf.mxu1  ;;  %9158 = vmatmul.mubr.bf16.vlgmr.msra.gmra.mxu1 %v21448_v33  ;;  %12653 = vmatpush1.bf16.msra.mxu0 %v18616_v9  ;;  %v18646_v9 = vld [vmem:[%s19998_s16 + $0x2040] ss:$16 sps:$4 sm:$0xff]  }
 0x4cc   : > { %v21861_v63 = vadd.f32 %v8841_v29, %v8788_v45  ;;  %12706 = vmatpush1.bf16.msra.mxu1 %v18619_v15  ;;  %v8790_v19 = vpop.f32.mrf.mxu0  ;;  %12654 = vmatprep.subr.bf16.mxu0 %v18624_v5  ;;  %v21897_v6 = vcombine.high %v21871_v37, %v21881_v26  ;;  %v18649_v15 = vld [vmem:[%s19998_s16 + $0x2240] ss:$16 sps:$4 sm:$0xff]   ;;  %v18654_v5 = vld [vmem:[%s19998_s16 + $0x2024] ss:$16 sps:$4 sm:$0xff]  }
 0x4cd   : > { %v8843_v2 = vpop.f32.mrf.mxu1  ;;  %12707 = vmatprep.subr.bf16.mxu1 %v18627_v34  ;;  %9114 = vmatprep.mubr.bf16.mxu0 %v21458_v31  ;;  %v18657_v34 = vld [vmem:[%s19998_s16 + $0x2224] ss:$16 sps:$4 sm:$0xff]   ;;  %v18658_v45 = vld [vmem:[%s19998_s16 + $0x2000] ss:$16 sps:$4 sm:$0xff]  }
 0x4ce   : > { %v21873_v33 = vadd.f32 %v8843_v2, %v8790_v19  ;;  %9167 = vmatprep.mubr.bf16.mxu1 %v21460_v32  ;;  %v8792_v20 = vpop.f32.mrf.mxu0  ;;  %v18636_v32 = vld [vmem:[%s19998_s16 + $0x2084] ss:$16 sps:$4 sm:$0xff]   ;;  %v18661_v29 = vld [vmem:[%s19998_s16 + $0x2200] ss:$16 sps:$4 sm:$0xff]  }
 0x4cf   : > { %v8845_v60 = vpop.f32.mrf.mxu1  ;;  %12655 = vmatpush1.bf16.msra.mxu0 %v18622_v0  ;;  %v18666_v0 = vld [vmem:[%s19998_s16 + $0x21e4] ss:$16 sps:$4 sm:$0xff]   ;;  %v18664_v19 = vld [vmem:[%s19998_s16 + $0x21e0] ss:$16 sps:$4 sm:$0xff]  }
 0x4d0   : > { %v21883_v53 = vadd.f32 %v8845_v60, %v8792_v20  ;;  %12708 = vmatpush1.bf16.msra.mxu1 %v18625_v14  ;;  %v8794_v7 = vpop.f32.mrf.mxu0  ;;  %12656 = vmatprep.subr.bf16.mxu0 %v18630_v57  ;;  %v18669_v14 = vld [vmem:[%s19998_s16 + $0x23e4] ss:$16 sps:$4 sm:$0xff]   ;;  %v18667_v2 = vld [vmem:[%s19998_s16 + $0x23e0] ss:$16 sps:$4 sm:$0xff]  }
 0x4d1   : > { %v8847_v31 = vpop.f32.mrf.mxu1  ;;  %12709 = vmatprep.subr.bf16.mxu1 %v18633_v52  ;;  %v18672_v57 = vld [vmem:[%s19998_s16 + $0x21c4] ss:$16 sps:$4 sm:$0xff]   ;;  %v18670_v20 = vld [vmem:[%s19998_s16 + $0x21c0] ss:$16 sps:$4 sm:$0xff]  }
 0x4d2   : > { %v21889_v50 = vadd.f32 %v8847_v31, %v8794_v7  ;;  %9115 = vmatmul.mubr.bf16.gmra.mxu0 %v21474_v49  ;;  %v8798_v48 = vpop.f32.mrf.mxu0  ;;  %v18675_v52 = vld [vmem:[%s19998_s16 + $0x23c4] ss:$16 sps:$4 sm:$0xff]   ;;  %v18673_v60 = vld [vmem:[%s19998_s16 + $0x23c0] ss:$16 sps:$4 sm:$0xff]  }
 0x4d3   : > { %9168 = vmatmul.mubr.bf16.gmra.mxu1 %v21476_v46  ;;  %v8851_v51 = vpop.f32.mrf.mxu1  ;;  %12657 = vmatpush1.bf16.msra.mxu0 %v18628_v36  ;;  %v18678_v36 = vld [vmem:[%s19998_s16 + $0x21a4] ss:$16 sps:$4 sm:$0xff]   ;;  %v18676_v7 = vld [vmem:[%s19998_s16 + $0x21a0] ss:$16 sps:$4 sm:$0xff]  }
 0x4d4   : > { %12710 = vmatpush1.bf16.msra.mxu1 %v18631_v18  ;;  %v21903_v4 = vadd.f32 %v8851_v51, %v8798_v48  ;;  %12658 = vmatprep.subr.bf16.mxu0 %v18636_v32  ;;  %v8800_v3 = vpop.f32.mrf.mxu0  ;;  %v18681_v18 = vld [vmem:[%s19998_s16 + $0x23a4] ss:$16 sps:$4 sm:$0xff]   ;;  %v18679_v31 = vld [vmem:[%s19998_s16 + $0x23a0] ss:$16 sps:$4 sm:$0xff]  }
 0x4d5   : > { %12711 = vmatprep.subr.bf16.mxu1 %v18639_v23  ;;  %v8853_v49 = vpop.f32.mrf.mxu1  ;;  %12684 = vmatprep.mubr.bf16.mxu0 %v21893_v62  ;;  %v18684_v32 = vld [vmem:[%s19998_s16 + $0x2184] ss:$16 sps:$4 sm:$0xff]   ;;  %v18682_v48 = vld [vmem:[%s19998_s16 + $0x2180] ss:$16 sps:$4 sm:$0xff]  }
 0x4d6   : > { %v21907_v44 = vadd.f32 %v8853_v49, %v8800_v3  ;;  %12737 = vmatprep.mubr.bf16.mxu1 %v21897_v6  ;;  %v8802_v46 = vpop.f32.mrf.mxu0  ;;  %v18687_v23 = vld [vmem:[%s19998_s16 + $0x2384] ss:$16 sps:$4 sm:$0xff]   ;;  %v18685_v51 = vld [vmem:[%s19998_s16 + $0x2380] ss:$16 sps:$4 sm:$0xff]  }
 0x4d7   : > { %v8855_v24 = vpop.f32.mrf.mxu1  ;;  %12659 = vmatpush1.bf16.msra.mxu0 %v18634_v56  ;;  %v18690_v56 = vld [vmem:[%s19998_s16 + $0x2164] ss:$16 sps:$4 sm:$0xff]  }
 0x4d8   : > { %12712 = vmatpush1.bf16.msra.mxu1 %v18637_v17  ;;  %v21913_v43 = vadd.f32 %v8855_v24, %v8802_v46  ;;  %12660 = vmatprep.subr.bf16.mxu0 %v18642_v10  ;;  %v8804_v42 = vpop.f32.mrf.mxu0  ;;  %v18693_v17 = vld [vmem:[%s19998_s16 + $0x2364] ss:$16 sps:$4 sm:$0xff]   ;;  %v18688_v10 = vld [vmem:[%s19998_s16 + $0x2160] ss:$16 sps:$4 sm:$0xff]  }
 0x4d9   : > { %12713 = vmatprep.subr.bf16.mxu1 %v18645_v22  ;;  %v8857_v11 = vpop.f32.mrf.mxu1  ;;  %v18691_v22 = vld [vmem:[%s19998_s16 + $0x2360] ss:$16 sps:$4 sm:$0xff]   ;;  %v18696_v3 = vld [vmem:[%s19998_s16 + $0x2144] ss:$16 sps:$4 sm:$0xff]  }
 0x4da   : > { %v21917_v58 = vadd.f32 %v8857_v11, %v8804_v42  ;;  %v18699_v49 = vld [vmem:[%s19998_s16 + $0x2344] ss:$16 sps:$4 sm:$0xff]   ;;  %v18694_v46 = vld [vmem:[%s19998_s16 + $0x2140] ss:$16 sps:$4 sm:$0xff]  }
 0x4db   : > { %12661 = vmatpush1.bf16.msra.mxu0 %v18640_v28  ;;  %v18697_v24 = vld [vmem:[%s19998_s16 + $0x2340] ss:$16 sps:$4 sm:$0xff]   ;;  %v18702_v28 = vld [vmem:[%s19998_s16 + $0x2124] ss:$16 sps:$4 sm:$0xff]  }
 0x4dc   : > { %12714 = vmatpush1.bf16.msra.mxu1 %v18643_v35  ;;  %12662 = vmatprep.subr.bf16.mxu0 %v18648_v1  ;;  %v18705_v35 = vld [vmem:[%s19998_s16 + $0x2324] ss:$16 sps:$4 sm:$0xff]  }
 0x4dd   : > { %12715 = vmatprep.subr.bf16.mxu1 %v18651_v41  ;;  %v15838_v1 = vld [vmem:[%s19990_s0 + $0x100] sm:$0xff] }
 0x4de   : > { %v15842_v41 = vld [vmem:[%s19990_s0 + $0x120] sm:$0xff] }
 0x4df   : > { %12663 = vmatpush1.bf16.msra.mxu0 %v18646_v9  ;;  %v15846_v42 = vld [vmem:[%s19990_s0 + $0x140] sm:$0xff] }
 0x4e0   : > { %12716 = vmatpush1.bf16.msra.mxu1 %v18649_v15  ;;  %12664 = vmatprep.subr.bf16.mxu0 %v18654_v5  ;;  %v15850_v11 = vld [vmem:[%s19990_s0 + $0x160] sm:$0xff] }
 0x4e1   : > { %12717 = vmatprep.subr.bf16.mxu1 %v18657_v34  ;;  %v18700_v9 = vld [vmem:[%s19998_s16 + $0x2120] ss:$16 sps:$4 sm:$0xff]   ;;  %v18708_v5 = vld [vmem:[%s19998_s16 + $0x2104] ss:$16 sps:$4 sm:$0xff]  }
 0x4e2   : > { %v18703_v15 = vld [vmem:[%s19998_s16 + $0x2320] ss:$16 sps:$4 sm:$0xff]   ;;  %v18711_v34 = vld [vmem:[%s19998_s16 + $0x2304] ss:$16 sps:$4 sm:$0xff]  }
 0x4e3   : > { %12665 = vmatpush1.bf16.msra.mxu0 %v18652_v54  ;;  %v9916_v54 = vcombine.low %v15838_v1, %v15842_v41 }
 0x4e4   : > { %12718 = vmatpush1.bf16.msra.mxu1 %v18655_v25  ;;  %12666 = vmatprep.subr.bf16.mxu0 %v18660_v8  ;;  %v9918_v25 = vcombine.low %v15846_v42, %v15850_v11  ;;  %v9917_v8 = vcombine.high %v15838_v1, %v15842_v41  ;;  %v18729_v1 = vld [vmem:[%s19998_s16 + $0x26a4] ss:$16 sps:$4 sm:$0xff]  }
 0x4e5   : > { %12719 = vmatprep.subr.bf16.mxu1 %v18663_v12  ;;  %v9919_v12 = vcombine.high %v15846_v42, %v15850_v11 }
 0x4e7   : > { %12667 = vmatpush1.bf16.msra.mxu0 %v18658_v45  ;;  %v18706_v45 = vld [vmem:[%s19998_s16 + $0x2100] ss:$16 sps:$4 sm:$0xff]  }
 0x4e8   : > { %12720 = vmatpush1.bf16.msra.mxu1 %v18661_v29  ;;  %12668 = vmatprep.subr.bf16.mxu0 %v18666_v0  ;;  %v18709_v29 = vld [vmem:[%s19998_s16 + $0x2300] ss:$16 sps:$4 sm:$0xff]   ;;  %v18714_v0 = vld [vmem:[%s19998_s16 + $0x24e4] ss:$16 sps:$4 sm:$0xff]  }
 0x4e9   : > { %12721 = vmatprep.subr.bf16.mxu1 %v18669_v14  ;;  %v18717_v14 = vld [vmem:[%s19998_s16 + $0x26e4] ss:$16 sps:$4 sm:$0xff]  }
 0x4eb   : > { %12669 = vmatpush2.bf16.msra.mxu0 %v18664_v19  ;;  %v15823_v19 = vld [vmem:[%s19990_s0 + $0x48] sm:$0xff] }
 0x4ec   : > { %12722 = vmatpush2.bf16.msra.mxu1 %v18667_v2  ;;  %12670 = vmatprep.subr.bf16.mxu0 %v18672_v57  ;;  %v9926_v2 = vrot.slane %v9916_v54, %v20083_v55  ;;  %v9940_v57 = vrot.slane %v9918_v25, %v20083_v55 }
 0x4ed   : > { %12723 = vmatprep.subr.bf16.mxu1 %v18675_v52  ;;  %v9933_v52 = vrot.slane %v9917_v8, %v20083_v55 }
 0x4ee   : > { %v22015_v54 = vcombine.low %v9926_v2, %v9940_v57 }
 0x4ef   : > { %12671 = vmatpush2.bf16.msra.mxu0 %v18670_v20  ;;  %v9947_v20 = vrot.slane %v9919_v12, %v20083_v55 }
 0x4f0   : > { %12724 = vmatpush2.bf16.msra.mxu1 %v18673_v60  ;;  %12672 = vmatprep.subr.bf16.mxu0 %v18678_v36  ;;  %v15827_v60 = vld [vmem:[%s19990_s0 + $0x68] sm:$0xff] }
 0x4f1   : > { %12725 = vmatprep.subr.bf16.mxu1 %v18681_v18  ;;  %v15831_v36 = vld [vmem:[%s19990_s0 + $0x88] sm:$0xff]  ;;  %v22017_v25 = vcombine.low %v9933_v52, %v9947_v20 }
 0x4f2   : > { %v15835_v18 = vld [vmem:[%s19990_s0 + $0xa8] sm:$0xff] }
 0x4f3   : > { %12673 = vmatpush2.bf16.msra.mxu0 %v18676_v7  ;;  %v21977_v7 = vcombine.low %v21868_v47, %v21878_v16  ;;  %v21989_v47 = vcombine.high %v9933_v52, %v9947_v20 }
 0x4f4   : > { %12726 = vmatpush2.bf16.msra.mxu1 %v18679_v31  ;;  %12674 = vmatprep.subr.bf16.mxu0 %v18684_v32  ;;  %v21981_v31 = vcombine.low %v21871_v37, %v21881_v26  ;;  %v18712_v32 = vld [vmem:[%s19998_s16 + $0x24e0] ss:$16 sps:$4 sm:$0xff]   ;;  %v9811_v37 = vcombine.high %v15831_v36, %v15835_v18 }
 0x4f5   : > { %12727 = vmatprep.subr.bf16.mxu1 %v18687_v23  ;;  %v18715_v23 = vld [vmem:[%s19998_s16 + $0x26e0] ss:$16 sps:$4 sm:$0xff]  }
 0x4f7   : > { %12675 = vmatpush2.bf16.msra.mxu0 %v18682_v48  ;;  %v18720_v48 = vld [vmem:[%s19998_s16 + $0x24c4] ss:$16 sps:$4 sm:$0xff]  }
 0x4f8   : > { %12728 = vmatpush2.bf16.msra.mxu1 %v18685_v51  ;;  %12676 = vmatprep.subr.bf16.mxu0 %v18690_v56  ;;  %v18723_v51 = vld [vmem:[%s19998_s16 + $0x26c4] ss:$16 sps:$4 sm:$0xff]   ;;  %v9808_v56 = vcombine.low %v15823_v19, %v15827_v60 }
 0x4f9   : > { %12729 = vmatprep.subr.bf16.mxu1 %v18693_v17  ;;  %v9810_v17 = vcombine.low %v15831_v36, %v15835_v18  ;;  %v18730_v18 = vld [vmem:[%s19998_s16 + $0x2480] ss:$16 sps:$4 sm:$0xff]  }
 0x4fa   : > { %v21999_v41 = vrot.slane %v9808_v56, %v20083_v55  ;;  %v18741_v56 = vld [vmem:[%s19998_s16 + $0x2664] ss:$16 sps:$4 sm:$0xff]  }
 0x4fb   : > { %12677 = vmatpush2.bf16.msra.mxu0 %v18688_v10  ;;  %v9809_v10 = vcombine.high %v15823_v19, %v15827_v60  ;;  %v22002_v42 = vrot.slane %v9810_v17, %v20083_v55  ;;  %v18735_v19 = vld [vmem:[%s19998_s16 + $0x2684] ss:$16 sps:$4 sm:$0xff]  }
 0x4fc   : > { %12730 = vmatpush2.bf16.msra.mxu1 %v18691_v22  ;;  %12678 = vmatprep.subr.bf16.mxu0 %v18696_v3  ;;  %v21987_v22 = vcombine.high %v9926_v2, %v9940_v57 }
 0x4fd   : > { %12731 = vmatprep.subr.bf16.mxu1 %v18699_v49  ;;  %v18718_v49 = vld [vmem:[%s19998_s16 + $0x24c0] ss:$16 sps:$4 sm:$0xff]   ;;  %v22031_v52 = vcombine.high %v21999_v41, %v22002_v42 }
 0x4ff   : > { %12679 = vmatpush2.bf16.msra.mxu0 %v18694_v46  ;;  %v18721_v46 = vld [vmem:[%s19998_s16 + $0x26c0] ss:$16 sps:$4 sm:$0xff]  }
 0x500   : > { %12732 = vmatpush2.bf16.msra.mxu1 %v18697_v24  ;;  %12680 = vmatprep.subr.bf16.mxu0 %v18702_v28 }
 0x501   : > { %12733 = vmatprep.subr.bf16.mxu1 %v18705_v35  ;;  %v18726_v35 = vld [vmem:[%s19998_s16 + $0x24a4] ss:$16 sps:$4 sm:$0xff]  }
 0x503   : > { %12681 = vmatpush2.bf16.msra.mxu0 %v18700_v9 }
 0x504   : > { %12734 = vmatpush2.bf16.msra.mxu1 %v18703_v15  ;;  %12682 = vmatprep.subr.bf16.mxu0 %v18708_v5  ;;  %v22013_v15 = vrot.slane %v9811_v37, %v20083_v55 }
 0x505   : > { %12735 = vmatprep.subr.bf16.mxu1 %v18711_v34 }
 0x507   : > { %12683 = vmatpush2.bf16.msra.mxu0 %v18706_v45  ;;  %v18727_v45 = vld [vmem:[%s19998_s16 + $0x26a0] ss:$16 sps:$4 sm:$0xff]  }
 0x508   : > { %12736 = vmatpush2.bf16.msra.mxu1 %v18709_v29  ;;  %12758 = vmatprep.subr.bf16.mxu0 %v18714_v0 }
 0x509   : > { %12811 = vmatprep.subr.bf16.mxu1 %v18717_v14  ;;  %v18732_v14 = vld [vmem:[%s19998_s16 + $0x2484] ss:$16 sps:$4 sm:$0xff]  }
 0x50a   : > { %v8894_v16 = vpop.f32.mrf.mxu0  ;;  %12685 = vmatmul.mubr.bf16.vlgmr.msra.gmra.mxu0 %v21977_v7 }
 0x50b   : > { %v8947_v26 = vpop.f32.mrf.mxu1  ;;  %12738 = vmatmul.mubr.bf16.vlgmr.msra.gmra.mxu1 %v21981_v31  ;;  %v8895_v3 = vadd.f32 %v8894_v16, %v21861_v63  ;;  %12759 = vmatpush1.bf16.msra.mxu0 %v18712_v32  ;;  %v22005_v63 = vrot.slane %v9809_v10, %v20083_v55  ;;  %v18733_v32 = vld [vmem:[%s19998_s16 + $0x2680] ss:$16 sps:$4 sm:$0xff]  }
 0x50c   : > { %12812 = vmatpush1.bf16.msra.mxu1 %v18715_v23  ;;  %v8896_v24 = vpop.f32.mrf.mxu0  ;;  %12760 = vmatprep.subr.bf16.mxu0 %v18720_v48 }
 0x50d   : > { %v8949_v28 = vpop.f32.mrf.mxu1  ;;  %12813 = vmatprep.subr.bf16.mxu1 %v18723_v51  ;;  %v22007_v11 = vadd.f32 %v8947_v26, %v8895_v3  ;;  %v8897_v9 = vadd.f32 %v8896_v24, %v21873_v33  ;;  %12694 = vmatprep.mubr.bf16.mxu0 %v21987_v22  ;;  %v18724_v33 = vld [vmem:[%s19998_s16 + $0x24a0] ss:$16 sps:$4 sm:$0xff]   ;;  %v18738_v51 = vld [vmem:[%s19998_s16 + $0x2464] ss:$16 sps:$4 sm:$0xff]  }
 0x50e   : > { %12747 = vmatprep.mubr.bf16.mxu1 %v21989_v47  ;;  %v8898_v5 = vpop.f32.mrf.mxu0  ;;  %v18736_v3 = vld [vmem:[%s19998_s16 + $0x2460] ss:$16 sps:$4 sm:$0xff]   ;;  %v18744_v24 = vld [vmem:[%s19998_s16 + $0x2444] ss:$16 sps:$4 sm:$0xff]  }
 0x50f   : > { %v8951_v34 = vpop.f32.mrf.mxu1  ;;  %v22019_v8 = vadd.f32 %v8949_v28, %v8897_v9  ;;  %v8899_v12 = vadd.f32 %v8898_v5, %v21883_v53  ;;  %12761 = vmatpush1.bf16.msra.mxu0 %v18718_v49  ;;  %v22035_v53 = vcombine.high %v22005_v63, %v22013_v15  ;;  %v18747_v28 = vld [vmem:[%s19998_s16 + $0x2644] ss:$16 sps:$4 sm:$0xff]   ;;  %v18742_v9 = vld [vmem:[%s19998_s16 + $0x2440] ss:$16 sps:$4 sm:$0xff]  }
 0x510   : > { %12814 = vmatpush1.bf16.msra.mxu1 %v18721_v46  ;;  %v8900_v29 = vpop.f32.mrf.mxu0  ;;  %12762 = vmatprep.subr.bf16.mxu0 %v18726_v35  ;;  %v18745_v5 = vld [vmem:[%s19998_s16 + $0x2640] ss:$16 sps:$4 sm:$0xff]  }
 0x511   : > { %v8953_v0 = vpop.f32.mrf.mxu1  ;;  %12815 = vmatprep.subr.bf16.mxu1 %v18729_v1  ;;  %v22026_v2 = vadd.f32 %v8951_v34, %v8899_v12  ;;  %v8901_v57 = vadd.f32 %v8900_v29, %v21889_v50  ;;  %v18750_v34 = vld [vmem:[%s19998_s16 + $0x2424] ss:$16 sps:$4 sm:$0xff]  }
 0x512   : > { %v8904_v20 = vpop.f32.mrf.mxu0  ;;  %12695 = vmatmul.mubr.bf16.gmra.mxu0 %v22015_v54  ;;  %v18753_v12 = vld [vmem:[%s19998_s16 + $0x2624] ss:$16 sps:$4 sm:$0xff]  }
 0x513   : > { %v8957_v60 = vpop.f32.mrf.mxu1  ;;  %12748 = vmatmul.mubr.bf16.gmra.mxu1 %v22017_v25  ;;  %v22039_v36 = vadd.f32 %v8953_v0, %v8901_v57  ;;  %v8905_v50 = vadd.f32 %v8904_v20, %v21903_v4  ;;  %12763 = vmatpush1.bf16.msra.mxu0 %v18724_v33  ;;  %v18751_v33 = vld [vmem:[%s19998_s16 + $0x2620] ss:$16 sps:$4 sm:$0xff]   ;;  %v18759_v29 = vld [vmem:[%s19998_s16 + $0x2604] ss:$16 sps:$4 sm:$0xff]  }
 0x514   : > { %12816 = vmatpush1.bf16.msra.mxu1 %v18727_v45  ;;  %v8906_v23 = vpop.f32.mrf.mxu0  ;;  %12764 = vmatprep.subr.bf16.mxu0 %v18732_v14  ;;  %v18756_v45 = vld [vmem:[%s19998_s16 + $0x2404] ss:$16 sps:$4 sm:$0xff]   ;;  %v18754_v0 = vld [vmem:[%s19998_s16 + $0x2400] ss:$16 sps:$4 sm:$0xff]  }
 0x515   : > { %v8959_v48 = vpop.f32.mrf.mxu1  ;;  %12817 = vmatprep.subr.bf16.mxu1 %v18735_v19  ;;  %v8907_v17 = vadd.f32 %v8906_v23, %v21907_v44  ;;  %v22047_v10 = vadd.f32 %v8957_v60, %v8905_v50  ;;  %12790 = vmatprep.mubr.bf16.mxu0 %v22031_v52  ;;  %v18739_v44 = vld [vmem:[%s19998_s16 + $0x2660] ss:$16 sps:$4 sm:$0xff]   ;;  %v18762_v19 = vld [vmem:[%s19998_s16 + $0x25e4] ss:$16 sps:$4 sm:$0xff]  }
 0x516   : > { %12843 = vmatprep.mubr.bf16.mxu1 %v22035_v53  ;;  %v8908_v4 = vpop.f32.mrf.mxu0  ;;  %v18757_v14 = vld [vmem:[%s19998_s16 + $0x2600] ss:$16 sps:$4 sm:$0xff]   ;;  %v18765_v57 = vld [vmem:[%s19998_s16 + $0x27e4] ss:$16 sps:$4 sm:$0xff]  }
 0x517   : > { %v8961_v37 = vpop.f32.mrf.mxu1  ;;  %v8909_v16 = vadd.f32 %v8908_v4, %v21913_v43  ;;  %v22052_v26 = vadd.f32 %v8959_v48, %v8907_v17  ;;  %12765 = vmatpush1.bf16.msra.mxu0 %v18730_v18  ;;  %v18760_v20 = vld [vmem:[%s19998_s16 + $0x25e0] ss:$16 sps:$4 sm:$0xff]   ;;  %v18768_v50 = vld [vmem:[%s19998_s16 + $0x25c4] ss:$16 sps:$4 sm:$0xff]  }
 0x518   : > { %12818 = vmatpush1.bf16.msra.mxu1 %v18733_v32  ;;  %v8910_v49 = vpop.f32.mrf.mxu0  ;;  %12766 = vmatprep.subr.bf16.mxu0 %v18738_v51  ;;  %v18763_v60 = vld [vmem:[%s19998_s16 + $0x27e0] ss:$16 sps:$4 sm:$0xff]   ;;  %v18771_v18 = vld [vmem:[%s19998_s16 + $0x27c4] ss:$16 sps:$4 sm:$0xff]  }
 0x519   : > { %v8963_v46 = vpop.f32.mrf.mxu1  ;;  %12819 = vmatprep.subr.bf16.mxu1 %v18741_v56  ;;  %v8911_v43 = vadd.f32 %v8910_v49, %v21917_v58  ;;  %v22059_v35 = vadd.f32 %v8961_v37, %v8909_v16  ;;  %v18748_v58 = vld [vmem:[%s19998_s16 + $0x2420] ss:$16 sps:$4 sm:$0xff]   ;;  %v18774_v48 = vld [vmem:[%s19998_s16 + $0x25a4] ss:$16 sps:$4 sm:$0xff]  }
 0x51a   : > { %v18766_v32 = vld [vmem:[%s19998_s16 + $0x25c0] ss:$16 sps:$4 sm:$0xff]   ;;  %v18777_v51 = vld [vmem:[%s19998_s16 + $0x27a4] ss:$16 sps:$4 sm:$0xff]  }
 0x51b   : > { %v22061_v1 = vadd.f32 %v8963_v46, %v8911_v43  ;;  %12767 = vmatpush1.bf16.msra.mxu0 %v18736_v3  ;;  %v18769_v23 = vld [vmem:[%s19998_s16 + $0x27c0] ss:$16 sps:$4 sm:$0xff]   ;;  %v18780_v4 = vld [vmem:[%s19998_s16 + $0x2584] ss:$16 sps:$4 sm:$0xff]  }
 0x51c   : > { %12820 = vmatpush1.bf16.msra.mxu1 %v18739_v44  ;;  %12768 = vmatprep.subr.bf16.mxu0 %v18744_v24  ;;  %v18772_v56 = vld [vmem:[%s19998_s16 + $0x25a0] ss:$16 sps:$4 sm:$0xff]   ;;  %v18783_v37 = vld [vmem:[%s19998_s16 + $0x2784] ss:$16 sps:$4 sm:$0xff]  }
 0x51d   : > { %12821 = vmatprep.subr.bf16.mxu1 %v18747_v28  ;;  %v18775_v17 = vld [vmem:[%s19998_s16 + $0x27a0] ss:$16 sps:$4 sm:$0xff]   ;;  %v18786_v44 = vld [vmem:[%s19998_s16 + $0x2564] ss:$16 sps:$4 sm:$0xff]  }
 0x51e   : > { %v18778_v16 = vld [vmem:[%s19998_s16 + $0x2580] ss:$16 sps:$4 sm:$0xff]   ;;  %v18789_v49 = vld [vmem:[%s19998_s16 + $0x2764] ss:$16 sps:$4 sm:$0xff]  }
 0x51f   : > { %12769 = vmatpush1.bf16.msra.mxu0 %v18742_v9  ;;  %v18781_v3 = vld [vmem:[%s19998_s16 + $0x2780] ss:$16 sps:$4 sm:$0xff]   ;;  %v18792_v28 = vld [vmem:[%s19998_s16 + $0x2544] ss:$16 sps:$4 sm:$0xff]  }
 0x520   : > { %12822 = vmatpush1.bf16.msra.mxu1 %v18745_v5  ;;  %12770 = vmatprep.subr.bf16.mxu0 %v18750_v34  ;;  %v18784_v46 = vld [vmem:[%s19998_s16 + $0x2560] ss:$16 sps:$4 sm:$0xff]   ;;  %v18795_v43 = vld [vmem:[%s19998_s16 + $0x2744] ss:$16 sps:$4 sm:$0xff]  }
 0x521   : > { %12823 = vmatprep.subr.bf16.mxu1 %v18753_v12  ;;  %v18787_v24 = vld [vmem:[%s19998_s16 + $0x2760] ss:$16 sps:$4 sm:$0xff]   ;;  %v18798_v34 = vld [vmem:[%s19998_s16 + $0x2524] ss:$16 sps:$4 sm:$0xff]  }
 0x522   : > { %v18790_v9 = vld [vmem:[%s19998_s16 + $0x2540] ss:$16 sps:$4 sm:$0xff]   ;;  %v18801_v12 = vld [vmem:[%s19998_s16 + $0x2724] ss:$16 sps:$4 sm:$0xff]  }
 0x523   : > { %12771 = vmatpush1.bf16.msra.mxu0 %v18748_v58  ;;  %v18793_v5 = vld [vmem:[%s19998_s16 + $0x2740] ss:$16 sps:$4 sm:$0xff]   ;;  %v15839_v58 = vld [vmem:[%s19990_s0 + $0x108] sm:$0xff] }
 0x524   : > { %12824 = vmatpush1.bf16.msra.mxu1 %v18751_v33  ;;  %12772 = vmatprep.subr.bf16.mxu0 %v18756_v45  ;;  %v15843_v33 = vld [vmem:[%s19990_s0 + $0x128] sm:$0xff] }
 0x525   : > { %12825 = vmatprep.subr.bf16.mxu1 %v18759_v29  ;;  %v15847_v45 = vld [vmem:[%s19990_s0 + $0x148] sm:$0xff] }
 0x526   : > { %v15851_v29 = vld [vmem:[%s19990_s0 + $0x168] sm:$0xff] }
 0x527   : > { %12773 = vmatpush1.bf16.msra.mxu0 %v18754_v0  ;;  %v18796_v0 = vld [vmem:[%s19998_s16 + $0x2520] ss:$16 sps:$4 sm:$0xff]  }
 0x528   : > { %12826 = vmatpush1.bf16.msra.mxu1 %v18757_v14  ;;  %12774 = vmatprep.subr.bf16.mxu0 %v18762_v19  ;;  %v18799_v14 = vld [vmem:[%s19998_s16 + $0x2720] ss:$16 sps:$4 sm:$0xff]   ;;  %v18804_v19 = vld [vmem:[%s19998_s16 + $0x2504] ss:$16 sps:$4 sm:$0xff]  }
 0x529   : > { %12827 = vmatprep.subr.bf16.mxu1 %v18765_v57  ;;  %v18807_v57 = vld [vmem:[%s19998_s16 + $0x2704] ss:$16 sps:$4 sm:$0xff]  }
 0x52b   : > { %12775 = vmatpush2.bf16.msra.mxu0 %v18760_v20  ;;  %v9952_v20 = vcombine.low %v15839_v58, %v15843_v33 }
 0x52c   : > { %12828 = vmatpush2.bf16.msra.mxu1 %v18763_v60  ;;  %12776 = vmatprep.subr.bf16.mxu0 %v18768_v50  ;;  %v9954_v60 = vcombine.low %v15847_v45, %v15851_v29  ;;  %v9953_v50 = vcombine.high %v15839_v58, %v15843_v33 }
 0x52d   : > { %12829 = vmatprep.subr.bf16.mxu1 %v18771_v18  ;;  %v9955_v18 = vcombine.high %v15847_v45, %v15851_v29  ;;  %v18814_v29 = vld [vmem:[%s19998_s16 + $0x28c0] ss:$16 sps:$4 sm:$0xff]  }
 0x52f   : > { %12777 = vmatpush2.bf16.msra.mxu0 %v18766_v32  ;;  %v18802_v32 = vld [vmem:[%s19998_s16 + $0x2500] ss:$16 sps:$4 sm:$0xff]  }
 0x530   : > { %12830 = vmatpush2.bf16.msra.mxu1 %v18769_v23  ;;  %12778 = vmatprep.subr.bf16.mxu0 %v18774_v48  ;;  %v18805_v23 = vld [vmem:[%s19998_s16 + $0x2700] ss:$16 sps:$4 sm:$0xff]   ;;  %v18810_v48 = vld [vmem:[%s19998_s16 + $0x28e4] ss:$16 sps:$4 sm:$0xff]  }
 0x531   : > { %12831 = vmatprep.subr.bf16.mxu1 %v18777_v51  ;;  %v18813_v51 = vld [vmem:[%s19998_s16 + $0x2ae4] ss:$16 sps:$4 sm:$0xff]  }
 0x533   : > { %12779 = vmatpush2.bf16.msra.mxu0 %v18772_v56  ;;  %v15824_v56 = vld [vmem:[%s19990_s0 + $0x50] sm:$0xff] }
 0x534   : > { %12832 = vmatpush2.bf16.msra.mxu1 %v18775_v17  ;;  %12780 = vmatprep.subr.bf16.mxu0 %v18780_v4  ;;  %v9962_v17 = vrot.slane %v9952_v20, %v20083_v55  ;;  %v9976_v4 = vrot.slane %v9954_v60, %v20083_v55  ;;  %v18825_v20 = vld [vmem:[%s19998_s16 + $0x2aa4] ss:$16 sps:$4 sm:$0xff]  }
 0x535   : > { %12833 = vmatprep.subr.bf16.mxu1 %v18783_v37  ;;  %v9969_v37 = vrot.slane %v9953_v50, %v20083_v55 }
 0x536   : > { %v22131_v33 = vcombine.high %v9962_v17, %v9976_v4 }
 0x537   : > { %12781 = vmatpush2.bf16.msra.mxu0 %v18778_v16  ;;  %v9983_v16 = vrot.slane %v9955_v18, %v20083_v55 }
 0x538   : > { %12834 = vmatpush2.bf16.msra.mxu1 %v18781_v3  ;;  %12782 = vmatprep.subr.bf16.mxu0 %v18786_v44  ;;  %v15828_v3 = vld [vmem:[%s19990_s0 + $0x70] sm:$0xff] }
 0x539   : > { %12835 = vmatprep.subr.bf16.mxu1 %v18789_v49  ;;  %v15832_v44 = vld [vmem:[%s19990_s0 + $0x90] sm:$0xff]  ;;  %v9845_v58 = vcombine.high %v15824_v56, %v15828_v3 }
 0x53a   : > { %v15836_v49 = vld [vmem:[%s19990_s0 + $0xb0] sm:$0xff] }
 0x53b   : > { %12783 = vmatpush2.bf16.msra.mxu0 %v18784_v46  ;;  %v22121_v46 = vcombine.low %v21999_v41, %v22002_v42  ;;  %v22133_v41 = vcombine.high %v9969_v37, %v9983_v16  ;;  %v9847_v42 = vcombine.high %v15832_v44, %v15836_v49 }
 0x53c   : > { %12836 = vmatpush2.bf16.msra.mxu1 %v18787_v24  ;;  %12784 = vmatprep.subr.bf16.mxu0 %v18792_v28  ;;  %v22125_v24 = vcombine.low %v22005_v63, %v22013_v15  ;;  %v18808_v28 = vld [vmem:[%s19998_s16 + $0x28e0] ss:$16 sps:$4 sm:$0xff]  }
 0x53d   : > { %12837 = vmatprep.subr.bf16.mxu1 %v18795_v43  ;;  %v18811_v43 = vld [vmem:[%s19998_s16 + $0x2ae0] ss:$16 sps:$4 sm:$0xff]  }
 0x53f   : > { %12785 = vmatpush2.bf16.msra.mxu0 %v18790_v9  ;;  %v18816_v9 = vld [vmem:[%s19998_s16 + $0x28c4] ss:$16 sps:$4 sm:$0xff]  }
 0x540   : > { %12838 = vmatpush2.bf16.msra.mxu1 %v18793_v5  ;;  %12786 = vmatprep.subr.bf16.mxu0 %v18798_v34  ;;  %v18819_v5 = vld [vmem:[%s19998_s16 + $0x2ac4] ss:$16 sps:$4 sm:$0xff]   ;;  %v9844_v34 = vcombine.low %v15824_v56, %v15828_v3  ;;  %v22159_v56 = vcombine.low %v9962_v17, %v9976_v4  ;;  %v22161_v3 = vcombine.low %v9969_v37, %v9983_v16 }
 0x541   : > { %12839 = vmatprep.subr.bf16.mxu1 %v18801_v12  ;;  %v9846_v12 = vcombine.low %v15832_v44, %v15836_v49 }
 0x542   : > { %v22143_v60 = vrot.slane %v9844_v34, %v20083_v55  ;;  %v18831_v34 = vld [vmem:[%s19998_s16 + $0x2a84] ss:$16 sps:$4 sm:$0xff]  }
 0x543   : > { %12787 = vmatpush2.bf16.msra.mxu0 %v18796_v0  ;;  %v18817_v0 = vld [vmem:[%s19998_s16 + $0x2ac0] ss:$16 sps:$4 sm:$0xff]   ;;  %v22146_v50 = vrot.slane %v9846_v12, %v20083_v55 }
 0x544   : > { %12840 = vmatpush2.bf16.msra.mxu1 %v18799_v14  ;;  %12788 = vmatprep.subr.bf16.mxu0 %v18804_v19 }
 0x545   : > { %12841 = vmatprep.subr.bf16.mxu1 %v18807_v57  ;;  %v18822_v57 = vld [vmem:[%s19998_s16 + $0x28a4] ss:$16 sps:$4 sm:$0xff]   ;;  %v22175_v37 = vcombine.high %v22143_v60, %v22146_v50 }
 0x547   : > { %12789 = vmatpush2.bf16.msra.mxu0 %v18802_v32 }
 0x548   : > { %12842 = vmatpush2.bf16.msra.mxu1 %v18805_v23  ;;  %12864 = vmatprep.subr.bf16.mxu0 %v18810_v48  ;;  %v22157_v23 = vrot.slane %v9847_v42, %v20083_v55  ;;  %v18826_v42 = vld [vmem:[%s19998_s16 + $0x2880] ss:$16 sps:$4 sm:$0xff]  }
 0x549   : > { %12917 = vmatprep.subr.bf16.mxu1 %v18813_v51 }
 0x54a   : > { %v9000_v63 = vpop.f32.mrf.mxu0  ;;  %12791 = vmatmul.mubr.bf16.vlgmr.msra.gmra.mxu0 %v22121_v46 }
 0x54b   : > { %v9053_v15 = vpop.f32.mrf.mxu1  ;;  %12844 = vmatmul.mubr.bf16.vlgmr.msra.gmra.mxu1 %v22125_v24  ;;  %v9001_v45 = vadd.f32 %v9000_v63, %v22007_v11  ;;  %12865 = vmatpush1.bf16.msra.mxu0 %v18808_v28  ;;  %v22149_v11 = vrot.slane %v9845_v58, %v20083_v55  ;;  %v18823_v28 = vld [vmem:[%s19998_s16 + $0x2aa0] ss:$16 sps:$4 sm:$0xff]  }
 0x54c   : > { %12918 = vmatpush1.bf16.msra.mxu1 %v18811_v43  ;;  %v9002_v14 = vpop.f32.mrf.mxu0  ;;  %12866 = vmatprep.subr.bf16.mxu0 %v18816_v9  ;;  %v18829_v63 = vld [vmem:[%s19998_s16 + $0x2a80] ss:$16 sps:$4 sm:$0xff]  }
 0x54d   : > { %v9055_v19 = vpop.f32.mrf.mxu1  ;;  %12919 = vmatprep.subr.bf16.mxu1 %v18819_v5  ;;  %v22151_v18 = vadd.f32 %v9053_v15, %v9001_v45  ;;  %v9003_v32 = vadd.f32 %v9002_v14, %v22019_v8  ;;  %12800 = vmatprep.mubr.bf16.mxu0 %v22131_v33  ;;  %v18820_v8 = vld [vmem:[%s19998_s16 + $0x28a0] ss:$16 sps:$4 sm:$0xff]   ;;  %v18828_v5 = vld [vmem:[%s19998_s16 + $0x2884] ss:$16 sps:$4 sm:$0xff]  }
 0x54e   : > { %12853 = vmatprep.mubr.bf16.mxu1 %v22133_v41  ;;  %v9004_v48 = vpop.f32.mrf.mxu0 }
 0x54f   : > { %v9057_v51 = vpop.f32.mrf.mxu1  ;;  %v22163_v44 = vadd.f32 %v9055_v19, %v9003_v32  ;;  %v9005_v49 = vadd.f32 %v9004_v48, %v22026_v2  ;;  %12867 = vmatpush1.bf16.msra.mxu0 %v18814_v29  ;;  %v22179_v2 = vcombine.high %v22149_v11, %v22157_v23  ;;  %v18834_v29 = vld [vmem:[%s19998_s16 + $0x2864] ss:$16 sps:$4 sm:$0xff]   ;;  %v18832_v48 = vld [vmem:[%s19998_s16 + $0x2860] ss:$16 sps:$4 sm:$0xff]  }
 0x550   : > { %12920 = vmatpush1.bf16.msra.mxu1 %v18817_v0  ;;  %v9006_v43 = vpop.f32.mrf.mxu0  ;;  %12868 = vmatprep.subr.bf16.mxu0 %v18822_v57  ;;  %v18837_v0 = vld [vmem:[%s19998_s16 + $0x2a64] ss:$16 sps:$4 sm:$0xff]  }
 0x551   : > { %v9059_v9 = vpop.f32.mrf.mxu1  ;;  %12921 = vmatprep.subr.bf16.mxu1 %v18825_v20  ;;  %v22170_v17 = vadd.f32 %v9057_v51, %v9005_v49  ;;  %v9007_v4 = vadd.f32 %v9006_v43, %v22039_v36 }
 0x552   : > { %v9010_v16 = vpop.f32.mrf.mxu0  ;;  %12801 = vmatmul.mubr.bf16.gmra.mxu0 %v22159_v56 }
 0x553   : > { %v9063_v12 = vpop.f32.mrf.mxu1  ;;  %12854 = vmatmul.mubr.bf16.gmra.mxu1 %v22161_v3  ;;  %v22183_v58 = vadd.f32 %v9059_v9, %v9007_v4  ;;  %v9011_v36 = vadd.f32 %v9010_v16, %v22047_v10  ;;  %12869 = vmatpush1.bf16.msra.mxu0 %v18820_v8  ;;  %v18840_v8 = vld [vmem:[%s19998_s16 + $0x2844] ss:$16 sps:$4 sm:$0xff]  }
 0x554   : > { %12922 = vmatpush1.bf16.msra.mxu1 %v18823_v28  ;;  %v9012_v15 = vpop.f32.mrf.mxu0  ;;  %12870 = vmatprep.subr.bf16.mxu0 %v18828_v5  ;;  %v18843_v28 = vld [vmem:[%s19998_s16 + $0x2a44] ss:$16 sps:$4 sm:$0xff]   ;;  %v18838_v5 = vld [vmem:[%s19998_s16 + $0x2840] ss:$16 sps:$4 sm:$0xff]  }
 0x555   : > { %v9065_v45 = vpop.f32.mrf.mxu1  ;;  %12923 = vmatprep.subr.bf16.mxu1 %v18831_v34  ;;  %v9013_v14 = vadd.f32 %v9012_v15, %v22052_v26  ;;  %v22191_v19 = vadd.f32 %v9063_v12, %v9011_v36  ;;  %12896 = vmatprep.mubr.bf16.mxu0 %v22175_v37  ;;  %v18835_v26 = vld [vmem:[%s19998_s16 + $0x2a60] ss:$16 sps:$4 sm:$0xff]   ;;  %v18846_v4 = vld [vmem:[%s19998_s16 + $0x2824] ss:$16 sps:$4 sm:$0xff]  }
 0x556   : > { %12949 = vmatprep.mubr.bf16.mxu1 %v22179_v2  ;;  %v9014_v10 = vpop.f32.mrf.mxu0  ;;  %v18841_v34 = vld [vmem:[%s19998_s16 + $0x2a40] ss:$16 sps:$4 sm:$0xff]   ;;  %v18849_v16 = vld [vmem:[%s19998_s16 + $0x2a24] ss:$16 sps:$4 sm:$0xff]  }
 0x557   : > { %v9067_v57 = vpop.f32.mrf.mxu1  ;;  %v9015_v20 = vadd.f32 %v9014_v10, %v22059_v35  ;;  %v22196_v32 = vadd.f32 %v9065_v45, %v9013_v14  ;;  %12871 = vmatpush1.bf16.msra.mxu0 %v18826_v42  ;;  %v18847_v12 = vld [vmem:[%s19998_s16 + $0x2a20] ss:$16 sps:$4 sm:$0xff]   ;;  %v18852_v36 = vld [vmem:[%s19998_s16 + $0x2804] ss:$16 sps:$4 sm:$0xff]  }
 0x558   : > { %12924 = vmatpush1.bf16.msra.mxu1 %v18829_v63  ;;  %v9016_v51 = vpop.f32.mrf.mxu0  ;;  %12872 = vmatprep.subr.bf16.mxu0 %v18834_v29  ;;  %v18855_v42 = vld [vmem:[%s19998_s16 + $0x2a04] ss:$16 sps:$4 sm:$0xff]   ;;  %v18850_v63 = vld [vmem:[%s19998_s16 + $0x2800] ss:$16 sps:$4 sm:$0xff]  }
 0x559   : > { %v9069_v49 = vpop.f32.mrf.mxu1  ;;  %12925 = vmatprep.subr.bf16.mxu1 %v18837_v0  ;;  %v9017_v35 = vadd.f32 %v9016_v51, %v22061_v1  ;;  %v22203_v43 = vadd.f32 %v9067_v57, %v9015_v20  ;;  %v18844_v1 = vld [vmem:[%s19998_s16 + $0x2820] ss:$16 sps:$4 sm:$0xff]   ;;  %v18858_v45 = vld [vmem:[%s19998_s16 + $0x29e4] ss:$16 sps:$4 sm:$0xff]  }
 0x55a   : > { %v18853_v15 = vld [vmem:[%s19998_s16 + $0x2a00] ss:$16 sps:$4 sm:$0xff]   ;;  %v18861_v29 = vld [vmem:[%s19998_s16 + $0x2be4] ss:$16 sps:$4 sm:$0xff]  }
 0x55b   : > { %v22205_v9 = vadd.f32 %v9069_v49, %v9017_v35  ;;  %12873 = vmatpush1.bf16.msra.mxu0 %v18832_v48  ;;  %v18856_v0 = vld [vmem:[%s19998_s16 + $0x29e0] ss:$16 sps:$4 sm:$0xff]   ;;  %v18864_v10 = vld [vmem:[%s19998_s16 + $0x29c4] ss:$16 sps:$4 sm:$0xff]  }
 0x55c   : > { %12926 = vmatpush1.bf16.msra.mxu1 %v18835_v26  ;;  %12874 = vmatprep.subr.bf16.mxu0 %v18840_v8  ;;  %v18859_v14 = vld [vmem:[%s19998_s16 + $0x2be0] ss:$16 sps:$4 sm:$0xff]   ;;  %v18867_v57 = vld [vmem:[%s19998_s16 + $0x2bc4] ss:$16 sps:$4 sm:$0xff]  }
 0x55d   : > { %12927 = vmatprep.subr.bf16.mxu1 %v18843_v28  ;;  %v18862_v20 = vld [vmem:[%s19998_s16 + $0x29c0] ss:$16 sps:$4 sm:$0xff]   ;;  %v18870_v26 = vld [vmem:[%s19998_s16 + $0x29a4] ss:$16 sps:$4 sm:$0xff]  }
 0x55e   : > { %v18865_v48 = vld [vmem:[%s19998_s16 + $0x2bc0] ss:$16 sps:$4 sm:$0xff]   ;;  %v18873_v51 = vld [vmem:[%s19998_s16 + $0x2ba4] ss:$16 sps:$4 sm:$0xff]  }
 0x55f   : > { %12875 = vmatpush1.bf16.msra.mxu0 %v18838_v5  ;;  %v18868_v49 = vld [vmem:[%s19998_s16 + $0x29a0] ss:$16 sps:$4 sm:$0xff]   ;;  %v18876_v28 = vld [vmem:[%s19998_s16 + $0x2984] ss:$16 sps:$4 sm:$0xff]  }
 0x560   : > { %12928 = vmatpush1.bf16.msra.mxu1 %v18841_v34  ;;  %12876 = vmatprep.subr.bf16.mxu0 %v18846_v4  ;;  %v18871_v8 = vld [vmem:[%s19998_s16 + $0x2ba0] ss:$16 sps:$4 sm:$0xff]   ;;  %v18879_v35 = vld [vmem:[%s19998_s16 + $0x2b84] ss:$16 sps:$4 sm:$0xff]  }
 0x561   : > { %12929 = vmatprep.subr.bf16.mxu1 %v18849_v16  ;;  %v18874_v5 = vld [vmem:[%s19998_s16 + $0x2980] ss:$16 sps:$4 sm:$0xff]   ;;  %v18882_v4 = vld [vmem:[%s19998_s16 + $0x2964] ss:$16 sps:$4 sm:$0xff]  }
 0x562   : > { %v18877_v34 = vld [vmem:[%s19998_s16 + $0x2b80] ss:$16 sps:$4 sm:$0xff]   ;;  %v18885_v16 = vld [vmem:[%s19998_s16 + $0x2b64] ss:$16 sps:$4 sm:$0xff]  }
 0x563   : > { %12877 = vmatpush1.bf16.msra.mxu0 %v18844_v1  ;;  %v18880_v1 = vld [vmem:[%s19998_s16 + $0x2960] ss:$16 sps:$4 sm:$0xff]  }
 0x564   : > { %12930 = vmatpush1.bf16.msra.mxu1 %v18847_v12  ;;  %12878 = vmatprep.subr.bf16.mxu0 %v18852_v36  ;;  %v18883_v12 = vld [vmem:[%s19998_s16 + $0x2b60] ss:$16 sps:$4 sm:$0xff]   ;;  %v18888_v36 = vld [vmem:[%s19998_s16 + $0x2944] ss:$16 sps:$4 sm:$0xff]  }
 0x565   : > { %12931 = vmatprep.subr.bf16.mxu1 %v18855_v42  ;;  %v18891_v42 = vld [vmem:[%s19998_s16 + $0x2b44] ss:$16 sps:$4 sm:$0xff]  }
 0x567   : > { %12879 = vmatpush1.bf16.msra.mxu0 %v18850_v63  ;;  %v18886_v63 = vld [vmem:[%s19998_s16 + $0x2940] ss:$16 sps:$4 sm:$0xff]  }
 0x568   : > { %12932 = vmatpush1.bf16.msra.mxu1 %v18853_v15  ;;  %12880 = vmatprep.subr.bf16.mxu0 %v18858_v45  ;;  %v18889_v15 = vld [vmem:[%s19998_s16 + $0x2b40] ss:$16 sps:$4 sm:$0xff]   ;;  %v18894_v45 = vld [vmem:[%s19998_s16 + $0x2924] ss:$16 sps:$4 sm:$0xff]  }
 0x569   : > { %12933 = vmatprep.subr.bf16.mxu1 %v18861_v29  ;;  %v18897_v29 = vld [vmem:[%s19998_s16 + $0x2b24] ss:$16 sps:$4 sm:$0xff]  }
 0x56b   : > { %12881 = vmatpush2.bf16.msra.mxu0 %v18856_v0  ;;  %v15840_v0 = vld [vmem:[%s19990_s0 + $0x110] sm:$0xff] }
 0x56c   : > { %12934 = vmatpush2.bf16.msra.mxu1 %v18859_v14  ;;  %12882 = vmatprep.subr.bf16.mxu0 %v18864_v10  ;;  %v15844_v14 = vld [vmem:[%s19990_s0 + $0x130] sm:$0xff] }
 0x56d   : > { %12935 = vmatprep.subr.bf16.mxu1 %v18867_v57  ;;  %v15848_v10 = vld [vmem:[%s19990_s0 + $0x150] sm:$0xff] }
 0x56e   : > { %v15852_v57 = vld [vmem:[%s19990_s0 + $0x170] sm:$0xff] }
 0x56f   : > { %12883 = vmatpush2.bf16.msra.mxu0 %v18862_v20  ;;  %v18892_v20 = vld [vmem:[%s19998_s16 + $0x2920] ss:$16 sps:$4 sm:$0xff]  }
 0x570   : > { %12936 = vmatpush2.bf16.msra.mxu1 %v18865_v48  ;;  %12884 = vmatprep.subr.bf16.mxu0 %v18870_v26  ;;  %v18895_v48 = vld [vmem:[%s19998_s16 + $0x2b20] ss:$16 sps:$4 sm:$0xff]   ;;  %v18900_v26 = vld [vmem:[%s19998_s16 + $0x2904] ss:$16 sps:$4 sm:$0xff]  }
 0x571   : > { %12937 = vmatprep.subr.bf16.mxu1 %v18873_v51  ;;  %v18903_v51 = vld [vmem:[%s19998_s16 + $0x2b04] ss:$16 sps:$4 sm:$0xff]  }
 0x573   : > { %12885 = vmatpush2.bf16.msra.mxu0 %v18868_v49  ;;  %v9988_v49 = vcombine.low %v15840_v0, %v15844_v14 }
 0x574   : > { %12938 = vmatpush2.bf16.msra.mxu1 %v18871_v8  ;;  %12886 = vmatprep.subr.bf16.mxu0 %v18876_v28  ;;  %v9990_v8 = vcombine.low %v15848_v10, %v15852_v57  ;;  %v9989_v28 = vcombine.high %v15840_v0, %v15844_v14  ;;  %v22265_v0 = vcombine.low %v22143_v60, %v22146_v50 }
 0x575   : > { %12939 = vmatprep.subr.bf16.mxu1 %v18879_v35  ;;  %v9991_v35 = vcombine.high %v15848_v10, %v15852_v57  ;;  %v22269_v14 = vcombine.low %v22149_v11, %v22157_v23  ;;  %v18904_v10 = vld [vmem:[%s19998_s16 + $0x2ce0] ss:$16 sps:$4 sm:$0xff]  }
 0x576   : > { %v18907_v57 = vld [vmem:[%s19998_s16 + $0x2ee0] ss:$16 sps:$4 sm:$0xff]  }
 0x577   : > { %12887 = vmatpush2.bf16.msra.mxu0 %v18874_v5  ;;  %v18898_v5 = vld [vmem:[%s19998_s16 + $0x2900] ss:$16 sps:$4 sm:$0xff]  }
 0x578   : > { %12940 = vmatpush2.bf16.msra.mxu1 %v18877_v34  ;;  %12888 = vmatprep.subr.bf16.mxu0 %v18882_v4  ;;  %v18901_v34 = vld [vmem:[%s19998_s16 + $0x2b00] ss:$16 sps:$4 sm:$0xff]   ;;  %v18906_v4 = vld [vmem:[%s19998_s16 + $0x2ce4] ss:$16 sps:$4 sm:$0xff]  }
 0x579   : > { %12941 = vmatprep.subr.bf16.mxu1 %v18885_v16  ;;  %v18909_v16 = vld [vmem:[%s19998_s16 + $0x2ee4] ss:$16 sps:$4 sm:$0xff]  }
 0x57b   : > { %12889 = vmatpush2.bf16.msra.mxu0 %v18880_v1  ;;  %v15825_v1 = vld [vmem:[%s19990_s0 + $0x58] sm:$0xff] }
 0x57c   : > { %12942 = vmatpush2.bf16.msra.mxu1 %v18883_v12  ;;  %12890 = vmatprep.subr.bf16.mxu0 %v18888_v36  ;;  %v9998_v12 = vrot.slane %v9988_v49, %v20083_v55  ;;  %v10012_v36 = vrot.slane %v9990_v8, %v20083_v55 }
 0x57d   : > { %12943 = vmatprep.subr.bf16.mxu1 %v18891_v42  ;;  %v10005_v42 = vrot.slane %v9989_v28, %v20083_v55 }
 0x57e   : > { %v22275_v60 = vcombine.high %v9998_v12, %v10012_v36 }
 0x57f   : > { %12891 = vmatpush2.bf16.msra.mxu0 %v18886_v63  ;;  %v10019_v63 = vrot.slane %v9991_v35, %v20083_v55 }
 0x580   : > { %12944 = vmatpush2.bf16.msra.mxu1 %v18889_v15  ;;  %12892 = vmatprep.subr.bf16.mxu0 %v18894_v45  ;;  %v15829_v15 = vld [vmem:[%s19990_s0 + $0x78] sm:$0xff] }
 0x581   : > { %12945 = vmatprep.subr.bf16.mxu1 %v18897_v29  ;;  %v15833_v45 = vld [vmem:[%s19990_s0 + $0x98] sm:$0xff]  ;;  %v9881_v8 = vcombine.high %v15825_v1, %v15829_v15  ;;  %v22277_v50 = vcombine.high %v10005_v42, %v10019_v63 }
 0x582   : > { %v15837_v29 = vld [vmem:[%s19990_s0 + $0xb8] sm:$0xff] }
 0x583   : > { %12893 = vmatpush2.bf16.msra.mxu0 %v18892_v20  ;;  %v538_v20 = vld [vmem:[#allocation2 + $0x58] sm:$0xff]  ;;  %v9882_v49 = vcombine.low %v15833_v45, %v15837_v29  ;;  %v9883_v11 = vcombine.high %v15833_v45, %v15837_v29  ;;  %v18918_v45 = vld [vmem:[%s19998_s16 + $0x2ca4] ss:$16 sps:$4 sm:$0xff]  }
 0x584   : > { %12946 = vmatpush2.bf16.msra.mxu1 %v18895_v48  ;;  %12894 = vmatprep.subr.bf16.mxu0 %v18900_v26  ;;  %v18912_v48 = vld [vmem:[%s19998_s16 + $0x2cc4] ss:$16 sps:$4 sm:$0xff]   ;;  %v4858_v35 = vadd.f32 %v21334_v13, %v538_v20  ;;  %v22294_v13 = vrot.slane %v9881_v8, %v20083_v55  ;;  %v22303_v8 = vcombine.low %v9998_v12, %v10012_v36 }
 0x585   : > { %12947 = vmatprep.subr.bf16.mxu1 %v18903_v51  ;;  %v18915_v26 = vld [vmem:[%s19998_s16 + $0x2ec4] ss:$16 sps:$4 sm:$0xff]   ;;  %v9880_v51 = vcombine.low %v15825_v1, %v15829_v15  ;;  %v22291_v21 = vrot.slane %v9882_v49, %v20083_v55  ;;  %v22300_v20 = vrot.slane %v9883_v11, %v20083_v55  ;;  %v18919_v11 = vld [vmem:[%s19998_s16 + $0x2ea0] ss:$16 sps:$4 sm:$0xff]  }
 0x586   : > { %v18921_v29 = vld [vmem:[%s19998_s16 + $0x2ea4] ss:$16 sps:$4 sm:$0xff]  }
 0x587   : > { %12895 = vmatpush2.bf16.msra.mxu0 %v18898_v5  ;;  %v539_v5 = vld [vmem:[#allocation2 + $0x18] sm:$0xff]  ;;  %v22288_v27 = vrot.slane %v9880_v51, %v20083_v55  ;;  %v18927_v12 = vld [vmem:[%s19998_s16 + $0x2e84] ss:$16 sps:$4 sm:$0xff]  }
 0x588   : > { %12948 = vmatpush2.bf16.msra.mxu1 %v18901_v34  ;;  %12970 = vmatprep.subr.bf16.mxu0 %v18906_v4  ;;  %v18910_v4 = vld [vmem:[%s19998_s16 + $0x2cc0] ss:$16 sps:$4 sm:$0xff]  }
 0x589   : > { %13023 = vmatprep.subr.bf16.mxu1 %v18909_v16  ;;  %v18913_v16 = vld [vmem:[%s19998_s16 + $0x2ec0] ss:$16 sps:$4 sm:$0xff]   ;;  %v22317_v36 = vcombine.high %v22288_v27, %v22291_v21 }
 0x58a   : > { %v9106_v23 = vpop.f32.mrf.mxu0  ;;  %12897 = vmatmul.mubr.bf16.vlgmr.msra.gmra.mxu0 %v22265_v0 }
 0x58b   : > { %v9159_v28 = vpop.f32.mrf.mxu1  ;;  %12950 = vmatmul.mubr.bf16.vlgmr.msra.gmra.mxu1 %v22269_v14  ;;  %v9107_v34 = vadd.f32 %v9106_v23, %v22151_v18  ;;  %12971 = vmatpush1.bf16.msra.mxu0 %v18904_v10  ;;  %v542_v18 = vld [vmem:[#allocation2 + $0x8] sm:$0xff]  ;;  %v22305_v23 = vcombine.low %v10005_v42, %v10019_v63 }
 0x58c   : > { %13024 = vmatpush1.bf16.msra.mxu1 %v18907_v57  ;;  %v9108_v1 = vpop.f32.mrf.mxu0  ;;  %12972 = vmatprep.subr.bf16.mxu0 %v18912_v48  ;;  %v23242_v48 = vld [vmem:[#allocation68_spill] sm:$0xff]  ;;  %v4862_v39 = vadd.f32 %v23243_v59, %v542_v18  ;;  %v22324_v59 = vcombine.high %v22294_v13, %v22300_v20 }
 0x58d   : > { %v9161_v15 = vpop.f32.mrf.mxu1  ;;  %13025 = vmatprep.subr.bf16.mxu1 %v18915_v26  ;;  %v9160_v10 = vadd.f32 %v9159_v28, %v9107_v34  ;;  %v9109_v57 = vadd.f32 %v9108_v1, %v22163_v44  ;;  %12906 = vmatprep.mubr.bf16.mxu0 %v22275_v60  ;;  %v4859_v26 = vadd.f32 %v23242_v48, %v539_v5  ;;  %v18916_v1 = vld [vmem:[%s19998_s16 + $0x2ca0] ss:$16 sps:$4 sm:$0xff]  }
 0x58e   : > { %12959 = vmatprep.mubr.bf16.mxu1 %v22277_v50  ;;  %v9110_v51 = vpop.f32.mrf.mxu0  ;;  %v18922_v18 = vld [vmem:[%s19998_s16 + $0x2c80] ss:$16 sps:$4 sm:$0xff]  }
 0x58f   : > { %v9163_v49 = vpop.f32.mrf.mxu1  ;;  %v22307_v28 = vadd.f32 %v9160_v10, %v4858_v35  ;;  %v9162_v44 = vadd.f32 %v9161_v15, %v9109_v57  ;;  %v9111_v34 = vadd.f32 %v9110_v51, %v22170_v17  ;;  %12973 = vmatpush1.bf16.msra.mxu0 %v18910_v4  ;;  %v546_v35 = vld [vmem:[#allocation2 + $0x10] sm:$0xff]  ;;  %v547_v15 = vld [vmem:[#allocation2 + $0x38] sm:$0xff] }
 0x590   : > { %13026 = vmatpush1.bf16.msra.mxu1 %v18913_v16  ;;  %v9112_v5 = vpop.f32.mrf.mxu0  ;;  %12974 = vmatprep.subr.bf16.mxu0 %v18918_v45  ;;  %v18925_v10 = vld [vmem:[%s19998_s16 + $0x2e80] ss:$16 sps:$4 sm:$0xff]   ;;  %v18930_v51 = vld [vmem:[%s19998_s16 + $0x2c64] ss:$16 sps:$4 sm:$0xff]  }
 0x591   : > { %v9165_v48 = vpop.f32.mrf.mxu1  ;;  %13027 = vmatprep.subr.bf16.mxu1 %v18921_v29  ;;  %v22319_v42 = vadd.f32 %v9162_v44, %v4859_v26  ;;  %v9164_v17 = vadd.f32 %v9163_v49, %v9111_v34  ;;  %v9113_v63 = vadd.f32 %v9112_v5, %v22183_v58  ;;  %v18933_v49 = vld [vmem:[%s19998_s16 + $0x2e64] ss:$16 sps:$4 sm:$0xff]  }
 0x592   : > { %v9116_v4 = vpop.f32.mrf.mxu0  ;;  %12907 = vmatmul.mubr.bf16.gmra.mxu0 %v22303_v8  ;;  %v23246_v44 = vld [vmem:[#allocation72_spill] sm:$0xff] }
 0x593   : > { %v9169_v16 = vpop.f32.mrf.mxu1  ;;  %12960 = vmatmul.mubr.bf16.gmra.mxu1 %v22305_v23  ;;  %v22328_v45 = vadd.f32 %v9164_v17, %v4862_v39  ;;  %v22330_v29 = vadd.f32 %v9165_v48, %v9113_v63  ;;  %v9117_v58 = vadd.f32 %v9116_v4, %v22191_v19  ;;  %12975 = vmatpush1.bf16.msra.mxu0 %v18916_v1  ;;  %v23247_v19 = vld [vmem:[#allocation73_spill] sm:$0xff] }
 0x594   : > { %13028 = vmatpush1.bf16.msra.mxu1 %v18919_v11  ;;  %v9118_v57 = vpop.f32.mrf.mxu0  ;;  %12976 = vmatprep.subr.bf16.mxu0 %v18924_v40  ;;  %v4866_v34 = vadd.f32 %v23246_v44, %v546_v35  ;;  %v4867_v1 = vadd.f32 %v23247_v19, %v547_v15  ;;  %v550_v11 = vld [vmem:[#allocation2 + $0x78] sm:$0xff]  ;;  %v18931_v35 = vld [vmem:[%s19998_s16 + $0x2e60] ss:$16 sps:$4 sm:$0xff]   ;;  %v18936_v15 = vld [vmem:[%s19998_s16 + $0x2c44] ss:$16 sps:$4 sm:$0xff]  }
 0x595   : > { %23244 = vst [vmem:[#allocation68_spill] sm:$0xff] %v22328_v45  ;;  %23245 = vst [vmem:[#allocation71_spill] sm:$0xff] %v22330_v29  ;;  %v9171_v26 = vpop.f32.mrf.mxu1  ;;  %13029 = vmatprep.subr.bf16.mxu1 %v18927_v12  ;;  %v9119_v39 = vadd.f32 %v9118_v57, %v22196_v32  ;;  %v9170_v5 = vadd.f32 %v9169_v16, %v9117_v58  ;;  %13002 = vmatprep.mubr.bf16.mxu0 %v22317_v36  ;;  %v18928_v32 = vld [vmem:[%s19998_s16 + $0x2c60] ss:$16 sps:$4 sm:$0xff]   ;;  %v18939_v58 = vld [vmem:[%s19998_s16 + $0x2e44] ss:$16 sps:$4 sm:$0xff]  }
 0x596   : > { %13055 = vmatprep.mubr.bf16.mxu1 %v22324_v59  ;;  %v9120_v40 = vpop.f32.mrf.mxu0  ;;  %v23249_v57 = vld [vmem:[#allocation74_spill] sm:$0xff] }
 0x597   : > { %v9173_v48 = vpop.f32.mrf.mxu1  ;;  %v22342_v12 = vadd.f32 %v9170_v5, %v4866_v34  ;;  %v9121_v17 = vadd.f32 %v9120_v40, %v22203_v43  ;;  %v9172_v63 = vadd.f32 %v9171_v26, %v9119_v39  ;;  %12977 = vmatpush1.bf16.msra.mxu0 %v18922_v18  ;;  %v4870_v44 = vadd.f32 %v23249_v57, %v550_v11  ;;  %v18942_v39 = vld [vmem:[%s19998_s16 + $0x2c24] ss:$16 sps:$4 sm:$0xff]   ;;  %v18943_v19 = vld [vmem:[%s19998_s16 + $0x2e20] ss:$16 sps:$4 sm:$0xff]  }
 0x598   : > { %13030 = vmatpush1.bf16.msra.mxu1 %v18925_v10  ;;  %v9122_v4 = vpop.f32.mrf.mxu0  ;;  %12978 = vmatprep.subr.bf16.mxu0 %v18930_v51  ;;  %v18934_v51 = vld [vmem:[%s19998_s16 + $0x2c40] ss:$16 sps:$4 sm:$0xff]   ;;  %v18945_v5 = vld [vmem:[%s19998_s16 + $0x2e24] ss:$16 sps:$4 sm:$0xff]  }
 0x599   : > { %23248 = vst [vmem:[#allocation72_spill] sm:$0xff] %v22342_v12  ;;  %v9175_v16 = vpop.f32.mrf.mxu1  ;;  %13031 = vmatprep.subr.bf16.mxu1 %v18933_v49  ;;  %v22350_v34 = vadd.f32 %v9172_v63, %v4867_v1  ;;  %v9123_v43 = vadd.f32 %v9122_v4, %v22205_v9  ;;  %v9174_v18 = vadd.f32 %v9173_v48, %v9121_v17  ;;  %v18937_v49 = vld [vmem:[%s19998_s16 + $0x2e40] ss:$16 sps:$4 sm:$0xff]   ;;  %v18948_v1 = vld [vmem:[%s19998_s16 + $0x2c04] ss:$16 sps:$4 sm:$0xff]  }
 0x59a   : > { %v18940_v9 = vld [vmem:[%s19998_s16 + $0x2c20] ss:$16 sps:$4 sm:$0xff]   ;;  %v18951_v11 = vld [vmem:[%s19998_s16 + $0x2e04] ss:$16 sps:$4 sm:$0xff]  }
 0x59b   : > { %23250 = vst [vmem:[#allocation73_spill] sm:$0xff] %v22350_v34  ;;  %v22353_v10 = vadd.f32 %v9174_v18, %v4870_v44  ;;  %v22355_v26 = vadd.f32 %v9175_v16, %v9123_v43  ;;  %12979 = vmatpush1.bf16.msra.mxu0 %v18928_v32  ;;  %v18946_v40 = vld [vmem:[%s19998_s16 + $0x2c00] ss:$16 sps:$4 sm:$0xff]   ;;  %v18954_v17 = vld [vmem:[%s19998_s16 + $0x2de4] ss:$16 sps:$4 sm:$0xff]  }
 0x59c   : > { %13032 = vmatpush1.bf16.msra.mxu1 %v18931_v35  ;;  %12980 = vmatprep.subr.bf16.mxu0 %v18936_v15  ;;  %v18949_v48 = vld [vmem:[%s19998_s16 + $0x2e00] ss:$16 sps:$4 sm:$0xff]   ;;  %v18957_v63 = vld [vmem:[%s19998_s16 + $0x2fe4] ss:$16 sps:$4 sm:$0xff]  }
 0x59d   : > { %23251 = vst [vmem:[#allocation74_spill] sm:$0xff] %v22353_v10  ;;  %23252 = vst [vmem:[#allocation82_spill] sm:$0xff] %v22355_v26  ;;  %13033 = vmatprep.subr.bf16.mxu1 %v18939_v58  ;;  %v18952_v32 = vld [vmem:[%s19998_s16 + $0x2de0] ss:$16 sps:$4 sm:$0xff]   ;;  %v18960_v4 = vld [vmem:[%s19998_s16 + $0x2dc4] ss:$16 sps:$4 sm:$0xff]  }
 0x59e   : > { %v18955_v35 = vld [vmem:[%s19998_s16 + $0x2fe0] ss:$16 sps:$4 sm:$0xff]   ;;  %v18963_v16 = vld [vmem:[%s19998_s16 + $0x2fc4] ss:$16 sps:$4 sm:$0xff]   ;;  %v23287_v26 = vld [vmem:[#allocation59_spill] sm:$0xff] }
 0x59f   : > { %12981 = vmatpush1.bf16.msra.mxu0 %v18934_v51  ;;  %v18958_v15 = vld [vmem:[%s19998_s16 + $0x2dc0] ss:$16 sps:$4 sm:$0xff]   ;;  %v18966_v57 = vld [vmem:[%s19998_s16 + $0x2da4] ss:$16 sps:$4 sm:$0xff]  }
 0x5a0   : > { %13034 = vmatpush1.bf16.msra.mxu1 %v18937_v49  ;;  %12982 = vmatprep.subr.bf16.mxu0 %v18942_v39  ;;  %v18961_v58 = vld [vmem:[%s19998_s16 + $0x2fc0] ss:$16 sps:$4 sm:$0xff]   ;;  %v18969_v44 = vld [vmem:[%s19998_s16 + $0x2fa4] ss:$16 sps:$4 sm:$0xff]  }
 0x5a1   : > { %13035 = vmatprep.subr.bf16.mxu1 %v18945_v5  ;;  %v18964_v43 = vld [vmem:[%s19998_s16 + $0x2da0] ss:$16 sps:$4 sm:$0xff]   ;;  %v18972_v51 = vld [vmem:[%s19998_s16 + $0x2d84] ss:$16 sps:$4 sm:$0xff]  }
 0x5a2   : > { %v18967_v18 = vld [vmem:[%s19998_s16 + $0x2fa0] ss:$16 sps:$4 sm:$0xff]   ;;  %v18975_v49 = vld [vmem:[%s19998_s16 + $0x2f84] ss:$16 sps:$4 sm:$0xff]  }
 0x5a3   : > { %12983 = vmatpush1.bf16.msra.mxu0 %v18940_v9  ;;  %v18970_v39 = vld [vmem:[%s19998_s16 + $0x2d80] ss:$16 sps:$4 sm:$0xff]   ;;  %v18978_v9 = vld [vmem:[%s19998_s16 + $0x2d64] ss:$16 sps:$4 sm:$0xff]  }
 0x5a4   : > { %13036 = vmatpush1.bf16.msra.mxu1 %v18943_v19  ;;  %12984 = vmatprep.subr.bf16.mxu0 %v18948_v1  ;;  %v18973_v5 = vld [vmem:[%s19998_s16 + $0x2f80] ss:$16 sps:$4 sm:$0xff]   ;;  %v18981_v19 = vld [vmem:[%s19998_s16 + $0x2f64] ss:$16 sps:$4 sm:$0xff]  }
 0x5a5   : > { %13037 = vmatprep.subr.bf16.mxu1 %v18951_v11  ;;  %v18976_v1 = vld [vmem:[%s19998_s16 + $0x2d60] ss:$16 sps:$4 sm:$0xff]  }
 0x5a6   : > { %v18979_v11 = vld [vmem:[%s19998_s16 + $0x2f60] ss:$16 sps:$4 sm:$0xff]  }
 0x5a7   : > { %12985 = vmatpush1.bf16.msra.mxu0 %v18946_v40  ;;  %v18984_v40 = vld [vmem:[%s19998_s16 + $0x2d44] ss:$16 sps:$4 sm:$0xff]  }
 0x5a8   : > { %13038 = vmatpush1.bf16.msra.mxu1 %v18949_v48  ;;  %12986 = vmatprep.subr.bf16.mxu0 %v18954_v17  ;;  %v18987_v48 = vld [vmem:[%s19998_s16 + $0x2f44] ss:$16 sps:$4 sm:$0xff]   ;;  %v18982_v17 = vld [vmem:[%s19998_s16 + $0x2d40] ss:$16 sps:$4 sm:$0xff]  }
 0x5a9   : > { %13039 = vmatprep.subr.bf16.mxu1 %v18957_v63  ;;  %v18985_v63 = vld [vmem:[%s19998_s16 + $0x2f40] ss:$16 sps:$4 sm:$0xff]  }
 0x5aa   : > { %v23286_v10 = vld [vmem:[#allocation58_spill] sm:$0xff] }
 0x5ab   : > { %12987 = vmatpush2.bf16.msra.mxu0 %v18952_v32  ;;  %v18990_v32 = vld [vmem:[%s19998_s16 + $0x2d24] ss:$16 sps:$4 sm:$0xff]   ;;  %v4536_v34 = vadd.f32 %v23287_v26, %v23286_v10  ;;  %v23291_v26 = vld [vmem:[#allocation63_spill] sm:$0xff] }
 0x5ac   : > { %13040 = vmatpush2.bf16.msra.mxu1 %v18955_v35  ;;  %12988 = vmatprep.subr.bf16.mxu0 %v18960_v4  ;;  %v18993_v35 = vld [vmem:[%s19998_s16 + $0x2f24] ss:$16 sps:$4 sm:$0xff]   ;;  %v15841_v4 = vld [vmem:[%s19990_s0 + $0x118] sm:$0xff] }
 0x5ad   : > { %13041 = vmatprep.subr.bf16.mxu1 %v18963_v16  ;;  %v15845_v16 = vld [vmem:[%s19990_s0 + $0x138] sm:$0xff]  ;;  %v23289_v45 = vld [vmem:[#allocation62_spill] sm:$0xff] }
 0x5ae   : > { %v4589_v29 = vadd.f32 %v23289_v45, %v4536_v34 }
 0x5af   : > { %12989 = vmatpush2.bf16.msra.mxu0 %v18958_v15  ;;  %v15849_v15 = vld [vmem:[%s19990_s0 + $0x158] sm:$0xff] }
 0x5b0   : > { %13042 = vmatpush2.bf16.msra.mxu1 %v18961_v58  ;;  %12990 = vmatprep.subr.bf16.mxu0 %v18966_v57  ;;  %v15853_v58 = vld [vmem:[%s19990_s0 + $0x178] sm:$0xff]  ;;  %v18988_v57 = vld [vmem:[%s19998_s16 + $0x2d20] ss:$16 sps:$4 sm:$0xff]   ;;  %s23304_s0 = sld [smem:[#allocation27_spill]] }
 0x5b1   : > { %13043 = vmatprep.subr.bf16.mxu1 %v18969_v44  ;;  %v18991_v44 = vld [vmem:[%s19998_s16 + $0x2f20] ss:$16 sps:$4 sm:$0xff]  }
 0x5b3   : > { %12991 = vmatpush2.bf16.msra.mxu0 %v18964_v43  ;;  %v18996_v43 = vld [vmem:[%s19998_s16 + $0x2d04] ss:$16 sps:$4 sm:$0xff]  }
 0x5b4   : > { %13044 = vmatpush2.bf16.msra.mxu1 %v18967_v18  ;;  %12992 = vmatprep.subr.bf16.mxu0 %v18972_v51  ;;  %v18999_v18 = vld [vmem:[%s19998_s16 + $0x2f04] ss:$16 sps:$4 sm:$0xff]   ;;  %v10024_v51 = vcombine.low %v15841_v4, %v15845_v16 }
 0x5b5   : > { %13045 = vmatprep.subr.bf16.mxu1 %v18975_v49  ;;  %v10026_v49 = vcombine.low %v15849_v15, %v15853_v58 }
 0x5b6   : > { %p16878_p0 = scmp.ge.s32.totalorder %s23304_s0, 2 }
 0x5b7   : > { %12993 = vmatpush2.bf16.msra.mxu0 %v18970_v39  ;;  %v10025_v39 = vcombine.high %v15841_v4, %v15845_v16  ;;  %v19000_v4 = vld [vmem:[%s19998_s16 + $0x20e8] ss:$16 sps:$4 sm:$0xff]  }
 0x5b8   : > { %13046 = vmatpush2.bf16.msra.mxu1 %v18973_v5  ;;  %12994 = vmatprep.subr.bf16.mxu0 %v18978_v9  ;;  %v10027_v5 = vcombine.high %v15849_v15, %v15853_v58  ;;  %v18994_v9 = vld [vmem:[%s19998_s16 + $0x2d00] ss:$16 sps:$4 sm:$0xff]   ;;  %v19003_v16 = vld [vmem:[%s19998_s16 + $0x22e8] ss:$16 sps:$4 sm:$0xff]   ;;  %v19008_v15 = vld [vmem:[%s19998_s16 + $0x20cc] ss:$16 sps:$4 sm:$0xff]  }
 0x5b9   : > { %13047 = vmatprep.subr.bf16.mxu1 %v18981_v19  ;;  %v18997_v19 = vld [vmem:[%s19998_s16 + $0x2f00] ss:$16 sps:$4 sm:$0xff]   ;;  %v19011_v58 = vld [vmem:[%s19998_s16 + $0x22cc] ss:$16 sps:$4 sm:$0xff]  }
 0x5bb   : > { %12995 = vmatpush2.bf16.msra.mxu0 %v18976_v1  ;;  %v19002_v1 = vld [vmem:[%s19998_s16 + $0x20ec] ss:$16 sps:$4 sm:$0xff]  }
 0x5bc   : > { %13048 = vmatpush2.bf16.msra.mxu1 %v18979_v11  ;;  %12996 = vmatprep.subr.bf16.mxu0 %v18984_v40  ;;  %v19005_v11 = vld [vmem:[%s19998_s16 + $0x22ec] ss:$16 sps:$4 sm:$0xff]   ;;  %v10034_v40 = vrot.slane %v10024_v51, %v20083_v55 }
 0x5bd   : > { %13049 = vmatprep.subr.bf16.mxu1 %v18987_v48  ;;  %v10048_v48 = vrot.slane %v10026_v49, %v20083_v55  ;;  %v19014_v49 = vld [vmem:[%s19998_s16 + $0x20ac] ss:$16 sps:$4 sm:$0xff]  }
 0x5bf   : > { %12997 = vmatpush2.bf16.msra.mxu0 %v18982_v17  ;;  %v10041_v17 = vrot.slane %v10025_v39, %v20083_v55  ;;  %v19017_v39 = vld [vmem:[%s19998_s16 + $0x22ac] ss:$16 sps:$4 sm:$0xff]  }
 0x5c0   : > { %13050 = vmatpush2.bf16.msra.mxu1 %v18985_v63  ;;  %12998 = vmatprep.subr.bf16.mxu0 %v18990_v32  ;;  %v10055_v63 = vrot.slane %v10027_v5, %v20083_v55  ;;  %v22411_v32 = vcombine.low %v22288_v27, %v22291_v21 }
 0x5c1   : > { %13051 = vmatprep.subr.bf16.mxu1 %v18993_v35  ;;  %v22415_v35 = vcombine.low %v22294_v13, %v22300_v20  ;;  %v19006_v20 = vld [vmem:[%s19998_s16 + $0x20c8] ss:$16 sps:$4 sm:$0xff]  }
 0x5c2   : > { %v22423_v27 = vcombine.high %v10041_v17, %v10055_v63 }
 0x5c3   : > { %12999 = vmatpush2.bf16.msra.mxu0 %v18988_v57  ;;  %v22421_v57 = vcombine.high %v10034_v40, %v10048_v48 }
 0x5c4   : > { %13052 = vmatpush2.bf16.msra.mxu1 %v18991_v44  ;;  %13000 = vmatprep.subr.bf16.mxu0 %v18996_v43  ;;  %v19009_v43 = vld [vmem:[%s19998_s16 + $0x22c8] ss:$16 sps:$4 sm:$0xff]  }
 0x5c5   : > { %13053 = vmatprep.subr.bf16.mxu1 %v18999_v18 }
 0x5c7   : > { %13001 = vmatpush2.bf16.msra.mxu0 %v18994_v9 }
 0x5c8   : > { %13054 = vmatpush2.bf16.msra.mxu1 %v18997_v19  ;;  %13076 = vmatprep.subr.bf16.mxu0 %v19002_v1  ;;  %v22437_v1 = vcombine.low %v10034_v40, %v10048_v48 }
 0x5c9   : > { %13129 = vmatprep.subr.bf16.mxu1 %v19005_v11  ;;  %v22439_v11 = vcombine.low %v10041_v17, %v10055_v63  ;;  %v19018_v63 = vld [vmem:[%s19998_s16 + $0x2088] ss:$16 sps:$4 sm:$0xff]  }
 0x5ca   : > { %v12686_v21 = vpop.f32.mrf.mxu0  ;;  %13003 = vmatmul.mubr.bf16.vlgmr.msra.gmra.mxu0 %v22411_v32 }
 0x5cb   : > { %v12739_v44 = vpop.f32.mrf.mxu1  ;;  %13056 = vmatmul.mubr.bf16.vlgmr.msra.gmra.mxu1 %v22415_v35  ;;  %13077 = vmatpush1.bf16.msra.mxu0 %v19000_v4 }
 0x5cc   : > { %v22427_v13 = vadd.f32 %v12739_v44, %v12686_v21  ;;  %13130 = vmatpush1.bf16.msra.mxu1 %v19003_v16  ;;  %v12688_v18 = vpop.f32.mrf.mxu0  ;;  %13078 = vmatprep.subr.bf16.mxu0 %v19008_v15  ;;  %v19012_v16 = vld [vmem:[%s19998_s16 + $0x20a8] ss:$16 sps:$4 sm:$0xff]   ;;  %v19020_v44 = vld [vmem:[%s19998_s16 + $0x208c] ss:$16 sps:$4 sm:$0xff]  }
 0x5cd   : > { %v12741_v51 = vpop.f32.mrf.mxu1  ;;  %13131 = vmatprep.subr.bf16.mxu1 %v19011_v58  ;;  %13012 = vmatprep.mubr.bf16.mxu0 %v22421_v57  ;;  %v19015_v15 = vld [vmem:[%s19998_s16 + $0x22a8] ss:$16 sps:$4 sm:$0xff]  }
 0x5ce   : > { %v22433_v5 = vadd.f32 %v12741_v51, %v12688_v18  ;;  %13065 = vmatprep.mubr.bf16.mxu1 %v22423_v27  ;;  %v12690_v9 = vpop.f32.mrf.mxu0  ;;  %v19023_v18 = vld [vmem:[%s19998_s16 + $0x228c] ss:$16 sps:$4 sm:$0xff]  }
 0x5cf   : > { %v12743_v19 = vpop.f32.mrf.mxu1  ;;  %13079 = vmatpush1.bf16.msra.mxu0 %v19006_v20  ;;  %v19021_v20 = vld [vmem:[%s19998_s16 + $0x2288] ss:$16 sps:$4 sm:$0xff]   ;;  %v19026_v51 = vld [vmem:[%s19998_s16 + $0x206c] ss:$16 sps:$4 sm:$0xff]  }
 0x5d0   : > { %v22441_v4 = vadd.f32 %v12743_v19, %v12690_v9  ;;  %13132 = vmatpush1.bf16.msra.mxu1 %v19009_v43  ;;  %v12692_v58 = vpop.f32.mrf.mxu0  ;;  %13080 = vmatprep.subr.bf16.mxu0 %v19014_v49  ;;  %v19029_v49 = vld [vmem:[%s19998_s16 + $0x226c] ss:$16 sps:$4 sm:$0xff]  }
 0x5d1   : > { %v12745_v21 = vpop.f32.mrf.mxu1  ;;  %13133 = vmatprep.subr.bf16.mxu1 %v19017_v39 }
 0x5d2   : > { %v22447_v40 = vadd.f32 %v12745_v21, %v12692_v58  ;;  %13013 = vmatmul.mubr.bf16.gmra.mxu0 %v22437_v1  ;;  %v12696_v48 = vpop.f32.mrf.mxu0  ;;  %v19024_v58 = vld [vmem:[%s19998_s16 + $0x2068] ss:$16 sps:$4 sm:$0xff]  }
 0x5d3   : > { %13066 = vmatmul.mubr.bf16.gmra.mxu1 %v22439_v11  ;;  %v12749_v17 = vpop.f32.mrf.mxu1  ;;  %13081 = vmatpush1.bf16.msra.mxu0 %v19012_v16  ;;  %v19027_v21 = vld [vmem:[%s19998_s16 + $0x2268] ss:$16 sps:$4 sm:$0xff]  }
 0x5d4   : > { %13134 = vmatpush1.bf16.msra.mxu1 %v19015_v15  ;;  %v22453_v43 = vadd.f32 %v12749_v17, %v12696_v48  ;;  %13082 = vmatprep.subr.bf16.mxu0 %v19020_v44  ;;  %v12698_v39 = vpop.f32.mrf.mxu0 }
 0x5d5   : > { %13135 = vmatprep.subr.bf16.mxu1 %v19023_v18  ;;  %v12751_v9 = vpop.f32.mrf.mxu1  ;;  %13108 = vmatprep.mubr.bf16.mxu0 %v21893_v62  ;;  %v19032_v18 = vld [vmem:[%s19998_s16 + $0x204c] ss:$16 sps:$4 sm:$0xff]  }
 0x5d6   : > { %v22457_v19 = vadd.f32 %v12751_v9, %v12698_v39  ;;  %13161 = vmatprep.mubr.bf16.mxu1 %v21897_v6  ;;  %v12700_v16 = vpop.f32.mrf.mxu0  ;;  %v19035_v62 = vld [vmem:[%s19998_s16 + $0x224c] ss:$16 sps:$4 sm:$0xff]   ;;  %v19036_v39 = vld [vmem:[%s19998_s16 + $0x2028] ss:$16 sps:$4 sm:$0xff]  }
 0x5d7   : > { %v12753_v15 = vpop.f32.mrf.mxu1  ;;  %13083 = vmatpush1.bf16.msra.mxu0 %v19018_v63  ;;  %v19030_v63 = vld [vmem:[%s19998_s16 + $0x2048] ss:$16 sps:$4 sm:$0xff]  }
 0x5d8   : > { %13136 = vmatpush1.bf16.msra.mxu1 %v19021_v20  ;;  %v22463_v44 = vadd.f32 %v12753_v15, %v12700_v16  ;;  %13084 = vmatprep.subr.bf16.mxu0 %v19026_v51  ;;  %v12702_v48 = vpop.f32.mrf.mxu0  ;;  %v19033_v20 = vld [vmem:[%s19998_s16 + $0x2248] ss:$16 sps:$4 sm:$0xff]   ;;  %v19038_v51 = vld [vmem:[%s19998_s16 + $0x202c] ss:$16 sps:$4 sm:$0xff]  }
 0x5d9   : > { %13137 = vmatprep.subr.bf16.mxu1 %v19029_v49  ;;  %v12755_v6 = vpop.f32.mrf.mxu1  ;;  %v19041_v49 = vld [vmem:[%s19998_s16 + $0x222c] ss:$16 sps:$4 sm:$0xff]   ;;  %v19039_v9 = vld [vmem:[%s19998_s16 + $0x2228] ss:$16 sps:$4 sm:$0xff]  }
 0x5da   : > { %v22467_v17 = vadd.f32 %v12755_v6, %v12702_v48  ;;  %v19044_v16 = vld [vmem:[%s19998_s16 + $0x200c] ss:$16 sps:$4 sm:$0xff]   ;;  %v19048_v48 = vld [vmem:[%s19998_s16 + $0x21e8] ss:$16 sps:$4 sm:$0xff]  }
 0x5db   : > { %13085 = vmatpush1.bf16.msra.mxu0 %v19024_v58  ;;  %v19047_v15 = vld [vmem:[%s19998_s16 + $0x220c] ss:$16 sps:$4 sm:$0xff]   ;;  %v19042_v58 = vld [vmem:[%s19998_s16 + $0x2008] ss:$16 sps:$4 sm:$0xff]  }
 0x5dc   : > { %13138 = vmatpush1.bf16.msra.mxu1 %v19027_v21  ;;  %13086 = vmatprep.subr.bf16.mxu0 %v19032_v18  ;;  %v19045_v21 = vld [vmem:[%s19998_s16 + $0x2208] ss:$16 sps:$4 sm:$0xff]   ;;  %v19050_v18 = vld [vmem:[%s19998_s16 + $0x21ec] ss:$16 sps:$4 sm:$0xff]  }
 0x5dd   : > { %13139 = vmatprep.subr.bf16.mxu1 %v19035_v62  ;;  %v19053_v62 = vld [vmem:[%s19998_s16 + $0x23ec] ss:$16 sps:$4 sm:$0xff]   ;;  %v19051_v6 = vld [vmem:[%s19998_s16 + $0x23e8] ss:$16 sps:$4 sm:$0xff]  }
 0x5df   : > { %13087 = vmatpush1.bf16.msra.mxu0 %v19030_v63  ;;  %v19056_v63 = vld [vmem:[%s19998_s16 + $0x21cc] ss:$16 sps:$4 sm:$0xff]  }
 0x5e0   : > { %13140 = vmatpush1.bf16.msra.mxu1 %v19033_v20  ;;  %13088 = vmatprep.subr.bf16.mxu0 %v19038_v51  ;;  %v19059_v20 = vld [vmem:[%s19998_s16 + $0x23cc] ss:$16 sps:$4 sm:$0xff]   ;;  %v19054_v51 = vld [vmem:[%s19998_s16 + $0x21c8] ss:$16 sps:$4 sm:$0xff]  }
 0x5e1   : > { %13141 = vmatprep.subr.bf16.mxu1 %v19041_v49  ;;  %v19057_v49 = vld [vmem:[%s19998_s16 + $0x23c8] ss:$16 sps:$4 sm:$0xff]  }
 0x5e3   : > { %13089 = vmatpush1.bf16.msra.mxu0 %v19036_v39  ;;  %v19062_v39 = vld [vmem:[%s19998_s16 + $0x21ac] ss:$16 sps:$4 sm:$0xff]  }
 0x5e4   : > { %13142 = vmatpush1.bf16.msra.mxu1 %v19039_v9  ;;  %13090 = vmatprep.subr.bf16.mxu0 %v19044_v16  ;;  %v19065_v9 = vld [vmem:[%s19998_s16 + $0x23ac] ss:$16 sps:$4 sm:$0xff]   ;;  %v19060_v16 = vld [vmem:[%s19998_s16 + $0x21a8] ss:$16 sps:$4 sm:$0xff]  }
 0x5e5   : > { %13143 = vmatprep.subr.bf16.mxu1 %v19047_v15  ;;  %v19063_v15 = vld [vmem:[%s19998_s16 + $0x23a8] ss:$16 sps:$4 sm:$0xff]  }
 0x5e7   : > { %13091 = vmatpush1.bf16.msra.mxu0 %v19042_v58  ;;  %v19068_v58 = vld [vmem:[%s19998_s16 + $0x218c] ss:$16 sps:$4 sm:$0xff]  }
 0x5e8   : > { %13144 = vmatpush1.bf16.msra.mxu1 %v19045_v21  ;;  %13092 = vmatprep.subr.bf16.mxu0 %v19050_v18  ;;  %v19071_v21 = vld [vmem:[%s19998_s16 + $0x238c] ss:$16 sps:$4 sm:$0xff]   ;;  %v19066_v18 = vld [vmem:[%s19998_s16 + $0x2188] ss:$16 sps:$4 sm:$0xff]  }
 0x5e9   : > { %13145 = vmatprep.subr.bf16.mxu1 %v19053_v62  ;;  %v19069_v62 = vld [vmem:[%s19998_s16 + $0x2388] ss:$16 sps:$4 sm:$0xff]  }
 0x5eb   : > { %13093 = vmatpush2.bf16.msra.mxu0 %v19048_v48  ;;  %v19074_v48 = vld [vmem:[%s19998_s16 + $0x216c] ss:$16 sps:$4 sm:$0xff]  }
 0x5ec   : > { %13146 = vmatpush2.bf16.msra.mxu1 %v19051_v6  ;;  %13094 = vmatprep.subr.bf16.mxu0 %v19056_v63  ;;  %v19077_v6 = vld [vmem:[%s19998_s16 + $0x236c] ss:$16 sps:$4 sm:$0xff]   ;;  %v19072_v63 = vld [vmem:[%s19998_s16 + $0x2168] ss:$16 sps:$4 sm:$0xff]  }
 0x5ed   : > { %13147 = vmatprep.subr.bf16.mxu1 %v19059_v20  ;;  %v19075_v20 = vld [vmem:[%s19998_s16 + $0x2368] ss:$16 sps:$4 sm:$0xff]  }
 0x5ef   : > { %13095 = vmatpush2.bf16.msra.mxu0 %v19054_v51  ;;  %v19080_v51 = vld [vmem:[%s19998_s16 + $0x214c] ss:$16 sps:$4 sm:$0xff]  }
 0x5f0   : > { %13148 = vmatpush2.bf16.msra.mxu1 %v19057_v49  ;;  %13096 = vmatprep.subr.bf16.mxu0 %v19062_v39  ;;  %v19083_v49 = vld [vmem:[%s19998_s16 + $0x234c] ss:$16 sps:$4 sm:$0xff]   ;;  %v19078_v39 = vld [vmem:[%s19998_s16 + $0x2148] ss:$16 sps:$4 sm:$0xff]  }
 0x5f1   : > { %13149 = vmatprep.subr.bf16.mxu1 %v19065_v9  ;;  %v19081_v9 = vld [vmem:[%s19998_s16 + $0x2348] ss:$16 sps:$4 sm:$0xff]  }
 0x5f3   : > { %13097 = vmatpush2.bf16.msra.mxu0 %v19060_v16  ;;  %v19086_v16 = vld [vmem:[%s19998_s16 + $0x212c] ss:$16 sps:$4 sm:$0xff]  }
 0x5f4   : > { %13150 = vmatpush2.bf16.msra.mxu1 %v19063_v15  ;;  %13098 = vmatprep.subr.bf16.mxu0 %v19068_v58  ;;  %v19089_v15 = vld [vmem:[%s19998_s16 + $0x232c] ss:$16 sps:$4 sm:$0xff]   ;;  %v19084_v58 = vld [vmem:[%s19998_s16 + $0x2128] ss:$16 sps:$4 sm:$0xff]  }
 0x5f5   : > { %13151 = vmatprep.subr.bf16.mxu1 %v19071_v21  ;;  %v19087_v21 = vld [vmem:[%s19998_s16 + $0x2328] ss:$16 sps:$4 sm:$0xff]  }
 0x5f7   : > { %13099 = vmatpush2.bf16.msra.mxu0 %v19066_v18  ;;  %v19092_v18 = vld [vmem:[%s19998_s16 + $0x210c] ss:$16 sps:$4 sm:$0xff]  }
 0x5f8   : > { %13152 = vmatpush2.bf16.msra.mxu1 %v19069_v62  ;;  %13100 = vmatprep.subr.bf16.mxu0 %v19074_v48  ;;  %v19095_v62 = vld [vmem:[%s19998_s16 + $0x230c] ss:$16 sps:$4 sm:$0xff]   ;;  %v19090_v48 = vld [vmem:[%s19998_s16 + $0x2108] ss:$16 sps:$4 sm:$0xff]  }
 0x5f9   : > { %13153 = vmatprep.subr.bf16.mxu1 %v19077_v6  ;;  %v19093_v6 = vld [vmem:[%s19998_s16 + $0x2308] ss:$16 sps:$4 sm:$0xff]  }
 0x5fb   : > { %13101 = vmatpush2.bf16.msra.mxu0 %v19072_v63  ;;  %v19098_v63 = vld [vmem:[%s19998_s16 + $0x24ec] ss:$16 sps:$4 sm:$0xff]  }
 0x5fc   : > { %13154 = vmatpush2.bf16.msra.mxu1 %v19075_v20  ;;  %13102 = vmatprep.subr.bf16.mxu0 %v19080_v51  ;;  %v19101_v20 = vld [vmem:[%s19998_s16 + $0x26ec] ss:$16 sps:$4 sm:$0xff]   ;;  %v19096_v51 = vld [vmem:[%s19998_s16 + $0x24e8] ss:$16 sps:$4 sm:$0xff]  }
 0x5fd   : > { %13155 = vmatprep.subr.bf16.mxu1 %v19083_v49  ;;  %v19099_v49 = vld [vmem:[%s19998_s16 + $0x26e8] ss:$16 sps:$4 sm:$0xff]  }
 0x5ff   : > { %13103 = vmatpush2.bf16.msra.mxu0 %v19078_v39  ;;  %v19104_v39 = vld [vmem:[%s19998_s16 + $0x24cc] ss:$16 sps:$4 sm:$0xff]  }
 0x600   : > { %13156 = vmatpush2.bf16.msra.mxu1 %v19081_v9  ;;  %13104 = vmatprep.subr.bf16.mxu0 %v19086_v16  ;;  %v19107_v9 = vld [vmem:[%s19998_s16 + $0x26cc] ss:$16 sps:$4 sm:$0xff]  }
 0x601   : > { %13157 = vmatprep.subr.bf16.mxu1 %v19089_v15 }
 0x603   : > { %13105 = vmatpush2.bf16.msra.mxu0 %v19084_v58 }
 0x604   : > { %13158 = vmatpush2.bf16.msra.mxu1 %v19087_v21  ;;  %13106 = vmatprep.subr.bf16.mxu0 %v19092_v18  ;;  %v19102_v21 = vld [vmem:[%s19998_s16 + $0x24c8] ss:$16 sps:$4 sm:$0xff]  }
 0x605   : > { %13159 = vmatprep.subr.bf16.mxu1 %v19095_v62  ;;  %v19105_v18 = vld [vmem:[%s19998_s16 + $0x26c8] ss:$16 sps:$4 sm:$0xff]  }
 0x607   : > { %13107 = vmatpush2.bf16.msra.mxu0 %v19090_v48 }
 0x608   : > { %13160 = vmatpush2.bf16.msra.mxu1 %v19093_v6  ;;  %13182 = vmatprep.subr.bf16.mxu0 %v19098_v63  ;;  %v19110_v6 = vld [vmem:[%s19998_s16 + $0x24ac] ss:$16 sps:$4 sm:$0xff]  }
 0x609   : > { %13235 = vmatprep.subr.bf16.mxu1 %v19101_v20  ;;  %v19113_v63 = vld [vmem:[%s19998_s16 + $0x26ac] ss:$16 sps:$4 sm:$0xff]  }
 0x60a   : > { %v12792_v16 = vpop.f32.mrf.mxu0  ;;  %13109 = vmatmul.mubr.bf16.vlgmr.msra.gmra.mxu0 %v21977_v7 }
 0x60b   : > { %v12845_v15 = vpop.f32.mrf.mxu1  ;;  %13162 = vmatmul.mubr.bf16.vlgmr.msra.gmra.mxu1 %v21981_v31  ;;  %v12793_v58 = vadd.f32 %v12792_v16, %v22427_v13  ;;  %13183 = vmatpush1.bf16.msra.mxu0 %v19096_v51 }
 0x60c   : > { %13236 = vmatpush1.bf16.msra.mxu1 %v19099_v49  ;;  %v12794_v62 = vpop.f32.mrf.mxu0  ;;  %13184 = vmatprep.subr.bf16.mxu0 %v19104_v39  ;;  %v19108_v39 = vld [vmem:[%s19998_s16 + $0x24a8] ss:$16 sps:$4 sm:$0xff]  }
 0x60d   : > { %v12847_v48 = vpop.f32.mrf.mxu1  ;;  %13237 = vmatprep.subr.bf16.mxu1 %v19107_v9  ;;  %v22524_v20 = vadd.f32 %v12845_v15, %v12793_v58  ;;  %v12795_v7 = vadd.f32 %v12794_v62, %v22433_v5  ;;  %13118 = vmatprep.mubr.bf16.mxu0 %v21987_v22  ;;  %v19111_v9 = vld [vmem:[%s19998_s16 + $0x26a8] ss:$16 sps:$4 sm:$0xff]   ;;  %v19116_v5 = vld [vmem:[%s19998_s16 + $0x248c] ss:$16 sps:$4 sm:$0xff]  }
 0x60e   : > { %13171 = vmatprep.mubr.bf16.mxu1 %v21989_v47  ;;  %v12796_v31 = vpop.f32.mrf.mxu0  ;;  %v19119_v22 = vld [vmem:[%s19998_s16 + $0x268c] ss:$16 sps:$4 sm:$0xff]  }
 0x60f   : > { %v12849_v13 = vpop.f32.mrf.mxu1  ;;  %v22529_v51 = vadd.f32 %v12847_v48, %v12795_v7  ;;  %v12797_v49 = vadd.f32 %v12796_v31, %v22441_v4  ;;  %13185 = vmatpush1.bf16.msra.mxu0 %v19102_v21  ;;  %v19114_v48 = vld [vmem:[%s19998_s16 + $0x2488] ss:$16 sps:$4 sm:$0xff]   ;;  %v19125_v31 = vld [vmem:[%s19998_s16 + $0x266c] ss:$16 sps:$4 sm:$0xff]  }
 0x610   : > { %13238 = vmatpush1.bf16.msra.mxu1 %v19105_v18  ;;  %v12798_v16 = vpop.f32.mrf.mxu0  ;;  %13186 = vmatprep.subr.bf16.mxu0 %v19110_v6  ;;  %v19117_v6 = vld [vmem:[%s19998_s16 + $0x2688] ss:$16 sps:$4 sm:$0xff]  }
 0x611   : > { %v12851_v15 = vpop.f32.mrf.mxu1  ;;  %13239 = vmatprep.subr.bf16.mxu1 %v19113_v63  ;;  %v22536_v58 = vadd.f32 %v12849_v13, %v12797_v49  ;;  %v12799_v47 = vadd.f32 %v12798_v16, %v22447_v40  ;;  %v19122_v40 = vld [vmem:[%s19998_s16 + $0x246c] ss:$16 sps:$4 sm:$0xff]  }
 0x612   : > { %v12802_v62 = vpop.f32.mrf.mxu0  ;;  %13119 = vmatmul.mubr.bf16.gmra.mxu0 %v22015_v54 }
 0x613   : > { %v12855_v4 = vpop.f32.mrf.mxu1  ;;  %13172 = vmatmul.mubr.bf16.gmra.mxu1 %v22017_v25  ;;  %v22541_v21 = vadd.f32 %v12851_v15, %v12799_v47  ;;  %v12803_v18 = vadd.f32 %v12802_v62, %v22453_v43  ;;  %13187 = vmatpush1.bf16.msra.mxu0 %v19108_v39  ;;  %v19126_v47 = vld [vmem:[%s19998_s16 + $0x2448] ss:$16 sps:$4 sm:$0xff]  }
 0x614   : > { %13240 = vmatpush1.bf16.msra.mxu1 %v19111_v9  ;;  %v12804_v63 = vpop.f32.mrf.mxu0  ;;  %13188 = vmatprep.subr.bf16.mxu0 %v19116_v5  ;;  %v19120_v9 = vld [vmem:[%s19998_s16 + $0x2468] ss:$16 sps:$4 sm:$0xff]  }
 0x615   : > { %v12857_v7 = vpop.f32.mrf.mxu1  ;;  %13241 = vmatprep.subr.bf16.mxu1 %v19119_v22  ;;  %v12805_v54 = vadd.f32 %v12804_v63, %v22457_v19  ;;  %v22549_v25 = vadd.f32 %v12855_v4, %v12803_v18  ;;  %13214 = vmatprep.mubr.bf16.mxu0 %v22031_v52  ;;  %v19123_v19 = vld [vmem:[%s19998_s16 + $0x2668] ss:$16 sps:$4 sm:$0xff]   ;;  %v19128_v52 = vld [vmem:[%s19998_s16 + $0x244c] ss:$16 sps:$4 sm:$0xff]  }
 0x616   : > { %13267 = vmatprep.mubr.bf16.mxu1 %v22035_v53  ;;  %v12806_v43 = vpop.f32.mrf.mxu0  ;;  %v19131_v53 = vld [vmem:[%s19998_s16 + $0x264c] ss:$16 sps:$4 sm:$0xff]   ;;  %v19129_v62 = vld [vmem:[%s19998_s16 + $0x2648] ss:$16 sps:$4 sm:$0xff]  }
 0x617   : > { %v12859_v13 = vpop.f32.mrf.mxu1  ;;  %v12807_v49 = vadd.f32 %v12806_v43, %v22463_v44  ;;  %v22554_v39 = vadd.f32 %v12857_v7, %v12805_v54  ;;  %13189 = vmatpush1.bf16.msra.mxu0 %v19114_v48  ;;  %v19134_v4 = vld [vmem:[%s19998_s16 + $0x242c] ss:$16 sps:$4 sm:$0xff]   ;;  %v19135_v48 = vld [vmem:[%s19998_s16 + $0x2628] ss:$16 sps:$4 sm:$0xff]  }
 0x618   : > { %13242 = vmatpush1.bf16.msra.mxu1 %v19117_v6  ;;  %v12808_v16 = vpop.f32.mrf.mxu0  ;;  %13190 = vmatprep.subr.bf16.mxu0 %v19122_v40  ;;  %v19137_v18 = vld [vmem:[%s19998_s16 + $0x262c] ss:$16 sps:$4 sm:$0xff]   ;;  %v19138_v7 = vld [vmem:[%s19998_s16 + $0x2408] ss:$16 sps:$4 sm:$0xff]  }
 0x619   : > { %v12861_v15 = vpop.f32.mrf.mxu1  ;;  %13243 = vmatprep.subr.bf16.mxu1 %v19125_v31  ;;  %v12809_v44 = vadd.f32 %v12808_v16, %v22467_v17  ;;  %v22561_v5 = vadd.f32 %v12859_v13, %v12807_v49  ;;  %v19132_v17 = vld [vmem:[%s19998_s16 + $0x2428] ss:$16 sps:$4 sm:$0xff]   ;;  %v19140_v6 = vld [vmem:[%s19998_s16 + $0x240c] ss:$16 sps:$4 sm:$0xff]  }
 0x61a   : > { %v19143_v63 = vld [vmem:[%s19998_s16 + $0x260c] ss:$16 sps:$4 sm:$0xff]   ;;  %v19141_v40 = vld [vmem:[%s19998_s16 + $0x2608] ss:$16 sps:$4 sm:$0xff]  }
 0x61b   : > { %v22563_v22 = vadd.f32 %v12861_v15, %v12809_v44  ;;  %13191 = vmatpush1.bf16.msra.mxu0 %v19120_v9  ;;  %v19146_v31 = vld [vmem:[%s19998_s16 + $0x25ec] ss:$16 sps:$4 sm:$0xff]   ;;  %v19144_v43 = vld [vmem:[%s19998_s16 + $0x25e8] ss:$16 sps:$4 sm:$0xff]  }
 0x61c   : > { %13244 = vmatpush1.bf16.msra.mxu1 %v19123_v19  ;;  %13192 = vmatprep.subr.bf16.mxu0 %v19128_v52  ;;  %v19149_v54 = vld [vmem:[%s19998_s16 + $0x27ec] ss:$16 sps:$4 sm:$0xff]   ;;  %v19147_v13 = vld [vmem:[%s19998_s16 + $0x27e8] ss:$16 sps:$4 sm:$0xff]  }
 0x61d   : > { %13245 = vmatprep.subr.bf16.mxu1 %v19131_v53  ;;  %v19152_v49 = vld [vmem:[%s19998_s16 + $0x25cc] ss:$16 sps:$4 sm:$0xff]   ;;  %v19150_v19 = vld [vmem:[%s19998_s16 + $0x25c8] ss:$16 sps:$4 sm:$0xff]  }
 0x61e   : > { %v19155_v9 = vld [vmem:[%s19998_s16 + $0x27cc] ss:$16 sps:$4 sm:$0xff]   ;;  %v19153_v16 = vld [vmem:[%s19998_s16 + $0x27c8] ss:$16 sps:$4 sm:$0xff]  }
 0x61f   : > { %13193 = vmatpush1.bf16.msra.mxu0 %v19126_v47  ;;  %v19158_v15 = vld [vmem:[%s19998_s16 + $0x25ac] ss:$16 sps:$4 sm:$0xff]   ;;  %v19156_v53 = vld [vmem:[%s19998_s16 + $0x25a8] ss:$16 sps:$4 sm:$0xff]  }
 0x620   : > { %13246 = vmatpush1.bf16.msra.mxu1 %v19129_v62  ;;  %13194 = vmatprep.subr.bf16.mxu0 %v19134_v4  ;;  %v19161_v52 = vld [vmem:[%s19998_s16 + $0x27ac] ss:$16 sps:$4 sm:$0xff]   ;;  %v19159_v44 = vld [vmem:[%s19998_s16 + $0x27a8] ss:$16 sps:$4 sm:$0xff]  }
 0x621   : > { %13247 = vmatprep.subr.bf16.mxu1 %v19137_v18  ;;  %v19164_v47 = vld [vmem:[%s19998_s16 + $0x258c] ss:$16 sps:$4 sm:$0xff]   ;;  %v19162_v4 = vld [vmem:[%s19998_s16 + $0x2588] ss:$16 sps:$4 sm:$0xff]  }
 0x622   : > { %v19167_v62 = vld [vmem:[%s19998_s16 + $0x278c] ss:$16 sps:$4 sm:$0xff]   ;;  %v19165_v18 = vld [vmem:[%s19998_s16 + $0x2788] ss:$16 sps:$4 sm:$0xff]  }
 0x623   : > { %13195 = vmatpush1.bf16.msra.mxu0 %v19132_v17  ;;  %v19170_v17 = vld [vmem:[%s19998_s16 + $0x256c] ss:$16 sps:$4 sm:$0xff]  }
 0x624   : > { %13248 = vmatpush1.bf16.msra.mxu1 %v19135_v48  ;;  %13196 = vmatprep.subr.bf16.mxu0 %v19140_v6  ;;  %v19173_v48 = vld [vmem:[%s19998_s16 + $0x276c] ss:$16 sps:$4 sm:$0xff]   ;;  %v19168_v6 = vld [vmem:[%s19998_s16 + $0x2568] ss:$16 sps:$4 sm:$0xff]  }
 0x625   : > { %13249 = vmatprep.subr.bf16.mxu1 %v19143_v63  ;;  %v19171_v63 = vld [vmem:[%s19998_s16 + $0x2768] ss:$16 sps:$4 sm:$0xff]  }
 0x627   : > { %13197 = vmatpush1.bf16.msra.mxu0 %v19138_v7  ;;  %v19176_v7 = vld [vmem:[%s19998_s16 + $0x254c] ss:$16 sps:$4 sm:$0xff]  }
 0x628   : > { %13250 = vmatpush1.bf16.msra.mxu1 %v19141_v40  ;;  %13198 = vmatprep.subr.bf16.mxu0 %v19146_v31  ;;  %v19179_v40 = vld [vmem:[%s19998_s16 + $0x274c] ss:$16 sps:$4 sm:$0xff]   ;;  %v19174_v31 = vld [vmem:[%s19998_s16 + $0x2548] ss:$16 sps:$4 sm:$0xff]  }
 0x629   : > { %13251 = vmatprep.subr.bf16.mxu1 %v19149_v54  ;;  %v19177_v54 = vld [vmem:[%s19998_s16 + $0x2748] ss:$16 sps:$4 sm:$0xff]  }
 0x62b   : > { %13199 = vmatpush2.bf16.msra.mxu0 %v19144_v43  ;;  %v19182_v43 = vld [vmem:[%s19998_s16 + $0x252c] ss:$16 sps:$4 sm:$0xff]  }
 0x62c   : > { %13252 = vmatpush2.bf16.msra.mxu1 %v19147_v13  ;;  %13200 = vmatprep.subr.bf16.mxu0 %v19152_v49  ;;  %v19185_v13 = vld [vmem:[%s19998_s16 + $0x272c] ss:$16 sps:$4 sm:$0xff]   ;;  %v19180_v49 = vld [vmem:[%s19998_s16 + $0x2528] ss:$16 sps:$4 sm:$0xff]  }
 0x62d   : > { %13253 = vmatprep.subr.bf16.mxu1 %v19155_v9  ;;  %v19183_v9 = vld [vmem:[%s19998_s16 + $0x2728] ss:$16 sps:$4 sm:$0xff]  }
 0x62f   : > { %13201 = vmatpush2.bf16.msra.mxu0 %v19150_v19  ;;  %v19188_v19 = vld [vmem:[%s19998_s16 + $0x250c] ss:$16 sps:$4 sm:$0xff]  }
 0x630   : > { %13254 = vmatpush2.bf16.msra.mxu1 %v19153_v16  ;;  %13202 = vmatprep.subr.bf16.mxu0 %v19158_v15  ;;  %v19191_v16 = vld [vmem:[%s19998_s16 + $0x270c] ss:$16 sps:$4 sm:$0xff]   ;;  %v19186_v15 = vld [vmem:[%s19998_s16 + $0x2508] ss:$16 sps:$4 sm:$0xff]  }
 0x631   : > { %13255 = vmatprep.subr.bf16.mxu1 %v19161_v52  ;;  %v19189_v52 = vld [vmem:[%s19998_s16 + $0x2708] ss:$16 sps:$4 sm:$0xff]  }
 0x633   : > { %13203 = vmatpush2.bf16.msra.mxu0 %v19156_v53  ;;  %v19194_v53 = vld [vmem:[%s19998_s16 + $0x28ec] ss:$16 sps:$4 sm:$0xff]  }
 0x634   : > { %13256 = vmatpush2.bf16.msra.mxu1 %v19159_v44  ;;  %13204 = vmatprep.subr.bf16.mxu0 %v19164_v47  ;;  %v19197_v44 = vld [vmem:[%s19998_s16 + $0x2aec] ss:$16 sps:$4 sm:$0xff]   ;;  %v19192_v47 = vld [vmem:[%s19998_s16 + $0x28e8] ss:$16 sps:$4 sm:$0xff]  }
 0x635   : > { %13257 = vmatprep.subr.bf16.mxu1 %v19167_v62  ;;  %v19195_v62 = vld [vmem:[%s19998_s16 + $0x2ae8] ss:$16 sps:$4 sm:$0xff]  }
 0x637   : > { %13205 = vmatpush2.bf16.msra.mxu0 %v19162_v4  ;;  %v19200_v4 = vld [vmem:[%s19998_s16 + $0x28cc] ss:$16 sps:$4 sm:$0xff]  }
 0x638   : > { %13258 = vmatpush2.bf16.msra.mxu1 %v19165_v18  ;;  %13206 = vmatprep.subr.bf16.mxu0 %v19170_v17  ;;  %v19203_v18 = vld [vmem:[%s19998_s16 + $0x2acc] ss:$16 sps:$4 sm:$0xff]  }
 0x639   : > { %13259 = vmatprep.subr.bf16.mxu1 %v19173_v48 }
 0x63b   : > { %13207 = vmatpush2.bf16.msra.mxu0 %v19168_v6 }
 0x63c   : > { %13260 = vmatpush2.bf16.msra.mxu1 %v19171_v63  ;;  %13208 = vmatprep.subr.bf16.mxu0 %v19176_v7  ;;  %v19198_v63 = vld [vmem:[%s19998_s16 + $0x28c8] ss:$16 sps:$4 sm:$0xff]  }
 0x63d   : > { %13261 = vmatprep.subr.bf16.mxu1 %v19179_v40  ;;  %v19201_v7 = vld [vmem:[%s19998_s16 + $0x2ac8] ss:$16 sps:$4 sm:$0xff]  }
 0x63f   : > { %13209 = vmatpush2.bf16.msra.mxu0 %v19174_v31 }
 0x640   : > { %13262 = vmatpush2.bf16.msra.mxu1 %v19177_v54  ;;  %13210 = vmatprep.subr.bf16.mxu0 %v19182_v43  ;;  %v19206_v54 = vld [vmem:[%s19998_s16 + $0x28ac] ss:$16 sps:$4 sm:$0xff]  }
 0x641   : > { %13263 = vmatprep.subr.bf16.mxu1 %v19185_v13  ;;  %v19209_v43 = vld [vmem:[%s19998_s16 + $0x2aac] ss:$16 sps:$4 sm:$0xff]  }
 0x643   : > { %13211 = vmatpush2.bf16.msra.mxu0 %v19180_v49 }
 0x644   : > { %13264 = vmatpush2.bf16.msra.mxu1 %v19183_v9  ;;  %13212 = vmatprep.subr.bf16.mxu0 %v19188_v19  ;;  %v19204_v19 = vld [vmem:[%s19998_s16 + $0x28a8] ss:$16 sps:$4 sm:$0xff]  }
 0x645   : > { %13265 = vmatprep.subr.bf16.mxu1 %v19191_v16  ;;  %v19207_v16 = vld [vmem:[%s19998_s16 + $0x2aa8] ss:$16 sps:$4 sm:$0xff]  }
 0x647   : > { %13213 = vmatpush2.bf16.msra.mxu0 %v19186_v15 }
 0x648   : > { %13266 = vmatpush2.bf16.msra.mxu1 %v19189_v52  ;;  %13288 = vmatprep.subr.bf16.mxu0 %v19194_v53 }
 0x649   : > { %13341 = vmatprep.subr.bf16.mxu1 %v19197_v44 }
 0x64a   : > { %v12898_v17 = vpop.f32.mrf.mxu0  ;;  %13215 = vmatmul.mubr.bf16.vlgmr.msra.gmra.mxu0 %v22121_v46 }
 0x64b   : > { %v12951_v48 = vpop.f32.mrf.mxu1  ;;  %13268 = vmatmul.mubr.bf16.vlgmr.msra.gmra.mxu1 %v22125_v24  ;;  %v12899_v6 = vadd.f32 %v12898_v17, %v22524_v20  ;;  %13289 = vmatpush1.bf16.msra.mxu0 %v19192_v47 }
 0x64c   : > { %13342 = vmatpush1.bf16.msra.mxu1 %v19195_v62  ;;  %v12900_v40 = vpop.f32.mrf.mxu0  ;;  %13290 = vmatprep.subr.bf16.mxu0 %v19200_v4  ;;  %v19210_v4 = vld [vmem:[%s19998_s16 + $0x2888] ss:$16 sps:$4 sm:$0xff]  }
 0x64d   : > { %v12953_v31 = vpop.f32.mrf.mxu1  ;;  %13343 = vmatprep.subr.bf16.mxu1 %v19203_v18  ;;  %v22620_v13 = vadd.f32 %v12951_v48, %v12899_v6  ;;  %v12901_v46 = vadd.f32 %v12900_v40, %v22529_v51  ;;  %13224 = vmatprep.mubr.bf16.mxu0 %v22131_v33  ;;  %v19212_v51 = vld [vmem:[%s19998_s16 + $0x288c] ss:$16 sps:$4 sm:$0xff]   ;;  %v19213_v18 = vld [vmem:[%s19998_s16 + $0x2a88] ss:$16 sps:$4 sm:$0xff]  }
 0x64e   : > { %13277 = vmatprep.mubr.bf16.mxu1 %v22133_v41  ;;  %v12902_v24 = vpop.f32.mrf.mxu0  ;;  %v19215_v33 = vld [vmem:[%s19998_s16 + $0x2a8c] ss:$16 sps:$4 sm:$0xff]  }
 0x64f   : > { %v12955_v20 = vpop.f32.mrf.mxu1  ;;  %v22625_v49 = vadd.f32 %v12953_v31, %v12901_v46  ;;  %v12903_v9 = vadd.f32 %v12902_v24, %v22536_v58  ;;  %13291 = vmatpush1.bf16.msra.mxu0 %v19198_v63  ;;  %v19221_v6 = vld [vmem:[%s19998_s16 + $0x2a6c] ss:$16 sps:$4 sm:$0xff]   ;;  %v19216_v31 = vld [vmem:[%s19998_s16 + $0x2868] ss:$16 sps:$4 sm:$0xff]  }
 0x650   : > { %13344 = vmatpush1.bf16.msra.mxu1 %v19201_v7  ;;  %v12904_v15 = vpop.f32.mrf.mxu0  ;;  %13292 = vmatprep.subr.bf16.mxu0 %v19206_v54 }
 0x651   : > { %v12957_v52 = vpop.f32.mrf.mxu1  ;;  %13345 = vmatprep.subr.bf16.mxu1 %v19209_v43  ;;  %v22632_v53 = vadd.f32 %v12955_v20, %v12903_v9  ;;  %v12905_v41 = vadd.f32 %v12904_v15, %v22541_v21  ;;  %v19218_v21 = vld [vmem:[%s19998_s16 + $0x286c] ss:$16 sps:$4 sm:$0xff]   ;;  %v19222_v20 = vld [vmem:[%s19998_s16 + $0x2848] ss:$16 sps:$4 sm:$0xff]  }
 0x652   : > { %v12908_v44 = vpop.f32.mrf.mxu0  ;;  %13225 = vmatmul.mubr.bf16.gmra.mxu0 %v22159_v56  ;;  %v19225_v9 = vld [vmem:[%s19998_s16 + $0x2a48] ss:$16 sps:$4 sm:$0xff]  }
 0x653   : > { %v12961_v58 = vpop.f32.mrf.mxu1  ;;  %13278 = vmatmul.mubr.bf16.gmra.mxu1 %v22161_v3  ;;  %v22637_v47 = vadd.f32 %v12957_v52, %v12905_v41  ;;  %v12909_v62 = vadd.f32 %v12908_v44, %v22549_v25  ;;  %13293 = vmatpush1.bf16.msra.mxu0 %v19204_v19  ;;  %v19230_v19 = vld [vmem:[%s19998_s16 + $0x282c] ss:$16 sps:$4 sm:$0xff]   ;;  %v19231_v15 = vld [vmem:[%s19998_s16 + $0x2a28] ss:$16 sps:$4 sm:$0xff]  }
 0x654   : > { %13346 = vmatpush1.bf16.msra.mxu1 %v19207_v16  ;;  %v12910_v17 = vpop.f32.mrf.mxu0  ;;  %13294 = vmatprep.subr.bf16.mxu0 %v19212_v51  ;;  %v19233_v16 = vld [vmem:[%s19998_s16 + $0x2a2c] ss:$16 sps:$4 sm:$0xff]   ;;  %v19237_v41 = vld [vmem:[%s19998_s16 + $0x2a08] ss:$16 sps:$4 sm:$0xff]  }
 0x655   : > { %v12963_v48 = vpop.f32.mrf.mxu1  ;;  %13347 = vmatprep.subr.bf16.mxu1 %v19215_v33  ;;  %v12911_v56 = vadd.f32 %v12910_v17, %v22554_v39  ;;  %v22645_v3 = vadd.f32 %v12961_v58, %v12909_v62  ;;  %13320 = vmatprep.mubr.bf16.mxu0 %v22175_v37  ;;  %v19219_v39 = vld [vmem:[%s19998_s16 + $0x2a68] ss:$16 sps:$4 sm:$0xff]   ;;  %v19224_v37 = vld [vmem:[%s19998_s16 + $0x284c] ss:$16 sps:$4 sm:$0xff]  }
 0x656   : > { %13373 = vmatprep.mubr.bf16.mxu1 %v22179_v2  ;;  %v12912_v25 = vpop.f32.mrf.mxu0  ;;  %v19227_v2 = vld [vmem:[%s19998_s16 + $0x2a4c] ss:$16 sps:$4 sm:$0xff]   ;;  %v19234_v33 = vld [vmem:[%s19998_s16 + $0x2808] ss:$16 sps:$4 sm:$0xff]  }
 0x657   : > { %v12965_v63 = vpop.f32.mrf.mxu1  ;;  %v12913_v7 = vadd.f32 %v12912_v25, %v22561_v5  ;;  %v22650_v40 = vadd.f32 %v12963_v48, %v12911_v56  ;;  %13295 = vmatpush1.bf16.msra.mxu0 %v19210_v4  ;;  %v19236_v52 = vld [vmem:[%s19998_s16 + $0x280c] ss:$16 sps:$4 sm:$0xff]   ;;  %v19240_v62 = vld [vmem:[%s19998_s16 + $0x29e8] ss:$16 sps:$4 sm:$0xff]  }
 0x658   : > { %13348 = vmatpush1.bf16.msra.mxu1 %v19213_v18  ;;  %v12914_v54 = vpop.f32.mrf.mxu0  ;;  %13296 = vmatprep.subr.bf16.mxu0 %v19218_v21  ;;  %v19239_v51 = vld [vmem:[%s19998_s16 + $0x2a0c] ss:$16 sps:$4 sm:$0xff]   ;;  %v19243_v4 = vld [vmem:[%s19998_s16 + $0x2be8] ss:$16 sps:$4 sm:$0xff]  }
 0x659   : > { %v12967_v43 = vpop.f32.mrf.mxu1  ;;  %13349 = vmatprep.subr.bf16.mxu1 %v19221_v6  ;;  %v12915_v5 = vadd.f32 %v12914_v54, %v22563_v22  ;;  %v22657_v46 = vadd.f32 %v12965_v63, %v12913_v7  ;;  %v19228_v22 = vld [vmem:[%s19998_s16 + $0x2828] ss:$16 sps:$4 sm:$0xff]   ;;  %v19242_v44 = vld [vmem:[%s19998_s16 + $0x29ec] ss:$16 sps:$4 sm:$0xff]  }
 0x65a   : > { %v19245_v58 = vld [vmem:[%s19998_s16 + $0x2bec] ss:$16 sps:$4 sm:$0xff]   ;;  %v19246_v48 = vld [vmem:[%s19998_s16 + $0x29c8] ss:$16 sps:$4 sm:$0xff]  }
 0x65b   : > { %v22659_v24 = vadd.f32 %v12967_v43, %v12915_v5  ;;  %13297 = vmatpush1.bf16.msra.mxu0 %v19216_v31  ;;  %v19248_v18 = vld [vmem:[%s19998_s16 + $0x29cc] ss:$16 sps:$4 sm:$0xff]   ;;  %v19249_v21 = vld [vmem:[%s19998_s16 + $0x2bc8] ss:$16 sps:$4 sm:$0xff]  }
 0x65c   : > { %13350 = vmatpush1.bf16.msra.mxu1 %v19219_v39  ;;  %13298 = vmatprep.subr.bf16.mxu0 %v19224_v37  ;;  %v19251_v17 = vld [vmem:[%s19998_s16 + $0x2bcc] ss:$16 sps:$4 sm:$0xff]   ;;  %v19252_v25 = vld [vmem:[%s19998_s16 + $0x29a8] ss:$16 sps:$4 sm:$0xff]  }
 0x65d   : > { %13351 = vmatprep.subr.bf16.mxu1 %v19227_v2  ;;  %v19254_v6 = vld [vmem:[%s19998_s16 + $0x29ac] ss:$16 sps:$4 sm:$0xff]   ;;  %v19255_v63 = vld [vmem:[%s19998_s16 + $0x2ba8] ss:$16 sps:$4 sm:$0xff]  }
 0x65e   : > { %v19257_v56 = vld [vmem:[%s19998_s16 + $0x2bac] ss:$16 sps:$4 sm:$0xff]   ;;  %v19258_v39 = vld [vmem:[%s19998_s16 + $0x2988] ss:$16 sps:$4 sm:$0xff]  }
 0x65f   : > { %13299 = vmatpush1.bf16.msra.mxu0 %v19222_v20  ;;  %v19260_v7 = vld [vmem:[%s19998_s16 + $0x298c] ss:$16 sps:$4 sm:$0xff]   ;;  %v19261_v54 = vld [vmem:[%s19998_s16 + $0x2b88] ss:$16 sps:$4 sm:$0xff]  }
 0x660   : > { %13352 = vmatpush1.bf16.msra.mxu1 %v19225_v9  ;;  %13300 = vmatprep.subr.bf16.mxu0 %v19230_v19  ;;  %v19263_v31 = vld [vmem:[%s19998_s16 + $0x2b8c] ss:$16 sps:$4 sm:$0xff]   ;;  %v19264_v2 = vld [vmem:[%s19998_s16 + $0x2968] ss:$16 sps:$4 sm:$0xff]   ;;  %v23253_v19 = vld [vmem:[#allocation40_spill] sm:$0xff] }
 0x661   : > { %13353 = vmatprep.subr.bf16.mxu1 %v19233_v16  ;;  %v19266_v43 = vld [vmem:[%s19998_s16 + $0x296c] ss:$16 sps:$4 sm:$0xff]   ;;  %v19267_v5 = vld [vmem:[%s19998_s16 + $0x2b68] ss:$16 sps:$4 sm:$0xff]  }
 0x662   : > { %v19269_v37 = vld [vmem:[%s19998_s16 + $0x2b6c] ss:$16 sps:$4 sm:$0xff]  }
 0x663   : > { %13301 = vmatpush1.bf16.msra.mxu0 %v19228_v22  ;;  %v19272_v20 = vld [vmem:[%s19998_s16 + $0x294c] ss:$16 sps:$4 sm:$0xff]  }
 0x664   : > { %13354 = vmatpush1.bf16.msra.mxu1 %v19231_v15  ;;  %13302 = vmatprep.subr.bf16.mxu0 %v19236_v52  ;;  %v19275_v9 = vld [vmem:[%s19998_s16 + $0x2b4c] ss:$16 sps:$4 sm:$0xff]   ;;  %v19270_v15 = vld [vmem:[%s19998_s16 + $0x2948] ss:$16 sps:$4 sm:$0xff]  }
 0x665   : > { %13355 = vmatprep.subr.bf16.mxu1 %v19239_v51  ;;  %v23254_v16 = vld [vmem:[#allocation41_spill] sm:$0xff]  ;;  %v23255_v51 = vld [vmem:[#allocation44_spill] sm:$0xff] }
 0x666   : > { %v4102_v22 = vadd.f32 %v23254_v16, %v23253_v19  ;;  %v19273_v52 = vld [vmem:[%s19998_s16 + $0x2b48] ss:$16 sps:$4 sm:$0xff]  }
 0x667   : > { %13303 = vmatpush1.bf16.msra.mxu0 %v19234_v33  ;;  %v23262_v19 = vld [vmem:[#allocation47_spill] sm:$0xff] }
 0x668   : > { %13356 = vmatpush1.bf16.msra.mxu1 %v19237_v41  ;;  %13304 = vmatprep.subr.bf16.mxu0 %v19242_v44  ;;  %v4155_v33 = vadd.f32 %v23255_v51, %v4102_v22  ;;  %v19278_v41 = vld [vmem:[%s19998_s16 + $0x292c] ss:$16 sps:$4 sm:$0xff]   ;;  %v23263_v22 = vld [vmem:[#allocation52_spill] sm:$0xff] }
 0x669   : > { %13357 = vmatprep.subr.bf16.mxu1 %v19245_v58  ;;  %v19281_v44 = vld [vmem:[%s19998_s16 + $0x2b2c] ss:$16 sps:$4 sm:$0xff]   ;;  %v19276_v58 = vld [vmem:[%s19998_s16 + $0x2928] ss:$16 sps:$4 sm:$0xff]  }
 0x66a   : > { %v19299_v51 = vld [vmem:[%s19998_s16 + $0x2ecc] ss:$16 sps:$4 sm:$0xff]  }
 0x66b   : > { %13305 = vmatpush2.bf16.msra.mxu0 %v19240_v62  ;;  %v19279_v62 = vld [vmem:[%s19998_s16 + $0x2b28] ss:$16 sps:$4 sm:$0xff]  }
 0x66c   : > { %13358 = vmatpush2.bf16.msra.mxu1 %v19243_v4  ;;  %13306 = vmatprep.subr.bf16.mxu0 %v19248_v18  ;;  %v23256_v4 = vld [vmem:[#allocation45_spill] sm:$0xff] }
 0x66d   : > { %13359 = vmatprep.subr.bf16.mxu1 %v19251_v17  ;;  %v4208_v18 = vadd.f32 %v23256_v4, %v4155_v33  ;;  %v19284_v17 = vld [vmem:[%s19998_s16 + $0x290c] ss:$16 sps:$4 sm:$0xff]   ;;  %v23264_v33 = vld [vmem:[#allocation50_spill] sm:$0xff]  ;;  %v19294_v4 = vld [vmem:[%s19998_s16 + $0x2cc8] ss:$16 sps:$4 sm:$0xff]  }
 0x66f   : > { %13307 = vmatpush2.bf16.msra.mxu0 %v19246_v48  ;;  %v19287_v48 = vld [vmem:[%s19998_s16 + $0x2b0c] ss:$16 sps:$4 sm:$0xff]  }
 0x670   : > { %13360 = vmatpush2.bf16.msra.mxu1 %v19249_v21  ;;  %13308 = vmatprep.subr.bf16.mxu0 %v19254_v6  ;;  %v23257_v21 = vld [vmem:[#allocation42_spill] sm:$0xff]  ;;  %v23258_v6 = vld [vmem:[#allocation43_spill] sm:$0xff] }
 0x671   : > { %13361 = vmatprep.subr.bf16.mxu1 %v19257_v56  ;;  %v4112_v56 = vadd.f32 %v23258_v6, %v23257_v21 }
 0x673   : > { %13309 = vmatpush2.bf16.msra.mxu0 %v19252_v25  ;;  %v23259_v25 = vld [vmem:[#allocation48_spill] sm:$0xff] }
 0x674   : > { %13362 = vmatpush2.bf16.msra.mxu1 %v19255_v63  ;;  %13310 = vmatprep.subr.bf16.mxu0 %v19260_v7  ;;  %v4261_v63 = vadd.f32 %v23259_v25, %v4208_v18  ;;  %v19282_v7 = vld [vmem:[%s19998_s16 + $0x2908] ss:$16 sps:$4 sm:$0xff]   ;;  %v19305_v25 = vld [vmem:[%s19998_s16 + $0x2eac] ss:$16 sps:$4 sm:$0xff]  }
 0x675   : > { %13363 = vmatprep.subr.bf16.mxu1 %v19263_v31  ;;  %v19285_v31 = vld [vmem:[%s19998_s16 + $0x2b08] ss:$16 sps:$4 sm:$0xff]  }
 0x676   : > { %v19297_v18 = vld [vmem:[%s19998_s16 + $0x2ec8] ss:$16 sps:$4 sm:$0xff]  }
 0x677   : > { %13311 = vmatpush2.bf16.msra.mxu0 %v19258_v39  ;;  %v23260_v39 = vld [vmem:[#allocation46_spill] sm:$0xff] }
 0x678   : > { %13364 = vmatpush2.bf16.msra.mxu1 %v19261_v54  ;;  %13312 = vmatprep.subr.bf16.mxu0 %v19266_v43  ;;  %v4165_v54 = vadd.f32 %v23260_v39, %v4112_v56  ;;  %v19290_v43 = vld [vmem:[%s19998_s16 + $0x2cec] ss:$16 sps:$4 sm:$0xff]  }
 0x679   : > { %13365 = vmatprep.subr.bf16.mxu1 %v19269_v37  ;;  %v19293_v37 = vld [vmem:[%s19998_s16 + $0x2eec] ss:$16 sps:$4 sm:$0xff]  }
 0x67a   : > { %v4218_v16 = vadd.f32 %v23262_v19, %v4165_v54  ;;  %v19302_v56 = vld [vmem:[%s19998_s16 + $0x2cac] ss:$16 sps:$4 sm:$0xff]  }
 0x67b   : > { %13313 = vmatpush2.bf16.msra.mxu0 %v19264_v2  ;;  %v23261_v2 = vld [vmem:[#allocation49_spill] sm:$0xff] }
 0x67c   : > { %13366 = vmatpush2.bf16.msra.mxu1 %v19267_v5  ;;  %13314 = vmatprep.subr.bf16.mxu0 %v19272_v20  ;;  %v4314_v5 = vadd.f32 %v23261_v2, %v4261_v63  ;;  %v19288_v20 = vld [vmem:[%s19998_s16 + $0x2ce8] ss:$16 sps:$4 sm:$0xff]   ;;  %v19308_v19 = vld [vmem:[%s19998_s16 + $0x2c8c] ss:$16 sps:$4 sm:$0xff]  }
 0x67d   : > { %13367 = vmatprep.subr.bf16.mxu1 %v19275_v9  ;;  %v19291_v9 = vld [vmem:[%s19998_s16 + $0x2ee8] ss:$16 sps:$4 sm:$0xff]  }
 0x67e   : > { %v541_v63 = vld [vmem:[#allocation2 + $0x68] sm:$0xff] }
 0x67f   : > { %13315 = vmatpush2.bf16.msra.mxu0 %v19270_v15  ;;  %v4367_v15 = vadd.f32 %v23263_v22, %v4314_v5  ;;  %v19300_v2 = vld [vmem:[%s19998_s16 + $0x2ca8] ss:$16 sps:$4 sm:$0xff]  }
 0x680   : > { %13368 = vmatpush2.bf16.msra.mxu1 %v19273_v52  ;;  %13316 = vmatprep.subr.bf16.mxu0 %v19278_v41  ;;  %v19296_v52 = vld [vmem:[%s19998_s16 + $0x2ccc] ss:$16 sps:$4 sm:$0xff]   ;;  %v4271_v41 = vadd.f32 %v23264_v33, %v4218_v16 }
 0x681   : > { %13369 = vmatprep.subr.bf16.mxu1 %v19281_v44  ;;  %v19311_v16 = vld [vmem:[%s19998_s16 + $0x2e8c] ss:$16 sps:$4 sm:$0xff]  }
 0x682   : > { %v23270_v33 = vld [vmem:[#allocation77_spill] sm:$0xff] }
 0x683   : > { %13317 = vmatpush2.bf16.msra.mxu0 %v19276_v58 }
 0x684   : > { %13370 = vmatpush2.bf16.msra.mxu1 %v19279_v62  ;;  %13318 = vmatprep.subr.bf16.mxu0 %v19284_v17  ;;  %v23265_v17 = vld [vmem:[#allocation53_spill] sm:$0xff] }
 0x685   : > { %13371 = vmatprep.subr.bf16.mxu1 %v19287_v48  ;;  %v4420_v48 = vadd.f32 %v23265_v17, %v4367_v15 }
 0x687   : > { %13319 = vmatpush2.bf16.msra.mxu0 %v19282_v7  ;;  %v4861_v5 = vadd.f32 %v4420_v48, %v541_v63 }
 0x688   : > { %13372 = vmatpush2.bf16.msra.mxu1 %v19285_v31  ;;  %13394 = vmatprep.subr.bf16.mxu0 %v19290_v43 }
 0x689   : > { %13447 = vmatprep.subr.bf16.mxu1 %v19293_v37  ;;  %v9183_v15 = vadd.f32 %v21780_v61, %v4861_v5 }
 0x68a   : > { %v13004_v44 = vpop.f32.mrf.mxu0  ;;  %13321 = vmatmul.mubr.bf16.vlgmr.msra.gmra.mxu0 %v22265_v0 }
 0x68b   : > { %v13057_v58 = vpop.f32.mrf.mxu1  ;;  %13374 = vmatmul.mubr.bf16.vlgmr.msra.gmra.mxu1 %v22269_v14  ;;  %v13005_v62 = vadd.f32 %v13004_v44, %v22620_v13  ;;  %13395 = vmatpush1.bf16.msra.mxu0 %v19288_v20  ;;  %v23266_v13 = vld [vmem:[#allocation51_spill] sm:$0xff] }
 0x68c   : > { %13448 = vmatpush1.bf16.msra.mxu1 %v19291_v9  ;;  %v13006_v21 = vpop.f32.mrf.mxu0  ;;  %13396 = vmatprep.subr.bf16.mxu0 %v19296_v52  ;;  %v4324_v7 = vadd.f32 %v23266_v13, %v4271_v41  ;;  %v19312_v13 = vld [vmem:[%s19998_s16 + $0x2c68] ss:$16 sps:$4 sm:$0xff]  }
 0x68d   : > { %v13059_v6 = vpop.f32.mrf.mxu1  ;;  %13449 = vmatprep.subr.bf16.mxu1 %v19299_v51  ;;  %v13058_v0 = vadd.f32 %v13057_v58, %v13005_v62  ;;  %v13007_v14 = vadd.f32 %v13006_v21, %v22625_v49  ;;  %13330 = vmatprep.mubr.bf16.mxu0 %v22275_v60  ;;  %v19303_v49 = vld [vmem:[%s19998_s16 + $0x2ea8] ss:$16 sps:$4 sm:$0xff]   ;;  %v23268_v60 = vld [vmem:[#allocation54_spill] sm:$0xff] }
 0x68e   : > { %13383 = vmatprep.mubr.bf16.mxu1 %v22277_v50  ;;  %v13008_v31 = vpop.f32.mrf.mxu0  ;;  %v4377_v20 = vadd.f32 %v23268_v60, %v4324_v7  ;;  %v19306_v58 = vld [vmem:[%s19998_s16 + $0x2c88] ss:$16 sps:$4 sm:$0xff]   ;;  %v23279_v60 = vld [vmem:[#allocation80_spill] sm:$0xff] }
 0x68f   : > { %v13061_v39 = vpop.f32.mrf.mxu1  ;;  %v22734_v54 = vadd.f32 %v13058_v0, %v21765_v38  ;;  %v13060_v43 = vadd.f32 %v13059_v6, %v13007_v14  ;;  %v13009_v37 = vadd.f32 %v13008_v31, %v22632_v53  ;;  %13397 = vmatpush1.bf16.msra.mxu0 %v19294_v4  ;;  %v23272_v62 = vld [vmem:[#allocation55_spill] sm:$0xff] }
 0x690   : > { %13450 = vmatpush1.bf16.msra.mxu1 %v19297_v18  ;;  %v13010_v50 = vpop.f32.mrf.mxu0  ;;  %13398 = vmatprep.subr.bf16.mxu0 %v19302_v56  ;;  %v4430_v61 = vadd.f32 %v23272_v62, %v4377_v20  ;;  %v19323_v31 = vld [vmem:[%s19998_s16 + $0x2e4c] ss:$16 sps:$4 sm:$0xff]   ;;  %v19339_v62 = vld [vmem:[%s19998_s16 + $0x2fe8] ss:$16 sps:$4 sm:$0xff]  }
 0x691   : > { %23267 = vst [vmem:[#allocation40_spill] sm:$0xff] %v22734_v54  ;;  %v13063_v9 = vpop.f32.mrf.mxu1  ;;  %13451 = vmatprep.subr.bf16.mxu1 %v19305_v25  ;;  %v22743_v38 = vadd.f32 %v13060_v43, %v21773_v30  ;;  %v13062_v22 = vadd.f32 %v13061_v39, %v13009_v37  ;;  %v13011_v53 = vadd.f32 %v13010_v50, %v22637_v47  ;;  %v19309_v47 = vld [vmem:[%s19998_s16 + $0x2e88] ss:$16 sps:$4 sm:$0xff]   ;;  %v23274_v25 = vld [vmem:[#allocation78_spill] sm:$0xff] }
 0x692   : > { %v13014_v52 = vpop.f32.mrf.mxu0  ;;  %13331 = vmatmul.mubr.bf16.gmra.mxu0 %v22303_v8  ;;  %v19314_v8 = vld [vmem:[%s19998_s16 + $0x2c6c] ss:$16 sps:$4 sm:$0xff]  }
 0x693   : > { %23269 = vst [vmem:[#allocation41_spill] sm:$0xff] %v22743_v38  ;;  %v13067_v51 = vpop.f32.mrf.mxu1  ;;  %13384 = vmatmul.mubr.bf16.gmra.mxu1 %v22305_v23  ;;  %v22750_v41 = vadd.f32 %v13062_v22, %v23270_v33  ;;  %v13064_v44 = vadd.f32 %v13063_v9, %v13011_v53  ;;  %v13015_v30 = vadd.f32 %v13014_v52, %v22645_v3  ;;  %v19317_v23 = vld [vmem:[%s19998_s16 + $0x2e6c] ss:$16 sps:$4 sm:$0xff]   ;;  %v549_v3 = vld [vmem:[#allocation2 + $0x70] sm:$0xff]  ;;  %v19318_v9 = vld [vmem:[%s19998_s16 + $0x2c48] ss:$16 sps:$4 sm:$0xff]  }
 0x694   : > { %13399 = vmatpush1.bf16.msra.mxu0 %v19300_v2  ;;  %13452 = vmatpush1.bf16.msra.mxu1 %v19303_v49  ;;  %v13016_v4 = vpop.f32.mrf.mxu0  ;;  %v4869_v39 = vadd.f32 %v4430_v61, %v549_v3  ;;  %v23276_v43 = vld [vmem:[#allocation79_spill] sm:$0xff]  ;;  %v23278_v49 = vld [vmem:[#allocation81_spill] sm:$0xff] }
 0x695   : > { %23271 = vst [vmem:[#allocation44_spill] sm:$0xff] %v22750_v41  ;;  %v13069_v18 = vpop.f32.mrf.mxu1  ;;  %13400 = vmatprep.subr.bf16.mxu0 %v19308_v19  ;;  %13453 = vmatprep.subr.bf16.mxu1 %v19311_v16  ;;  %v22758_v17 = vadd.f32 %v13064_v44, %v9183_v15  ;;  %v13017_v48 = vadd.f32 %v13016_v4, %v22650_v40  ;;  %v19315_v40 = vld [vmem:[%s19998_s16 + $0x2e68] ss:$16 sps:$4 sm:$0xff]   ;;  %v19329_v16 = vld [vmem:[%s19998_s16 + $0x2e2c] ss:$16 sps:$4 sm:$0xff]  }
 0x696   : > { %v13068_v21 = vadd.f32 %v13067_v51, %v13015_v30  ;;  %13426 = vmatprep.mubr.bf16.mxu0 %v22317_v36  ;;  %13479 = vmatprep.mubr.bf16.mxu1 %v22324_v59  ;;  %v13018_v6 = vpop.f32.mrf.mxu0  ;;  %v19320_v59 = vld [vmem:[%s19998_s16 + $0x2c4c] ss:$16 sps:$4 sm:$0xff]   ;;  %v9191_v5 = vadd.f32 %v23278_v49, %v4869_v39  ;;  %v19321_v19 = vld [vmem:[%s19998_s16 + $0x2e48] ss:$16 sps:$4 sm:$0xff]  }
 0x697   : > { %23273 = vst [vmem:[#allocation45_spill] sm:$0xff] %v22758_v17  ;;  %v13071_v56 = vpop.f32.mrf.mxu1  ;;  %v13019_v0 = vadd.f32 %v13018_v6, %v22657_v46  ;;  %v13070_v14 = vadd.f32 %v13069_v18, %v13017_v48  ;;  %v19324_v53 = vld [vmem:[%s19998_s16 + $0x2c28] ss:$16 sps:$4 sm:$0xff]   ;;  %v19332_v52 = vld [vmem:[%s19998_s16 + $0x2c0c] ss:$16 sps:$4 sm:$0xff]  }
 0x698   : > { %v22764_v63 = vadd.f32 %v13068_v21, %v23274_v25  ;;  %13401 = vmatpush1.bf16.msra.mxu0 %v19306_v58  ;;  %13454 = vmatpush1.bf16.msra.mxu1 %v19309_v47  ;;  %v13020_v7 = vpop.f32.mrf.mxu0  ;;  %v19327_v15 = vld [vmem:[%s19998_s16 + $0x2e28] ss:$16 sps:$4 sm:$0xff]   ;;  %v19335_v51 = vld [vmem:[%s19998_s16 + $0x2e0c] ss:$16 sps:$4 sm:$0xff]  }
 0x699   : > { %v13073_v36 = vpop.f32.mrf.mxu1  ;;  %13402 = vmatprep.subr.bf16.mxu0 %v19314_v8  ;;  %13455 = vmatprep.subr.bf16.mxu1 %v19317_v23  ;;  %v22772_v37 = vadd.f32 %v13070_v14, %v23276_v43  ;;  %v13021_v46 = vadd.f32 %v13020_v7, %v22659_v24  ;;  %v13072_v2 = vadd.f32 %v13071_v56, %v13019_v0  ;;  %v19326_v24 = vld [vmem:[%s19998_s16 + $0x2c2c] ss:$16 sps:$4 sm:$0xff]   ;;  %v19330_v33 = vld [vmem:[%s19998_s16 + $0x2c08] ss:$16 sps:$4 sm:$0xff]  }
 0x69a   : > { %23275 = vst [vmem:[#allocation42_spill] sm:$0xff] %v22764_v63  ;;  %v19333_v44 = vld [vmem:[%s19998_s16 + $0x2e08] ss:$16 sps:$4 sm:$0xff]   ;;  %v19338_v30 = vld [vmem:[%s19998_s16 + $0x2dec] ss:$16 sps:$4 sm:$0xff]  }
 0x69b   : > { %23277 = vst [vmem:[#allocation43_spill] sm:$0xff] %v22772_v37  ;;  %v22777_v20 = vadd.f32 %v13072_v2, %v23279_v60  ;;  %v13074_v50 = vadd.f32 %v13073_v36, %v13021_v46  ;;  %v19341_v58 = vld [vmem:[%s19998_s16 + $0x2fec] ss:$16 sps:$4 sm:$0xff]   ;;  %v19336_v47 = vld [vmem:[%s19998_s16 + $0x2de8] ss:$16 sps:$4 sm:$0xff]  }
 0x69c   : > { %13403 = vmatpush1.bf16.msra.mxu0 %v19312_v13  ;;  %13456 = vmatpush1.bf16.msra.mxu1 %v19315_v40  ;;  %v19344_v61 = vld [vmem:[%s19998_s16 + $0x2dcc] ss:$16 sps:$4 sm:$0xff]   ;;  %v19342_v18 = vld [vmem:[%s19998_s16 + $0x2dc8] ss:$16 sps:$4 sm:$0xff]  }
 0x69d   : > { %23280 = vst [vmem:[#allocation48_spill] sm:$0xff] %v22777_v20  ;;  %13404 = vmatprep.subr.bf16.mxu0 %v19320_v59  ;;  %13457 = vmatprep.subr.bf16.mxu1 %v19323_v31  ;;  %v22783_v22 = vadd.f32 %v13074_v50, %v9191_v5  ;;  %v19347_v4 = vld [vmem:[%s19998_s16 + $0x2fcc] ss:$16 sps:$4 sm:$0xff]   ;;  %v19345_v8 = vld [vmem:[%s19998_s16 + $0x2fc8] ss:$16 sps:$4 sm:$0xff]  }
 0x69e   : > { %v19350_v23 = vld [vmem:[%s19998_s16 + $0x2dac] ss:$16 sps:$4 sm:$0xff]   ;;  %v19348_v21 = vld [vmem:[%s19998_s16 + $0x2da8] ss:$16 sps:$4 sm:$0xff]  }
 0x69f   : > { %23281 = vst [vmem:[#allocation46_spill] sm:$0xff] %v22783_v22  ;;  %v19353_v48 = vld [vmem:[%s19998_s16 + $0x2fac] ss:$16 sps:$4 sm:$0xff]   ;;  %v19351_v3 = vld [vmem:[%s19998_s16 + $0x2fa8] ss:$16 sps:$4 sm:$0xff]  }
 0x6a0   : > { %13405 = vmatpush1.bf16.msra.mxu0 %v19318_v9  ;;  %13458 = vmatpush1.bf16.msra.mxu1 %v19321_v19  ;;  %v19356_v6 = vld [vmem:[%s19998_s16 + $0x2d8c] ss:$16 sps:$4 sm:$0xff]   ;;  %v19354_v25 = vld [vmem:[%s19998_s16 + $0x2d88] ss:$16 sps:$4 sm:$0xff]  }
 0x6a1   : > { %13406 = vmatprep.subr.bf16.mxu0 %v19326_v24  ;;  %13459 = vmatprep.subr.bf16.mxu1 %v19329_v16  ;;  %v19359_v56 = vld [vmem:[%s19998_s16 + $0x2f8c] ss:$16 sps:$4 sm:$0xff]   ;;  %v19357_v0 = vld [vmem:[%s19998_s16 + $0x2f88] ss:$16 sps:$4 sm:$0xff]  }
 0x6a2   : > { %v19362_v14 = vld [vmem:[%s19998_s16 + $0x2d6c] ss:$16 sps:$4 sm:$0xff]   ;;  %v19360_v40 = vld [vmem:[%s19998_s16 + $0x2d68] ss:$16 sps:$4 sm:$0xff]  }
 0x6a3   : > { %v19365_v13 = vld [vmem:[%s19998_s16 + $0x2f6c] ss:$16 sps:$4 sm:$0xff]   ;;  %v19363_v7 = vld [vmem:[%s19998_s16 + $0x2f68] ss:$16 sps:$4 sm:$0xff]  }
 0x6a4   : > { %13407 = vmatpush1.bf16.msra.mxu0 %v19324_v53  ;;  %13460 = vmatpush1.bf16.msra.mxu1 %v19327_v15  ;;  %v19368_v36 = vld [vmem:[%s19998_s16 + $0x2d4c] ss:$16 sps:$4 sm:$0xff]   ;;  %v19366_v31 = vld [vmem:[%s19998_s16 + $0x2d48] ss:$16 sps:$4 sm:$0xff]  }
 0x6a5   : > { %13408 = vmatprep.subr.bf16.mxu0 %v19332_v52  ;;  %13461 = vmatprep.subr.bf16.mxu1 %v19335_v51  ;;  %v19371_v59 = vld [vmem:[%s19998_s16 + $0x2f4c] ss:$16 sps:$4 sm:$0xff]   ;;  %v19369_v39 = vld [vmem:[%s19998_s16 + $0x2f48] ss:$16 sps:$4 sm:$0xff]  }
 0x6a6   : > { %v19374_v43 = vld [vmem:[%s19998_s16 + $0x2d2c] ss:$16 sps:$4 sm:$0xff]   ;;  %v19372_v2 = vld [vmem:[%s19998_s16 + $0x2d28] ss:$16 sps:$4 sm:$0xff]  }
 0x6a7   : > { %v19377_v46 = vld [vmem:[%s19998_s16 + $0x2f2c] ss:$16 sps:$4 sm:$0xff]   ;;  %v19375_v49 = vld [vmem:[%s19998_s16 + $0x2f28] ss:$16 sps:$4 sm:$0xff]  }
 0x6a8   : > { %13409 = vmatpush1.bf16.msra.mxu0 %v19330_v33  ;;  %13462 = vmatpush1.bf16.msra.mxu1 %v19333_v44  ;;  %v19380_v5 = vld [vmem:[%s19998_s16 + $0x2d0c] ss:$16 sps:$4 sm:$0xff]   ;;  %v19378_v50 = vld [vmem:[%s19998_s16 + $0x2d08] ss:$16 sps:$4 sm:$0xff]  }
 0x6a9   : > { %13410 = vmatprep.subr.bf16.mxu0 %v19338_v30  ;;  %13463 = vmatprep.subr.bf16.mxu1 %v19341_v58  ;;  %v19383_v60 = vld [vmem:[%s19998_s16 + $0x2f0c] ss:$16 sps:$4 sm:$0xff]   ;;  %v19381_v9 = vld [vmem:[%s19998_s16 + $0x2f08] ss:$16 sps:$4 sm:$0xff]  }
 0x6aa   : > { %v23285_v37 = vld [vmem:[#allocation61_spill] sm:$0xff] }
 0x6ac   : > { %13411 = vmatpush2.bf16.msra.mxu0 %v19336_v47  ;;  %13464 = vmatpush2.bf16.msra.mxu1 %v19339_v62 }
 0x6ad   : > { %13412 = vmatprep.subr.bf16.mxu0 %v19344_v61  ;;  %13465 = vmatprep.subr.bf16.mxu1 %v19347_v4 }
 0x6b0   : > { %13413 = vmatpush2.bf16.msra.mxu0 %v19342_v18  ;;  %13466 = vmatpush2.bf16.msra.mxu1 %v19345_v8 }
 0x6b1   : > { %13414 = vmatprep.subr.bf16.mxu0 %v19350_v23  ;;  %13467 = vmatprep.subr.bf16.mxu1 %v19353_v48 }
 0x6b4   : > { %13415 = vmatpush2.bf16.msra.mxu0 %v19348_v21  ;;  %13468 = vmatpush2.bf16.msra.mxu1 %v19351_v3 }
 0x6b5   : > { %13416 = vmatprep.subr.bf16.mxu0 %v19356_v6  ;;  %13469 = vmatprep.subr.bf16.mxu1 %v19359_v56 }
 0x6b8   : > { %13417 = vmatpush2.bf16.msra.mxu0 %v19354_v25  ;;  %13470 = vmatpush2.bf16.msra.mxu1 %v19357_v0 }
 0x6b9   : > { %13418 = vmatprep.subr.bf16.mxu0 %v19362_v14  ;;  %13471 = vmatprep.subr.bf16.mxu1 %v19365_v13 }
 0x6bc   : > { %13419 = vmatpush2.bf16.msra.mxu0 %v19360_v40  ;;  %13472 = vmatpush2.bf16.msra.mxu1 %v19363_v7 }
 0x6bd   : > { %13420 = vmatprep.subr.bf16.mxu0 %v19368_v36  ;;  %13473 = vmatprep.subr.bf16.mxu1 %v19371_v59 }
 0x6c0   : > { %13421 = vmatpush2.bf16.msra.mxu0 %v19366_v31  ;;  %13474 = vmatpush2.bf16.msra.mxu1 %v19369_v39 }
 0x6c1   : > { %13422 = vmatprep.subr.bf16.mxu0 %v19374_v43  ;;  %13475 = vmatprep.subr.bf16.mxu1 %v19377_v46  ;;  %v23282_v43 = vld [vmem:[#allocation56_spill] sm:$0xff]  ;;  %v23283_v46 = vld [vmem:[#allocation57_spill] sm:$0xff] }
 0x6c4   : > { %13423 = vmatpush2.bf16.msra.mxu0 %v19372_v2  ;;  %13476 = vmatpush2.bf16.msra.mxu1 %v19375_v49  ;;  %v4526_v2 = vadd.f32 %v23283_v46, %v23282_v43  ;;  %v23288_v43 = vld [vmem:[#allocation64_spill] sm:$0xff] }
 0x6c5   : > { %13424 = vmatprep.subr.bf16.mxu0 %v19380_v5  ;;  %13477 = vmatprep.subr.bf16.mxu1 %v19383_v60  ;;  %v23284_v5 = vld [vmem:[#allocation60_spill] sm:$0xff] }
 0x6c6   : > { %v4579_v60 = vadd.f32 %v23284_v5, %v4526_v2 }
 0x6c8   : > { %13425 = vmatpush2.bf16.msra.mxu0 %v19378_v50  ;;  %13478 = vmatpush2.bf16.msra.mxu1 %v19381_v9  ;;  %v4632_v63 = vadd.f32 %v23285_v37, %v4579_v60 }
 0x6ca   : > { %v13110_v19 = vpop.f32.mrf.mxu0  ;;  %v4685_v46 = vadd.f32 %v23288_v43, %v4632_v63  ;;  %v4642_v63 = vadd.f32 %v23291_v26, %v4589_v29 }
 0x6cb   : > { %13427 = vmatmul.mubr.bf16.vlgmr.msra.gmra.mxu0 %v22411_v32  ;;  %13480 = vmatmul.mubr.bf16.vlgmr.msra.gmra.mxu1 %v22415_v35  ;;  %v13163_v24 = vpop.f32.mrf.mxu1 }
 0x6cc   : > { %13436 = vmatprep.mubr.bf16.mxu0 %v22421_v57  ;;  %13489 = vmatprep.mubr.bf16.mxu1 %v22423_v27  ;;  %v13112_v16 = vpop.f32.mrf.mxu0  ;;  %v13164_v55 = vadd.f32 %v13163_v24, %v13110_v19 }
 0x6cd   : > { %v13165_v53 = vpop.f32.mrf.mxu1 }
 0x6ce   : > { %v13114_v15 = vpop.f32.mrf.mxu0  ;;  %v13166_v22 = vadd.f32 %v13165_v53, %v13112_v16 }
 0x6cf   : > { %v13167_v52 = vpop.f32.mrf.mxu1 }
 0x6d0   : > { %v13116_v51 = vpop.f32.mrf.mxu0  ;;  %v13168_v38 = vadd.f32 %v13167_v52, %v13114_v15 }
 0x6d1   : > { %v13169_v44 = vpop.f32.mrf.mxu1 }
 0x6d2   : > { %v13120_v33 = vpop.f32.mrf.mxu0  ;;  %v13170_v12 = vadd.f32 %v13169_v44, %v13116_v51  ;;  %v23292_v51 = vld [vmem:[#allocation69_spill] sm:$0xff] }
 0x6d3   : > { %13437 = vmatmul.mubr.bf16.gmra.mxu0 %v22437_v1  ;;  %13490 = vmatmul.mubr.bf16.gmra.mxu1 %v22439_v11  ;;  %v13173_v32 = vpop.f32.mrf.mxu1 }
 0x6d4   : > { %v13122_v30 = vpop.f32.mrf.mxu0  ;;  %v13174_v19 = vadd.f32 %v13173_v32, %v13120_v33 }
 0x6d5   : > { %v13175_v35 = vpop.f32.mrf.mxu1 }
 0x6d6   : > { %v13124_v58 = vpop.f32.mrf.mxu0 }
 0x6d7   : > { %v13177_v57 = vpop.f32.mrf.mxu1 }
 0x6d8   : > { %v22829_v47 = vpop.f32.mrf.mxu0 }
 0x6d9   : > { %v22831_v1 = vpop.f32.mrf.mxu1 }
 0x70a   : > { %v13216_v27 = vpop.f32.mrf.mxu0 }
 0x70b   : > { %v13269_v11 = vpop.f32.mrf.mxu1  ;;  %v13217_v20 = vadd.f32 %v13216_v27, %v13164_v55  ;;  %v23290_v27 = vld [vmem:[#allocation65_spill] sm:$0xff] }
 0x70c   : > { %v13218_v62 = vpop.f32.mrf.mxu0  ;;  %v4738_v15 = vadd.f32 %v23290_v27, %v4685_v46 }
 0x70d   : > { %v13271_v61 = vpop.f32.mrf.mxu1  ;;  %v13219_v54 = vadd.f32 %v13218_v62, %v13166_v22  ;;  %v13270_v2 = vadd.f32 %v13269_v11, %v13217_v20  ;;  %v13176_v22 = vadd.f32 %v13175_v35, %v13122_v30 }
 0x70e   : > { %v13220_v4 = vpop.f32.mrf.mxu0  ;;  %v4791_v20 = vadd.f32 %v23292_v51, %v4738_v15 }
 0x70f   : > { %v13273_v18 = vpop.f32.mrf.mxu1  ;;  %v13221_v5 = vadd.f32 %v13220_v4, %v13168_v38  ;;  %v13272_v37 = vadd.f32 %v13271_v61, %v13219_v54  ;;  %v13178_v38 = vadd.f32 %v13177_v57, %v13124_v58  ;;  %v23293_v54 = vld [vmem:[#allocation66_spill] sm:$0xff]  ;;  %v13180_v61 = vadd.f32 %v22831_v1, %v22829_v47 }
 0x710   : > { %v13222_v8 = vpop.f32.mrf.mxu0 }
 0x711   : > { %v13275_v23 = vpop.f32.mrf.mxu1  ;;  %v13223_v16 = vadd.f32 %v13222_v8, %v13170_v12  ;;  %v13274_v62 = vadd.f32 %v13273_v18, %v13221_v5  ;;  %v4695_v12 = vadd.f32 %v23293_v54, %v4642_v63  ;;  %v23298_v63 = vld [vmem:[#allocation68_spill] sm:$0xff]  ;;  %v551_v54 = vld [vmem:[#allocation2 + $0x28] sm:$0xff] }
 0x712   : > { %v13226_v48 = vpop.f32.mrf.mxu0 }
 0x713   : > { %v13279_v21 = vpop.f32.mrf.mxu1  ;;  %v13227_v52 = vadd.f32 %v13226_v48, %v13174_v19  ;;  %v13276_v33 = vadd.f32 %v13275_v23, %v13223_v16  ;;  %v23296_v19 = vld [vmem:[#allocation75_spill] sm:$0xff] }
 0x714   : > { %v13228_v3 = vpop.f32.mrf.mxu0 }
 0x715   : > { %v13281_v6 = vpop.f32.mrf.mxu1  ;;  %v13229_v44 = vadd.f32 %v13228_v3, %v13176_v22  ;;  %v13280_v30 = vadd.f32 %v13279_v21, %v13227_v52  ;;  %v23297_v22 = vld [vmem:[#allocation71_spill] sm:$0xff] }
 0x716   : > { %v13230_v56 = vpop.f32.mrf.mxu0 }
 0x717   : > { %v22833_v25 = vpop.f32.mrf.mxu1  ;;  %v13231_v35 = vadd.f32 %v13230_v56, %v13178_v38  ;;  %v13282_v57 = vadd.f32 %v13281_v6, %v13229_v44 }
 0x718   : > { %v13232_v0 = vpop.f32.mrf.mxu0 }
 0x719   : > { %v22835_v14 = vpop.f32.mrf.mxu1  ;;  %v13233_v3 = vadd.f32 %v13232_v0, %v13180_v61  ;;  %v13284_v1 = vadd.f32 %v22833_v25, %v13231_v35 }
 0x74a   : > { %v13322_v13 = vpop.f32.mrf.mxu0 }
 0x74b   : > { %v13375_v40 = vpop.f32.mrf.mxu1  ;;  %v13323_v53 = vadd.f32 %v13322_v13, %v13270_v2  ;;  %v23294_v13 = vld [vmem:[#allocation70_spill] sm:$0xff]  ;;  %v23295_v2 = vld [vmem:[#allocation67_spill] sm:$0xff] }
 0x74c   : > { %v13324_v7 = vpop.f32.mrf.mxu0  ;;  %v4844_v58 = vadd.f32 %v23294_v13, %v4791_v20  ;;  %v4748_v47 = vadd.f32 %v23295_v2, %v4695_v12  ;;  %v23299_v20 = vld [vmem:[#allocation76_spill] sm:$0xff] }
 0x74d   : > { %v13377_v36 = vpop.f32.mrf.mxu1  ;;  %v13325_v10 = vadd.f32 %v13324_v7, %v13272_v37  ;;  %v13376_v32 = vadd.f32 %v13375_v40, %v13323_v53 }
 0x74e   : > { %v13326_v59 = vpop.f32.mrf.mxu0  ;;  %v4801_v37 = vadd.f32 %v23296_v19, %v4748_v47 }
 0x74f   : > { %v13379_v31 = vpop.f32.mrf.mxu1  ;;  %v13327_v11 = vadd.f32 %v13326_v59, %v13274_v62  ;;  %v13378_v8 = vadd.f32 %v13377_v36, %v13325_v10  ;;  %v543_v59 = vld [vmem:[#allocation2 + $0x48] sm:$0xff] }
 0x750   : > { %v13328_v39 = vpop.f32.mrf.mxu0  ;;  %v4854_v38 = vadd.f32 %v23299_v20, %v4801_v37 }
 0x751   : > { %v13381_v49 = vpop.f32.mrf.mxu1  ;;  %v13329_v29 = vadd.f32 %v13328_v39, %v13276_v33  ;;  %v13380_v60 = vadd.f32 %v13379_v31, %v13327_v11  ;;  %v13286_v31 = vadd.f32 %v22835_v14, %v13233_v3 }
 0x752   : > { %v13332_v50 = vpop.f32.mrf.mxu0 }
 0x753   : > { %v22840_v9 = vpop.f32.mrf.mxu1  ;;  %v13333_v7 = vadd.f32 %v13332_v50, %v13280_v30  ;;  %v13382_v39 = vadd.f32 %v13381_v49, %v13329_v29  ;;  %v4863_v50 = vadd.f32 %v4844_v58, %v543_v59  ;;  %v23301_v29 = vld [vmem:[#allocation73_spill] sm:$0xff] }
 0x754   : > { %v13334_v17 = vpop.f32.mrf.mxu0 }
 0x755   : > { %v22843_v41 = vpop.f32.mrf.mxu1  ;;  %v13335_v21 = vadd.f32 %v13334_v17, %v13282_v57  ;;  %v13386_v16 = vadd.f32 %v22840_v9, %v13333_v7  ;;  %v23302_v57 = vld [vmem:[#allocation82_spill] sm:$0xff] }
 0x756   : > { %v13336_v24 = vpop.f32.mrf.mxu0  ;;  %v23303_v7 = vld [vmem:[#allocation74_spill] sm:$0xff] }
 0x757   : > { %v22849_v55 = vpop.f32.mrf.mxu1  ;;  %v13337_v15 = vadd.f32 %v13336_v24, %v13284_v1  ;;  %v13388_v52 = vadd.f32 %v22843_v41, %v13335_v21 }
 0x758   : > { %v13338_v45 = vpop.f32.mrf.mxu0 }
 0x759   : > { %v13391_v34 = vpop.f32.mrf.mxu1  ;;  %v13339_v26 = vadd.f32 %v13338_v45, %v13286_v31  ;;  %v23300_v45 = vld [vmem:[#allocation72_spill] sm:$0xff] }
 0x75b   : > { %v13392_v61 = vadd.f32 %v13391_v34, %v13339_v26 }
 0x78b   : > { %v13428_v4 = vpop.f32.mrf.mxu0  ;;  %v13481_v18 = vpop.f32.mrf.mxu1 }
 0x78c   : > { %v13429_v48 = vadd.f32 %v13428_v4, %v13376_v32 }
 0x78d   : > { %v13430_v23 = vpop.f32.mrf.mxu0  ;;  %v13483_v40 = vpop.f32.mrf.mxu1 }
 0x78e   : > { %v13482_v43 = vadd.f32 %v13481_v18, %v13429_v48  ;;  %v13431_v46 = vadd.f32 %v13430_v23, %v13378_v8  ;;  %v4871_v8 = vadd.f32 %v4854_v38, %v551_v54 }
 0x78f   : > { %v13432_v56 = vpop.f32.mrf.mxu0  ;;  %v13485_v36 = vpop.f32.mrf.mxu1 }
 0x790   : > { %v22861_v5 = vadd.f32 %v13482_v43, %v22307_v28  ;;  %v13484_v6 = vadd.f32 %v13483_v40, %v13431_v46  ;;  %v13433_v0 = vadd.f32 %v13432_v56, %v13380_v60  ;;  %v9185_v28 = vadd.f32 %v23297_v22, %v4863_v50 }
 0x791   : > { %v13434_v53 = vpop.f32.mrf.mxu0  ;;  %v13487_v27 = vpop.f32.mrf.mxu1  ;;  %v9193_v3 = vadd.f32 %v23302_v57, %v4871_v8 }
 0x792   : > { %v22867_v17 = vadd.f32 %v13484_v6, %v22319_v42  ;;  %v13486_v25 = vadd.f32 %v13485_v36, %v13433_v0  ;;  %v13435_v49 = vadd.f32 %v13434_v53, %v13382_v39  ;;  %v13390_v42 = vadd.f32 %v22849_v55, %v13337_v15 }
 0x793   : > { %v13438_v62 = vpop.f32.mrf.mxu0  ;;  %v13491_v10 = vpop.f32.mrf.mxu1 }
 0x794   : > { %v22872_v51 = vadd.f32 %v13486_v25, %v23298_v63  ;;  %v13488_v14 = vadd.f32 %v13487_v27, %v13435_v49  ;;  %v13439_v9 = vadd.f32 %v13438_v62, %v13386_v16 }
 0x795   : > { %v13440_v24 = vpop.f32.mrf.mxu0  ;;  %v13493_v44 = vpop.f32.mrf.mxu1 }
 0x796   : > { %v22876_v33 = vadd.f32 %v13488_v14, %v9185_v28  ;;  %v13492_v32 = vadd.f32 %v13491_v10, %v13439_v9  ;;  %v13441_v11 = vadd.f32 %v13440_v24, %v13388_v52 }
 0x797   : > { %v13442_v41 = vpop.f32.mrf.mxu0  ;;  %v13495_v12 = vpop.f32.mrf.mxu1 }
 0x798   : > { %v22879_v30 = vadd.f32 %v13492_v32, %v23300_v45  ;;  %v13494_v35 = vadd.f32 %v13493_v44, %v13441_v11  ;;  %v13443_v4 = vadd.f32 %v13442_v41, %v13390_v42 }
 0x799   : > { %v13444_v18 = vpop.f32.mrf.mxu0  ;;  %v13497_v58 = vpop.f32.mrf.mxu1 }
 0x79a   : > { %v22882_v48 = vadd.f32 %v13494_v35, %v23301_v29  ;;  %v13496_v13 = vadd.f32 %v13495_v12, %v13443_v4  ;;  %v13445_v55 = vadd.f32 %v13444_v18, %v13392_v61  ;;  %13519 = sbr.rel (%p16878_p0) target bundleno = 1959 (0x7a7), region = 76 }
 0x79c   : > { %v22886_v23 = vadd.f32 %v13496_v13, %v23303_v7  ;;  %v13498_v40 = vadd.f32 %v13497_v58, %v13445_v55 }
 0x79e   : > { %v22888_v34 = vadd.f32 %v13498_v40, %v9193_v3 }
 0x79f   : > { %v23305_v59 = vld [vmem:[#allocation40_spill] sm:$0xff]  ;;  %v23306_v60 = vld [vmem:[#allocation41_spill] sm:$0xff]  ;;  %13522 = vst [vmem:[#allocation2 + $0x58] sm:$0xff] %v22861_v5  ;;  %13523 = vst [vmem:[#allocation2 + $0x18] sm:$0xff] %v22867_v17 }
 0x7a0   : > { %13520 = vst [vmem:[#allocation2 + $0x30] sm:$0xff] %v23305_v59  ;;  %13521 = vst [vmem:[#allocation2] sm:$0xff] %v23306_v60  ;;  %v23307_v43 = vld [vmem:[#allocation44_spill] sm:$0xff]  ;;  %v23308_v46 = vld [vmem:[#allocation45_spill] sm:$0xff] }
 0x7a1   : > { %13524 = vst [vmem:[#allocation2 + $0x50] sm:$0xff] %v23307_v43  ;;  %13525 = vst [vmem:[#allocation2 + $0x68] sm:$0xff] %v23308_v46  ;;  %v23309_v2 = vld [vmem:[#allocation42_spill] sm:$0xff]  ;;  %v23310_v47 = vld [vmem:[#allocation43_spill] sm:$0xff] }
 0x7a2   : > { %13526 = vst [vmem:[#allocation2 + $0x8] sm:$0xff] %v22872_v51  ;;  %13527 = vst [vmem:[#allocation2 + $0x48] sm:$0xff] %v22876_v33  ;;  %v23311_v1 = vld [vmem:[#allocation48_spill] sm:$0xff]  ;;  %v23312_v21 = vld [vmem:[#allocation46_spill] sm:$0xff] }
 0x7a3   : > { %13528 = vst [vmem:[#allocation2 + $0x40] sm:$0xff] %v23309_v2  ;;  %13529 = vst [vmem:[#allocation2 + $0x20] sm:$0xff] %v23310_v47 }
 0x7a4   : > { %13530 = vst [vmem:[#allocation2 + $0x10] sm:$0xff] %v22879_v30  ;;  %13531 = vst [vmem:[#allocation2 + $0x38] sm:$0xff] %v22882_v48 }
 0x7a5   : > { %13532 = vst [vmem:[#allocation2 + $0x60] sm:$0xff] %v23311_v1  ;;  %13533 = vst [vmem:[#allocation2 + $0x70] sm:$0xff] %v23312_v21 }
 0x7a6   : > { %13534 = vst [vmem:[#allocation2 + $0x78] sm:$0xff] %v22886_v23  ;;  %13535 = vst [vmem:[#allocation2 + $0x28] sm:$0xff] %v22888_v34 }
 0x7a7 PF: > { %s23313_s13 = sld [smem:[#allocation27_spill]] }
 0x7ad   : > { %p16879_p4 = scmp.ne.s32.totalorder %s23313_s13, 2 }
 0x7af   : > { %13539 = sbr.rel (%p16879_p4) target bundleno = 2025 (0x7e9), region = 80 }
 0x7b4   : > { %v13540_v56 = vld [vmem:[%s426_s14] sm:$0xf]  ;;  %v13578_v19 = vld [vmem:[%s435_s7] sm:$0xf]  ;;  %v13632_v27 = vld [vmem:[%s444_s22] sm:$0xf] }
 0x7b5   : > { %v23314_v36 = vld [vmem:[#allocation38_spill] sm:$0xff]  ;;  %v23315_v28 = vld [vmem:[#allocation40_spill] sm:$0xff]  ;;  %v23316_v62 = vld [vmem:[#allocation41_spill] sm:$0xff] }
 0x7b6   : > { %v13544_v39 = vsub.s32 0, %v23314_v36  ;;  %v13548_v6 = vsub.s32 1, %v23314_v36  ;;  %v13552_v0 = vsub.s32 2, %v23314_v36  ;;  %v13556_v50 = vsub.s32 3, %v23314_v36  ;;  %v13670_v14 = vld [vmem:[%s453_s20] sm:$0xf] }
 0x7b7   : > { %v23317_v4 = vld [vmem:[#allocation44_spill] sm:$0xff]  ;;  %v23318_v8 = vld [vmem:[#allocation45_spill] sm:$0xff] }
 0x7b8   : > { %v22916_v37 = vrot.slane %v13540_v56, %v13544_v39  ;;  %v22918_v31 = vrot.slane %v13540_v56, %v13548_v6  ;;  %v22920_v16 = vrot.slane %v13540_v56, %v13552_v0  ;;  %v22922_v53 = vrot.slane %v13540_v56, %v13556_v50 }
 0x7b9   : > { %v22926_v15 = vrot.slane %v13578_v19, %v13544_v39  ;;  %v22928_v25 = vrot.slane %v13578_v19, %v13548_v6  ;;  %v22930_v49 = vrot.slane %v13578_v19, %v13552_v0  ;;  %v22932_v22 = vrot.slane %v13578_v19, %v13556_v50 }
 0x7ba   : > { %v13562_v52 = vmul.f32 %v22916_v37, %v23315_v28  ;;  %v13563_v10 = vmul.f32 %v22918_v31, %v23316_v62  ;;  %v13564_v26 = vmul.f32 %v22920_v16, %v22861_v5  ;;  %v13565_v63 = vmul.f32 %v22922_v53, %v22867_v17 }
 0x7bb   : > { %v22944_v9 = vrot.slane %v13632_v27, %v13544_v39  ;;  %v22946_v20 = vrot.slane %v13632_v27, %v13548_v6  ;;  %v22948_v38 = vrot.slane %v13632_v27, %v13552_v0  ;;  %v22950_v24 = vrot.slane %v13632_v27, %v13556_v50 }
 0x7bc   : > { %v13600_v44 = vadd.f32 %v22926_v15, %v13562_v52  ;;  %v13601_v42 = vadd.f32 %v22928_v25, %v13563_v10  ;;  %v13602_v32 = vadd.f32 %v22930_v49, %v13564_v26  ;;  %v13603_v5 = vadd.f32 %v22932_v22, %v13565_v63 }
 0x7bd   : > { %v22956_v11 = vrot.slane %v13670_v14, %v13544_v39  ;;  %v22958_v17 = vrot.slane %v13670_v14, %v13548_v6  ;;  %v22960_v54 = vrot.slane %v13670_v14, %v13552_v0  ;;  %v22962_v41 = vrot.slane %v13670_v14, %v13556_v50 }
 0x7be   : > { %v13616_v12 = vmax.f32 %v13600_v44, 0.0  ;;  %v13617_v61 = vmax.f32 %v13601_v42, 0.0  ;;  %v13618_v45 = vmax.f32 %v13602_v32, 0.0  ;;  %v13619_v35 = vmax.f32 %v13603_v5, 0.0  ;;  %v23319_v32 = vld [vmem:[#allocation39_spill] sm:$0xff] }
 0x7bf   : > { %v13566_v18 = vmul.f32 %v22916_v37, %v23317_v4  ;;  %v13567_v29 = vmul.f32 %v22918_v31, %v23318_v8  ;;  %v13568_v13 = vmul.f32 %v22920_v16, %v22872_v51  ;;  %v13569_v55 = vmul.f32 %v22922_v53, %v22876_v33 }
 0x7c0   : > { %v13654_v58 = vmul.f32 %v22944_v9, %v13616_v12  ;;  %v13655_v57 = vmul.f32 %v22946_v20, %v13617_v61  ;;  %v13656_v3 = vmul.f32 %v22948_v38, %v13618_v45  ;;  %v13657_v7 = vmul.f32 %v22950_v24, %v13619_v35 }
 0x7c1   : > { %v13604_v40 = vadd.f32 %v22926_v15, %v13566_v18  ;;  %v13605_v59 = vadd.f32 %v22928_v25, %v13567_v29  ;;  %v13606_v60 = vadd.f32 %v22930_v49, %v13568_v13  ;;  %v13607_v43 = vadd.f32 %v22932_v22, %v13569_v55 }
 0x7c2   : > { %v13692_v51 = vadd.f32 %v22956_v11, %v13654_v58  ;;  %v13693_v33 = vadd.f32 %v22958_v17, %v13655_v57  ;;  %v13694_v46 = vadd.f32 %v22960_v54, %v13656_v3  ;;  %v13695_v2 = vadd.f32 %v22962_v41, %v13657_v7 }
 0x7c3   : > { %v13620_v47 = vmax.f32 %v13604_v40, 0.0  ;;  %v13621_v1 = vmax.f32 %v13605_v59, 0.0  ;;  %v13622_v21 = vmax.f32 %v13606_v60, 0.0  ;;  %v13623_v56 = vmax.f32 %v13607_v43, 0.0 }
 0x7c4   : > { %v13724_v36 = vcombine.low %v13692_v51, %v13693_v33  ;;  %v13726_v39 = vcombine.low %v13694_v46, %v13695_v2  ;;  %v16880_v6 = vcombine.low %v13693_v33, %v13693_v33  ;;  %v16881_v0 = vcombine.low %v13695_v2, %v13695_v2 }
 0x7c5   : > { %v13725_v50 = vcombine.high %v13692_v51, %v13693_v33  ;;  %v13727_v19 = vcombine.high %v13694_v46, %v13695_v2  ;;  %v16882_v27 = vcombine.high %v13693_v33, %v13693_v33  ;;  %v16883_v28 = vcombine.high %v13695_v2, %v13695_v2  ;;  %v23320_v51 = vld [vmem:[#allocation42_spill] sm:$0xff]  ;;  %v23321_v2 = vld [vmem:[#allocation43_spill] sm:$0xff] }
 0x7c6   : > { %v16896_v52 = vpack.c.bf16 %v16880_v6, %v13724_v36  ;;  %v16897_v62 = vpack.c.bf16 %v16881_v0, %v13726_v39  ;;  %v13658_v10 = vmul.f32 %v22944_v9, %v13620_v47  ;;  %v13659_v26 = vmul.f32 %v22946_v20, %v13621_v1 }
 0x7c7   : > { %v16898_v63 = vpack.c.bf16 %v16882_v27, %v13725_v50  ;;  %v16899_v14 = vpack.c.bf16 %v16883_v28, %v13727_v19  ;;  %v13660_v44 = vmul.f32 %v22948_v38, %v13622_v21  ;;  %v13661_v42 = vmul.f32 %v22950_v24, %v13623_v56 }
 0x7c8   : > { %v13860_v5 = vrot.slane %v16896_v52, %v23319_v32  ;;  %v13867_v12 = vrot.slane %v16897_v62, %v23319_v32  ;;  %v13696_v61 = vadd.f32 %v22956_v11, %v13658_v10  ;;  %v13697_v45 = vadd.f32 %v22958_v17, %v13659_v26  ;;  %v23322_v52 = vld [vmem:[#allocation48_spill] sm:$0xff] }
 0x7c9   : > { %v13877_v35 = vrot.slane %v16898_v63, %v23319_v32  ;;  %v13884_v4 = vrot.slane %v16899_v14, %v23319_v32  ;;  %v13698_v18 = vadd.f32 %v22960_v54, %v13660_v44  ;;  %v13699_v8 = vadd.f32 %v22962_v41, %v13661_v42 }
 0x7ca   : > { %v13868_v29 = vcombine.low %v13860_v5, %v13867_v12  ;;  %v13728_v13 = vcombine.low %v13696_v61, %v13697_v45  ;;  %v16884_v55 = vcombine.low %v13697_v45, %v13697_v45  ;;  %v13729_v58 = vcombine.high %v13696_v61, %v13697_v45  ;;  %v23323_v5 = vld [vmem:[#allocation46_spill] sm:$0xff] }
 0x7cb   : > { %v13885_v57 = vcombine.low %v13877_v35, %v13884_v4  ;;  %v13730_v3 = vcombine.low %v13698_v18, %v13699_v8  ;;  %v16885_v7 = vcombine.low %v13699_v8, %v13699_v8  ;;  %v13731_v40 = vcombine.high %v13698_v18, %v13699_v8 }
 0x7cc   : > { %13996 = vst [vmem:[%s20028_s24] sm:$0xff] %v13868_v29  ;;  %v16900_v59 = vpack.c.bf16 %v16884_v55, %v13728_v13  ;;  %v16886_v60 = vcombine.high %v13697_v45, %v13697_v45  ;;  %v16887_v43 = vcombine.high %v13699_v8, %v13699_v8  ;;  %v13570_v33 = vmul.f32 %v22916_v37, %v23320_v51 }
 0x7cd   : > { %13997 = vst [vmem:[%s20028_s24 + $0x8] sm:$0xff] %v13885_v57  ;;  %v16901_v46 = vpack.c.bf16 %v16885_v7, %v13730_v3  ;;  %v13571_v47 = vmul.f32 %v22918_v31, %v23321_v2  ;;  %v13572_v1 = vmul.f32 %v22920_v16, %v22879_v30  ;;  %v13573_v21 = vmul.f32 %v22922_v53, %v22882_v48 }
 0x7ce   : > { %v13894_v56 = vrot.slane %v16900_v59, %v23319_v32  ;;  %v16902_v36 = vpack.c.bf16 %v16886_v60, %v13729_v58  ;;  %v16903_v39 = vpack.c.bf16 %v16887_v43, %v13731_v40  ;;  %v13608_v6 = vadd.f32 %v22926_v15, %v13570_v33 }
 0x7cf   : > { %v13901_v0 = vrot.slane %v16901_v46, %v23319_v32  ;;  %v13609_v50 = vadd.f32 %v22928_v25, %v13571_v47  ;;  %v13610_v19 = vadd.f32 %v22930_v49, %v13572_v1  ;;  %v13611_v27 = vadd.f32 %v22932_v22, %v13573_v21 }
 0x7d0   : > { %v13911_v30 = vrot.slane %v16902_v36, %v23319_v32  ;;  %v13918_v28 = vrot.slane %v16903_v39, %v23319_v32  ;;  %v13624_v48 = vmax.f32 %v13608_v6, 0.0  ;;  %v13574_v62 = vmul.f32 %v22916_v37, %v23322_v52 }
 0x7d1   : > { %v13902_v10 = vcombine.low %v13894_v56, %v13901_v0  ;;  %v13625_v26 = vmax.f32 %v13609_v50, 0.0  ;;  %v13626_v63 = vmax.f32 %v13610_v19, 0.0  ;;  %v13627_v14 = vmax.f32 %v13611_v27, 0.0 }
 0x7d2   : > { %v13919_v44 = vcombine.low %v13911_v30, %v13918_v28  ;;  %v13662_v42 = vmul.f32 %v22944_v9, %v13624_v48  ;;  %v13575_v12 = vmul.f32 %v22918_v31, %v23323_v5  ;;  %v13576_v61 = vmul.f32 %v22920_v16, %v22886_v23 }
 0x7d3   : > { %13998 = vst [vmem:[%s20028_s24 + $0x10] sm:$0xff] %v13902_v10  ;;  %v13663_v45 = vmul.f32 %v22946_v20, %v13625_v26  ;;  %v13664_v35 = vmul.f32 %v22948_v38, %v13626_v63  ;;  %v13665_v37 = vmul.f32 %v22950_v24, %v13627_v14  ;;  %v13577_v4 = vmul.f32 %v22922_v53, %v22888_v34 }
 0x7d4   : > { %13999 = vst [vmem:[%s20028_s24 + $0x18] sm:$0xff] %v13919_v44  ;;  %v13700_v18 = vadd.f32 %v22956_v11, %v13662_v42  ;;  %v13612_v8 = vadd.f32 %v22926_v15, %v13574_v62  ;;  %v13613_v31 = vadd.f32 %v22928_v25, %v13575_v12  ;;  %v13614_v29 = vadd.f32 %v22930_v49, %v13576_v61 }
 0x7d5   : > { %v13701_v23 = vadd.f32 %v22958_v17, %v13663_v45  ;;  %v13702_v16 = vadd.f32 %v22960_v54, %v13664_v35  ;;  %v13703_v13 = vadd.f32 %v22962_v41, %v13665_v37  ;;  %v13615_v55 = vadd.f32 %v22932_v22, %v13577_v4 }
 0x7d6   : > { %v13628_v58 = vmax.f32 %v13612_v8, 0.0  ;;  %v13629_v57 = vmax.f32 %v13613_v31, 0.0  ;;  %v13630_v34 = vmax.f32 %v13614_v29, 0.0 }
 0x7d7   : > { %v13732_v53 = vcombine.low %v13700_v18, %v13701_v23  ;;  %v13734_v3 = vcombine.low %v13702_v16, %v13703_v13  ;;  %v16888_v7 = vcombine.low %v13701_v23, %v13701_v23  ;;  %v16889_v40 = vcombine.low %v13703_v13, %v13703_v13 }
 0x7d8   : > { %v13733_v15 = vcombine.high %v13700_v18, %v13701_v23  ;;  %v13735_v59 = vcombine.high %v13702_v16, %v13703_v13  ;;  %v16890_v25 = vcombine.high %v13701_v23, %v13701_v23  ;;  %v16891_v60 = vcombine.high %v13703_v13, %v13703_v13 }
 0x7d9   : > { %v16904_v49 = vpack.c.bf16 %v16888_v7, %v13732_v53  ;;  %v16905_v43 = vpack.c.bf16 %v16889_v40, %v13734_v3  ;;  %v13631_v51 = vmax.f32 %v13615_v55, 0.0  ;;  %v13666_v33 = vmul.f32 %v22944_v9, %v13628_v58 }
 0x7da   : > { %v16906_v46 = vpack.c.bf16 %v16890_v25, %v13733_v15  ;;  %v16907_v2 = vpack.c.bf16 %v16891_v60, %v13735_v59  ;;  %v13667_v22 = vmul.f32 %v22946_v20, %v13629_v57  ;;  %v13668_v47 = vmul.f32 %v22948_v38, %v13630_v34 }
 0x7db   : > { %v13928_v1 = vrot.slane %v16904_v49, %v23319_v32  ;;  %v13935_v21 = vrot.slane %v16905_v43, %v23319_v32  ;;  %v13669_v56 = vmul.f32 %v22950_v24, %v13631_v51  ;;  %v13704_v36 = vadd.f32 %v22956_v11, %v13666_v33 }
 0x7dc   : > { %v13945_v39 = vrot.slane %v16906_v46, %v23319_v32  ;;  %v13952_v9 = vrot.slane %v16907_v2, %v23319_v32  ;;  %v13705_v6 = vadd.f32 %v22958_v17, %v13667_v22  ;;  %v13706_v20 = vadd.f32 %v22960_v54, %v13668_v47 }
 0x7dd   : > { %v13936_v0 = vcombine.low %v13928_v1, %v13935_v21  ;;  %v13707_v38 = vadd.f32 %v22962_v41, %v13669_v56 }
 0x7de   : > { %v13953_v50 = vcombine.low %v13945_v39, %v13952_v9  ;;  %v13736_v19 = vcombine.low %v13704_v36, %v13705_v6  ;;  %v16892_v27 = vcombine.low %v13705_v6, %v13705_v6  ;;  %v13737_v30 = vcombine.high %v13704_v36, %v13705_v6 }
 0x7df   : > { %14000 = vst [vmem:[%s20028_s24 + $0x20] sm:$0xff] %v13936_v0  ;;  %v13738_v24 = vcombine.low %v13706_v20, %v13707_v38  ;;  %v16893_v11 = vcombine.low %v13707_v38, %v13707_v38  ;;  %v13739_v28 = vcombine.high %v13706_v20, %v13707_v38  ;;  %v16894_v48 = vcombine.high %v13705_v6, %v13705_v6 }
 0x7e0   : > { %14001 = vst [vmem:[%s20028_s24 + $0x28] sm:$0xff] %v13953_v50  ;;  %v16908_v52 = vpack.c.bf16 %v16892_v27, %v13736_v19  ;;  %v16895_v62 = vcombine.high %v13707_v38, %v13707_v38 }
 0x7e1   : > { %v16909_v17 = vpack.c.bf16 %v16893_v11, %v13738_v24  ;;  %v16910_v10 = vpack.c.bf16 %v16894_v48, %v13737_v30 }
 0x7e2   : > { %v13962_v54 = vrot.slane %v16908_v52, %v23319_v32  ;;  %v16911_v26 = vpack.c.bf16 %v16895_v62, %v13739_v28 }
 0x7e3   : > { %v13969_v41 = vrot.slane %v16909_v17, %v23319_v32  ;;  %v13979_v63 = vrot.slane %v16910_v10, %v23319_v32 }
 0x7e4   : > { %v13986_v14 = vrot.slane %v16911_v26, %v23319_v32 }
 0x7e5   : > { %v13970_v44 = vcombine.low %v13962_v54, %v13969_v41 }
 0x7e6   : > { %v13987_v42 = vcombine.low %v13979_v63, %v13986_v14 }
 0x7e7   : > { %14002 = vst [vmem:[%s20028_s24 + $0x30] sm:$0xff] %v13970_v44 }
 0x7e8   : > { %14003 = vst [vmem:[%s20028_s24 + $0x38] sm:$0xff] %v13987_v42 }
 0x7e9 PF: > { %s23324_s21 = sld [smem:[#allocation28_spill]]  ;;  %s14021_s14 = sshll.u32 %s20028_s24, 4  ;;  %s23063_s14 = int_to_ptr.vmem [resolvable:$true] %s14021_s14 }
 0x7ea   : > { %s23325_s25 = sld [smem:[#allocation36_spill]]  ;;  %s14005_s11 = scalar_lea.sflag [#allocation5], %s20005_s27 }
 0x7eb   : > { %s23326_s12 = sld [smem:[#allocation84_spill]]  ;;  %s19514_s7 = scalar_lea.vmem %s23063_s14, 1024 }
 0x7ec   : > { %p19515_p10 = scmp.ne.s32.totalorder %s23063_s14, %s19514_s7  ;;  %s19692_s22 = smov [#allocation14]  }
 0x7ed   : > { %s19518_s6 = sshll.u32 %s19692_s22, 4  ;;  %s19519_s6 = int_to_ptr.vmem [resolvable:$false] %s19518_s6 }
 0x7ee   : > { %s19520_s20 = scalar_lea.vmem %s19519_s6, 2048  ;;  %p19521_p5 = scmp.lt.s32.totalorder %s23063_s14, %s19519_s6 }
 0x7ef   : > { %s16923_s17 = sshll.u32 %s23324_s21, 7  ;;  %p19522_p6 = scmp.lt.s32.totalorder %s19520_s20, %s19514_s7 }
 0x7f0   : > { %p23327_p11 = scmp.ne.s32.totalorder %s23325_s25, 0 }
 0x7f1   : > { %s23060_s19 = scalar_lea.hbm %s23326_s12, %s16923_s17  ;;  %p19523_p9 = por %p19522_p6, %p19521_p5 }
 0x7f2   : > { %p19516_p7 = pnand %p19515_p10, %p23327_p11 }
 0x7f4   : > { %p19517_p1 = pneg %p19516_p7 }
 0x7f6   : > { %p19524_p2 = pnand %p19523_p9, %p19517_p1 }
 0x7f8   : > { %19527 = shalt.err (!%p19524_p2)
}
 0x7f9   : > { %s19528_s18 = scalar_lea.hbm %s23060_s19, 1024  ;;  %s19532_s0 = scalar_lea.hbm %s23326_s12, 2048 }
 0x7fa   : > { %p19529_p3 = scmp.ne.s32.totalorder %s23060_s19, %s19528_s18  ;;  %p19533_p8 = scmp.lt.s32.totalorder %s23060_s19, %s23326_s12 }
 0x7fb   : > { %p19534_p0 = scmp.lt.s32.totalorder %s19532_s0, %s19528_s18 }
 0x7fc   : > { %p19530_p13 = pnand %p19529_p3, %p23327_p11 }
 0x7fd   : > { %p19535_p4 = por %p19534_p0, %p19533_p8 }
 0x7fe   : > { %p19531_p12 = pneg %p19530_p13 }
 0x800   : > { %p19536_p10 = pnand %p19535_p4, %p19531_p12 }
 0x802   : > { %19539 = shalt.err (!%p19536_p10)
}
 0x803   : > { %s19693_s17 = smov 128   ;;  %s19694_s16 = smov 256  }
 0x804   : > { %s19695_s30 = smov 8  }
 0x805   : > { %16947 = dma.vmem_to_hbm [thread:$0]  (%p23327_p11), %s23063_s14, 1024, %s23060_s19, %s14005_s11, %s19693_s17, %s19694_s16, %s19695_s30  }
 0x806 PF: > { %s23328_s7 = sld [smem:[#allocation24_spill]]  ;;  %p16953_p7 = scmp.ge.s32.totalorder %s19674_s10, 2 }
 0x807   : > { %s23329_s22 = sld [smem:[#allocation37_spill]] }
 0x80c   : > { %s14036_s6 = sand.u32 1, %s23328_s7  }
 0x80d   : > { %p23330_p1 = scmp.ne.s32.totalorder %s23329_s22, 0  ;;  %s14037_s20 = scalar_lea.sflag [#allocation5], %s14036_s6 }
 0x80f   : > { %p16950_p5 = pnand %p16953_p7, %p23330_p1 }
 0x811   : > { %p16951_p6 = pneg %p16950_p5 }
 0x813   : > { %19617 = dma.done.wait (%p16951_p6), %s14037_s20, 1024  }
 0x814   : > { %19619 = vsyncadd (%p16951_p6), %s14037_s20, 4294966272  ;;  %s31_s10 = sadd.s32 1, %s19674_s10   ;;  %s23332_s21 = sld [smem:[#allocation25_spill]] }
 0x815   : > { %p23093_p9 = scmp.ge.s32.totalorder %s31_s10, 8   ;;  %s23333_s27 = sld [smem:[#allocation34_spill]] }
 0x816   : > { %s23334_s24 = sld [smem:[#allocation26_spill]]  ;;  %s23339_s22 = smov %s19630_s23 }
 0x817   : > { %s23335_s19 = sld [smem:[#allocation32_spill]]  ;;  %s23341_s25 = smov %s19642_s26 }
 0x818   : > { %s23336_s14 = sld [smem:[#allocation31_spill]]  ;;  %s23346_s30 = smov %s19666_s8 }
 0x819   : > { %s23337_s11 = sld [smem:[#allocation29_spill]]  ;;  %s23347_s7 = smov %s19670_s9 }
 0x81a   : > { %s23338_s15 = sld [smem:[#allocation30_spill]] }
 0x81b   : > { %s23340_s23 = smov %s23333_s27  ;;  %s23343_s27 = smov %s19650_s28 }
 0x81c   : > { %s23344_s28 = smov %s19654_s29  ;;  %30 = sbr.rel (!%p23093_p9) target bundleno = 19 (0x13), region = 171 }
 0x81d   : > { %s23342_s26 = smov %s23335_s19 }
 0x81e   : > { %s23345_s29 = smov %s23336_s14 }
 0x81f   : > { %s23348_s8 = smov %s23337_s11 }
 0x820   : > { %s23349_s9 = smov %s23338_s15 }
 0x821   :  { %14042 = vsyncpa [#allocation4], 1 }
 0x822   :  { %14044 = vsyncpa [#allocation4 + $0x1], 1 }
 0x823   :  { %14045 = vsyncpa [#allocation7], 1 }
 0x824   :  { %14047 = vsyncpa [#allocation7 + $0x1], 1 }
 0x825   :  { %14048 = vsyncpa [#allocation10], 1 }
 0x826   :  { %14050 = vsyncpa [#allocation10 + $0x1], 1 }
 0x827   :  { %14051 = vsyncpa [#allocation13], 1 }
 0x828   :  { %14053 = vsyncpa [#allocation13 + $0x1], 1 }
 0x829   :  { %14054 = vsyncpa [#allocation5], 1 }
 0x82a   :  { %14056 = vsyncpa [#allocation5 + $0x1], 1 }

</bundles_post_ra>
